<compile_context>
chip_gen: v6e
topology: v6e:2x2x1
jax: 0.10.0
libtpu: 0.0.40
codegen_flags: <defaults>
</compile_context>

<pallas_src>
import functools

import jax
import jax.numpy as jnp
from jax.experimental import pallas as pl
from jax.experimental.pallas import tpu as pltpu

EPS = 1e-5
PAD = 128            # lane-dense padded feature width
SLAB_ROWS = PAD + 16 # weight rows + (bias, gamma, beta) rows, 16-sublane aligned for bf16
ROW_B, ROW_G, ROW_BT = PAD, PAD + 1, PAD + 2


def _dqn_kernel(hidden_widths, x_ref, p_ref, out_ref):
    """Fused MLP forward on one batch tile.

    x_ref:   [TB, PAD]            f32  (features zero-padded to PAD lanes)
    p_ref:   [L, SLAB_ROWS, PAD]  bf16 packed (weight / bias / gamma / beta)
    out_ref: [TB, PAD]            f32  (first n_actions lanes are the real output)
    """
    h = x_ref[...]  # f32

    for l, width in enumerate(hidden_widths):
        w = p_ref[l, :PAD, :]                                     # bf16 [PAD, PAD]
        vec = p_ref[l, ROW_B:ROW_BT + 1, :].astype(jnp.float32)   # [3, PAD]
        b, g, bt = vec[0:1, :], vec[1:2, :], vec[2:3, :]          # each used once

        # Linear (MXU, bf16 x bf16 -> f32 accumulate).  Padded lanes of h and
        # padded rows/cols of w are zero, so padded output lanes are exactly 0.
        h = jnp.dot(h.astype(jnp.bfloat16), w,
                    preferred_element_type=jnp.float32) + b

        # LayerNorm over the TRUE width (no lane mask).  Padded lanes of h are
        # exactly 0, so sum(h) is already the true-width sum; sum(diff^2)
        # over-counts by (PAD - width) * mu^2 from the padded lanes.
        inv_w = 1.0 / float(width)
        mu = jnp.sum(h, axis=-1, keepdims=True) * inv_w
        diff = h - mu
        var = (jnp.sum(diff * diff, axis=-1, keepdims=True)
               - float(PAD - width) * mu * mu) * inv_w
        # gamma/beta are 0 in padded lanes -> padded lanes return to exactly 0.
        h = diff * jax.lax.rsqrt(var + EPS) * g + bt

        # ReLU6; Dropout is identity in inference mode.
        # TODO(synk): training-mode dropout would use pltpu.prng_seed/prng_random_bits.
        h = jnp.clip(h, 0.0, 6.0)

    # Final Linear (no LayerNorm / activation).
    l = len(hidden_widths)
    w = p_ref[l, :PAD, :]
    b = p_ref[l, ROW_B:ROW_B + 1, :].astype(jnp.float32)
    y = jnp.dot(h.astype(jnp.bfloat16), w, preferred_element_type=jnp.float32) + b
    out_ref[...] = y.astype(out_ref.dtype)


def _num_parallel_cores():
    """Heuristic TensorCore count per device for batch-tile splitting."""
    try:
        kind = jax.devices()[0].device_kind.lower()
    except Exception:
        return 1
    if "lite" in kind or "v5e" in kind or "v6e" in kind or "v6 lite" in kind:
        return 1
    if "v7" in kind or "v4" in kind or "v5p" in kind:
        return 2
    return 1


def dqn_forward(x, p_slab, layer_specs, n_actions):
    """x: [B, D] float32.  p_slab: [L, SLAB_ROWS, PAD] bfloat16."""
    B, D = x.shape
    L = p_slab.shape[0]
    hidden_widths = tuple(fo for (_, fo, ln) in layer_specs if ln)

    # Batch tiling: as few grid steps as possible (grid=(1,) on single-TC
    # chips), but keep one tile per TensorCore on multi-TC chips so the
    # "parallel" grid axis can shard them.  VMEM is a non-issue (~1 MB total).
    num_cores = _num_parallel_cores()
    max_tb = 1024
    n_tiles = max(num_cores, pl.cdiv(B, max_tb))
    tb = max(8, ((-(-B // n_tiles) + 7) // 8) * 8)   # ceil(B/n_tiles), sublane-aligned
    b_pad = pl.cdiv(B, tb) * tb
    grid = (b_pad // tb,)

    # Pad batch rows and feature lanes to a lane-dense [b_pad, PAD] slab.
    x_p = jnp.pad(x.astype(jnp.float32), ((0, b_pad - B), (0, PAD - D)))

    # True (unpadded) cost hint for XLA scheduling around this tiny call.
    flops = 2 * B * sum(fi * fo for (fi, fo, _) in layer_specs)
    transcendentals = B * sum(1 for (_, _, ln) in layer_specs if ln)
    bytes_accessed = x_p.size * 4 + p_slab.size * 2 + b_pad * PAD * 4

    kernel = functools.partial(_dqn_kernel, hidden_widths)

    out = pl.pallas_call(
        kernel,
        out_shape=jax.ShapeDtypeStruct((b_pad, PAD), jnp.float32),
        grid_spec=pl.GridSpec(
            grid=grid,
            in_specs=[
                # Activations: tiled over the batch grid axis.
                pl.BlockSpec((tb, PAD), lambda i: (i, 0)),
                # Single packed parameter slab: constant index map keeps it
                # VMEM-resident across all grid steps (one DMA total).
                pl.BlockSpec((L, SLAB_ROWS, PAD), lambda i: (0, 0, 0)),
            ],
            out_specs=pl.BlockSpec((tb, PAD), lambda i: (i, 0)),
        ),
        compiler_params=pltpu.CompilerParams(
            dimension_semantics=("parallel",)),
        cost_estimate=pl.CostEstimate(
            flops=flops,
            transcendentals=transcendentals,
            bytes_accessed=bytes_accessed),
    )(x_p, p_slab)

    return out[:B, :n_actions]


def init_params(key, layer_specs):
    """Deterministic f32 parameters matching DeepQNetwork.init_weights()."""
    params = []
    for fan_in, fan_out, has_ln in layer_specs:
        key, sub = jax.random.split(key)
        # kaiming_uniform_(nonlinearity='relu'): bound = sqrt(2) * sqrt(3/fan_in)
        bound = (6.0 / fan_in) ** 0.5
        w = jax.random.uniform(sub, (fan_in, fan_out), jnp.float32, -bound, bound)
        b = jnp.zeros((fan_out,), jnp.float32)
        g = jnp.ones((fan_out,), jnp.float32) if has_ln else None
        bt = jnp.zeros((fan_out,), jnp.float32) if has_ln else None
        params.append((w, b, g, bt))
    return params


def pack_params(params, layer_specs):
    """Pack per-layer params into one bf16 slab [L, SLAB_ROWS, PAD]."""
    L = len(params)
    slab = jnp.zeros((L, SLAB_ROWS, PAD), jnp.float32)
    for l, ((w, b, g, bt), (fan_in, fan_out, has_ln)) in enumerate(zip(params, layer_specs)):
        slab = slab.at[l, :fan_in, :fan_out].set(w)       # pre-transposed [in, out]
        slab = slab.at[l, ROW_B, :fan_out].set(b)
        if has_ln:
            slab = slab.at[l, ROW_G, :fan_out].set(g)     # gamma=1 on true lanes only
            slab = slab.at[l, ROW_BT, :fan_out].set(bt)
    return slab.astype(jnp.bfloat16)


def reference_forward(x, params, layer_specs):
    """Pure-JAX f32 reference (identical math to the torch module in eval mode)."""
    h = x.astype(jnp.float32)
    for (w, b, g, bt), (fan_in, fan_out, has_ln) in zip(params, layer_specs):
        h = h @ w + b
        if has_ln:
            mu = jnp.mean(h, axis=-1, keepdims=True)
            var = jnp.mean((h - mu) ** 2, axis=-1, keepdims=True)
            h = (h - mu) * jax.lax.rsqrt(var + EPS) * g + bt
            h = jnp.clip(h, 0.0, 6.0)
    return h


if __name__ == "__main__":
    # input_dims=(32,), fc1=64, fc2=48, fc3=32, n_actions=8, batch=256.
    B = 256
    D = 32
    fc1, fc2, fc3 = 64, 48, 32
    n_actions = 8

    layer_specs = [
        (D, fc1, True),
        (fc1, fc2, True),
        (fc2, fc3, True),
        (fc3, fc2, True),
        (fc2, fc1, True),
        (fc1, D, True),
        (D, n_actions, False),
    ]

    key = jax.random.PRNGKey(0)
    key, xkey = jax.random.split(key)
    x = jax.random.normal(xkey, (B, D), jnp.float32)

    params = init_params(key, layer_specs)
    p_slab = pack_params(params, layer_specs)

    y = dqn_forward(x, p_slab, layer_specs, n_actions)
    y = jax.block_until_ready(y)

    y_ref = reference_forward(x, params, layer_specs)
    assert y.shape == (B, n_actions)

    # bf16 MXU operands vs. pure-f32 reference: allow ~a few % relative error.
    max_err = float(jnp.max(jnp.abs(y - y_ref)))
    scale = float(jnp.max(jnp.abs(y_ref)))
    assert max_err <= 0.05 * max(scale, 1.0), f"mismatch: {max_err} vs scale {scale}"

    print("KERNEL_OK")
</pallas_src>

<mosaic_0001>
module attributes {stable_mosaic.version = 11 : i64} {
  func.func @_dqn_kernel(%arg0: i32, %arg1: memref<256x128xf32, #tpu.memory_space<vmem>>, %arg2: memref<7x144x128xbf16, #tpu.memory_space<vmem>>, %arg3: memref<256x128xf32, #tpu.memory_space<vmem>>) attributes {dimension_semantics = [#tpu.dimension_semantics<parallel>], iteration_bounds = array<i64: 1>, scalar_prefetch = 0 : i64, scratch_operands = 0 : i64, tpu.core_type = #tpu.core_type<tc>, window_params = [{transform_indices = @transform_0, window_bounds = array<i64: 256, 128>}, {pipeline_mode = #tpu.pipeline_mode<synchronous>, transform_indices = @transform_1, window_bounds = array<i64: 7, 144, 128>}, {transform_indices = @transform_2, window_bounds = array<i64: 256, 128>}]} {
    %c0 = arith.constant 0 : index
    %c0_0 = arith.constant 0 : index
    %0 = vector.load %arg1[%c0, %c0_0] : memref<256x128xf32, #tpu.memory_space<vmem>>, vector<256x128xf32>
    %c0_1 = arith.constant 0 : index
    %c0_2 = arith.constant 0 : index
    %c0_3 = arith.constant 0 : index
    %1 = vector.load %arg2[%c0_1, %c0_2, %c0_3] : memref<7x144x128xbf16, #tpu.memory_space<vmem>>, vector<1x128x128xbf16>
    %2 = vector.shape_cast %1 : vector<1x128x128xbf16> to vector<128x128xbf16>
    %c0_4 = arith.constant 0 : index
    %c128 = arith.constant 128 : index
    %c0_5 = arith.constant 0 : index
    %3 = vector.load %arg2[%c0_4, %c128, %c0_5] : memref<7x144x128xbf16, #tpu.memory_space<vmem>>, vector<1x3x128xbf16>
    %4 = vector.shape_cast %3 : vector<1x3x128xbf16> to vector<3x128xbf16>
    %5 = arith.extf %4 : vector<3x128xbf16> to vector<3x128xf32>
    %6 = vector.extract_strided_slice %5 {offsets = [0, 0], sizes = [1, 128], strides = [1, 1]} : vector<3x128xf32> to vector<1x128xf32>
    %7 = vector.extract_strided_slice %5 {offsets = [1, 0], sizes = [1, 128], strides = [1, 1]} : vector<3x128xf32> to vector<1x128xf32>
    %8 = vector.extract_strided_slice %5 {offsets = [2, 0], sizes = [1, 128], strides = [1, 1]} : vector<3x128xf32> to vector<1x128xf32>
    %9 = arith.truncf %0 : vector<256x128xf32> to vector<256x128xbf16>
    %cst = arith.constant dense<0.000000e+00> : vector<256x128xf32>
    %10 = tpu.matmul %9, %2, %cst {dimension_numbers = #tpu.dot_dimension_numbers<[1], [0], [0], [1], [0, 0, 1, 1], [], []>} : vector<256x128xbf16>, vector<128x128xbf16>, vector<256x128xf32> -> vector<256x128xf32>
    %11 = vector.broadcast %6 : vector<1x128xf32> to vector<256x128xf32>
    %12 = arith.addf %10, %11 : vector<256x128xf32>
    %cst_6 = arith.constant dense<0.000000e+00> : vector<256xf32>
    %13 = vector.multi_reduction <add>, %12, %cst_6 [1] : vector<256x128xf32> to vector<256xf32>
    %14 = vector.shape_cast %13 : vector<256xf32> to vector<256x1xf32>
    %cst_7 = arith.constant 1.562500e-02 : f32
    %15 = vector.broadcast %cst_7 : f32 to vector<256x1xf32>
    %16 = arith.mulf %14, %15 : vector<256x1xf32>
    %17 = vector.broadcast %16 : vector<256x1xf32> to vector<256x128xf32>
    %18 = arith.subf %12, %17 : vector<256x128xf32>
    %19 = arith.mulf %18, %18 : vector<256x128xf32>
    %cst_8 = arith.constant dense<0.000000e+00> : vector<256xf32>
    %20 = vector.multi_reduction <add>, %19, %cst_8 [1] : vector<256x128xf32> to vector<256xf32>
    %21 = vector.shape_cast %20 : vector<256xf32> to vector<256x1xf32>
    %cst_9 = arith.constant 6.400000e+01 : f32
    %22 = vector.broadcast %cst_9 : f32 to vector<256x1xf32>
    %23 = arith.mulf %22, %16 : vector<256x1xf32>
    %24 = arith.mulf %23, %16 : vector<256x1xf32>
    %25 = arith.subf %21, %24 : vector<256x1xf32>
    %cst_10 = arith.constant 1.562500e-02 : f32
    %26 = vector.broadcast %cst_10 : f32 to vector<256x1xf32>
    %27 = arith.mulf %25, %26 : vector<256x1xf32>
    %cst_11 = arith.constant 9.99999974E-6 : f32
    %28 = vector.broadcast %cst_11 : f32 to vector<256x1xf32>
    %29 = arith.addf %27, %28 : vector<256x1xf32>
    %30 = math.rsqrt %29 : vector<256x1xf32>
    %31 = vector.broadcast %30 : vector<256x1xf32> to vector<256x128xf32>
    %32 = arith.mulf %18, %31 : vector<256x128xf32>
    %33 = vector.broadcast %7 : vector<1x128xf32> to vector<256x128xf32>
    %34 = arith.mulf %32, %33 : vector<256x128xf32>
    %35 = vector.broadcast %8 : vector<1x128xf32> to vector<256x128xf32>
    %36 = arith.addf %34, %35 : vector<256x128xf32>
    %cst_12 = arith.constant 0.000000e+00 : f32
    %cst_13 = arith.constant 6.000000e+00 : f32
    %37 = vector.broadcast %cst_12 : f32 to vector<256x128xf32>
    %38 = arith.maximumf %37, %36 : vector<256x128xf32>
    %39 = vector.broadcast %cst_13 : f32 to vector<256x128xf32>
    %40 = arith.minimumf %39, %38 : vector<256x128xf32>
    %c1 = arith.constant 1 : index
    %c0_14 = arith.constant 0 : index
    %c0_15 = arith.constant 0 : index
    %41 = vector.load %arg2[%c1, %c0_14, %c0_15] : memref<7x144x128xbf16, #tpu.memory_space<vmem>>, vector<1x128x128xbf16>
    %42 = vector.shape_cast %41 : vector<1x128x128xbf16> to vector<128x128xbf16>
    %c1_16 = arith.constant 1 : index
    %c128_17 = arith.constant 128 : index
    %c0_18 = arith.constant 0 : index
    %43 = vector.load %arg2[%c1_16, %c128_17, %c0_18] : memref<7x144x128xbf16, #tpu.memory_space<vmem>>, vector<1x3x128xbf16>
    %44 = vector.shape_cast %43 : vector<1x3x128xbf16> to vector<3x128xbf16>
    %45 = arith.extf %44 : vector<3x128xbf16> to vector<3x128xf32>
    %46 = vector.extract_strided_slice %45 {offsets = [0, 0], sizes = [1, 128], strides = [1, 1]} : vector<3x128xf32> to vector<1x128xf32>
    %47 = vector.extract_strided_slice %45 {offsets = [1, 0], sizes = [1, 128], strides = [1, 1]} : vector<3x128xf32> to vector<1x128xf32>
    %48 = vector.extract_strided_slice %45 {offsets = [2, 0], sizes = [1, 128], strides = [1, 1]} : vector<3x128xf32> to vector<1x128xf32>
    %49 = arith.truncf %40 : vector<256x128xf32> to vector<256x128xbf16>
    %cst_19 = arith.constant dense<0.000000e+00> : vector<256x128xf32>
    %50 = tpu.matmul %49, %42, %cst_19 {dimension_numbers = #tpu.dot_dimension_numbers<[1], [0], [0], [1], [0, 0, 1, 1], [], []>} : vector<256x128xbf16>, vector<128x128xbf16>, vector<256x128xf32> -> vector<256x128xf32>
    %51 = vector.broadcast %46 : vector<1x128xf32> to vector<256x128xf32>
    %52 = arith.addf %50, %51 : vector<256x128xf32>
    %cst_20 = arith.constant dense<0.000000e+00> : vector<256xf32>
    %53 = vector.multi_reduction <add>, %52, %cst_20 [1] : vector<256x128xf32> to vector<256xf32>
    %54 = vector.shape_cast %53 : vector<256xf32> to vector<256x1xf32>
    %cst_21 = arith.constant 0.020833334 : f32
    %55 = vector.broadcast %cst_21 : f32 to vector<256x1xf32>
    %56 = arith.mulf %54, %55 : vector<256x1xf32>
    %57 = vector.broadcast %56 : vector<256x1xf32> to vector<256x128xf32>
    %58 = arith.subf %52, %57 : vector<256x128xf32>
    %59 = arith.mulf %58, %58 : vector<256x128xf32>
    %cst_22 = arith.constant dense<0.000000e+00> : vector<256xf32>
    %60 = vector.multi_reduction <add>, %59, %cst_22 [1] : vector<256x128xf32> to vector<256xf32>
    %61 = vector.shape_cast %60 : vector<256xf32> to vector<256x1xf32>
    %cst_23 = arith.constant 8.000000e+01 : f32
    %62 = vector.broadcast %cst_23 : f32 to vector<256x1xf32>
    %63 = arith.mulf %62, %56 : vector<256x1xf32>
    %64 = arith.mulf %63, %56 : vector<256x1xf32>
    %65 = arith.subf %61, %64 : vector<256x1xf32>
    %cst_24 = arith.constant 0.020833334 : f32
    %66 = vector.broadcast %cst_24 : f32 to vector<256x1xf32>
    %67 = arith.mulf %65, %66 : vector<256x1xf32>
    %cst_25 = arith.constant 9.99999974E-6 : f32
    %68 = vector.broadcast %cst_25 : f32 to vector<256x1xf32>
    %69 = arith.addf %67, %68 : vector<256x1xf32>
    %70 = math.rsqrt %69 : vector<256x1xf32>
    %71 = vector.broadcast %70 : vector<256x1xf32> to vector<256x128xf32>
    %72 = arith.mulf %58, %71 : vector<256x128xf32>
    %73 = vector.broadcast %47 : vector<1x128xf32> to vector<256x128xf32>
    %74 = arith.mulf %72, %73 : vector<256x128xf32>
    %75 = vector.broadcast %48 : vector<1x128xf32> to vector<256x128xf32>
    %76 = arith.addf %74, %75 : vector<256x128xf32>
    %cst_26 = arith.constant 0.000000e+00 : f32
    %cst_27 = arith.constant 6.000000e+00 : f32
    %77 = vector.broadcast %cst_26 : f32 to vector<256x128xf32>
    %78 = arith.maximumf %77, %76 : vector<256x128xf32>
    %79 = vector.broadcast %cst_27 : f32 to vector<256x128xf32>
    %80 = arith.minimumf %79, %78 : vector<256x128xf32>
    %c2 = arith.constant 2 : index
    %c0_28 = arith.constant 0 : index
    %c0_29 = arith.constant 0 : index
    %81 = vector.load %arg2[%c2, %c0_28, %c0_29] : memref<7x144x128xbf16, #tpu.memory_space<vmem>>, vector<1x128x128xbf16>
    %82 = vector.shape_cast %81 : vector<1x128x128xbf16> to vector<128x128xbf16>
    %c2_30 = arith.constant 2 : index
    %c128_31 = arith.constant 128 : index
    %c0_32 = arith.constant 0 : index
    %83 = vector.load %arg2[%c2_30, %c128_31, %c0_32] : memref<7x144x128xbf16, #tpu.memory_space<vmem>>, vector<1x3x128xbf16>
    %84 = vector.shape_cast %83 : vector<1x3x128xbf16> to vector<3x128xbf16>
    %85 = arith.extf %84 : vector<3x128xbf16> to vector<3x128xf32>
    %86 = vector.extract_strided_slice %85 {offsets = [0, 0], sizes = [1, 128], strides = [1, 1]} : vector<3x128xf32> to vector<1x128xf32>
    %87 = vector.extract_strided_slice %85 {offsets = [1, 0], sizes = [1, 128], strides = [1, 1]} : vector<3x128xf32> to vector<1x128xf32>
    %88 = vector.extract_strided_slice %85 {offsets = [2, 0], sizes = [1, 128], strides = [1, 1]} : vector<3x128xf32> to vector<1x128xf32>
    %89 = arith.truncf %80 : vector<256x128xf32> to vector<256x128xbf16>
    %cst_33 = arith.constant dense<0.000000e+00> : vector<256x128xf32>
    %90 = tpu.matmul %89, %82, %cst_33 {dimension_numbers = #tpu.dot_dimension_numbers<[1], [0], [0], [1], [0, 0, 1, 1], [], []>} : vector<256x128xbf16>, vector<128x128xbf16>, vector<256x128xf32> -> vector<256x128xf32>
    %91 = vector.broadcast %86 : vector<1x128xf32> to vector<256x128xf32>
    %92 = arith.addf %90, %91 : vector<256x128xf32>
    %cst_34 = arith.constant dense<0.000000e+00> : vector<256xf32>
    %93 = vector.multi_reduction <add>, %92, %cst_34 [1] : vector<256x128xf32> to vector<256xf32>
    %94 = vector.shape_cast %93 : vector<256xf32> to vector<256x1xf32>
    %cst_35 = arith.constant 3.125000e-02 : f32
    %95 = vector.broadcast %cst_35 : f32 to vector<256x1xf32>
    %96 = arith.mulf %94, %95 : vector<256x1xf32>
    %97 = vector.broadcast %96 : vector<256x1xf32> to vector<256x128xf32>
    %98 = arith.subf %92, %97 : vector<256x128xf32>
    %99 = arith.mulf %98, %98 : vector<256x128xf32>
    %cst_36 = arith.constant dense<0.000000e+00> : vector<256xf32>
    %100 = vector.multi_reduction <add>, %99, %cst_36 [1] : vector<256x128xf32> to vector<256xf32>
    %101 = vector.shape_cast %100 : vector<256xf32> to vector<256x1xf32>
    %cst_37 = arith.constant 9.600000e+01 : f32
    %102 = vector.broadcast %cst_37 : f32 to vector<256x1xf32>
    %103 = arith.mulf %102, %96 : vector<256x1xf32>
    %104 = arith.mulf %103, %96 : vector<256x1xf32>
    %105 = arith.subf %101, %104 : vector<256x1xf32>
    %cst_38 = arith.constant 3.125000e-02 : f32
    %106 = vector.broadcast %cst_38 : f32 to vector<256x1xf32>
    %107 = arith.mulf %105, %106 : vector<256x1xf32>
    %cst_39 = arith.constant 9.99999974E-6 : f32
    %108 = vector.broadcast %cst_39 : f32 to vector<256x1xf32>
    %109 = arith.addf %107, %108 : vector<256x1xf32>
    %110 = math.rsqrt %109 : vector<256x1xf32>
    %111 = vector.broadcast %110 : vector<256x1xf32> to vector<256x128xf32>
    %112 = arith.mulf %98, %111 : vector<256x128xf32>
    %113 = vector.broadcast %87 : vector<1x128xf32> to vector<256x128xf32>
    %114 = arith.mulf %112, %113 : vector<256x128xf32>
    %115 = vector.broadcast %88 : vector<1x128xf32> to vector<256x128xf32>
    %116 = arith.addf %114, %115 : vector<256x128xf32>
    %cst_40 = arith.constant 0.000000e+00 : f32
    %cst_41 = arith.constant 6.000000e+00 : f32
    %117 = vector.broadcast %cst_40 : f32 to vector<256x128xf32>
    %118 = arith.maximumf %117, %116 : vector<256x128xf32>
    %119 = vector.broadcast %cst_41 : f32 to vector<256x128xf32>
    %120 = arith.minimumf %119, %118 : vector<256x128xf32>
    %c3 = arith.constant 3 : index
    %c0_42 = arith.constant 0 : index
    %c0_43 = arith.constant 0 : index
    %121 = vector.load %arg2[%c3, %c0_42, %c0_43] : memref<7x144x128xbf16, #tpu.memory_space<vmem>>, vector<1x128x128xbf16>
    %122 = vector.shape_cast %121 : vector<1x128x128xbf16> to vector<128x128xbf16>
    %c3_44 = arith.constant 3 : index
    %c128_45 = arith.constant 128 : index
    %c0_46 = arith.constant 0 : index
    %123 = vector.load %arg2[%c3_44, %c128_45, %c0_46] : memref<7x144x128xbf16, #tpu.memory_space<vmem>>, vector<1x3x128xbf16>
    %124 = vector.shape_cast %123 : vector<1x3x128xbf16> to vector<3x128xbf16>
    %125 = arith.extf %124 : vector<3x128xbf16> to vector<3x128xf32>
    %126 = vector.extract_strided_slice %125 {offsets = [0, 0], sizes = [1, 128], strides = [1, 1]} : vector<3x128xf32> to vector<1x128xf32>
    %127 = vector.extract_strided_slice %125 {offsets = [1, 0], sizes = [1, 128], strides = [1, 1]} : vector<3x128xf32> to vector<1x128xf32>
    %128 = vector.extract_strided_slice %125 {offsets = [2, 0], sizes = [1, 128], strides = [1, 1]} : vector<3x128xf32> to vector<1x128xf32>
    %129 = arith.truncf %120 : vector<256x128xf32> to vector<256x128xbf16>
    %cst_47 = arith.constant dense<0.000000e+00> : vector<256x128xf32>
    %130 = tpu.matmul %129, %122, %cst_47 {dimension_numbers = #tpu.dot_dimension_numbers<[1], [0], [0], [1], [0, 0, 1, 1], [], []>} : vector<256x128xbf16>, vector<128x128xbf16>, vector<256x128xf32> -> vector<256x128xf32>
    %131 = vector.broadcast %126 : vector<1x128xf32> to vector<256x128xf32>
    %132 = arith.addf %130, %131 : vector<256x128xf32>
    %cst_48 = arith.constant dense<0.000000e+00> : vector<256xf32>
    %133 = vector.multi_reduction <add>, %132, %cst_48 [1] : vector<256x128xf32> to vector<256xf32>
    %134 = vector.shape_cast %133 : vector<256xf32> to vector<256x1xf32>
    %cst_49 = arith.constant 0.020833334 : f32
    %135 = vector.broadcast %cst_49 : f32 to vector<256x1xf32>
    %136 = arith.mulf %134, %135 : vector<256x1xf32>
    %137 = vector.broadcast %136 : vector<256x1xf32> to vector<256x128xf32>
    %138 = arith.subf %132, %137 : vector<256x128xf32>
    %139 = arith.mulf %138, %138 : vector<256x128xf32>
    %cst_50 = arith.constant dense<0.000000e+00> : vector<256xf32>
    %140 = vector.multi_reduction <add>, %139, %cst_50 [1] : vector<256x128xf32> to vector<256xf32>
    %141 = vector.shape_cast %140 : vector<256xf32> to vector<256x1xf32>
    %cst_51 = arith.constant 8.000000e+01 : f32
    %142 = vector.broadcast %cst_51 : f32 to vector<256x1xf32>
    %143 = arith.mulf %142, %136 : vector<256x1xf32>
    %144 = arith.mulf %143, %136 : vector<256x1xf32>
    %145 = arith.subf %141, %144 : vector<256x1xf32>
    %cst_52 = arith.constant 0.020833334 : f32
    %146 = vector.broadcast %cst_52 : f32 to vector<256x1xf32>
    %147 = arith.mulf %145, %146 : vector<256x1xf32>
    %cst_53 = arith.constant 9.99999974E-6 : f32
    %148 = vector.broadcast %cst_53 : f32 to vector<256x1xf32>
    %149 = arith.addf %147, %148 : vector<256x1xf32>
    %150 = math.rsqrt %149 : vector<256x1xf32>
    %151 = vector.broadcast %150 : vector<256x1xf32> to vector<256x128xf32>
    %152 = arith.mulf %138, %151 : vector<256x128xf32>
    %153 = vector.broadcast %127 : vector<1x128xf32> to vector<256x128xf32>
    %154 = arith.mulf %152, %153 : vector<256x128xf32>
    %155 = vector.broadcast %128 : vector<1x128xf32> to vector<256x128xf32>
    %156 = arith.addf %154, %155 : vector<256x128xf32>
    %cst_54 = arith.constant 0.000000e+00 : f32
    %cst_55 = arith.constant 6.000000e+00 : f32
    %157 = vector.broadcast %cst_54 : f32 to vector<256x128xf32>
    %158 = arith.maximumf %157, %156 : vector<256x128xf32>
    %159 = vector.broadcast %cst_55 : f32 to vector<256x128xf32>
    %160 = arith.minimumf %159, %158 : vector<256x128xf32>
    %c4 = arith.constant 4 : index
    %c0_56 = arith.constant 0 : index
    %c0_57 = arith.constant 0 : index
    %161 = vector.load %arg2[%c4, %c0_56, %c0_57] : memref<7x144x128xbf16, #tpu.memory_space<vmem>>, vector<1x128x128xbf16>
    %162 = vector.shape_cast %161 : vector<1x128x128xbf16> to vector<128x128xbf16>
    %c4_58 = arith.constant 4 : index
    %c128_59 = arith.constant 128 : index
    %c0_60 = arith.constant 0 : index
    %163 = vector.load %arg2[%c4_58, %c128_59, %c0_60] : memref<7x144x128xbf16, #tpu.memory_space<vmem>>, vector<1x3x128xbf16>
    %164 = vector.shape_cast %163 : vector<1x3x128xbf16> to vector<3x128xbf16>
    %165 = arith.extf %164 : vector<3x128xbf16> to vector<3x128xf32>
    %166 = vector.extract_strided_slice %165 {offsets = [0, 0], sizes = [1, 128], strides = [1, 1]} : vector<3x128xf32> to vector<1x128xf32>
    %167 = vector.extract_strided_slice %165 {offsets = [1, 0], sizes = [1, 128], strides = [1, 1]} : vector<3x128xf32> to vector<1x128xf32>
    %168 = vector.extract_strided_slice %165 {offsets = [2, 0], sizes = [1, 128], strides = [1, 1]} : vector<3x128xf32> to vector<1x128xf32>
    %169 = arith.truncf %160 : vector<256x128xf32> to vector<256x128xbf16>
    %cst_61 = arith.constant dense<0.000000e+00> : vector<256x128xf32>
    %170 = tpu.matmul %169, %162, %cst_61 {dimension_numbers = #tpu.dot_dimension_numbers<[1], [0], [0], [1], [0, 0, 1, 1], [], []>} : vector<256x128xbf16>, vector<128x128xbf16>, vector<256x128xf32> -> vector<256x128xf32>
    %171 = vector.broadcast %166 : vector<1x128xf32> to vector<256x128xf32>
    %172 = arith.addf %170, %171 : vector<256x128xf32>
    %cst_62 = arith.constant dense<0.000000e+00> : vector<256xf32>
    %173 = vector.multi_reduction <add>, %172, %cst_62 [1] : vector<256x128xf32> to vector<256xf32>
    %174 = vector.shape_cast %173 : vector<256xf32> to vector<256x1xf32>
    %cst_63 = arith.constant 1.562500e-02 : f32
    %175 = vector.broadcast %cst_63 : f32 to vector<256x1xf32>
    %176 = arith.mulf %174, %175 : vector<256x1xf32>
    %177 = vector.broadcast %176 : vector<256x1xf32> to vector<256x128xf32>
    %178 = arith.subf %172, %177 : vector<256x128xf32>
    %179 = arith.mulf %178, %178 : vector<256x128xf32>
    %cst_64 = arith.constant dense<0.000000e+00> : vector<256xf32>
    %180 = vector.multi_reduction <add>, %179, %cst_64 [1] : vector<256x128xf32> to vector<256xf32>
    %181 = vector.shape_cast %180 : vector<256xf32> to vector<256x1xf32>
    %cst_65 = arith.constant 6.400000e+01 : f32
    %182 = vector.broadcast %cst_65 : f32 to vector<256x1xf32>
    %183 = arith.mulf %182, %176 : vector<256x1xf32>
    %184 = arith.mulf %183, %176 : vector<256x1xf32>
    %185 = arith.subf %181, %184 : vector<256x1xf32>
    %cst_66 = arith.constant 1.562500e-02 : f32
    %186 = vector.broadcast %cst_66 : f32 to vector<256x1xf32>
    %187 = arith.mulf %185, %186 : vector<256x1xf32>
    %cst_67 = arith.constant 9.99999974E-6 : f32
    %188 = vector.broadcast %cst_67 : f32 to vector<256x1xf32>
    %189 = arith.addf %187, %188 : vector<256x1xf32>
    %190 = math.rsqrt %189 : vector<256x1xf32>
    %191 = vector.broadcast %190 : vector<256x1xf32> to vector<256x128xf32>
    %192 = arith.mulf %178, %191 : vector<256x128xf32>
    %193 = vector.broadcast %167 : vector<1x128xf32> to vector<256x128xf32>
    %194 = arith.mulf %192, %193 : vector<256x128xf32>
    %195 = vector.broadcast %168 : vector<1x128xf32> to vector<256x128xf32>
    %196 = arith.addf %194, %195 : vector<256x128xf32>
    %cst_68 = arith.constant 0.000000e+00 : f32
    %cst_69 = arith.constant 6.000000e+00 : f32
    %197 = vector.broadcast %cst_68 : f32 to vector<256x128xf32>
    %198 = arith.maximumf %197, %196 : vector<256x128xf32>
    %199 = vector.broadcast %cst_69 : f32 to vector<256x128xf32>
    %200 = arith.minimumf %199, %198 : vector<256x128xf32>
    %c5 = arith.constant 5 : index
    %c0_70 = arith.constant 0 : index
    %c0_71 = arith.constant 0 : index
    %201 = vector.load %arg2[%c5, %c0_70, %c0_71] : memref<7x144x128xbf16, #tpu.memory_space<vmem>>, vector<1x128x128xbf16>
    %202 = vector.shape_cast %201 : vector<1x128x128xbf16> to vector<128x128xbf16>
    %c5_72 = arith.constant 5 : index
    %c128_73 = arith.constant 128 : index
    %c0_74 = arith.constant 0 : index
    %203 = vector.load %arg2[%c5_72, %c128_73, %c0_74] : memref<7x144x128xbf16, #tpu.memory_space<vmem>>, vector<1x3x128xbf16>
    %204 = vector.shape_cast %203 : vector<1x3x128xbf16> to vector<3x128xbf16>
    %205 = arith.extf %204 : vector<3x128xbf16> to vector<3x128xf32>
    %206 = vector.extract_strided_slice %205 {offsets = [0, 0], sizes = [1, 128], strides = [1, 1]} : vector<3x128xf32> to vector<1x128xf32>
    %207 = vector.extract_strided_slice %205 {offsets = [1, 0], sizes = [1, 128], strides = [1, 1]} : vector<3x128xf32> to vector<1x128xf32>
    %208 = vector.extract_strided_slice %205 {offsets = [2, 0], sizes = [1, 128], strides = [1, 1]} : vector<3x128xf32> to vector<1x128xf32>
    %209 = arith.truncf %200 : vector<256x128xf32> to vector<256x128xbf16>
    %cst_75 = arith.constant dense<0.000000e+00> : vector<256x128xf32>
    %210 = tpu.matmul %209, %202, %cst_75 {dimension_numbers = #tpu.dot_dimension_numbers<[1], [0], [0], [1], [0, 0, 1, 1], [], []>} : vector<256x128xbf16>, vector<128x128xbf16>, vector<256x128xf32> -> vector<256x128xf32>
    %211 = vector.broadcast %206 : vector<1x128xf32> to vector<256x128xf32>
    %212 = arith.addf %210, %211 : vector<256x128xf32>
    %cst_76 = arith.constant dense<0.000000e+00> : vector<256xf32>
    %213 = vector.multi_reduction <add>, %212, %cst_76 [1] : vector<256x128xf32> to vector<256xf32>
    %214 = vector.shape_cast %213 : vector<256xf32> to vector<256x1xf32>
    %cst_77 = arith.constant 3.125000e-02 : f32
    %215 = vector.broadcast %cst_77 : f32 to vector<256x1xf32>
    %216 = arith.mulf %214, %215 : vector<256x1xf32>
    %217 = vector.broadcast %216 : vector<256x1xf32> to vector<256x128xf32>
    %218 = arith.subf %212, %217 : vector<256x128xf32>
    %219 = arith.mulf %218, %218 : vector<256x128xf32>
    %cst_78 = arith.constant dense<0.000000e+00> : vector<256xf32>
    %220 = vector.multi_reduction <add>, %219, %cst_78 [1] : vector<256x128xf32> to vector<256xf32>
    %221 = vector.shape_cast %220 : vector<256xf32> to vector<256x1xf32>
    %cst_79 = arith.constant 9.600000e+01 : f32
    %222 = vector.broadcast %cst_79 : f32 to vector<256x1xf32>
    %223 = arith.mulf %222, %216 : vector<256x1xf32>
    %224 = arith.mulf %223, %216 : vector<256x1xf32>
    %225 = arith.subf %221, %224 : vector<256x1xf32>
    %cst_80 = arith.constant 3.125000e-02 : f32
    %226 = vector.broadcast %cst_80 : f32 to vector<256x1xf32>
    %227 = arith.mulf %225, %226 : vector<256x1xf32>
    %cst_81 = arith.constant 9.99999974E-6 : f32
    %228 = vector.broadcast %cst_81 : f32 to vector<256x1xf32>
    %229 = arith.addf %227, %228 : vector<256x1xf32>
    %230 = math.rsqrt %229 : vector<256x1xf32>
    %231 = vector.broadcast %230 : vector<256x1xf32> to vector<256x128xf32>
    %232 = arith.mulf %218, %231 : vector<256x128xf32>
    %233 = vector.broadcast %207 : vector<1x128xf32> to vector<256x128xf32>
    %234 = arith.mulf %232, %233 : vector<256x128xf32>
    %235 = vector.broadcast %208 : vector<1x128xf32> to vector<256x128xf32>
    %236 = arith.addf %234, %235 : vector<256x128xf32>
    %cst_82 = arith.constant 0.000000e+00 : f32
    %cst_83 = arith.constant 6.000000e+00 : f32
    %237 = vector.broadcast %cst_82 : f32 to vector<256x128xf32>
    %238 = arith.maximumf %237, %236 : vector<256x128xf32>
    %239 = vector.broadcast %cst_83 : f32 to vector<256x128xf32>
    %240 = arith.minimumf %239, %238 : vector<256x128xf32>
    %c6 = arith.constant 6 : index
    %c0_84 = arith.constant 0 : index
    %c0_85 = arith.constant 0 : index
    %241 = vector.load %arg2[%c6, %c0_84, %c0_85] : memref<7x144x128xbf16, #tpu.memory_space<vmem>>, vector<1x128x128xbf16>
    %242 = vector.shape_cast %241 : vector<1x128x128xbf16> to vector<128x128xbf16>
    %c6_86 = arith.constant 6 : index
    %c128_87 = arith.constant 128 : index
    %c0_88 = arith.constant 0 : index
    %243 = vector.load %arg2[%c6_86, %c128_87, %c0_88] : memref<7x144x128xbf16, #tpu.memory_space<vmem>>, vector<1x1x128xbf16>
    %244 = vector.shape_cast %243 : vector<1x1x128xbf16> to vector<1x128xbf16>
    %245 = arith.extf %244 : vector<1x128xbf16> to vector<1x128xf32>
    %246 = arith.truncf %240 : vector<256x128xf32> to vector<256x128xbf16>
    %cst_89 = arith.constant dense<0.000000e+00> : vector<256x128xf32>
    %247 = tpu.matmul %246, %242, %cst_89 {dimension_numbers = #tpu.dot_dimension_numbers<[1], [0], [0], [1], [0, 0, 1, 1], [], []>} : vector<256x128xbf16>, vector<128x128xbf16>, vector<256x128xf32> -> vector<256x128xf32>
    %248 = vector.broadcast %245 : vector<1x128xf32> to vector<256x128xf32>
    %249 = arith.addf %247, %248 : vector<256x128xf32>
    %c0_90 = arith.constant 0 : index
    %c0_91 = arith.constant 0 : index
    %250 = vector.load %arg3[%c0_90, %c0_91] : memref<256x128xf32, #tpu.memory_space<vmem>>, vector<256x128xf32>
    tpu.vector_store %arg3[%c0_90, %c0_91], %249 {strides = array<i32>} : memref<256x128xf32, #tpu.memory_space<vmem>>, vector<256x128xf32>,
    return
  }
  func.func @transform_0(%arg0: i32) -> (i32, i32) {
    %c0_i32 = arith.constant 0 : i32
    %c0_i32_0 = arith.constant 0 : i32
    return %arg0, %c0_i32 : i32, i32
  }
  func.func @transform_1(%arg0: i32) -> (i32, i32, i32) {
    %c0_i32 = arith.constant 0 : i32
    %c0_i32_0 = arith.constant 0 : i32
    %c0_i32_1 = arith.constant 0 : i32
    %c0_i32_2 = arith.constant 0 : i32
    return %c0_i32, %c0_i32_0, %c0_i32_1 : i32, i32, i32
  }
  func.func @transform_2(%arg0: i32) -> (i32, i32) {
    %c0_i32 = arith.constant 0 : i32
    %c0_i32_0 = arith.constant 0 : i32
    return %arg0, %c0_i32 : i32, i32
  }
}

</mosaic_0001>

<bundles_post_ra>
// kernel: tpu_custom_call.1
= control target key start
LH: loop header
LB: loop body
LE: loop exit
PB: predicated region body
PF: predicated region fallthrough
CT: control target
= control target key end

     0   :  { %7 = vsyncpa [#allocation3], 0  ;;  %s10266_s0 = inlined_call_operand.hbm [shape: f32[256,128], index: 0, kind: input, shape index: {}]   ;;  %s10267_s1 = inlined_call_operand.hbm [shape: bf16[7,144,128], index: 1, kind: input, shape index: {}]   ;;  %s10268_s2 = inlined_call_operand.hbm [shape: f32[256,128], index: 2, kind: output, shape index: {}]  }
   0x1   :  { %8 = vsyncpa [#allocation6], 0 }
   0x2   :  { %9 = vsyncpa [#allocation4], 0  ;;  %s6451_s9 = smov [#allocation2]  }
   0x3   :  { %s15_s10 = sshll.u32 %s6451_s9, 4  ;;  %s16_s10 = int_to_ptr.vmem [resolvable:$true] %s15_s10 }
   0x4   :  { %s6393_s11 = scalar_lea.vmem %s16_s10, 4096  ;;  %p6398_p1 = scmp.lt.s32.totalorder %s16_s10, %s16_s10 }
   0x5   :  { %p6394_p0 = scmp.ne.s32.totalorder %s16_s10, %s6393_s11  ;;  %p6399_p2 = scmp.lt.s32.totalorder %s6393_s11, %s6393_s11 }
   0x7   :  { %p6400_p3 = por %p6399_p2, %p6398_p1 }
   0x9   :  { %p6401_p4 = pnand %p6400_p3, %p6394_p0 }
   0xb   :  { %6404 = shalt.err (!%p6401_p4)
}
   0xc   :  { %s6452_s12 = smov 128   ;;  %s6453_s13 = smov 8  }
   0xd   :  { %21 = dma.hbm_to_vmem [thread:$0]  %s10266_s0, 4096, %s16_s10, [#allocation3], %s6452_s12, %s6452_s12, %s6453_s13  }
   0xe   :  { %s6454_s16 = smov [#allocation5]  }
   0xf   :  { %s27_s17 = sshll.u32 %s6454_s16, 4  ;;  %s28_s17 = int_to_ptr.vmem [resolvable:$true] %s27_s17 }
  0x10   :  { %s6413_s18 = scalar_lea.vmem %s28_s17, 8064  ;;  %p6418_p6 = scmp.lt.s32.totalorder %s28_s17, %s28_s17 }
  0x11   :  { %p6414_p5 = scmp.ne.s32.totalorder %s28_s17, %s6413_s18  ;;  %p6419_p7 = scmp.lt.s32.totalorder %s6413_s18, %s6413_s18 }
  0x13   :  { %p6420_p8 = por %p6419_p7, %p6418_p6 }
  0x15   :  { %p6421_p9 = pnand %p6420_p8, %p6414_p5 }
  0x17   :  { %6424 = shalt.err (!%p6421_p9)
}
  0x18   :  { %s6455_s19 = smov 64   ;;  %s6456_s20 = smov 4  }
  0x19   :  { %33 = dma.hbm_to_vmem [thread:$0]  %s10267_s1, 8064, %s28_s17, [#allocation6], %s6455_s19, %s6455_s19, %s6456_s20  }
  0x1a   :  { %6445 = dma.done.wait [#allocation3], 4096  }
  0x1b   :  { %6446 = vsyncadd [#allocation3], 4294963200 }
  0x1c   :  { %6447 = dma.done.wait [#allocation6], 8064  }
  0x1d   :  { %6448 = vsyncadd [#allocation6], 4294959232  ;;  %v5945_v0 = vld [vmem:[#allocation5 + $0x38] sm:$0xff]   ;;  %v5946_v1 = vld [vmem:[#allocation5 + $0x30] sm:$0xff]   ;;  %v107_v56 = vlaneseq  ;;  %s6457_s0 = smov [#allocation7]  }
  0x1e   :  { %5586 = vmatprep.subr.bf16.mxu0 %v5945_v0  ;;  %5922 = vmatprep.subr.bf16.mxu1 %v5945_v0  ;;  %v5947_v2 = vld [vmem:[#allocation5 + $0x28] sm:$0xff]   ;;  %v5948_v3 = vld [vmem:[#allocation5 + $0x20] sm:$0xff]   ;;  %v5949_v7 = vld [vmem:[#allocation5 + $0x18] sm:$0xff]   ;;  %s5349_s1 = sshll.u32 %s6457_s0, 4  ;;  %s5350_s1 = int_to_ptr.vmem [resolvable:$true] %s5349_s1 }
  0x1f   :  { %5587 = vmatpush3.bf16.msra.mxu0 %v5945_v0  ;;  %5930 = vmatpush3.bf16.msra.mxu1 %v5945_v0  ;;  %v41_v4 = vld [vmem:[#allocation2] sm:$0xff]  ;;  %v42_v5 = vld [vmem:[#allocation2 + $0x8] sm:$0xff]  ;;  %v5950_v11 = vld [vmem:[#allocation5 + $0x10] sm:$0xff]   ;;  %v6482_v57 = vshrl.u32 %v107_v56, 7  ;;  %s6425_s23 = scalar_lea.vmem %s5350_s1, 4096  ;;  %p6430_p11 = scmp.lt.s32.totalorder %s5350_s1, %s5350_s1 }
  0x20   :  { %5588 = vmatprep.subr.bf16.mxu0 %v5946_v1  ;;  %5923 = vmatprep.subr.bf16.mxu1 %v5946_v1  ;;  %v91_v6 = vpack.c.bf16 %v42_v5, %v41_v4  ;;  %v57_v8 = vld [vmem:[#allocation2 + $0x80] sm:$0xff]  ;;  %v58_v9 = vld [vmem:[#allocation2 + $0x88] sm:$0xff]  ;;  %v43_v14 = vld [vmem:[#allocation2 + $0x10] sm:$0xff]  ;;  %p6426_p10 = scmp.ne.s32.totalorder %s5350_s1, %s6425_s23  ;;  %p6431_p12 = scmp.lt.s32.totalorder %s6425_s23, %s6425_s23 }
  0x21   :  { %v99_v10 = vpack.c.bf16 %v58_v9, %v57_v8  ;;  %v5951_v12 = vld [vmem:[#allocation5 + $0x8] sm:$0xff]   ;;  %v5952_v13 = vld [vmem:[#allocation5] sm:$0xff]   ;;  %v44_v15 = vld [vmem:[#allocation2 + $0x18] sm:$0xff]  ;;  %v6487_v60 = vsub.s32 0, %v6482_v57 }
  0x22   :  { %5602 = vmatprep.mubr.bf16.mxu0 %v91_v6  ;;  %v45_v16 = vld [vmem:[#allocation2 + $0x20] sm:$0xff]  ;;  %v46_v17 = vld [vmem:[#allocation2 + $0x28] sm:$0xff]  ;;  %v59_v18 = vld [vmem:[#allocation2 + $0x90] sm:$0xff]  ;;  %v92_v22 = vpack.c.bf16 %v44_v15, %v43_v14  ;;  %p6432_p13 = por %p6431_p12, %p6430_p11 }
  0x23   :  { %5589 = vmatpush3.bf16.msra.mxu0 %v5946_v1  ;;  %5931 = vmatpush3.bf16.msra.mxu1 %v5946_v1  ;;  %v60_v19 = vld [vmem:[#allocation2 + $0x98] sm:$0xff]  ;;  %v61_v20 = vld [vmem:[#allocation2 + $0xa0] sm:$0xff]  ;;  %v62_v21 = vld [vmem:[#allocation2 + $0xa8] sm:$0xff]  ;;  %v93_v23 = vpack.c.bf16 %v46_v17, %v45_v16  ;;  %10398 = vst [vmem:[#allocation11_spill] sm:$0xff] %v6487_v60 }
  0x24   :  { %5590 = vmatprep.subr.bf16.mxu0 %v5947_v2  ;;  %5924 = vmatprep.subr.bf16.mxu1 %v5947_v2  ;;  %v100_v24 = vpack.c.bf16 %v60_v19, %v59_v18  ;;  %v101_v25 = vpack.c.bf16 %v62_v21, %v61_v20  ;;  %v47_v26 = vld [vmem:[#allocation2 + $0x30] sm:$0xff]  ;;  %v48_v27 = vld [vmem:[#allocation2 + $0x38] sm:$0xff]  ;;  %v49_v28 = vld [vmem:[#allocation2 + $0x40] sm:$0xff]  ;;  %p6433_p0 = pnand %p6432_p13, %p6426_p10 }
  0x25   :  { %5618 = vmatprep.mubr.bf16.mxu1 %v99_v10  ;;  %v50_v29 = vld [vmem:[#allocation2 + $0x48] sm:$0xff]  ;;  %v63_v30 = vld [vmem:[#allocation2 + $0xb0] sm:$0xff]  ;;  %v64_v31 = vld [vmem:[#allocation2 + $0xb8] sm:$0xff]  ;;  %v94_v34 = vpack.c.bf16 %v48_v27, %v47_v26 }
  0x26   :  { %v65_v32 = vld [vmem:[#allocation2 + $0xc0] sm:$0xff]  ;;  %v66_v33 = vld [vmem:[#allocation2 + $0xc8] sm:$0xff]  ;;  %v95_v35 = vpack.c.bf16 %v50_v29, %v49_v28  ;;  %v102_v36 = vpack.c.bf16 %v64_v31, %v63_v30  ;;  %v51_v38 = vld [vmem:[#allocation2 + $0x50] sm:$0xff] }
  0x27   :  { %5591 = vmatpush3.bf16.msra.mxu0 %v5947_v2  ;;  %5932 = vmatpush3.bf16.msra.mxu1 %v5947_v2  ;;  %v103_v37 = vpack.c.bf16 %v66_v33, %v65_v32  ;;  %v52_v39 = vld [vmem:[#allocation2 + $0x58] sm:$0xff]  ;;  %v53_v40 = vld [vmem:[#allocation2 + $0x60] sm:$0xff]  ;;  %v54_v41 = vld [vmem:[#allocation2 + $0x68] sm:$0xff] }
  0x28   :  { %5592 = vmatprep.subr.bf16.mxu0 %v5948_v3  ;;  %5925 = vmatprep.subr.bf16.mxu1 %v5948_v3  ;;  %v67_v42 = vld [vmem:[#allocation2 + $0xd0] sm:$0xff]  ;;  %v68_v43 = vld [vmem:[#allocation2 + $0xd8] sm:$0xff]  ;;  %v69_v44 = vld [vmem:[#allocation2 + $0xe0] sm:$0xff]  ;;  %v96_v46 = vpack.c.bf16 %v52_v39, %v51_v38  ;;  %v97_v47 = vpack.c.bf16 %v54_v41, %v53_v40 }
  0x29   :  { %v70_v45 = vld [vmem:[#allocation2 + $0xe8] sm:$0xff]  ;;  %v104_v48 = vpack.c.bf16 %v68_v43, %v67_v42  ;;  %v55_v50 = vld [vmem:[#allocation2 + $0x70] sm:$0xff]  ;;  %v56_v51 = vld [vmem:[#allocation2 + $0x78] sm:$0xff] }
  0x2a   :  { %v105_v49 = vpack.c.bf16 %v70_v45, %v69_v44  ;;  %v71_v52 = vld [vmem:[#allocation2 + $0xf0] sm:$0xff]  ;;  %v72_v53 = vld [vmem:[#allocation2 + $0xf8] sm:$0xff]  ;;  %v98_v54 = vpack.c.bf16 %v56_v51, %v55_v50  ;;  %v89_v58 = vld [vmem:[#allocation5 + $0x40] sm:$0x3] }
  0x2b   :  { %5593 = vmatpush3.bf16.msra.mxu0 %v5948_v3  ;;  %5933 = vmatpush3.bf16.msra.mxu1 %v5948_v3  ;;  %v106_v55 = vpack.c.bf16 %v72_v53, %v71_v52  ;;  %v6484_v59 = vunpack.c.l.bf16 %v89_v58 }
  0x2c   :  { %5594 = vmatprep.subr.bf16.mxu0 %v5949_v7  ;;  %5926 = vmatprep.subr.bf16.mxu1 %v5949_v7 }
  0x2d   :  { %v6491_v61 = vrot.slane %v6484_v59, %v6487_v60 }
  0x2f   :  { %5595 = vmatpush3.bf16.msra.mxu0 %v5949_v7  ;;  %5934 = vmatpush3.bf16.msra.mxu1 %v5949_v7 }
  0x30   :  { %5596 = vmatprep.subr.bf16.mxu0 %v5950_v11  ;;  %5927 = vmatprep.subr.bf16.mxu1 %v5950_v11 }
  0x33   :  { %5597 = vmatpush3.bf16.msra.mxu0 %v5950_v11  ;;  %5935 = vmatpush3.bf16.msra.mxu1 %v5950_v11 }
  0x34   :  { %5598 = vmatprep.subr.bf16.mxu0 %v5951_v12  ;;  %5928 = vmatprep.subr.bf16.mxu1 %v5951_v12 }
  0x37   :  { %5599 = vmatpush3.bf16.msra.mxu0 %v5951_v12  ;;  %5936 = vmatpush3.bf16.msra.mxu1 %v5951_v12 }
  0x38   :  { %5600 = vmatprep.subr.bf16.mxu0 %v5952_v13  ;;  %5929 = vmatprep.subr.bf16.mxu1 %v5952_v13 }
  0x3b   :  { %5601 = vmatpush3.bf16.msra.mxu0 %v5952_v13  ;;  %5937 = vmatpush3.bf16.msra.mxu1 %v5952_v13 }
  0x3e   :  { %5603 = vmatmul.mubr.bf16.vlgmr.msra.gmra.mxu0 %v92_v22  ;;  %5619 = vmatmul.mubr.bf16.vlgmr.msra.gmra.mxu1 %v100_v24 }
  0x3f   :  { %5606 = vmatprep.mubr.bf16.mxu0 %v93_v23  ;;  %5622 = vmatprep.mubr.bf16.mxu1 %v101_v25 }
  0x46   :  { %5607 = vmatmul.mubr.bf16.gmra.mxu0 %v94_v34  ;;  %5623 = vmatmul.mubr.bf16.gmra.mxu1 %v102_v36 }
  0x47   :  { %5610 = vmatprep.mubr.bf16.mxu0 %v95_v35  ;;  %5626 = vmatprep.mubr.bf16.mxu1 %v103_v37 }
  0x4e   :  { %5611 = vmatmul.mubr.bf16.gmra.mxu0 %v96_v46  ;;  %5627 = vmatmul.mubr.bf16.gmra.mxu1 %v104_v48 }
  0x4f   :  { %5614 = vmatprep.mubr.bf16.mxu0 %v97_v47  ;;  %5630 = vmatprep.mubr.bf16.mxu1 %v105_v49 }
  0x56   :  { %5615 = vmatmul.mubr.bf16.gmra.mxu0 %v98_v54  ;;  %5631 = vmatmul.mubr.bf16.gmra.mxu1 %v106_v55 }
  0xfe   :  { %v5604_v62 = vpop.f32.mrf.mxu0  ;;  %v5620_v0 = vpop.f32.mrf.mxu1 }
  0xff   :  { %v6494_v63 = vadd.f32 %v5604_v62, %v6491_v61  ;;  %v6562_v41 = vadd.f32 %v5620_v0, %v6491_v61 }
 0x100   :  { %v193_v1 = vpop.f32.mrf.mxu0  ;;  %v257_v4 = vpop.f32.mrf.mxu1 }
 0x101   :  { %v6497_v2 = vadd.f32 %v193_v1, %v6491_v61  ;;  %324 = vadd.xlane.f32.xlu1 %v6494_v63  ;;  %v6557_v39 = vadd.f32 %v257_v4, %v6491_v61 }
 0x102   :  { %v5605_v3 = vpop.f32.mrf.mxu0  ;;  %v5621_v9 = vpop.f32.mrf.mxu1 }
 0x103   :  { %v6501_v5 = vadd.f32 %v5605_v3, %v6491_v61  ;;  %320 = vadd.xlane.f32.xlu0 %v6497_v2  ;;  %v6570_v44 = vadd.f32 %v5621_v9, %v6491_v61 }
 0x104   :  { %v196_v6 = vpop.f32.mrf.mxu0  ;;  %v260_v13 = vpop.f32.mrf.mxu1 }
 0x105   :  { %v6505_v7 = vadd.f32 %v196_v6, %v6491_v61  ;;  %326 = vadd.xlane.f32.xlu1 %v6501_v5  ;;  %v6565_v42 = vadd.f32 %v260_v13, %v6491_v61 }
 0x106   :  { %v5608_v8 = vpop.f32.mrf.mxu0  ;;  %v5624_v18 = vpop.f32.mrf.mxu1 }
 0x107   :  { %322 = vadd.xlane.f32.xlu0 %v6505_v7  ;;  %v6514_v15 = vadd.f32 %v5608_v8, %v6491_v61  ;;  %v6578_v47 = vadd.f32 %v5624_v18, %v6491_v61 }
 0x108   :  { %v209_v10 = vpop.f32.mrf.mxu0  ;;  %v273_v23 = vpop.f32.mrf.mxu1 }
 0x109   :  { %v6510_v11 = vadd.f32 %v209_v10, %v6491_v61  ;;  %v6573_v45 = vadd.f32 %v273_v23, %v6491_v61 }
 0x10a   :  { %v5609_v12 = vpop.f32.mrf.mxu0  ;;  %v5625_v28 = vpop.f32.mrf.mxu1 }
 0x10b   :  { %328 = vadd.xlane.f32.xlu0 %v6510_v11  ;;  %v6522_v20 = vadd.f32 %v5609_v12, %v6491_v61  ;;  %v6586_v50 = vadd.f32 %v5625_v28, %v6491_v61 }
 0x10c   :  { %v212_v14 = vpop.f32.mrf.mxu0  ;;  %v276_v33 = vpop.f32.mrf.mxu1 }
 0x10d   :  { %v6517_v16 = vadd.f32 %v212_v14, %v6491_v61  ;;  %v6581_v48 = vadd.f32 %v276_v33, %v6491_v61 }
 0x10e   :  { %v5612_v17 = vpop.f32.mrf.mxu0  ;;  %v5628_v37 = vpop.f32.mrf.mxu1 }
 0x10f   :  { %330 = vadd.xlane.f32.xlu1 %v6517_v16  ;;  %332 = vadd.xlane.f32.xlu0 %v6514_v15  ;;  %v6530_v25 = vadd.f32 %v5612_v17, %v6491_v61  ;;  %v6594_v53 = vadd.f32 %v5628_v37, %v6491_v61 }
 0x110   :  { %v225_v19 = vpop.f32.mrf.mxu0  ;;  %v289_v40 = vpop.f32.mrf.mxu1 }
 0x111   :  { %v6525_v21 = vadd.f32 %v225_v19, %v6491_v61  ;;  %v6589_v51 = vadd.f32 %v289_v40, %v6491_v61 }
 0x112   :  { %v5613_v22 = vpop.f32.mrf.mxu0  ;;  %v5629_v43 = vpop.f32.mrf.mxu1 }
 0x113   :  { %334 = vadd.xlane.f32.xlu1 %v6522_v20  ;;  %336 = vadd.xlane.f32.xlu0 %v6525_v21  ;;  %v6538_v30 = vadd.f32 %v5613_v22, %v6491_v61  ;;  %v6602_v56 = vadd.f32 %v5629_v43, %v6491_v61 }
 0x114   :  { %v228_v24 = vpop.f32.mrf.mxu0  ;;  %v292_v46 = vpop.f32.mrf.mxu1 }
 0x115   :  { %v6533_v26 = vadd.f32 %v228_v24, %v6491_v61  ;;  %v6597_v54 = vadd.f32 %v292_v46, %v6491_v61 }
 0x116   :  { %v5616_v27 = vpop.f32.mrf.mxu0  ;;  %v5632_v49 = vpop.f32.mrf.mxu1 }
 0x117   :  { %338 = vadd.xlane.f32.xlu1 %v6533_v26  ;;  %340 = vadd.xlane.f32.xlu0 %v6530_v25  ;;  %v6546_v35 = vadd.f32 %v5616_v27, %v6491_v61  ;;  %v6610_v0 = vadd.f32 %v5632_v49, %v6491_v61 }
 0x118   :  { %v241_v29 = vpop.f32.mrf.mxu0  ;;  %v305_v52 = vpop.f32.mrf.mxu1 }
 0x119   :  { %v6541_v31 = vadd.f32 %v241_v29, %v6491_v61  ;;  %v6605_v58 = vadd.f32 %v305_v52, %v6491_v61 }
 0x11a   :  { %v5617_v32 = vpop.f32.mrf.mxu0  ;;  %v5633_v55 = vpop.f32.mrf.mxu1 }
 0x11b   :  { %342 = vadd.xlane.f32.xlu1 %v6538_v30  ;;  %344 = vadd.xlane.f32.xlu0 %v6541_v31  ;;  %v6554_v38 = vadd.f32 %v5617_v32, %v6491_v61  ;;  %v6618_v3 = vadd.f32 %v5633_v55, %v6491_v61 }
 0x11c   :  { %v244_v34 = vpop.f32.mrf.mxu0  ;;  %v308_v62 = vpop.f32.mrf.mxu1 }
 0x11d   :  { %v6549_v36 = vadd.f32 %v244_v34, %v6491_v61  ;;  %v6613_v1 = vadd.f32 %v308_v62, %v6491_v61 }
 0x11f   :  { %346 = vadd.xlane.f32.xlu1 %v6549_v36  ;;  %348 = vadd.xlane.f32.xlu0 %v6546_v35 }
 0x123   :  { %350 = vadd.xlane.f32.xlu1 %v6554_v38  ;;  %352 = vadd.xlane.f32.xlu0 %v6557_v39 }
 0x127   :  { %354 = vadd.xlane.f32.xlu1 %v6565_v42  ;;  %356 = vadd.xlane.f32.xlu0 %v6562_v41 }
 0x12b   :  { %358 = vadd.xlane.f32.xlu1 %v6570_v44  ;;  %360 = vadd.xlane.f32.xlu0 %v6573_v45 }
 0x12f   :  { %362 = vadd.xlane.f32.xlu1 %v6581_v48  ;;  %364 = vadd.xlane.f32.xlu0 %v6578_v47 }
 0x133   :  { %366 = vadd.xlane.f32.xlu1 %v6586_v50  ;;  %368 = vadd.xlane.f32.xlu0 %v6589_v51 }
 0x137   :  { %370 = vadd.xlane.f32.xlu1 %v6597_v54  ;;  %372 = vadd.xlane.f32.xlu0 %v6594_v53 }
 0x13b   :  { %374 = vadd.xlane.f32.xlu1 %v6602_v56  ;;  %376 = vadd.xlane.f32.xlu0 %v6605_v58 }
 0x13f   :  { %378 = vadd.xlane.f32.xlu1 %v6613_v1  ;;  %380 = vadd.xlane.f32.xlu0 %v6610_v0 }
 0x143   :  { %382 = vadd.xlane.f32.xlu1 %v6618_v3 }
 0x18a   :  { %v325_v4 = vpop.xlane.xlu1 %324 }
 0x18b   :  { %v6621_v8 = vmul.f32 0.015625, %v325_v4 }
 0x18c   :  { %v321_v6 = vpop.xlane.xlu0 %320 }
 0x18d   :  { %v6623_v9 = vmul.f32 0.015625, %v321_v6  ;;  %v6637_v18 = vsub.f32 %v6494_v63, %v6621_v8 }
 0x18e   :  { %v327_v10 = vpop.xlane.xlu1 %326 }
 0x18f   :  { %v6627_v12 = vsub.f32 %v6497_v2, %v6623_v9  ;;  %v6629_v14 = vmul.f32 0.015625, %v327_v10  ;;  %v450_v23 = vmul.f32 %v6637_v18, %v6637_v18 }
 0x190   :  { %v323_v13 = vpop.xlane.xlu0 %322 }
 0x191   :  { %v6631_v17 = vmul.f32 0.015625, %v323_v13  ;;  %v448_v61 = vmul.f32 %v6627_v12, %v6627_v12  ;;  %v6651_v27 = vsub.f32 %v6501_v5, %v6629_v14 }
 0x193   :  { %480 = vadd.xlane.f32.xlu0 %v448_v61  ;;  %v6641_v19 = vsub.f32 %v6505_v7, %v6631_v17  ;;  %v451_v33 = vmul.f32 %v6651_v27, %v6651_v27 }
 0x194   :  { %v329_v22 = vpop.xlane.xlu0 %328 }
 0x195   :  { %v6643_v2 = vmul.f32 0.015625, %v329_v22  ;;  %v449_v24 = vmul.f32 %v6641_v19, %v6641_v19 }
 0x197   :  { %484 = vadd.xlane.f32.xlu0 %v450_v23  ;;  %482 = vadd.xlane.f32.xlu1 %v449_v24  ;;  %v6655_v63 = vsub.f32 %v6510_v11, %v6643_v2  ;;  %v5953_v23 = vld [vmem:[#allocation5 + $0x80] sm:$0xff]  }
 0x198   :  { %v331_v7 = vpop.xlane.xlu1 %330  ;;  %v333_v28 = vpop.xlane.xlu0 %332  ;;  %5634 = vmatprep.subr.bf16.mxu1 %v5953_v23 }
 0x199   :  { %v6657_v29 = vmul.f32 0.015625, %v331_v7  ;;  %v6659_v32 = vmul.f32 0.015625, %v333_v28  ;;  %v452_v34 = vmul.f32 %v6655_v63, %v6655_v63  ;;  %5635 = vmatpush3.bf16.msra.mxu1 %v5953_v23 }
 0x19b   :  { %486 = vadd.xlane.f32.xlu1 %v451_v33  ;;  %488 = vadd.xlane.f32.xlu0 %v452_v34  ;;  %v6667_v5 = vsub.f32 %v6517_v16, %v6657_v29  ;;  %v6671_v11 = vsub.f32 %v6514_v15, %v6659_v32 }
 0x19c   :  { %v335_v37 = vpop.xlane.xlu1 %334  ;;  %v337_v40 = vpop.xlane.xlu0 %336 }
 0x19d   :  { %v6673_v43 = vmul.f32 0.015625, %v335_v37  ;;  %v6675_v46 = vmul.f32 0.015625, %v337_v40  ;;  %v453_v49 = vmul.f32 %v6667_v5, %v6667_v5  ;;  %v454_v52 = vmul.f32 %v6671_v11, %v6671_v11  ;;  %v5954_v40 = vld [vmem:[#allocation5 + $0x78] sm:$0xff]  }
 0x19e   :  { %5636 = vmatprep.subr.bf16.mxu1 %v5954_v40 }
 0x19f   :  { %490 = vadd.xlane.f32.xlu1 %v453_v49  ;;  %492 = vadd.xlane.f32.xlu0 %v454_v52  ;;  %v6683_v16 = vsub.f32 %v6522_v20, %v6673_v43  ;;  %v6687_v15 = vsub.f32 %v6525_v21, %v6675_v46 }
 0x1a0   :  { %v339_v55 = vpop.xlane.xlu1 %338  ;;  %v341_v62 = vpop.xlane.xlu0 %340  ;;  %5637 = vmatpush3.bf16.msra.mxu1 %v5954_v40  ;;  %v5956_v40 = vld [vmem:[#allocation5 + $0x68] sm:$0xff]  }
 0x1a1   :  { %v6689_v4 = vmul.f32 0.015625, %v339_v55  ;;  %v6691_v6 = vmul.f32 0.015625, %v341_v62  ;;  %v455_v10 = vmul.f32 %v6683_v16, %v6683_v16  ;;  %v456_v13 = vmul.f32 %v6687_v15, %v6687_v15 }
 0x1a3   :  { %494 = vadd.xlane.f32.xlu1 %v455_v10  ;;  %496 = vadd.xlane.f32.xlu0 %v456_v13  ;;  %v6699_v20 = vsub.f32 %v6533_v26, %v6689_v4  ;;  %v6703_v21 = vsub.f32 %v6530_v25, %v6691_v6 }
 0x1a4   :  { %v343_v61 = vpop.xlane.xlu1 %342  ;;  %v345_v22 = vpop.xlane.xlu0 %344 }
 0x1a5   :  { %10399 = vst [vmem:[#allocation12_spill] sm:$0xff] %v6703_v21  ;;  %v6705_v24 = vmul.f32 0.015625, %v343_v61  ;;  %v6707_v7 = vmul.f32 0.015625, %v345_v22  ;;  %v457_v28 = vmul.f32 %v6699_v20, %v6699_v20  ;;  %v458_v33 = vmul.f32 %v6703_v21, %v6703_v21  ;;  %v5955_v61 = vld [vmem:[#allocation5 + $0x70] sm:$0xff]  }
 0x1a6   :  { %5638 = vmatprep.subr.bf16.mxu1 %v5955_v61 }
 0x1a7   :  { %498 = vadd.xlane.f32.xlu1 %v457_v28  ;;  %500 = vadd.xlane.f32.xlu0 %v458_v33  ;;  %v6715_v25 = vsub.f32 %v6538_v30, %v6705_v24  ;;  %v6719_v26 = vsub.f32 %v6541_v31, %v6707_v7 }
 0x1a8   :  { %v347_v34 = vpop.xlane.xlu1 %346  ;;  %v349_v37 = vpop.xlane.xlu0 %348  ;;  %5639 = vmatpush3.bf16.msra.mxu1 %v5955_v61 }
 0x1a9   :  { %10400 = vst [vmem:[#allocation13_spill] sm:$0xff] %v6715_v25  ;;  %10401 = vst [vmem:[#allocation14_spill] sm:$0xff] %v6719_v26  ;;  %v6721_v49 = vmul.f32 0.015625, %v347_v34  ;;  %v6723_v52 = vmul.f32 0.015625, %v349_v37  ;;  %v459_v55 = vmul.f32 %v6715_v25, %v6715_v25  ;;  %v460_v62 = vmul.f32 %v6719_v26, %v6719_v26  ;;  %5640 = vmatprep.subr.bf16.mxu1 %v5956_v40 }
 0x1aa   :  { %v555_v26 = vmul.f32 64.0, %v6705_v24  ;;  %v556_v25 = vmul.f32 64.0, %v6707_v7 }
 0x1ab   :  { %502 = vadd.xlane.f32.xlu1 %v459_v55  ;;  %504 = vadd.xlane.f32.xlu0 %v460_v62  ;;  %v6731_v30 = vsub.f32 %v6549_v36, %v6721_v49  ;;  %v6735_v31 = vsub.f32 %v6546_v35, %v6723_v52 }
 0x1ac   :  { %v351_v10 = vpop.xlane.xlu1 %350  ;;  %v353_v13 = vpop.xlane.xlu0 %352  ;;  %5641 = vmatpush3.bf16.msra.mxu1 %v5956_v40 }
 0x1ad   :  { %10402 = vst [vmem:[#allocation15_spill] sm:$0xff] %v6731_v30  ;;  %10403 = vst [vmem:[#allocation16_spill] sm:$0xff] %v6735_v31  ;;  %v6737_v22 = vmul.f32 0.015625, %v351_v10  ;;  %v6739_v23 = vmul.f32 0.015625, %v353_v13  ;;  %v461_v28 = vmul.f32 %v6731_v30, %v6731_v30  ;;  %v462_v33 = vmul.f32 %v6735_v31, %v6735_v31 }
 0x1ae   :  { %v554_v30 = vmul.f32 64.0, %v6691_v6 }
 0x1af   :  { %506 = vadd.xlane.f32.xlu1 %v461_v28  ;;  %508 = vadd.xlane.f32.xlu0 %v462_v33  ;;  %v6747_v35 = vsub.f32 %v6554_v38, %v6737_v22  ;;  %v6751_v36 = vsub.f32 %v6557_v39, %v6739_v23  ;;  %v5957_v33 = vld [vmem:[#allocation5 + $0x60] sm:$0xff]  }
 0x1b0   :  { %v355_v34 = vpop.xlane.xlu1 %354  ;;  %v357_v37 = vpop.xlane.xlu0 %356  ;;  %5642 = vmatprep.subr.bf16.mxu1 %v5957_v33 }
 0x1b1   :  { %10404 = vst [vmem:[#allocation17_spill] sm:$0xff] %v6747_v35  ;;  %10405 = vst [vmem:[#allocation18_spill] sm:$0xff] %v6751_v36  ;;  %v6753_v55 = vmul.f32 0.015625, %v355_v34  ;;  %v6755_v62 = vmul.f32 0.015625, %v357_v37  ;;  %v463_v10 = vmul.f32 %v6747_v35, %v6747_v35  ;;  %v464_v13 = vmul.f32 %v6751_v36, %v6751_v36  ;;  %5643 = vmatpush3.bf16.msra.mxu1 %v5957_v33 }
 0x1b3   :  { %510 = vadd.xlane.f32.xlu1 %v463_v10  ;;  %512 = vadd.xlane.f32.xlu0 %v464_v13  ;;  %v6763_v38 = vsub.f32 %v6565_v42, %v6753_v55  ;;  %v6767_v39 = vsub.f32 %v6562_v41, %v6755_v62 }
 0x1b4   :  { %v359_v61 = vpop.xlane.xlu1 %358  ;;  %v361_v28 = vpop.xlane.xlu0 %360 }
 0x1b5   :  { %10406 = vst [vmem:[#allocation19_spill] sm:$0xff] %v6763_v38  ;;  %10407 = vst [vmem:[#allocation20_spill] sm:$0xff] %v6767_v39  ;;  %v6769_v34 = vmul.f32 0.015625, %v359_v61  ;;  %v6771_v37 = vmul.f32 0.015625, %v361_v28  ;;  %v465_v10 = vmul.f32 %v6763_v38, %v6763_v38  ;;  %v466_v13 = vmul.f32 %v6767_v39, %v6767_v39  ;;  %v5958_v28 = vld [vmem:[#allocation5 + $0x58] sm:$0xff]  }
 0x1b6   :  { %5644 = vmatprep.subr.bf16.mxu1 %v5958_v28 }
 0x1b7   :  { %514 = vadd.xlane.f32.xlu1 %v465_v10  ;;  %516 = vadd.xlane.f32.xlu0 %v466_v13  ;;  %v6779_v41 = vsub.f32 %v6570_v44, %v6769_v34  ;;  %v6783_v42 = vsub.f32 %v6573_v45, %v6771_v37 }
 0x1b8   :  { %v363_v40 = vpop.xlane.xlu1 %362  ;;  %v365_v61 = vpop.xlane.xlu0 %364  ;;  %5645 = vmatpush3.bf16.msra.mxu1 %v5958_v28 }
 0x1b9   :  { %10408 = vst [vmem:[#allocation21_spill] sm:$0xff] %v6779_v41  ;;  %10409 = vst [vmem:[#allocation22_spill] sm:$0xff] %v6783_v42  ;;  %v6785_v60 = vmul.f32 0.015625, %v363_v40  ;;  %v6787_v38 = vmul.f32 0.015625, %v365_v61  ;;  %v467_v10 = vmul.f32 %v6779_v41, %v6779_v41  ;;  %v468_v13 = vmul.f32 %v6783_v42, %v6783_v42  ;;  %v5959_v61 = vld [vmem:[#allocation5 + $0x50] sm:$0xff]  }
 0x1ba   :  { %5646 = vmatprep.subr.bf16.mxu1 %v5959_v61 }
 0x1bb   :  { %518 = vadd.xlane.f32.xlu1 %v467_v10  ;;  %520 = vadd.xlane.f32.xlu0 %v468_v13  ;;  %v6795_v44 = vsub.f32 %v6581_v48, %v6785_v60  ;;  %v6799_v45 = vsub.f32 %v6578_v47, %v6787_v38 }
 0x1bc   :  { %v367_v33 = vpop.xlane.xlu1 %366  ;;  %v369_v40 = vpop.xlane.xlu0 %368  ;;  %5647 = vmatpush3.bf16.msra.mxu1 %v5959_v61 }
 0x1bd   :  { %10410 = vst [vmem:[#allocation23_spill] sm:$0xff] %v6795_v44  ;;  %10411 = vst [vmem:[#allocation24_spill] sm:$0xff] %v6799_v45  ;;  %v6801_v39 = vmul.f32 0.015625, %v367_v33  ;;  %v6803_v41 = vmul.f32 0.015625, %v369_v40  ;;  %v469_v10 = vmul.f32 %v6795_v44, %v6795_v44  ;;  %v470_v13 = vmul.f32 %v6799_v45, %v6799_v45  ;;  %v5960_v40 = vld [vmem:[#allocation5 + $0x48] sm:$0xff]  }
 0x1be   :  { %5648 = vmatprep.subr.bf16.mxu1 %v5960_v40  ;;  %v553_v45 = vmul.f32 64.0, %v6689_v4 }
 0x1bf   :  { %522 = vadd.xlane.f32.xlu1 %v469_v10  ;;  %524 = vadd.xlane.f32.xlu0 %v470_v13  ;;  %v6811_v47 = vsub.f32 %v6586_v50, %v6801_v39  ;;  %v6815_v48 = vsub.f32 %v6589_v51, %v6803_v41 }
 0x1c0   :  { %v371_v28 = vpop.xlane.xlu1 %370  ;;  %v373_v33 = vpop.xlane.xlu0 %372  ;;  %5649 = vmatpush3.bf16.msra.mxu1 %v5960_v40 }
 0x1c1   :  { %10412 = vst [vmem:[#allocation25_spill] sm:$0xff] %v6811_v47  ;;  %10413 = vst [vmem:[#allocation26_spill] sm:$0xff] %v6815_v48  ;;  %v6817_v42 = vmul.f32 0.015625, %v371_v28  ;;  %v6819_v44 = vmul.f32 0.015625, %v373_v33  ;;  %v471_v10 = vmul.f32 %v6811_v47, %v6811_v47  ;;  %v472_v13 = vmul.f32 %v6815_v48, %v6815_v48 }
 0x1c3   :  { %526 = vadd.xlane.f32.xlu1 %v471_v10  ;;  %528 = vadd.xlane.f32.xlu0 %v472_v13  ;;  %v6827_v50 = vsub.f32 %v6597_v54, %v6817_v42  ;;  %v6831_v51 = vsub.f32 %v6594_v53, %v6819_v44 }
 0x1c4   :  { %v375_v61 = vpop.xlane.xlu1 %374  ;;  %v377_v28 = vpop.xlane.xlu0 %376 }
 0x1c5   :  { %10414 = vst [vmem:[#allocation27_spill] sm:$0xff] %v6827_v50  ;;  %10415 = vst [vmem:[#allocation28_spill] sm:$0xff] %v6831_v51  ;;  %v6833_v33 = vmul.f32 0.015625, %v375_v61  ;;  %v6835_v47 = vmul.f32 0.015625, %v377_v28  ;;  %v473_v48 = vmul.f32 %v6827_v50, %v6827_v50  ;;  %v474_v10 = vmul.f32 %v6831_v51, %v6831_v51 }
 0x1c7   :  { %530 = vadd.xlane.f32.xlu1 %v473_v48  ;;  %532 = vadd.xlane.f32.xlu0 %v474_v10  ;;  %v6843_v54 = vsub.f32 %v6602_v56, %v6833_v33  ;;  %v6847_v53 = vsub.f32 %v6605_v58, %v6835_v47 }
 0x1c8   :  { %v379_v40 = vpop.xlane.xlu1 %378  ;;  %v381_v13 = vpop.xlane.xlu0 %380 }
 0x1c9   :  { %10416 = vst [vmem:[#allocation29_spill] sm:$0xff] %v6843_v54  ;;  %10417 = vst [vmem:[#allocation30_spill] sm:$0xff] %v6847_v53  ;;  %v6849_v61 = vmul.f32 0.015625, %v379_v40  ;;  %v6851_v28 = vmul.f32 0.015625, %v381_v13  ;;  %v475_v50 = vmul.f32 %v6843_v54, %v6843_v54  ;;  %v476_v48 = vmul.f32 %v6847_v53, %v6847_v53 }
 0x1ca   :  { %v551_v53 = vmul.f32 64.0, %v6673_v43 }
 0x1cb   :  { %534 = vadd.xlane.f32.xlu1 %v475_v50  ;;  %536 = vadd.xlane.f32.xlu0 %v476_v48  ;;  %v6859_v56 = vsub.f32 %v6613_v1, %v6849_v61  ;;  %v6863_v58 = vsub.f32 %v6610_v0, %v6851_v28  ;;  %v544_v0 = vmul.f32 64.0, %v6623_v9  ;;  %v546_v48 = vmul.f32 64.0, %v6621_v8 }
 0x1cc   :  { %v383_v10 = vpop.xlane.xlu1 %382 }
 0x1cd   :  { %10418 = vst [vmem:[#allocation31_spill] sm:$0xff] %v6859_v56  ;;  %10419 = vst [vmem:[#allocation32_spill] sm:$0xff] %v6863_v58  ;;  %v6865_v40 = vmul.f32 0.015625, %v383_v10  ;;  %v477_v13 = vmul.f32 %v6859_v56, %v6859_v56  ;;  %v478_v54 = vmul.f32 %v6863_v58, %v6863_v58  ;;  %v545_v10 = vmul.f32 64.0, %v6631_v17 }
 0x1ce   :  { %v547_v56 = vmul.f32 64.0, %v6629_v14  ;;  %v548_v58 = vmul.f32 64.0, %v6643_v2  ;;  %v578_v51 = vmul.f32 %v546_v48, %v6621_v8  ;;  %v6898_v48 = vmul.f32 %v551_v53, %v6673_v43 }
 0x1cf   :  { %538 = vadd.xlane.f32.xlu1 %v477_v13  ;;  %540 = vadd.xlane.f32.xlu0 %v478_v54  ;;  %v6873_v50 = vsub.f32 %v6618_v3, %v6865_v40  ;;  %v549_v54 = vmul.f32 64.0, %v6657_v29  ;;  %v576_v13 = vmul.f32 %v544_v0, %v6623_v9  ;;  %v550_v3 = vmul.f32 64.0, %v6659_v32 }
 0x1d0   :  { %v577_v35 = vmul.f32 %v545_v10, %v6631_v17  ;;  %v579_v31 = vmul.f32 %v547_v56, %v6629_v14  ;;  %v580_v9 = vmul.f32 %v548_v58, %v6643_v2  ;;  %v557_v2 = vmul.f32 64.0, %v6721_v49 }
 0x1d1   :  { %10420 = vst [vmem:[#allocation33_spill] sm:$0xff] %v6873_v50  ;;  %v479_v1 = vmul.f32 %v6873_v50, %v6873_v50  ;;  %v581_v0 = vmul.f32 %v549_v54, %v6657_v29  ;;  %v582_v8 = vmul.f32 %v550_v3, %v6659_v32  ;;  %v558_v29 = vmul.f32 64.0, %v6723_v52 }
 0x1d2   :  { %v559_v58 = vmul.f32 64.0, %v6737_v22  ;;  %v6910_v43 = vmul.f32 %v554_v30, %v6691_v6  ;;  %v6916_v53 = vmul.f32 %v556_v25, %v6707_v7  ;;  %v6926_v30 = vmul.f32 %v557_v2, %v6721_v49 }
 0x1d3   :  { %542 = vadd.xlane.f32.xlu1 %v479_v1  ;;  %v552_v1 = vmul.f32 64.0, %v6675_v46  ;;  %v561_v25 = vmul.f32 64.0, %v6753_v55 }
 0x1d4   :  { %v6932_v7 = vmul.f32 %v559_v58, %v6737_v22  ;;  %v565_v58 = vmul.f32 64.0, %v6785_v60 }
 0x1d5   :  { %v6901_v17 = vmul.f32 %v552_v1, %v6675_v46  ;;  %v6913_v46 = vmul.f32 %v555_v26, %v6705_v24  ;;  %v6929_v24 = vmul.f32 %v558_v29, %v6723_v52  ;;  %v563_v52 = vmul.f32 64.0, %v6769_v34 }
 0x1d6   :  { %v564_v29 = vmul.f32 64.0, %v6771_v37 }
 0x21c   :  { %v481_v50 = vpop.xlane.xlu0 %480 }
 0x21d   :  { %v608_v36 = vsub.f32 %v481_v50, %v576_v13  ;;  %v6904_v50 = vmul.f32 %v553_v45, %v6689_v4  ;;  %v560_v4 = vmul.f32 64.0, %v6739_v23  ;;  %v6920_v45 = vsub.s32 1, %v6482_v57 }
 0x21f   :  { %v640_v21 = vmul.f32 0.015625, %v608_v36  ;;  %v6941_v49 = vrot.slane %v6484_v59, %v6920_v45 }
 0x220   :  { %v483_v14 = vpop.xlane.xlu1 %482  ;;  %v485_v56 = vpop.xlane.xlu0 %484 }
 0x221   :  { %v672_v36 = vadd.f32 1e-05, %v640_v21  ;;  %v609_v10 = vsub.f32 %v483_v14, %v577_v35  ;;  %v610_v32 = vsub.f32 %v485_v56, %v578_v51  ;;  %v6923_v21 = vsub.s32 2, %v6482_v57 }
 0x222   :  { %v6936_v57 = vmul.f32 %v560_v4, %v6739_v23  ;;  %v562_v14 = vmul.f32 64.0, %v6755_v62  ;;  %v6949_v23 = vmul.f32 %v561_v25, %v6753_v55  ;;  %v568_v25 = vmul.f32 64.0, %v6803_v41 }
 0x223   :  { %6001 = vrsqrt.f32 %v672_v36  ;;  %v641_v54 = vmul.f32 0.015625, %v609_v10  ;;  %v642_v13 = vmul.f32 0.015625, %v610_v32  ;;  %v6946_v2 = vrot.slane %v6484_v59, %v6923_v21 }
 0x224   :  { %v487_v35 = vpop.xlane.xlu1 %486  ;;  %v489_v6 = vpop.xlane.xlu0 %488  ;;  %v6957_v59 = vmul.f32 %v563_v52, %v6769_v34  ;;  %v569_v34 = vmul.f32 64.0, %v6817_v42 }
 0x225   :  { %v673_v26 = vadd.f32 1e-05, %v641_v54  ;;  %v674_v51 = vadd.f32 1e-05, %v642_v13  ;;  %v611_v3 = vsub.f32 %v487_v35, %v579_v31  ;;  %v612_v1 = vsub.f32 %v489_v6, %v580_v9 }
 0x226   :  { %v6954_v54 = vmul.f32 %v562_v14, %v6755_v62  ;;  %v566_v13 = vmul.f32 64.0, %v6787_v38  ;;  %v567_v35 = vmul.f32 64.0, %v6801_v39  ;;  %v6966_v62 = vmul.f32 %v565_v58, %v6785_v60 }
 0x227   :  { %6003 = vrsqrt.f32 %v673_v26  ;;  %v643_v22 = vmul.f32 0.015625, %v611_v3  ;;  %v644_v56 = vmul.f32 0.015625, %v612_v1  ;;  %v570_v14 = vmul.f32 64.0, %v6819_v44 }
 0x228   :  { %6005 = vrsqrt.f32 %v674_v51  ;;  %v491_v31 = vpop.xlane.xlu1 %490  ;;  %v493_v9 = vpop.xlane.xlu0 %492  ;;  %v6983_v58 = vmul.f32 %v569_v34, %v6817_v42 }
 0x229   :  { %v675_v36 = vadd.f32 1e-05, %v643_v22  ;;  %v676_v10 = vadd.f32 1e-05, %v644_v56  ;;  %v613_v32 = vsub.f32 %v491_v31, %v581_v0  ;;  %v614_v4 = vsub.f32 %v493_v9, %v582_v8 }
 0x22a   :  { %v6963_v0 = vmul.f32 %v564_v29, %v6771_v37  ;;  %v6973_v22 = vmul.f32 %v566_v13, %v6787_v38  ;;  %v6976_v56 = vmul.f32 %v567_v35, %v6801_v39  ;;  %v571_v37 = vmul.f32 64.0, %v6833_v33 }
 0x22b   :  { %6007 = vrsqrt.f32 %v675_v36  ;;  %v645_v55 = vmul.f32 0.015625, %v613_v32  ;;  %v646_v6 = vmul.f32 0.015625, %v614_v4  ;;  %v6980_v9 = vmul.f32 %v568_v25, %v6803_v41 }
 0x22c   :  { %6009 = vrsqrt.f32 %v676_v10  ;;  %v495_v26 = vpop.xlane.xlu1 %494  ;;  %v497_v51 = vpop.xlane.xlu0 %496  ;;  %v572_v38 = vmul.f32 64.0, %v6835_v47  ;;  %v573_v36 = vmul.f32 64.0, %v6849_v61  ;;  %v574_v39 = vmul.f32 64.0, %v6851_v28 }
 0x22d   :  { %v677_v8 = vadd.f32 1e-05, %v645_v55  ;;  %v615_v3 = vsub.f32 %v495_v26, %v6898_v48  ;;  %v616_v1 = vsub.f32 %v497_v51, %v6901_v17  ;;  %v678_v52 = vadd.f32 1e-05, %v646_v6 }
 0x22e   :  { %v6991_v41 = vmul.f32 %v570_v14, %v6819_v44  ;;  %v6995_v42 = vmul.f32 %v571_v37, %v6833_v33  ;;  %v575_v25 = vmul.f32 64.0, %v6865_v40  ;;  %v7000_v44 = vmul.f32 %v572_v38, %v6835_v47 }
 0x22f   :  { %6011 = vrsqrt.f32 %v677_v8  ;;  %v647_v60 = vmul.f32 0.015625, %v615_v3  ;;  %v648_v31 = vmul.f32 0.015625, %v616_v1  ;;  %v7003_v34 = vmul.f32 %v573_v36, %v6849_v61 }
 0x230   :  { %v6002_v48 = vpop.eup %6001  ;;  %v499_v29 = vpop.xlane.xlu1 %498  ;;  %6013 = vrsqrt.f32 %v678_v52 }
 0x231   :  { %v501_v17 = vpop.xlane.xlu0 %500  ;;  %v679_v10 = vadd.f32 1e-05, %v647_v60  ;;  %v617_v32 = vsub.f32 %v499_v29, %v6904_v50  ;;  %v680_v13 = vadd.f32 1e-05, %v648_v31  ;;  %v736_v35 = vmul.f32 %v6002_v48, %v6627_v12 }
 0x232   :  { %v618_v4 = vsub.f32 %v501_v17, %v6910_v43  ;;  %v7006_v12 = vmul.f32 %v574_v39, %v6851_v28  ;;  %v7014_v28 = vmul.f32 %v575_v25, %v6865_v40 }
 0x233   :  { %6015 = vrsqrt.f32 %v679_v10  ;;  %v649_v55 = vmul.f32 0.015625, %v617_v32  ;;  %v772_v43 = vmul.f32 %v6941_v49, %v736_v35 }
 0x234   :  { %v650_v6 = vmul.f32 0.015625, %v618_v4  ;;  %v6004_v26 = vpop.eup %6003  ;;  %v503_v51 = vpop.xlane.xlu1 %502  ;;  %6017 = vrsqrt.f32 %v680_v13 }
 0x235   :  { %v505_v50 = vpop.xlane.xlu0 %504  ;;  %v6006_v33 = vpop.eup %6005  ;;  %v681_v8 = vadd.f32 1e-05, %v649_v55  ;;  %v619_v1 = vsub.f32 %v503_v51, %v6913_v46  ;;  %v737_v37 = vmul.f32 %v6004_v26, %v6641_v19  ;;  %v808_v47 = vadd.f32 %v6946_v2, %v772_v43 }
 0x236   :  { %v682_v3 = vadd.f32 1e-05, %v650_v6  ;;  %v620_v14 = vsub.f32 %v505_v50, %v6916_v53  ;;  %v738_v52 = vmul.f32 %v6006_v33, %v6637_v18 }
 0x237   :  { %6019 = vrsqrt.f32 %v681_v8  ;;  %v651_v61 = vmul.f32 0.015625, %v619_v1  ;;  %v773_v46 = vmul.f32 %v6941_v49, %v737_v37  ;;  %v840_v53 = vmax.f32 %v808_v47, 0.0 }
 0x238   :  { %v652_v60 = vmul.f32 0.015625, %v620_v14  ;;  %v6008_v31 = vpop.eup %6007  ;;  %6021 = vrsqrt.f32 %v682_v3  ;;  %v507_v48 = vpop.xlane.xlu1 %506  ;;  %v774_v18 = vmul.f32 %v6941_v49, %v738_v52 }
 0x239   :  { %v509_v29 = vpop.xlane.xlu0 %508  ;;  %v6010_v17 = vpop.eup %6009  ;;  %v739_v19 = vmul.f32 %v6008_v31, %v6651_v27  ;;  %v683_v38 = vadd.f32 1e-05, %v651_v61  ;;  %v621_v39 = vsub.f32 %v507_v48, %v6926_v30  ;;  %v809_v40 = vadd.f32 %v6946_v2, %v773_v46 }
 0x23a   :  { %v684_v36 = vadd.f32 1e-05, %v652_v60  ;;  %v622_v10 = vsub.f32 %v509_v29, %v6929_v24  ;;  %v872_v32 = vmin.f32 %v840_v53, 6.0  ;;  %v810_v4 = vadd.f32 %v6946_v2, %v774_v18 }
 0x23b   :  { %6023 = vrsqrt.f32 %v683_v38  ;;  %v653_v13 = vmul.f32 0.015625, %v621_v39  ;;  %v775_v35 = vmul.f32 %v6941_v49, %v739_v19  ;;  %v740_v55 = vmul.f32 %v6010_v17, %v6655_v63 }
 0x23c   :  { %v6012_v6 = vpop.eup %6011  ;;  %6025 = vrsqrt.f32 %v684_v36  ;;  %v654_v27 = vmul.f32 0.015625, %v622_v10  ;;  %v511_v25 = vpop.xlane.xlu1 %510  ;;  %v841_v51 = vmax.f32 %v809_v40, 0.0  ;;  %v842_v30 = vmax.f32 %v810_v4, 0.0 }
 0x23d   :  { %v513_v26 = vpop.xlane.xlu0 %512  ;;  %v685_v50 = vadd.f32 1e-05, %v653_v13  ;;  %v623_v24 = vsub.f32 %v511_v25, %v6932_v7  ;;  %v811_v33 = vadd.f32 %v6946_v2, %v775_v35  ;;  %v741_v14 = vmul.f32 %v6012_v6, %v6667_v5  ;;  %v6014_v63 = vpop.eup %6013 }
 0x23e   :  { %v624_v43 = vsub.f32 %v513_v26, %v6936_v57  ;;  %v686_v8 = vadd.f32 1e-05, %v654_v27  ;;  %v873_v3 = vmin.f32 %v841_v51, 6.0  ;;  %v874_v1 = vmin.f32 %v842_v30, 6.0 }
 0x23f   :  { %6027 = vrsqrt.f32 %v685_v50  ;;  %v655_v52 = vmul.f32 0.015625, %v623_v24  ;;  %v843_v47 = vmax.f32 %v811_v33, 0.0  ;;  %v776_v7 = vmul.f32 %v6941_v49, %v740_v55 }
 0x240   :  { %v656_v37 = vmul.f32 0.015625, %v624_v43  ;;  %v6016_v61 = vpop.eup %6015  ;;  %6029 = vrsqrt.f32 %v686_v8  ;;  %v515_v60 = vpop.xlane.xlu1 %514  ;;  %v923_v48 = vpack.c.bf16 %v873_v3, %v872_v32  ;;  %v777_v57 = vmul.f32 %v6941_v49, %v741_v14 }
 0x241   :  { %v517_v31 = vpop.xlane.xlu0 %516  ;;  %v687_v29 = vadd.f32 1e-05, %v655_v52  ;;  %v625_v53 = vsub.f32 %v515_v60, %v6949_v23  ;;  %v875_v18 = vmin.f32 %v843_v47, 6.0  ;;  %v812_v17 = vadd.f32 %v6946_v2, %v776_v7  ;;  %v6018_v36 = vpop.eup %6017 }
 0x242   :  { %v688_v46 = vadd.f32 1e-05, %v656_v37  ;;  %v626_v5 = vsub.f32 %v517_v31, %v6954_v54  ;;  %5650 = vmatprep.mubr.bf16.mxu1 %v923_v48  ;;  %v813_v19 = vadd.f32 %v6946_v2, %v777_v57  ;;  %v742_v38 = vmul.f32 %v6014_v63, %v6671_v11  ;;  %v10421_v57 = vld [vmem:[#allocation12_spill] sm:$0xff] }
 0x243   :  { %6031 = vrsqrt.f32 %v687_v29  ;;  %v657_v39 = vmul.f32 0.015625, %v625_v53  ;;  %v743_v40 = vmul.f32 %v6016_v61, %v6683_v16  ;;  %v924_v13 = vpack.c.bf16 %v875_v18, %v874_v1 }
 0x244   :  { %v658_v10 = vmul.f32 0.015625, %v626_v5  ;;  %v6020_v32 = vpop.eup %6019  ;;  %6033 = vrsqrt.f32 %v688_v46  ;;  %v519_v4 = vpop.xlane.xlu1 %518  ;;  %v844_v54 = vmax.f32 %v812_v17, 0.0  ;;  %v845_v35 = vmax.f32 %v813_v19, 0.0 }
 0x245   :  { %v521_v23 = vpop.xlane.xlu0 %520  ;;  %v6022_v55 = vpop.eup %6021  ;;  %v689_v6 = vadd.f32 1e-05, %v657_v39  ;;  %v627_v25 = vsub.f32 %v519_v4, %v6957_v59  ;;  %5651 = vmatmul.mubr.bf16.vlgmr.msra.gmra.mxu1 %v924_v13  ;;  %v778_v30 = vmul.f32 %v6941_v49, %v742_v38  ;;  %v779_v16 = vmul.f32 %v6941_v49, %v743_v40 }
 0x246   :  { %v690_v27 = vadd.f32 1e-05, %v658_v10  ;;  %v628_v11 = vsub.f32 %v521_v23, %v6963_v0  ;;  %v876_v26 = vmin.f32 %v844_v54, 6.0  ;;  %v877_v51 = vmin.f32 %v845_v35, 6.0 }
 0x247   :  { %6035 = vrsqrt.f32 %v689_v6  ;;  %v659_v50 = vmul.f32 0.015625, %v627_v25  ;;  %v744_v43 = vmul.f32 %v6018_v36, %v6687_v15  ;;  %v814_v59 = vadd.f32 %v6946_v2, %v778_v30 }
 0x248   :  { %v660_v24 = vmul.f32 0.015625, %v628_v11  ;;  %v6024_v33 = vpop.eup %6023  ;;  %6037 = vrsqrt.f32 %v690_v27  ;;  %v523_v8 = vpop.xlane.xlu1 %522  ;;  %v925_v1 = vpack.c.bf16 %v877_v51, %v876_v26  ;;  %v815_v0 = vadd.f32 %v6946_v2, %v779_v16 }
 0x249   :  { %v525_v3 = vpop.xlane.xlu0 %524  ;;  %v6026_v14 = vpop.eup %6025  ;;  %v691_v63 = vadd.f32 1e-05, %v659_v50  ;;  %v629_v37 = vsub.f32 %v523_v8, %v6966_v62  ;;  %v846_v61 = vmax.f32 %v814_v59, 0.0  ;;  %v745_v15 = vmul.f32 %v6020_v32, %v6699_v20  ;;  %v10422_v32 = vld [vmem:[#allocation13_spill] sm:$0xff] }
 0x24a   :  { %v692_v52 = vadd.f32 1e-05, %v660_v24  ;;  %v630_v47 = vsub.f32 %v525_v3, %v6973_v22  ;;  %5654 = vmatprep.mubr.bf16.mxu1 %v925_v1  ;;  %v847_v60 = vmax.f32 %v815_v0, 0.0  ;;  %v780_v31 = vmul.f32 %v6941_v49, %v744_v43  ;;  %v10423_v3 = vld [vmem:[#allocation14_spill] sm:$0xff] }
 0x24b   :  { %6039 = vrsqrt.f32 %v691_v63  ;;  %v661_v48 = vmul.f32 0.015625, %v629_v37  ;;  %v746_v29 = vmul.f32 %v6022_v55, %v10421_v57  ;;  %v878_v18 = vmin.f32 %v846_v61, 6.0 }
 0x24c   :  { %v662_v7 = vmul.f32 0.015625, %v630_v47  ;;  %v6028_v46 = vpop.eup %6027  ;;  %6041 = vrsqrt.f32 %v692_v52  ;;  %v527_v53 = vpop.xlane.xlu1 %526  ;;  %v879_v62 = vmin.f32 %v847_v60, 6.0  ;;  %v781_v22 = vmul.f32 %v6941_v49, %v745_v15 }
 0x24d   :  { %v529_v5 = vpop.xlane.xlu0 %528  ;;  %v6030_v17 = vpop.eup %6029  ;;  %v693_v19 = vadd.f32 1e-05, %v661_v48  ;;  %v631_v20 = vsub.f32 %v527_v53, %v6976_v56  ;;  %v816_v10 = vadd.f32 %v6946_v2, %v780_v31  ;;  %v747_v4 = vmul.f32 %v6024_v33, %v10422_v32  ;;  %v10426_v32 = vld [vmem:[#allocation17_spill] sm:$0xff] }
 0x24e   :  { %v694_v38 = vadd.f32 1e-05, %v662_v7  ;;  %v632_v36 = vsub.f32 %v529_v5, %v6980_v9  ;;  %v926_v39 = vpack.c.bf16 %v879_v62, %v878_v18  ;;  %v817_v40 = vadd.f32 %v6946_v2, %v781_v22  ;;  %v10424_v7 = vld [vmem:[#allocation15_spill] sm:$0xff]  ;;  %v10425_v5 = vld [vmem:[#allocation16_spill] sm:$0xff] }
 0x24f   :  { %6043 = vrsqrt.f32 %v693_v19  ;;  %v663_v23 = vmul.f32 0.015625, %v631_v20  ;;  %v782_v54 = vmul.f32 %v6941_v49, %v746_v29  ;;  %v848_v56 = vmax.f32 %v816_v10, 0.0 }
 0x250   :  { %v664_v13 = vmul.f32 0.015625, %v632_v36  ;;  %v6032_v35 = vpop.eup %6031  ;;  %6045 = vrsqrt.f32 %v694_v38  ;;  %5655 = vmatmul.mubr.bf16.gmra.mxu1 %v926_v39  ;;  %v531_v55 = vpop.xlane.xlu1 %530  ;;  %v849_v27 = vmax.f32 %v817_v40, 0.0  ;;  %v783_v9 = vmul.f32 %v6941_v49, %v747_v4 }
 0x251   :  { %v533_v6 = vpop.xlane.xlu0 %532  ;;  %v6034_v25 = vpop.eup %6033  ;;  %v695_v11 = vadd.f32 1e-05, %v663_v23  ;;  %v633_v51 = vsub.f32 %v531_v55, %v6983_v58  ;;  %v880_v16 = vmin.f32 %v848_v56, 6.0  ;;  %v818_v24 = vadd.f32 %v6946_v2, %v782_v54  ;;  %v10427_v55 = vld [vmem:[#allocation18_spill] sm:$0xff] }
 0x252   :  { %v696_v26 = vadd.f32 1e-05, %v664_v13  ;;  %v634_v30 = vsub.f32 %v533_v6, %v6991_v41  ;;  %v881_v50 = vmin.f32 %v849_v27, 6.0  ;;  %v819_v43 = vadd.f32 %v6946_v2, %v783_v9 }
 0x253   :  { %6047 = vrsqrt.f32 %v695_v11  ;;  %v665_v33 = vmul.f32 0.015625, %v633_v51  ;;  %v748_v1 = vmul.f32 %v6026_v14, %v10423_v3  ;;  %v850_v37 = vmax.f32 %v818_v24, 0.0  ;;  %v10428_v24 = vld [vmem:[#allocation19_spill] sm:$0xff]  ;;  %v10429_v3 = vld [vmem:[#allocation20_spill] sm:$0xff] }
 0x254   :  { %v666_v8 = vmul.f32 0.015625, %v634_v30  ;;  %v6036_v59 = vpop.eup %6035  ;;  %6049 = vrsqrt.f32 %v696_v26  ;;  %v927_v0 = vpack.c.bf16 %v881_v50, %v880_v16  ;;  %v535_v63 = vpop.xlane.xlu1 %534  ;;  %v851_v58 = vmax.f32 %v819_v43, 0.0 }
 0x255   :  { %v537_v52 = vpop.xlane.xlu0 %536  ;;  %v6038_v47 = vpop.eup %6037  ;;  %v697_v41 = vadd.f32 1e-05, %v665_v33  ;;  %v635_v60 = vsub.f32 %v535_v63, %v6995_v42  ;;  %v882_v31 = vmin.f32 %v850_v37, 6.0  ;;  %v749_v57 = vmul.f32 %v6028_v46, %v10424_v7 }
 0x256   :  { %v698_v61 = vadd.f32 1e-05, %v666_v8  ;;  %v636_v15 = vsub.f32 %v537_v52, %v7000_v44  ;;  %5658 = vmatprep.mubr.bf16.mxu1 %v927_v0  ;;  %v883_v48 = vmin.f32 %v851_v58, 6.0  ;;  %v784_v14 = vmul.f32 %v6941_v49, %v748_v1 }
 0x257   :  { %6051 = vrsqrt.f32 %v697_v41  ;;  %v667_v29 = vmul.f32 0.015625, %v635_v60  ;;  %v750_v18 = vmul.f32 %v6030_v17, %v10425_v5  ;;  %v785_v42 = vmul.f32 %v6941_v49, %v749_v57  ;;  %v10430_v60 = vld [vmem:[#allocation21_spill] sm:$0xff] }
 0x258   :  { %v668_v53 = vmul.f32 0.015625, %v636_v15  ;;  %v6040_v62 = vpop.eup %6039  ;;  %6053 = vrsqrt.f32 %v698_v61  ;;  %v928_v22 = vpack.c.bf16 %v883_v48, %v882_v31  ;;  %v539_v19 = vpop.xlane.xlu1 %538  ;;  %v820_v44 = vadd.f32 %v6946_v2, %v784_v14 }
 0x259   :  { %v541_v38 = vpop.xlane.xlu0 %540  ;;  %v6042_v20 = vpop.eup %6041  ;;  %v699_v36 = vadd.f32 1e-05, %v667_v29  ;;  %v637_v46 = vsub.f32 %v539_v19, %v7003_v34  ;;  %v821_v40 = vadd.f32 %v6946_v2, %v785_v42  ;;  %v751_v4 = vmul.f32 %v6032_v35, %v10426_v32  ;;  %v10432_v29 = vld [vmem:[#allocation23_spill] sm:$0xff] }
 0x25a   :  { %v700_v39 = vadd.f32 1e-05, %v668_v53  ;;  %v638_v10 = vsub.f32 %v541_v38, %v7006_v12  ;;  %5659 = vmatmul.mubr.bf16.gmra.mxu1 %v928_v22  ;;  %v852_v17 = vmax.f32 %v820_v44, 0.0  ;;  %v786_v23 = vmul.f32 %v6941_v49, %v750_v18 }
 0x25b   :  { %6055 = vrsqrt.f32 %v699_v36  ;;  %v669_v13 = vmul.f32 0.015625, %v637_v46  ;;  %v752_v6 = vmul.f32 %v6034_v25, %v10427_v55  ;;  %v853_v27 = vmax.f32 %v821_v40, 0.0 }
 0x25c   :  { %v670_v54 = vmul.f32 0.015625, %v638_v10  ;;  %v6044_v56 = vpop.eup %6043  ;;  %6057 = vrsqrt.f32 %v700_v39  ;;  %v884_v9 = vmin.f32 %v852_v17, 6.0  ;;  %v543_v34 = vpop.xlane.xlu1 %542  ;;  %v787_v12 = vmul.f32 %v6941_v49, %v751_v4  ;;  %v10434_v17 = vld [vmem:[#allocation25_spill] sm:$0xff] }
 0x25d   :  { %v6046_v11 = vpop.eup %6045  ;;  %v701_v26 = vadd.f32 1e-05, %v669_v13  ;;  %v639_v30 = vsub.f32 %v543_v34, %v7014_v28  ;;  %v822_v35 = vadd.f32 %v6946_v2, %v786_v23  ;;  %v885_v16 = vmin.f32 %v853_v27, 6.0 }
 0x25e   :  { %v702_v51 = vadd.f32 1e-05, %v670_v54  ;;  %v823_v50 = vadd.f32 %v6946_v2, %v787_v12  ;;  %v753_v43 = vmul.f32 %v6036_v59, %v10428_v24  ;;  %v788_v25 = vmul.f32 %v6941_v49, %v752_v6  ;;  %v10435_v54 = vld [vmem:[#allocation26_spill] sm:$0xff] }
 0x25f   :  { %6059 = vrsqrt.f32 %v701_v26  ;;  %v671_v33 = vmul.f32 0.015625, %v639_v30  ;;  %v854_v8 = vmax.f32 %v822_v35, 0.0  ;;  %v754_v1 = vmul.f32 %v6038_v47, %v10429_v3  ;;  %v10431_v47 = vld [vmem:[#allocation22_spill] sm:$0xff]  ;;  %v10436_v30 = vld [vmem:[#allocation27_spill] sm:$0xff] }
 0x260   :  { %v6048_v0 = vpop.eup %6047  ;;  %6061 = vrsqrt.f32 %v702_v51  ;;  %v929_v63 = vpack.c.bf16 %v885_v16, %v884_v9  ;;  %v855_v52 = vmax.f32 %v823_v50, 0.0  ;;  %v789_v28 = vmul.f32 %v6941_v49, %v753_v43  ;;  %v10437_v43 = vld [vmem:[#allocation28_spill] sm:$0xff] }
 0x261   :  { %v6050_v37 = vpop.eup %6049  ;;  %v703_v58 = vadd.f32 1e-05, %v671_v33  ;;  %v886_v41 = vmin.f32 %v854_v8, 6.0  ;;  %v824_v61 = vadd.f32 %v6946_v2, %v788_v25  ;;  %v755_v59 = vmul.f32 %v6040_v62, %v10430_v60 }
 0x262   :  { %5662 = vmatprep.mubr.bf16.mxu1 %v929_v63  ;;  %v887_v15 = vmin.f32 %v855_v52, 6.0  ;;  %v825_v31 = vadd.f32 %v6946_v2, %v789_v28  ;;  %v790_v48 = vmul.f32 %v6941_v49, %v754_v1  ;;  %v756_v7 = vmul.f32 %v6042_v20, %v10431_v47  ;;  %v10433_v20 = vld [vmem:[#allocation24_spill] sm:$0xff]  ;;  %v10438_v28 = vld [vmem:[#allocation29_spill] sm:$0xff] }
 0x263   :  { %6063 = vrsqrt.f32 %v703_v58  ;;  %v856_v57 = vmax.f32 %v824_v61, 0.0  ;;  %v791_v14 = vmul.f32 %v6941_v49, %v755_v59  ;;  %v757_v53 = vmul.f32 %v6044_v56, %v10432_v29  ;;  %v10440_v29 = vld [vmem:[#allocation31_spill] sm:$0xff] }
 0x264   :  { %v6052_v5 = vpop.eup %6051  ;;  %v930_v18 = vpack.c.bf16 %v887_v15, %v886_v41  ;;  %v857_v22 = vmax.f32 %v825_v31, 0.0  ;;  %v826_v19 = vadd.f32 %v6946_v2, %v790_v48  ;;  %v792_v62 = vmul.f32 %v6941_v49, %v756_v7  ;;  %v10439_v15 = vld [vmem:[#allocation30_spill] sm:$0xff] }
 0x265   :  { %v6054_v38 = vpop.eup %6053  ;;  %v888_v42 = vmin.f32 %v856_v57, 6.0  ;;  %v827_v44 = vadd.f32 %v6946_v2, %v791_v14  ;;  %v793_v36 = vmul.f32 %v6941_v49, %v757_v53  ;;  %v758_v39 = vmul.f32 %v6046_v11, %v10433_v20 }
 0x266   :  { %5663 = vmatmul.mubr.bf16.gmra.mxu1 %v930_v18  ;;  %v889_v46 = vmin.f32 %v857_v22, 6.0  ;;  %v858_v10 = vmax.f32 %v826_v19, 0.0  ;;  %v828_v40 = vadd.f32 %v6946_v2, %v792_v62  ;;  %v759_v32 = vmul.f32 %v6048_v0, %v10434_v17  ;;  %v10441_v18 = vld [vmem:[#allocation32_spill] sm:$0xff] }
 0x267   :  { %v859_v4 = vmax.f32 %v827_v44, 0.0  ;;  %v829_v23 = vadd.f32 %v6946_v2, %v793_v36  ;;  %v794_v13 = vmul.f32 %v6941_v49, %v758_v39  ;;  %v760_v55 = vmul.f32 %v6050_v37, %v10435_v54 }
 0x268   :  { %v6056_v6 = vpop.eup %6055  ;;  %v931_v56 = vpack.c.bf16 %v889_v46, %v888_v42  ;;  %v890_v27 = vmin.f32 %v858_v10, 6.0  ;;  %v860_v9 = vmax.f32 %v828_v40, 0.0  ;;  %v795_v34 = vmul.f32 %v6941_v49, %v759_v32  ;;  %v10442_v46 = vld [vmem:[#allocation33_spill] sm:$0xff] }
 0x269   :  { %v6058_v12 = vpop.eup %6057  ;;  %v891_v11 = vmin.f32 %v859_v4, 6.0  ;;  %v861_v26 = vmax.f32 %v829_v23, 0.0  ;;  %v830_v51 = vadd.f32 %v6946_v2, %v794_v13  ;;  %v761_v35 = vmul.f32 %v6052_v5, %v10436_v30 }
 0x26a   :  { %5666 = vmatprep.mubr.bf16.mxu1 %v931_v56  ;;  %v892_v16 = vmin.f32 %v860_v9, 6.0  ;;  %v831_v50 = vadd.f32 %v6946_v2, %v795_v34  ;;  %v796_v24 = vmul.f32 %v6941_v49, %v760_v55  ;;  %v762_v25 = vmul.f32 %v6054_v38, %v10437_v43  ;;  %v10443_v43 = vld [vmem:[#allocation11_spill] sm:$0xff] }
 0x26b   :  { %v932_v33 = vpack.c.bf16 %v891_v11, %v890_v27  ;;  %v893_v8 = vmin.f32 %v861_v26, 6.0  ;;  %v862_v3 = vmax.f32 %v830_v51, 0.0  ;;  %v797_v1 = vmul.f32 %v6941_v49, %v761_v35 }
 0x26c   :  { %v6060_v0 = vpop.eup %6059  ;;  %v863_v63 = vmax.f32 %v831_v50, 0.0  ;;  %v832_v52 = vadd.f32 %v6946_v2, %v796_v24  ;;  %v763_v37 = vmul.f32 %v6056_v6, %v10438_v28  ;;  %v798_v58 = vmul.f32 %v6941_v49, %v762_v25 }
 0x26d   :  { %v6062_v41 = vpop.eup %6061  ;;  %v933_v61 = vpack.c.bf16 %v893_v8, %v892_v16  ;;  %v894_v60 = vmin.f32 %v862_v3, 6.0  ;;  %v833_v59 = vadd.f32 %v6946_v2, %v797_v1  ;;  %v764_v31 = vmul.f32 %v6058_v12, %v10439_v15 }
 0x26e   :  { %5667 = vmatmul.mubr.bf16.gmra.mxu1 %v932_v33  ;;  %v895_v48 = vmin.f32 %v863_v63, 6.0  ;;  %v864_v47 = vmax.f32 %v832_v52, 0.0  ;;  %v799_v7 = vmul.f32 %v6941_v49, %v763_v37  ;;  %v834_v57 = vadd.f32 %v6946_v2, %v798_v58 }
 0x26f   :  { %5670 = vmatprep.mubr.bf16.mxu1 %v933_v61  ;;  %v865_v14 = vmax.f32 %v833_v59, 0.0  ;;  %v765_v53 = vmul.f32 %v6060_v0, %v10440_v29  ;;  %v800_v5 = vmul.f32 %v6941_v49, %v764_v31  ;;  %v766_v22 = vmul.f32 %v6062_v41, %v10441_v18 }
 0x270   :  { %v6064_v19 = vpop.eup %6063  ;;  %v934_v62 = vpack.c.bf16 %v895_v48, %v894_v60  ;;  %v896_v38 = vmin.f32 %v864_v47, 6.0  ;;  %v835_v42 = vadd.f32 %v6946_v2, %v799_v7  ;;  %v866_v44 = vmax.f32 %v834_v57, 0.0 }
 0x271   :  { %v897_v36 = vmin.f32 %v865_v14, 6.0  ;;  %v801_v20 = vmul.f32 %v6941_v49, %v765_v53  ;;  %v836_v39 = vadd.f32 %v6946_v2, %v800_v5  ;;  %v767_v10 = vmul.f32 %v6064_v19, %v10442_v46 }
 0x272   :  { %v867_v40 = vmax.f32 %v835_v42, 0.0  ;;  %v802_v17 = vmul.f32 %v6941_v49, %v766_v22  ;;  %v898_v54 = vmin.f32 %v866_v44, 6.0 }
 0x273   :  { %v935_v32 = vpack.c.bf16 %v897_v36, %v896_v38  ;;  %v837_v4 = vadd.f32 %v6946_v2, %v801_v20  ;;  %v868_v23 = vmax.f32 %v836_v39, 0.0  ;;  %v803_v13 = vmul.f32 %v6941_v49, %v767_v10  ;;  %v921_v49 = vld [vmem:[#allocation5 + $0x88] sm:$0x3] }
 0x274   :  { %v899_v55 = vmin.f32 %v867_v40, 6.0  ;;  %v838_v6 = vadd.f32 %v6946_v2, %v802_v17  ;;  %v7126_v50 = vunpack.c.l.bf16 %v921_v49 }
 0x275   :  { %v869_v56 = vmax.f32 %v837_v4, 0.0  ;;  %v839_v27 = vadd.f32 %v6946_v2, %v803_v13  ;;  %v900_v12 = vmin.f32 %v868_v23, 6.0 }
 0x276   :  { %5671 = vmatmul.mubr.bf16.gmra.mxu1 %v934_v62  ;;  %v936_v9 = vpack.c.bf16 %v899_v55, %v898_v54  ;;  %v870_v34 = vmax.f32 %v838_v6, 0.0  ;;  %v7130_v2 = vrot.slane %v7126_v50, %v10443_v43 }
 0x277   :  { %5674 = vmatprep.mubr.bf16.mxu1 %v935_v32  ;;  %v901_v11 = vmin.f32 %v869_v56, 6.0  ;;  %v871_v26 = vmax.f32 %v839_v27, 0.0 }
 0x278   :  { %v902_v30 = vmin.f32 %v870_v34, 6.0 }
 0x279   :  { %v937_v51 = vpack.c.bf16 %v901_v11, %v900_v12  ;;  %v903_v35 = vmin.f32 %v871_v26, 6.0 }
 0x27b   :  { %v938_v16 = vpack.c.bf16 %v903_v35, %v902_v30 }
 0x27e   :  { %5675 = vmatmul.mubr.bf16.gmra.mxu1 %v936_v9 }
 0x27f   :  { %5678 = vmatprep.mubr.bf16.mxu1 %v937_v51 }
 0x286   :  { %5679 = vmatmul.mubr.bf16.gmra.mxu1 %v938_v16 }
 0x305   :  { %v5652_v24 = vpop.f32.mrf.mxu1 }
 0x306   :  { %v7137_v1 = vadd.f32 %v5652_v24, %v7130_v2 }
 0x307   :  { %v1025_v25 = vpop.f32.mrf.mxu1 }
 0x308   :  { %v7133_v33 = vadd.f32 %v1025_v25, %v7130_v2 }
 0x309   :  { %v5653_v8 = vpop.f32.mrf.mxu1 }
 0x30a   :  { %1152 = vadd.xlane.f32.xlu0 %v7133_v33  ;;  %v7145_v52 = vadd.f32 %v5653_v8, %v7130_v2 }
 0x30b   :  { %v1028_v3 = vpop.f32.mrf.mxu1 }
 0x30c   :  { %v7140_v0 = vadd.f32 %v1028_v3, %v7130_v2 }
 0x30e   :  { %1154 = vadd.xlane.f32.xlu1 %v7140_v0  ;;  %1156 = vadd.xlane.f32.xlu0 %v7137_v1 }
 0x310   :  { %v5656_v63 = vpop.f32.mrf.mxu1 }
 0x311   :  { %v7153_v61 = vadd.f32 %v5656_v63, %v7130_v2 }
 0x312   :  { %v1041_v28 = vpop.f32.mrf.mxu1  ;;  %1158 = vadd.xlane.f32.xlu1 %v7145_v52 }
 0x313   :  { %v7148_v37 = vadd.f32 %v1041_v28, %v7130_v2 }
 0x314   :  { %v5657_v58 = vpop.f32.mrf.mxu1 }
 0x315   :  { %1160 = vadd.xlane.f32.xlu0 %v7148_v37  ;;  %v7161_v15 = vadd.f32 %v5657_v58, %v7130_v2 }
 0x316   :  { %v1044_v41 = vpop.f32.mrf.mxu1 }
 0x317   :  { %v7156_v60 = vadd.f32 %v1044_v41, %v7130_v2 }
 0x319   :  { %1162 = vadd.xlane.f32.xlu1 %v7156_v60  ;;  %1164 = vadd.xlane.f32.xlu0 %v7153_v61 }
 0x31a   :  { %v5660_v59 = vpop.f32.mrf.mxu1 }
 0x31b   :  { %v7169_v57 = vadd.f32 %v5660_v59, %v7130_v2 }
 0x31c   :  { %v1057_v31 = vpop.f32.mrf.mxu1 }
 0x31d   :  { %v7164_v48 = vadd.f32 %v1057_v31, %v7130_v2  ;;  %1166 = vadd.xlane.f32.xlu1 %v7161_v15 }
 0x31e   :  { %v5661_v47 = vpop.f32.mrf.mxu1 }
 0x31f   :  { %1168 = vadd.xlane.f32.xlu0 %v7164_v48  ;;  %v7177_v29 = vadd.f32 %v5661_v47, %v7130_v2 }
 0x320   :  { %v1060_v7 = vpop.f32.mrf.mxu1 }
 0x321   :  { %v7172_v14 = vadd.f32 %v1060_v7, %v7130_v2 }
 0x323   :  { %1170 = vadd.xlane.f32.xlu1 %v7172_v14  ;;  %1172 = vadd.xlane.f32.xlu0 %v7169_v57 }
 0x326   :  { %v5664_v53 = vpop.f32.mrf.mxu1 }
 0x327   :  { %1174 = vadd.xlane.f32.xlu1 %v7177_v29  ;;  %v7185_v62 = vadd.f32 %v5664_v53, %v7130_v2 }
 0x328   :  { %v1073_v5 = vpop.f32.mrf.mxu1 }
 0x329   :  { %v7181_v18 = vadd.f32 %v1073_v5, %v7130_v2 }
 0x32a   :  { %v5665_v22 = vpop.f32.mrf.mxu1 }
 0x32b   :  { %1176 = vadd.xlane.f32.xlu0 %v7181_v18  ;;  %v7193_v36 = vadd.f32 %v5665_v22, %v7130_v2 }
 0x32c   :  { %v1076_v19 = vpop.f32.mrf.mxu1 }
 0x32d   :  { %v7188_v38 = vadd.f32 %v1076_v19, %v7130_v2 }
 0x32e   :  { %v5668_v42 = vpop.f32.mrf.mxu1 }
 0x32f   :  { %1178 = vadd.xlane.f32.xlu1 %v7188_v38  ;;  %1180 = vadd.xlane.f32.xlu0 %v7185_v62  ;;  %v7201_v10 = vadd.f32 %v5668_v42, %v7130_v2 }
 0x330   :  { %v1089_v44 = vpop.f32.mrf.mxu1 }
 0x331   :  { %v7196_v20 = vadd.f32 %v1089_v44, %v7130_v2 }
 0x332   :  { %v5669_v39 = vpop.f32.mrf.mxu1 }
 0x333   :  { %1182 = vadd.xlane.f32.xlu1 %v7193_v36  ;;  %1184 = vadd.xlane.f32.xlu0 %v7196_v20  ;;  %v7209_v4 = vadd.f32 %v5669_v39, %v7130_v2 }
 0x334   :  { %v1092_v46 = vpop.f32.mrf.mxu1 }
 0x335   :  { %v7204_v40 = vadd.f32 %v1092_v46, %v7130_v2 }
 0x336   :  { %v5672_v17 = vpop.f32.mrf.mxu1 }
 0x337   :  { %1186 = vadd.xlane.f32.xlu1 %v7204_v40  ;;  %1188 = vadd.xlane.f32.xlu0 %v7201_v10  ;;  %v7217_v55 = vadd.f32 %v5672_v17, %v7130_v2 }
 0x338   :  { %v1105_v32 = vpop.f32.mrf.mxu1 }
 0x339   :  { %v7212_v23 = vadd.f32 %v1105_v32, %v7130_v2 }
 0x33a   :  { %v5673_v13 = vpop.f32.mrf.mxu1 }
 0x33b   :  { %1190 = vadd.xlane.f32.xlu1 %v7209_v4  ;;  %1192 = vadd.xlane.f32.xlu0 %v7212_v23  ;;  %v7225_v9 = vadd.f32 %v5673_v13, %v7130_v2 }
 0x33c   :  { %v1108_v54 = vpop.f32.mrf.mxu1 }
 0x33d   :  { %v7220_v6 = vadd.f32 %v1108_v54, %v7130_v2 }
 0x33e   :  { %v5676_v56 = vpop.f32.mrf.mxu1 }
 0x33f   :  { %1194 = vadd.xlane.f32.xlu1 %v7220_v6  ;;  %1196 = vadd.xlane.f32.xlu0 %v7217_v55  ;;  %v7233_v26 = vadd.f32 %v5676_v56, %v7130_v2 }
 0x340   :  { %v1121_v27 = vpop.f32.mrf.mxu1 }
 0x341   :  { %v7228_v34 = vadd.f32 %v1121_v27, %v7130_v2 }
 0x342   :  { %v5677_v12 = vpop.f32.mrf.mxu1 }
 0x343   :  { %1198 = vadd.xlane.f32.xlu1 %v7225_v9  ;;  %1200 = vadd.xlane.f32.xlu0 %v7228_v34  ;;  %v7241_v16 = vadd.f32 %v5677_v12, %v7130_v2 }
 0x344   :  { %v1124_v11 = vpop.f32.mrf.mxu1 }
 0x345   :  { %v7236_v51 = vadd.f32 %v1124_v11, %v7130_v2 }
 0x346   :  { %v5680_v30 = vpop.f32.mrf.mxu1 }
 0x347   :  { %1202 = vadd.xlane.f32.xlu1 %v7236_v51  ;;  %1204 = vadd.xlane.f32.xlu0 %v7233_v26  ;;  %v7249_v8 = vadd.f32 %v5680_v30, %v7130_v2 }
 0x348   :  { %v1137_v35 = vpop.f32.mrf.mxu1 }
 0x349   :  { %v7244_v49 = vadd.f32 %v1137_v35, %v7130_v2 }
 0x34a   :  { %v5681_v24 = vpop.f32.mrf.mxu1 }
 0x34b   :  { %1206 = vadd.xlane.f32.xlu1 %v7241_v16  ;;  %1208 = vadd.xlane.f32.xlu0 %v7244_v49  ;;  %v7257_v63 = vadd.f32 %v5681_v24, %v7130_v2 }
 0x34c   :  { %v1140_v25 = vpop.f32.mrf.mxu1 }
 0x34d   :  { %v7252_v3 = vadd.f32 %v1140_v25, %v7130_v2 }
 0x34f   :  { %1210 = vadd.xlane.f32.xlu1 %v7252_v3  ;;  %1212 = vadd.xlane.f32.xlu0 %v7249_v8 }
 0x353   :  { %1214 = vadd.xlane.f32.xlu1 %v7257_v63 }
 0x393   :  { %v1153_v28 = vpop.xlane.xlu0 %1152 }
 0x394   :  { %v7260_v58 = vmul.f32 0.020833334, %v1153_v28 }
 0x396   :  { %v7264_v41 = vsub.f32 %v7133_v33, %v7260_v58 }
 0x397   :  { %v1155_v59 = vpop.xlane.xlu1 %1154  ;;  %v1157_v31 = vpop.xlane.xlu0 %1156 }
 0x398   :  { %v7266_v47 = vmul.f32 0.020833334, %v1155_v59  ;;  %v7268_v7 = vmul.f32 0.020833334, %v1157_v31  ;;  %v1280_v53 = vmul.f32 %v7264_v41, %v7264_v41 }
 0x39a   :  { %1312 = vadd.xlane.f32.xlu0 %v1280_v53  ;;  %v7274_v2 = vsub.f32 %v7140_v0, %v7266_v47  ;;  %v7278_v5 = vsub.f32 %v7137_v1, %v7268_v7 }
 0x39b   :  { %v1159_v33 = vpop.xlane.xlu1 %1158 }
 0x39c   :  { %v7280_v22 = vmul.f32 0.020833334, %v1159_v33  ;;  %v1281_v19 = vmul.f32 %v7274_v2, %v7274_v2  ;;  %v1282_v42 = vmul.f32 %v7278_v5, %v7278_v5 }
 0x39e   :  { %v1161_v44 = vpop.xlane.xlu0 %1160  ;;  %1314 = vadd.xlane.f32.xlu1 %v1281_v19  ;;  %1316 = vadd.xlane.f32.xlu0 %v1282_v42  ;;  %v7290_v0 = vsub.f32 %v7145_v52, %v7280_v22 }
 0x39f   :  { %v7286_v39 = vmul.f32 0.020833334, %v1161_v44 }
 0x3a0   :  { %v1283_v1 = vmul.f32 %v7290_v0, %v7290_v0 }
 0x3a1   :  { %v7296_v46 = vsub.f32 %v7148_v37, %v7286_v39 }
 0x3a2   :  { %v1163_v17 = vpop.xlane.xlu1 %1162  ;;  %v1165_v32 = vpop.xlane.xlu0 %1164  ;;  %1318 = vadd.xlane.f32.xlu1 %v1283_v1 }
 0x3a3   :  { %v7298_v13 = vmul.f32 0.020833334, %v1163_v17  ;;  %v7300_v54 = vmul.f32 0.020833334, %v1165_v32  ;;  %v1284_v56 = vmul.f32 %v7296_v46, %v7296_v46 }
 0x3a5   :  { %1320 = vadd.xlane.f32.xlu0 %v1284_v56  ;;  %v7306_v52 = vsub.f32 %v7156_v60, %v7298_v13  ;;  %v7310_v27 = vsub.f32 %v7153_v61, %v7300_v54  ;;  %v5961_v56 = vld [vmem:[#allocation5 + $0xc8] sm:$0xff]  }
 0x3a6   :  { %v1167_v37 = vpop.xlane.xlu1 %1166  ;;  %5682 = vmatprep.subr.bf16.mxu0 %v5961_v56 }
 0x3a7   :  { %v7312_v12 = vmul.f32 0.020833334, %v1167_v37  ;;  %v1285_v11 = vmul.f32 %v7306_v52, %v7306_v52  ;;  %v1286_v30 = vmul.f32 %v7310_v27, %v7310_v27  ;;  %5683 = vmatpush3.bf16.msra.mxu0 %v5961_v56 }
 0x3a8   :  { %v1169_v35 = vpop.xlane.xlu0 %1168 }
 0x3a9   :  { %v7318_v24 = vmul.f32 0.020833334, %v1169_v35  ;;  %1322 = vadd.xlane.f32.xlu1 %v1285_v11  ;;  %1324 = vadd.xlane.f32.xlu0 %v1286_v30  ;;  %v7322_v60 = vsub.f32 %v7161_v15, %v7312_v12 }
 0x3ab   :  { %v1287_v61 = vmul.f32 %v7322_v60, %v7322_v60  ;;  %v7328_v25 = vsub.f32 %v7164_v48, %v7318_v24 }
 0x3ac   :  { %v1171_v28 = vpop.xlane.xlu1 %1170  ;;  %v1173_v59 = vpop.xlane.xlu0 %1172 }
 0x3ad   :  { %v7330_v31 = vmul.f32 0.020833334, %v1171_v28  ;;  %v7332_v53 = vmul.f32 0.020833334, %v1173_v59  ;;  %1326 = vadd.xlane.f32.xlu1 %v1287_v61  ;;  %v1288_v33 = vmul.f32 %v7328_v25, %v7328_v25  ;;  %v5962_v28 = vld [vmem:[#allocation5 + $0xc0] sm:$0xff]  }
 0x3ae   :  { %5684 = vmatprep.subr.bf16.mxu0 %v5962_v28 }
 0x3af   :  { %1328 = vadd.xlane.f32.xlu0 %v1288_v33  ;;  %v7338_v15 = vsub.f32 %v7172_v14, %v7330_v31  ;;  %v7342_v19 = vsub.f32 %v7169_v57, %v7332_v53  ;;  %5685 = vmatpush3.bf16.msra.mxu0 %v5962_v28 }
 0x3b0   :  { %v1175_v48 = vpop.xlane.xlu1 %1174 }
 0x3b1   :  { %v7344_v42 = vmul.f32 0.020833334, %v1175_v48  ;;  %v1289_v44 = vmul.f32 %v7338_v15, %v7338_v15  ;;  %v1290_v1 = vmul.f32 %v7342_v19, %v7342_v19 }
 0x3b3   :  { %1330 = vadd.xlane.f32.xlu1 %v1289_v44  ;;  %1332 = vadd.xlane.f32.xlu0 %v1290_v1  ;;  %v7352_v17 = vsub.f32 %v7177_v29, %v7344_v42 }
 0x3b4   :  { %v1177_v14 = vpop.xlane.xlu0 %1176 }
 0x3b5   :  { %10444 = vst [vmem:[#allocation12_spill] sm:$0xff] %v7352_v17  ;;  %v7354_v32 = vmul.f32 0.020833334, %v1177_v14  ;;  %v1291_v57 = vmul.f32 %v7352_v17, %v7352_v17 }
 0x3b7   :  { %1334 = vadd.xlane.f32.xlu1 %v1291_v57  ;;  %v7360_v37 = vsub.f32 %v7181_v18, %v7354_v32 }
 0x3b8   :  { %v1179_v11 = vpop.xlane.xlu1 %1178  ;;  %v1181_v30 = vpop.xlane.xlu0 %1180 }
 0x3b9   :  { %10445 = vst [vmem:[#allocation13_spill] sm:$0xff] %v7360_v37  ;;  %v7362_v35 = vmul.f32 0.020833334, %v1179_v11  ;;  %v7364_v61 = vmul.f32 0.020833334, %v1181_v30  ;;  %v1292_v29 = vmul.f32 %v7360_v37, %v7360_v37 }
 0x3bb   :  { %1336 = vadd.xlane.f32.xlu0 %v1292_v29  ;;  %v7370_v59 = vsub.f32 %v7188_v38, %v7362_v35  ;;  %v7374_v18 = vsub.f32 %v7185_v62, %v7364_v61  ;;  %v5963_v38 = vld [vmem:[#allocation5 + $0xb8] sm:$0xff]  }
 0x3bc   :  { %v1183_v33 = vpop.xlane.xlu1 %1182  ;;  %v1185_v48 = vpop.xlane.xlu0 %1184  ;;  %5686 = vmatprep.subr.bf16.mxu0 %v5963_v38 }
 0x3bd   :  { %10446 = vst [vmem:[#allocation14_spill] sm:$0xff] %v7370_v59  ;;  %10447 = vst [vmem:[#allocation15_spill] sm:$0xff] %v7374_v18  ;;  %v7376_v44 = vmul.f32 0.020833334, %v1183_v33  ;;  %v7378_v1 = vmul.f32 0.020833334, %v1185_v48  ;;  %v1293_v14 = vmul.f32 %v7370_v59, %v7370_v59  ;;  %v1294_v57 = vmul.f32 %v7374_v18, %v7374_v18  ;;  %5687 = vmatpush3.bf16.msra.mxu0 %v5963_v38 }
 0x3bf   :  { %1338 = vadd.xlane.f32.xlu1 %v1293_v14  ;;  %1340 = vadd.xlane.f32.xlu0 %v1294_v57  ;;  %v7386_v62 = vsub.f32 %v7193_v36, %v7376_v44  ;;  %v7390_v56 = vsub.f32 %v7196_v20, %v7378_v1  ;;  %v5964_v36 = vld [vmem:[#allocation5 + $0xb0] sm:$0xff]  }
 0x3c0   :  { %v1187_v11 = vpop.xlane.xlu1 %1186  ;;  %v1189_v30 = vpop.xlane.xlu0 %1188  ;;  %5688 = vmatprep.subr.bf16.mxu0 %v5964_v36 }
 0x3c1   :  { %10448 = vst [vmem:[#allocation16_spill] sm:$0xff] %v7386_v62  ;;  %10449 = vst [vmem:[#allocation17_spill] sm:$0xff] %v7390_v56  ;;  %v7392_v29 = vmul.f32 0.020833334, %v1187_v11  ;;  %v7394_v33 = vmul.f32 0.020833334, %v1189_v30  ;;  %v1295_v28 = vmul.f32 %v7386_v62, %v7386_v62  ;;  %v1296_v48 = vmul.f32 %v7390_v56, %v7390_v56  ;;  %5689 = vmatpush3.bf16.msra.mxu0 %v5964_v36 }
 0x3c2   :  { %v5965_v30 = vld [vmem:[#allocation5 + $0xa8] sm:$0xff]   ;;  %v1381_v56 = vmul.f32 80.0, %v7298_v13 }
 0x3c3   :  { %1342 = vadd.xlane.f32.xlu1 %v1295_v28  ;;  %1344 = vadd.xlane.f32.xlu0 %v1296_v48  ;;  %v7402_v20 = vsub.f32 %v7204_v40, %v7392_v29  ;;  %v7406_v14 = vsub.f32 %v7201_v10, %v7394_v33 }
 0x3c4   :  { %v1191_v57 = vpop.xlane.xlu1 %1190  ;;  %v1193_v11 = vpop.xlane.xlu0 %1192  ;;  %5690 = vmatprep.subr.bf16.mxu0 %v5965_v30  ;;  %v1413_v17 = vmul.f32 %v1381_v56, %v7298_v13 }
 0x3c5   :  { %10450 = vst [vmem:[#allocation18_spill] sm:$0xff] %v7402_v20  ;;  %10451 = vst [vmem:[#allocation19_spill] sm:$0xff] %v7406_v14  ;;  %v7408_v43 = vmul.f32 0.020833334, %v1191_v57  ;;  %v7410_v62 = vmul.f32 0.020833334, %v1193_v11  ;;  %v1297_v38 = vmul.f32 %v7402_v20, %v7402_v20  ;;  %v1298_v28 = vmul.f32 %v7406_v14, %v7406_v14  ;;  %5691 = vmatpush3.bf16.msra.mxu0 %v5965_v30 }
 0x3c7   :  { %1346 = vadd.xlane.f32.xlu1 %v1297_v38  ;;  %1348 = vadd.xlane.f32.xlu0 %v1298_v28  ;;  %v7418_v10 = vsub.f32 %v7209_v4, %v7408_v43  ;;  %v7422_v40 = vsub.f32 %v7212_v23, %v7410_v62  ;;  %v5966_v28 = vld [vmem:[#allocation5 + $0xa0] sm:$0xff]  }
 0x3c8   :  { %v1195_v48 = vpop.xlane.xlu1 %1194  ;;  %v1197_v57 = vpop.xlane.xlu0 %1196  ;;  %5692 = vmatprep.subr.bf16.mxu0 %v5966_v28 }
 0x3c9   :  { %10452 = vst [vmem:[#allocation20_spill] sm:$0xff] %v7418_v10  ;;  %10453 = vst [vmem:[#allocation21_spill] sm:$0xff] %v7422_v40  ;;  %v7424_v11 = vmul.f32 0.020833334, %v1195_v48  ;;  %v7426_v20 = vmul.f32 0.020833334, %v1197_v57  ;;  %v1299_v36 = vmul.f32 %v7418_v10, %v7418_v10  ;;  %v1300_v38 = vmul.f32 %v7422_v40, %v7422_v40  ;;  %5693 = vmatpush3.bf16.msra.mxu0 %v5966_v28 }
 0x3cb   :  { %1350 = vadd.xlane.f32.xlu1 %v1299_v36  ;;  %1352 = vadd.xlane.f32.xlu0 %v1300_v38  ;;  %v7434_v4 = vsub.f32 %v7220_v6, %v7424_v11  ;;  %v7438_v23 = vsub.f32 %v7217_v55, %v7426_v20  ;;  %v5967_v6 = vld [vmem:[#allocation5 + $0x98] sm:$0xff]  }
 0x3cc   :  { %v1199_v48 = vpop.xlane.xlu1 %1198  ;;  %v1201_v57 = vpop.xlane.xlu0 %1200  ;;  %5694 = vmatprep.subr.bf16.mxu0 %v5967_v6 }
 0x3cd   :  { %10454 = vst [vmem:[#allocation22_spill] sm:$0xff] %v7434_v4  ;;  %10455 = vst [vmem:[#allocation23_spill] sm:$0xff] %v7438_v23  ;;  %v7440_v14 = vmul.f32 0.020833334, %v1199_v48  ;;  %v7442_v10 = vmul.f32 0.020833334, %v1201_v57  ;;  %v1301_v30 = vmul.f32 %v7434_v4, %v7434_v4  ;;  %v1302_v36 = vmul.f32 %v7438_v23, %v7438_v23  ;;  %5695 = vmatpush3.bf16.msra.mxu0 %v5967_v6 }
 0x3cf   :  { %1354 = vadd.xlane.f32.xlu1 %v1301_v30  ;;  %1356 = vadd.xlane.f32.xlu0 %v1302_v36  ;;  %v7450_v55 = vsub.f32 %v7225_v9, %v7440_v14  ;;  %v7454_v38 = vsub.f32 %v7228_v34, %v7442_v10  ;;  %v5968_v9 = vld [vmem:[#allocation5 + $0x90] sm:$0xff]  }
 0x3d0   :  { %v1203_v48 = vpop.xlane.xlu1 %1202  ;;  %v1205_v57 = vpop.xlane.xlu0 %1204  ;;  %5696 = vmatprep.subr.bf16.mxu0 %v5968_v9 }
 0x3d1   :  { %10456 = vst [vmem:[#allocation24_spill] sm:$0xff] %v7450_v55  ;;  %10457 = vst [vmem:[#allocation25_spill] sm:$0xff] %v7454_v38  ;;  %v7456_v40 = vmul.f32 0.020833334, %v1203_v48  ;;  %v7458_v4 = vmul.f32 0.020833334, %v1205_v57  ;;  %v1303_v28 = vmul.f32 %v7450_v55, %v7450_v55  ;;  %v1304_v30 = vmul.f32 %v7454_v38, %v7454_v38  ;;  %5697 = vmatpush3.bf16.msra.mxu0 %v5968_v9 }
 0x3d3   :  { %1358 = vadd.xlane.f32.xlu1 %v1303_v28  ;;  %1360 = vadd.xlane.f32.xlu0 %v1304_v30  ;;  %v7466_v34 = vsub.f32 %v7236_v51, %v7456_v40  ;;  %v7470_v36 = vsub.f32 %v7233_v26, %v7458_v4 }
 0x3d4   :  { %v1207_v48 = vpop.xlane.xlu1 %1206  ;;  %v1209_v57 = vpop.xlane.xlu0 %1208 }
 0x3d5   :  { %10458 = vst [vmem:[#allocation26_spill] sm:$0xff] %v7466_v34  ;;  %10459 = vst [vmem:[#allocation27_spill] sm:$0xff] %v7470_v36  ;;  %v7472_v23 = vmul.f32 0.020833334, %v1207_v48  ;;  %v7474_v55 = vmul.f32 0.020833334, %v1209_v57  ;;  %v1305_v6 = vmul.f32 %v7466_v34, %v7466_v34  ;;  %v1306_v28 = vmul.f32 %v7470_v36, %v7470_v36 }
 0x3d7   :  { %1362 = vadd.xlane.f32.xlu1 %v1305_v6  ;;  %1364 = vadd.xlane.f32.xlu0 %v1306_v28  ;;  %v7482_v26 = vsub.f32 %v7241_v16, %v7472_v23  ;;  %v7486_v51 = vsub.f32 %v7244_v49, %v7474_v55 }
 0x3d8   :  { %v1211_v30 = vpop.xlane.xlu1 %1210  ;;  %v1213_v48 = vpop.xlane.xlu0 %1212 }
 0x3d9   :  { %10460 = vst [vmem:[#allocation28_spill] sm:$0xff] %v7482_v26  ;;  %10461 = vst [vmem:[#allocation29_spill] sm:$0xff] %v7486_v51  ;;  %v7488_v57 = vmul.f32 0.020833334, %v1211_v30  ;;  %v7490_v38 = vmul.f32 0.020833334, %v1213_v48  ;;  %v1307_v36 = vmul.f32 %v7482_v26, %v7482_v26  ;;  %v1308_v9 = vmul.f32 %v7486_v51, %v7486_v51 }
 0x3db   :  { %1366 = vadd.xlane.f32.xlu1 %v1307_v36  ;;  %1368 = vadd.xlane.f32.xlu0 %v1308_v9  ;;  %v7498_v16 = vsub.f32 %v7252_v3, %v7488_v57  ;;  %v7502_v49 = vsub.f32 %v7249_v8, %v7490_v38  ;;  %v1376_v8 = vmul.f32 80.0, %v7260_v58 }
 0x3dc   :  { %v1215_v6 = vpop.xlane.xlu1 %1214 }
 0x3dd   :  { %10462 = vst [vmem:[#allocation30_spill] sm:$0xff] %v7498_v16  ;;  %10463 = vst [vmem:[#allocation31_spill] sm:$0xff] %v7502_v49  ;;  %v7504_v28 = vmul.f32 0.020833334, %v1215_v6  ;;  %v1309_v30 = vmul.f32 %v7498_v16, %v7498_v16  ;;  %v1310_v48 = vmul.f32 %v7502_v49, %v7502_v49  ;;  %v1408_v9 = vmul.f32 %v1376_v8, %v7260_v58 }
 0x3de   :  { %v1377_v6 = vmul.f32 80.0, %v7266_v47  ;;  %v1378_v16 = vmul.f32 80.0, %v7268_v7  ;;  %v1382_v58 = vmul.f32 80.0, %v7300_v54 }
 0x3df   :  { %1370 = vadd.xlane.f32.xlu1 %v1309_v30  ;;  %1372 = vadd.xlane.f32.xlu0 %v1310_v48  ;;  %v7512_v36 = vsub.f32 %v7257_v63, %v7504_v28  ;;  %v1379_v30 = vmul.f32 80.0, %v7280_v22 }
 0x3e0   :  { %v1409_v63 = vmul.f32 %v1377_v6, %v7266_v47  ;;  %v1410_v26 = vmul.f32 %v1378_v16, %v7268_v7  ;;  %v1385_v16 = vmul.f32 80.0, %v7330_v31 }
 0x3e1   :  { %10464 = vst [vmem:[#allocation32_spill] sm:$0xff] %v7512_v36  ;;  %v1311_v3 = vmul.f32 %v7512_v36, %v7512_v36 }
 0x3e3   :  { %1374 = vadd.xlane.f32.xlu1 %v1311_v3  ;;  %v1380_v3 = vmul.f32 80.0, %v7286_v39 }
 0x3e5   :  { %v1412_v37 = vmul.f32 %v1380_v3, %v7286_v39  ;;  %v1389_v39 = vmul.f32 80.0, %v7362_v35  ;;  %v1390_v3 = vmul.f32 80.0, %v7364_v61 }
 0x423   :  { %v1313_v51 = vpop.xlane.xlu0 %1312 }
 0x424   :  { %v1440_v49 = vsub.f32 %v1313_v51, %v1408_v9  ;;  %v1411_v51 = vmul.f32 %v1379_v30, %v7280_v22  ;;  %v1383_v9 = vmul.f32 80.0, %v7312_v12  ;;  %v1387_v30 = vmul.f32 80.0, %v7344_v42 }
 0x426   :  { %v1472_v48 = vmul.f32 0.020833334, %v1440_v49  ;;  %v1384_v49 = vmul.f32 80.0, %v7318_v24 }
 0x427   :  { %v1315_v34 = vpop.xlane.xlu1 %1314  ;;  %v1317_v36 = vpop.xlane.xlu0 %1316 }
 0x428   :  { %v1504_v8 = vadd.f32 1e-05, %v1472_v48  ;;  %v1441_v18 = vsub.f32 %v1315_v34, %v1409_v63  ;;  %v1442_v59 = vsub.f32 %v1317_v36, %v1410_v26  ;;  %v1414_v48 = vmul.f32 %v1382_v58, %v7300_v54 }
 0x429   :  { %v1386_v34 = vmul.f32 80.0, %v7332_v53  ;;  %v7540_v54 = vmul.f32 %v1385_v16, %v7330_v31  ;;  %v1391_v58 = vmul.f32 80.0, %v7376_v44  ;;  %v1393_v16 = vmul.f32 80.0, %v7392_v29 }
 0x42a   :  { %6065 = vrsqrt.f32 %v1504_v8  ;;  %v1473_v47 = vmul.f32 0.020833334, %v1441_v18  ;;  %v1474_v7 = vmul.f32 0.020833334, %v1442_v59  ;;  %v1415_v18 = vmul.f32 %v1383_v9, %v7312_v12 }
 0x42b   :  { %v1319_v6 = vpop.xlane.xlu1 %1318  ;;  %v1416_v59 = vmul.f32 %v1384_v49, %v7318_v24  ;;  %v1388_v8 = vmul.f32 80.0, %v7354_v32  ;;  %v7546_v24 = vmul.f32 %v1386_v34, %v7332_v53  ;;  %v7549_v49 = vmul.f32 %v1387_v30, %v7344_v42 }
 0x42c   :  { %v1505_v26 = vadd.f32 1e-05, %v1473_v47  ;;  %v1506_v22 = vadd.f32 1e-05, %v1474_v7  ;;  %v1443_v36 = vsub.f32 %v1319_v6, %v1411_v51  ;;  %v1392_v51 = vmul.f32 80.0, %v7378_v1 }
 0x42d   :  { %v7552_v31 = vmul.f32 %v1388_v8, %v7354_v32  ;;  %v7555_v7 = vmul.f32 %v1389_v39, %v7362_v35  ;;  %v1394_v6 = vmul.f32 80.0, %v7394_v33  ;;  %v7560_v34 = vmul.f32 %v1390_v3, %v7364_v61 }
 0x42e   :  { %v1321_v63 = vpop.xlane.xlu0 %1320  ;;  %6067 = vrsqrt.f32 %v1505_v26  ;;  %v1475_v13 = vmul.f32 0.020833334, %v1443_v36  ;;  %v7563_v42 = vmul.f32 %v1391_v58, %v7376_v44  ;;  %v7566_v32 = vmul.f32 %v1392_v51, %v7378_v1 }
 0x42f   :  { %v1444_v56 = vsub.f32 %v1321_v63, %v1412_v37  ;;  %6069 = vrsqrt.f32 %v1506_v22  ;;  %v1395_v35 = vmul.f32 80.0, %v7408_v43  ;;  %v7571_v63 = vrot.slane %v7126_v50, %v6920_v45 }
 0x430   :  { %v1507_v12 = vadd.f32 1e-05, %v1475_v13  ;;  %v7577_v61 = vmul.f32 %v1394_v6, %v7394_v33  ;;  %v1396_v44 = vmul.f32 80.0, %v7410_v62  ;;  %v1397_v1 = vmul.f32 80.0, %v7424_v11 }
 0x431   :  { %v1476_v9 = vmul.f32 0.020833334, %v1444_v56  ;;  %v7583_v56 = vrot.slane %v7126_v50, %v6923_v21  ;;  %v7586_v51 = vmul.f32 %v1395_v35, %v7408_v43  ;;  %v1399_v33 = vmul.f32 80.0, %v7440_v14 }
 0x432   :  { %v1323_v47 = vpop.xlane.xlu1 %1322  ;;  %v1325_v37 = vpop.xlane.xlu0 %1324  ;;  %6071 = vrsqrt.f32 %v1507_v12  ;;  %v1400_v12 = vmul.f32 80.0, %v7442_v10  ;;  %v7593_v50 = vmul.f32 %v1396_v44, %v7410_v62  ;;  %v1401_v43 = vmul.f32 80.0, %v7456_v40 }
 0x433   :  { %v1508_v26 = vadd.f32 1e-05, %v1476_v9  ;;  %v1445_v22 = vsub.f32 %v1323_v47, %v1413_v17  ;;  %v1446_v53 = vsub.f32 %v1325_v37, %v1414_v48  ;;  %v7574_v48 = vmul.f32 %v1393_v16, %v7392_v29 }
 0x434   :  { %v1398_v29 = vmul.f32 80.0, %v7426_v20  ;;  %v7596_v37 = vmul.f32 %v1397_v1, %v7424_v11  ;;  %v7605_v62 = vmul.f32 %v1399_v33, %v7440_v14  ;;  %v7608_v11 = vmul.f32 %v1400_v12, %v7442_v10 }
 0x435   :  { %6073 = vrsqrt.f32 %v1508_v26  ;;  %v1477_v36 = vmul.f32 0.020833334, %v1445_v22  ;;  %v1478_v30 = vmul.f32 0.020833334, %v1446_v53  ;;  %v1402_v22 = vmul.f32 80.0, %v7458_v4 }
 0x436   :  { %v1327_v17 = vpop.xlane.xlu1 %1326  ;;  %v7617_v14 = vmul.f32 %v1401_v43, %v7456_v40 }
 0x437   :  { %v1509_v8 = vadd.f32 1e-05, %v1477_v36  ;;  %v1510_v39 = vadd.f32 1e-05, %v1478_v30  ;;  %v1447_v13 = vsub.f32 %v1327_v17, %v1415_v18  ;;  %v6066_v3 = vpop.eup %6065  ;;  %v1403_v36 = vmul.f32 80.0, %v7472_v23 }
 0x438   :  { %v1329_v58 = vpop.xlane.xlu0 %1328  ;;  %v1568_v18 = vmul.f32 %v6066_v3, %v7264_v41  ;;  %v7602_v41 = vmul.f32 %v1398_v29, %v7426_v20  ;;  %v7620_v3 = vmul.f32 %v1402_v22, %v7458_v4 }
 0x439   :  { %6075 = vrsqrt.f32 %v1509_v8  ;;  %v1479_v9 = vmul.f32 0.020833334, %v1447_v13  ;;  %v1448_v47 = vsub.f32 %v1329_v58, %v1416_v59 }
 0x43a   :  { %6077 = vrsqrt.f32 %v1510_v39  ;;  %v1604_v26 = vmul.f32 %v7571_v63, %v1568_v18 }
 0x43b   :  { %v1511_v16 = vadd.f32 1e-05, %v1479_v9  ;;  %v1480_v6 = vmul.f32 0.020833334, %v1448_v47  ;;  %v6068_v53 = vpop.eup %6067 }
 0x43c   :  { %v1331_v35 = vpop.xlane.xlu1 %1330  ;;  %v1333_v59 = vpop.xlane.xlu0 %1332  ;;  %v1569_v20 = vmul.f32 %v6068_v53, %v7274_v2  ;;  %v1640_v39 = vadd.f32 %v7583_v56, %v1604_v26  ;;  %v1404_v2 = vmul.f32 80.0, %v7474_v55 }
 0x43d   :  { %v6070_v30 = vpop.eup %6069  ;;  %6079 = vrsqrt.f32 %v1511_v16  ;;  %v1512_v17 = vadd.f32 1e-05, %v1480_v6  ;;  %v1449_v44 = vsub.f32 %v1331_v35, %v7540_v54  ;;  %v1450_v1 = vsub.f32 %v1333_v59, %v7546_v24 }
 0x43e   :  { %v1570_v8 = vmul.f32 %v6070_v30, %v7278_v5  ;;  %v1605_v54 = vmul.f32 %v7571_v63, %v1569_v20  ;;  %v7625_v5 = vmul.f32 %v1403_v36, %v7472_v23  ;;  %v1672_v18 = vmax.f32 %v1640_v39, 0.0 }
 0x43f   :  { %6081 = vrsqrt.f32 %v1512_v17  ;;  %v1481_v10 = vmul.f32 0.020833334, %v1449_v44  ;;  %v1482_v13 = vmul.f32 0.020833334, %v1450_v1  ;;  %v6072_v58 = vpop.eup %6071  ;;  %v1405_v16 = vmul.f32 80.0, %v7488_v57 }
 0x440   :  { %v1335_v29 = vpop.xlane.xlu1 %1334  ;;  %v1606_v24 = vmul.f32 %v7571_v63, %v1570_v8  ;;  %v1571_v40 = vmul.f32 %v6072_v58, %v7290_v0  ;;  %v1641_v4 = vadd.f32 %v7583_v56, %v1605_v54  ;;  %v1704_v44 = vmin.f32 %v1672_v18, 6.0 }
 0x441   :  { %v1513_v33 = vadd.f32 1e-05, %v1481_v10  ;;  %v1514_v12 = vadd.f32 1e-05, %v1482_v13  ;;  %v1451_v9 = vsub.f32 %v1335_v29, %v7549_v49  ;;  %v7636_v49 = vmul.f32 %v1404_v2, %v7474_v55 }
 0x442   :  { %v6074_v47 = vpop.eup %6073  ;;  %v1642_v43 = vadd.f32 %v7583_v56, %v1606_v24  ;;  %v1607_v23 = vmul.f32 %v7571_v63, %v1571_v40  ;;  %v1673_v22 = vmax.f32 %v1641_v4, 0.0  ;;  %v7642_v8 = vmul.f32 %v1405_v16, %v7488_v57 }
 0x443   :  { %6083 = vrsqrt.f32 %v1513_v33  ;;  %v1483_v6 = vmul.f32 0.020833334, %v1451_v9  ;;  %v1572_v26 = vmul.f32 %v6074_v47, %v7296_v46  ;;  %v1406_v46 = vmul.f32 80.0, %v7490_v38 }
 0x444   :  { %6085 = vrsqrt.f32 %v1514_v12  ;;  %v1337_v0 = vpop.xlane.xlu0 %1336  ;;  %v1674_v53 = vmax.f32 %v1642_v43, 0.0  ;;  %v1643_v36 = vadd.f32 %v7583_v56, %v1607_v23  ;;  %v1705_v1 = vmin.f32 %v1673_v22, 6.0 }
 0x445   :  { %v1515_v35 = vadd.f32 1e-05, %v1483_v6  ;;  %v1452_v59 = vsub.f32 %v1337_v0, %v7552_v31  ;;  %v1608_v30 = vmul.f32 %v7571_v63, %v1572_v26  ;;  %v7653_v4 = vmul.f32 %v1406_v46, %v7490_v38 }
 0x446   :  { %v6076_v17 = vpop.eup %6075  ;;  %v1675_v55 = vmax.f32 %v1643_v36, 0.0  ;;  %v1755_v58 = vpack.c.bf16 %v1705_v1, %v1704_v44  ;;  %v1706_v29 = vmin.f32 %v1674_v53, 6.0  ;;  %v7659_v0 = vmul.f32 80.0, %v7504_v28 }
 0x447   :  { %v6078_v20 = vpop.eup %6077  ;;  %6087 = vrsqrt.f32 %v1515_v35  ;;  %v1484_v39 = vmul.f32 0.020833334, %v1452_v59  ;;  %v1573_v10 = vmul.f32 %v6076_v17, %v7306_v52  ;;  %v1644_v54 = vadd.f32 %v7583_v56, %v1608_v30 }
 0x448   :  { %v1339_v13 = vpop.xlane.xlu1 %1338  ;;  %v1341_v31 = vpop.xlane.xlu0 %1340  ;;  %v1574_v24 = vmul.f32 %v6078_v20, %v7310_v27  ;;  %v1707_v33 = vmin.f32 %v1675_v55, 6.0  ;;  %5698 = vmatprep.mubr.bf16.mxu0 %v1755_v58 }
 0x449   :  { %v1516_v2 = vadd.f32 1e-05, %v1484_v39  ;;  %v1453_v57 = vsub.f32 %v1339_v13, %v7555_v7  ;;  %v1454_v40 = vsub.f32 %v1341_v31, %v7560_v34  ;;  %v1609_v9 = vmul.f32 %v7571_v63, %v1573_v10 }
 0x44a   :  { %v6080_v12 = vpop.eup %6079  ;;  %v1676_v47 = vmax.f32 %v1644_v54, 0.0  ;;  %v1610_v52 = vmul.f32 %v7571_v63, %v1574_v24  ;;  %v1756_v27 = vpack.c.bf16 %v1707_v33, %v1706_v29 }
 0x44b   :  { %6089 = vrsqrt.f32 %v1516_v2  ;;  %v1485_v18 = vmul.f32 0.020833334, %v1453_v57  ;;  %v1486_v43 = vmul.f32 0.020833334, %v1454_v40  ;;  %v1645_v34 = vadd.f32 %v7583_v56, %v1609_v9 }
 0x44c   :  { %v6082_v16 = vpop.eup %6081  ;;  %v1343_v6 = vpop.xlane.xlu1 %1342  ;;  %v1575_v23 = vmul.f32 %v6080_v12, %v7322_v60  ;;  %v1646_v26 = vadd.f32 %v7583_v56, %v1610_v52  ;;  %5699 = vmatmul.mubr.bf16.vlgmr.msra.gmra.mxu0 %v1756_v27  ;;  %v1708_v1 = vmin.f32 %v1676_v47, 6.0 }
 0x44d   :  { %v1345_v7 = vpop.xlane.xlu0 %1344  ;;  %v1517_v22 = vadd.f32 1e-05, %v1485_v18  ;;  %v1518_v53 = vadd.f32 1e-05, %v1486_v43  ;;  %v1455_v38 = vsub.f32 %v1343_v6, %v7563_v42  ;;  %v1677_v59 = vmax.f32 %v1645_v34, 0.0 }
 0x44e   :  { %v1456_v35 = vsub.f32 %v1345_v7, %v7566_v32  ;;  %v1611_v36 = vmul.f32 %v7571_v63, %v1575_v23  ;;  %v1678_v30 = vmax.f32 %v1646_v26, 0.0  ;;  %v1576_v17 = vmul.f32 %v6082_v16, %v7328_v25  ;;  %v10465_v7 = vld [vmem:[#allocation12_spill] sm:$0xff] }
 0x44f   :  { %6091 = vrsqrt.f32 %v1517_v22  ;;  %v1487_v60 = vmul.f32 0.020833334, %v1455_v38  ;;  %v1709_v55 = vmin.f32 %v1677_v59, 6.0 }
 0x450   :  { %v1488_v44 = vmul.f32 0.020833334, %v1456_v35  ;;  %v6084_v46 = vpop.eup %6083  ;;  %6093 = vrsqrt.f32 %v1518_v53  ;;  %v1347_v20 = vpop.xlane.xlu1 %1346  ;;  %v1647_v42 = vadd.f32 %v7583_v56, %v1611_v36  ;;  %v1710_v10 = vmin.f32 %v1678_v30, 6.0 }
 0x451   :  { %v1349_v39 = vpop.xlane.xlu0 %1348  ;;  %v6086_v32 = vpop.eup %6085  ;;  %v1519_v13 = vadd.f32 1e-05, %v1487_v60  ;;  %v1457_v58 = vsub.f32 %v1347_v20, %v7574_v48  ;;  %v1757_v25 = vpack.c.bf16 %v1709_v55, %v1708_v1  ;;  %v1577_v24 = vmul.f32 %v6084_v46, %v7338_v15  ;;  %v10466_v20 = vld [vmem:[#allocation13_spill] sm:$0xff] }
 0x452   :  { %v1520_v31 = vadd.f32 1e-05, %v1488_v44  ;;  %v1458_v29 = vsub.f32 %v1349_v39, %v7577_v61  ;;  %v1679_v54 = vmax.f32 %v1647_v42, 0.0  ;;  %v1612_v2 = vmul.f32 %v7571_v63, %v1576_v17 }
 0x453   :  { %6095 = vrsqrt.f32 %v1519_v13  ;;  %v1489_v57 = vmul.f32 0.020833334, %v1457_v58  ;;  %v1578_v33 = vmul.f32 %v6086_v32, %v7342_v19  ;;  %5702 = vmatprep.mubr.bf16.mxu0 %v1757_v25  ;;  %v1613_v48 = vmul.f32 %v7571_v63, %v1577_v24 }
 0x454   :  { %v1490_v40 = vmul.f32 0.020833334, %v1458_v29  ;;  %v6088_v12 = vpop.eup %6087  ;;  %6097 = vrsqrt.f32 %v1520_v31  ;;  %v1351_v9 = vpop.xlane.xlu1 %1350  ;;  %v1711_v52 = vmin.f32 %v1679_v54, 6.0  ;;  %v1648_v61 = vadd.f32 %v7583_v56, %v1612_v2 }
 0x455   :  { %v1353_v47 = vpop.xlane.xlu0 %1352  ;;  %v1521_v18 = vadd.f32 1e-05, %v1489_v57  ;;  %v1459_v15 = vsub.f32 %v1351_v9, %v7586_v51  ;;  %v1649_v6 = vadd.f32 %v7583_v56, %v1613_v48  ;;  %v1579_v34 = vmul.f32 %v6088_v12, %v10465_v7 }
 0x456   :  { %v1522_v43 = vadd.f32 1e-05, %v1490_v40  ;;  %v1460_v27 = vsub.f32 %v1353_v47, %v7593_v50  ;;  %v1758_v16 = vpack.c.bf16 %v1711_v52, %v1710_v10  ;;  %v1680_v19 = vmax.f32 %v1648_v61, 0.0  ;;  %v10468_v47 = vld [vmem:[#allocation15_spill] sm:$0xff] }
 0x457   :  { %6099 = vrsqrt.f32 %v1521_v18  ;;  %v1491_v23 = vmul.f32 0.020833334, %v1459_v15  ;;  %v1614_v22 = vmul.f32 %v7571_v63, %v1578_v33  ;;  %v1681_v59 = vmax.f32 %v1649_v6, 0.0  ;;  %v10467_v33 = vld [vmem:[#allocation14_spill] sm:$0xff] }
 0x458   :  { %v1492_v26 = vmul.f32 0.020833334, %v1460_v27  ;;  %v6090_v53 = vpop.eup %6089  ;;  %6101 = vrsqrt.f32 %v1522_v43  ;;  %v1355_v38 = vpop.xlane.xlu1 %1354  ;;  %5703 = vmatmul.mubr.bf16.gmra.mxu0 %v1758_v16  ;;  %v1712_v51 = vmin.f32 %v1680_v19, 6.0  ;;  %v1615_v50 = vmul.f32 %v7571_v63, %v1579_v34 }
 0x459   :  { %v1357_v35 = vpop.xlane.xlu0 %1356  ;;  %v1523_v36 = vadd.f32 1e-05, %v1491_v23  ;;  %v1461_v17 = vsub.f32 %v1355_v38, %v7596_v37  ;;  %v1713_v44 = vmin.f32 %v1681_v59, 6.0  ;;  %v1650_v1 = vadd.f32 %v7583_v56, %v1614_v22  ;;  %v10469_v23 = vld [vmem:[#allocation16_spill] sm:$0xff] }
 0x45a   :  { %v1524_v30 = vadd.f32 1e-05, %v1492_v26  ;;  %v1462_v60 = vsub.f32 %v1357_v35, %v7602_v41  ;;  %v1651_v46 = vadd.f32 %v7583_v56, %v1615_v50  ;;  %v1580_v39 = vmul.f32 %v6090_v53, %v10466_v20  ;;  %v10470_v35 = vld [vmem:[#allocation17_spill] sm:$0xff] }
 0x45b   :  { %6103 = vrsqrt.f32 %v1523_v36  ;;  %v1493_v55 = vmul.f32 0.020833334, %v1461_v17  ;;  %v7686_v10 = vmul.f32 %v7659_v0, %v7504_v28  ;;  %v1759_v31 = vpack.c.bf16 %v1713_v44, %v1712_v51 }
 0x45c   :  { %v1494_v42 = vmul.f32 0.020833334, %v1462_v60  ;;  %v6092_v32 = vpop.eup %6091  ;;  %6105 = vrsqrt.f32 %v1524_v30  ;;  %v1359_v13 = vpop.xlane.xlu1 %1358  ;;  %v1682_v41 = vmax.f32 %v1650_v1, 0.0  ;;  %v1683_v58 = vmax.f32 %v1651_v46, 0.0 }
 0x45d   :  { %v1361_v37 = vpop.xlane.xlu0 %1360  ;;  %v6094_v29 = vpop.eup %6093  ;;  %v1525_v25 = vadd.f32 1e-05, %v1493_v55  ;;  %v1463_v24 = vsub.f32 %v1359_v13, %v7605_v62  ;;  %5706 = vmatprep.mubr.bf16.mxu0 %v1759_v31  ;;  %v1581_v28 = vmul.f32 %v6092_v32, %v10467_v33  ;;  %v1616_v0 = vmul.f32 %v7571_v63, %v1580_v39 }
 0x45e   :  { %v1526_v54 = vadd.f32 1e-05, %v1494_v42  ;;  %v1464_v2 = vsub.f32 %v1361_v37, %v7608_v11  ;;  %v1714_v57 = vmin.f32 %v1682_v41, 6.0  ;;  %v1715_v40 = vmin.f32 %v1683_v58, 6.0  ;;  %v10471_v42 = vld [vmem:[#allocation18_spill] sm:$0xff] }
 0x45f   :  { %6107 = vrsqrt.f32 %v1525_v25  ;;  %v1495_v12 = vmul.f32 0.020833334, %v1463_v24  ;;  %v1582_v52 = vmul.f32 %v6094_v29, %v10468_v47  ;;  %v1617_v62 = vmul.f32 %v7571_v63, %v1581_v28 }
 0x460   :  { %v1496_v9 = vmul.f32 0.020833334, %v1464_v2  ;;  %v6096_v48 = vpop.eup %6095  ;;  %6109 = vrsqrt.f32 %v1526_v54  ;;  %v1363_v61 = vpop.xlane.xlu1 %1362  ;;  %v1760_v43 = vpack.c.bf16 %v1715_v40, %v1714_v57  ;;  %v1652_v11 = vadd.f32 %v7583_v56, %v1616_v0 }
 0x461   :  { %v1365_v18 = vpop.xlane.xlu0 %1364  ;;  %v6098_v15 = vpop.eup %6097  ;;  %v1527_v27 = vadd.f32 1e-05, %v1495_v12  ;;  %v1465_v6 = vsub.f32 %v1363_v61, %v7617_v14  ;;  %v1653_v7 = vadd.f32 %v7583_v56, %v1617_v62  ;;  %v1583_v26 = vmul.f32 %v6096_v48, %v10469_v23  ;;  %v10474_v23 = vld [vmem:[#allocation21_spill] sm:$0xff] }
 0x462   :  { %v1528_v16 = vadd.f32 1e-05, %v1496_v9  ;;  %v1466_v19 = vsub.f32 %v1365_v18, %v7620_v3  ;;  %5707 = vmatmul.mubr.bf16.gmra.mxu0 %v1760_v43  ;;  %v1684_v34 = vmax.f32 %v1652_v11, 0.0  ;;  %v1618_v22 = vmul.f32 %v7571_v63, %v1582_v52  ;;  %v10472_v52 = vld [vmem:[#allocation19_spill] sm:$0xff] }
 0x463   :  { %6111 = vrsqrt.f32 %v1527_v27  ;;  %v1497_v53 = vmul.f32 0.020833334, %v1465_v6  ;;  %v1584_v59 = vmul.f32 %v6098_v15, %v10470_v35  ;;  %v1685_v14 = vmax.f32 %v1653_v7, 0.0 }
 0x464   :  { %v1498_v38 = vmul.f32 0.020833334, %v1466_v19  ;;  %v6100_v51 = vpop.eup %6099  ;;  %6113 = vrsqrt.f32 %v1528_v16  ;;  %v1367_v50 = vpop.xlane.xlu1 %1366  ;;  %v1716_v30 = vmin.f32 %v1684_v34, 6.0  ;;  %v1619_v3 = vmul.f32 %v7571_v63, %v1583_v26  ;;  %v10473_v16 = vld [vmem:[#allocation20_spill] sm:$0xff] }
 0x465   :  { %v1369_v36 = vpop.xlane.xlu0 %1368  ;;  %v6102_v17 = vpop.eup %6101  ;;  %v1529_v60 = vadd.f32 1e-05, %v1497_v53  ;;  %v1467_v1 = vsub.f32 %v1367_v50, %v7625_v5  ;;  %v1717_v20 = vmin.f32 %v1685_v14, 6.0  ;;  %v1654_v39 = vadd.f32 %v7583_v56, %v1618_v22 }
 0x466   :  { %v1530_v44 = vadd.f32 1e-05, %v1498_v38  ;;  %v1468_v46 = vsub.f32 %v1369_v36, %v7636_v49  ;;  %v1655_v55 = vadd.f32 %v7583_v56, %v1619_v3  ;;  %v1585_v32 = vmul.f32 %v6100_v51, %v10471_v42  ;;  %v10475_v38 = vld [vmem:[#allocation22_spill] sm:$0xff] }
 0x467   :  { %6115 = vrsqrt.f32 %v1529_v60  ;;  %v1499_v13 = vmul.f32 0.020833334, %v1467_v1  ;;  %v1620_v31 = vmul.f32 %v7571_v63, %v1584_v59  ;;  %v1761_v25 = vpack.c.bf16 %v1717_v20, %v1716_v30  ;;  %v10477_v20 = vld [vmem:[#allocation24_spill] sm:$0xff] }
 0x468   :  { %v1500_v37 = vmul.f32 0.020833334, %v1468_v46  ;;  %v6104_v41 = vpop.eup %6103  ;;  %6117 = vrsqrt.f32 %v1530_v44  ;;  %v1371_v58 = vpop.xlane.xlu1 %1370  ;;  %v1686_v5 = vmax.f32 %v1654_v39, 0.0  ;;  %v1687_v54 = vmax.f32 %v1655_v55, 0.0 }
 0x469   :  { %v1373_v29 = vpop.xlane.xlu0 %1372  ;;  %v6106_v49 = vpop.eup %6105  ;;  %v1531_v24 = vadd.f32 1e-05, %v1499_v13  ;;  %v1469_v57 = vsub.f32 %v1371_v58, %v7642_v8  ;;  %5710 = vmatprep.mubr.bf16.mxu0 %v1761_v25  ;;  %v1621_v0 = vmul.f32 %v7571_v63, %v1585_v32  ;;  %v1656_v12 = vadd.f32 %v7583_v56, %v1620_v31  ;;  %v10478_v58 = vld [vmem:[#allocation25_spill] sm:$0xff] }
 0x46a   :  { %v1532_v2 = vadd.f32 1e-05, %v1500_v37  ;;  %v1470_v40 = vsub.f32 %v1373_v29, %v7653_v4  ;;  %v1718_v33 = vmin.f32 %v1686_v5, 6.0  ;;  %v1719_v28 = vmin.f32 %v1687_v54, 6.0 }
 0x46b   :  { %6119 = vrsqrt.f32 %v1531_v24  ;;  %v1501_v9 = vmul.f32 0.020833334, %v1469_v57  ;;  %v1586_v48 = vmul.f32 %v6102_v17, %v10472_v52  ;;  %v1657_v8 = vadd.f32 %v7583_v56, %v1621_v0  ;;  %v10476_v17 = vld [vmem:[#allocation23_spill] sm:$0xff]  ;;  %v10479_v24 = vld [vmem:[#allocation26_spill] sm:$0xff] }
 0x46c   :  { %v1502_v47 = vmul.f32 0.020833334, %v1470_v40  ;;  %v6108_v61 = vpop.eup %6107  ;;  %6121 = vrsqrt.f32 %v1532_v2  ;;  %v1375_v18 = vpop.xlane.xlu1 %1374  ;;  %v1762_v43 = vpack.c.bf16 %v1719_v28, %v1718_v33  ;;  %v1688_v62 = vmax.f32 %v1656_v12, 0.0  ;;  %v10480_v28 = vld [vmem:[#allocation27_spill] sm:$0xff] }
 0x46d   :  { %v6110_v4 = vpop.eup %6109  ;;  %v1533_v11 = vadd.f32 1e-05, %v1501_v9  ;;  %v1471_v27 = vsub.f32 %v1375_v18, %v7686_v10  ;;  %v1587_v6 = vmul.f32 %v6104_v41, %v10473_v16  ;;  %v1689_v19 = vmax.f32 %v1657_v8, 0.0 }
 0x46e   :  { %v1534_v15 = vadd.f32 1e-05, %v1502_v47  ;;  %5711 = vmatmul.mubr.bf16.gmra.mxu0 %v1762_v43  ;;  %v1720_v7 = vmin.f32 %v1688_v62, 6.0  ;;  %v1622_v34 = vmul.f32 %v7571_v63, %v1586_v48  ;;  %v1588_v26 = vmul.f32 %v6106_v49, %v10474_v23 }
 0x46f   :  { %6123 = vrsqrt.f32 %v1533_v11  ;;  %v1503_v22 = vmul.f32 0.020833334, %v1471_v27  ;;  %v1623_v53 = vmul.f32 %v7571_v63, %v1587_v6  ;;  %v1589_v35 = vmul.f32 %v6108_v61, %v10475_v38 }
 0x470   :  { %v6112_v59 = vpop.eup %6111  ;;  %6125 = vrsqrt.f32 %v1534_v15  ;;  %v1721_v51 = vmin.f32 %v1689_v19, 6.0  ;;  %v1658_v10 = vadd.f32 %v7583_v56, %v1622_v34  ;;  %v1624_v50 = vmul.f32 %v7571_v63, %v1588_v26  ;;  %v10481_v15 = vld [vmem:[#allocation28_spill] sm:$0xff] }
 0x471   :  { %v6114_v36 = vpop.eup %6113  ;;  %v1535_v14 = vadd.f32 1e-05, %v1503_v22  ;;  %v1659_v30 = vadd.f32 %v7583_v56, %v1623_v53  ;;  %v1625_v3 = vmul.f32 %v7571_v63, %v1589_v35  ;;  %v1590_v60 = vmul.f32 %v6110_v4, %v10476_v17 }
 0x472   :  { %v1763_v44 = vpack.c.bf16 %v1721_v51, %v1720_v7  ;;  %v1690_v1 = vmax.f32 %v1658_v10, 0.0  ;;  %v1660_v46 = vadd.f32 %v7583_v56, %v1624_v50  ;;  %v1591_v39 = vmul.f32 %v6112_v59, %v10477_v20  ;;  %v10482_v7 = vld [vmem:[#allocation29_spill] sm:$0xff] }
 0x473   :  { %6127 = vrsqrt.f32 %v1535_v14  ;;  %v1691_v55 = vmax.f32 %v1659_v30, 0.0  ;;  %v1661_v42 = vadd.f32 %v7583_v56, %v1625_v3  ;;  %v1626_v32 = vmul.f32 %v7571_v63, %v1590_v60  ;;  %v10484_v3 = vld [vmem:[#allocation31_spill] sm:$0xff] }
 0x474   :  { %v6116_v13 = vpop.eup %6115  ;;  %5714 = vmatprep.mubr.bf16.mxu0 %v1763_v44  ;;  %v1722_v37 = vmin.f32 %v1690_v1, 6.0  ;;  %v1692_v31 = vmax.f32 %v1660_v46, 0.0  ;;  %v1627_v41 = vmul.f32 %v7571_v63, %v1591_v39  ;;  %v1592_v29 = vmul.f32 %v6114_v36, %v10478_v58  ;;  %v10483_v36 = vld [vmem:[#allocation30_spill] sm:$0xff] }
 0x475   :  { %v6118_v25 = vpop.eup %6117  ;;  %v1723_v5 = vmin.f32 %v1691_v55, 6.0  ;;  %v1693_v54 = vmax.f32 %v1661_v42, 0.0  ;;  %v1662_v49 = vadd.f32 %v7583_v56, %v1626_v32  ;;  %v1593_v2 = vmul.f32 %v6116_v13, %v10479_v24  ;;  %v10485_v13 = vld [vmem:[#allocation32_spill] sm:$0xff] }
 0x476   :  { %v1724_v57 = vmin.f32 %v1692_v31, 6.0  ;;  %v1663_v40 = vadd.f32 %v7583_v56, %v1627_v41  ;;  %v1628_v33 = vmul.f32 %v7571_v63, %v1592_v29  ;;  %v1594_v0 = vmul.f32 %v6118_v25, %v10480_v28  ;;  %v1753_v28 = vld [vmem:[#allocation5 + $0xd0] sm:$0x3] }
 0x477   :  { %v1764_v12 = vpack.c.bf16 %v1723_v5, %v1722_v37  ;;  %v1725_v9 = vmin.f32 %v1693_v54, 6.0  ;;  %v1694_v47 = vmax.f32 %v1662_v49, 0.0  ;;  %v1629_v52 = vmul.f32 %v7571_v63, %v1593_v2 }
 0x478   :  { %v6120_v48 = vpop.eup %6119  ;;  %v1695_v61 = vmax.f32 %v1663_v40, 0.0  ;;  %v1664_v18 = vadd.f32 %v7583_v56, %v1628_v33  ;;  %v1630_v43 = vmul.f32 %v7571_v63, %v1594_v0  ;;  %v7756_v0 = vunpack.c.l.bf16 %v1753_v28 }
 0x479   :  { %v6122_v8 = vpop.eup %6121  ;;  %5715 = vmatmul.mubr.bf16.gmra.mxu0 %v1764_v12  ;;  %v1765_v62 = vpack.c.bf16 %v1725_v9, %v1724_v57  ;;  %v1726_v4 = vmin.f32 %v1694_v47, 6.0  ;;  %v1665_v11 = vadd.f32 %v7583_v56, %v1629_v52  ;;  %v1595_v27 = vmul.f32 %v6120_v48, %v10481_v15  ;;  %v10486_v9 = vld [vmem:[#allocation11_spill] sm:$0xff] }
 0x47a   :  { %v1727_v16 = vmin.f32 %v1695_v61, 6.0  ;;  %v1696_v6 = vmax.f32 %v1664_v18, 0.0  ;;  %v1666_v19 = vadd.f32 %v7583_v56, %v1630_v43  ;;  %v1596_v34 = vmul.f32 %v6122_v8, %v10482_v7 }
 0x47b   :  { %5718 = vmatprep.mubr.bf16.mxu0 %v1765_v62  ;;  %v1697_v23 = vmax.f32 %v1665_v11, 0.0  ;;  %v1631_v26 = vmul.f32 %v7571_v63, %v1595_v27 }
 0x47c   :  { %v6124_v22 = vpop.eup %6123  ;;  %v1766_v53 = vpack.c.bf16 %v1727_v16, %v1726_v4  ;;  %v1698_v38 = vmax.f32 %v1666_v19, 0.0  ;;  %v1632_v35 = vmul.f32 %v7571_v63, %v1596_v34  ;;  %v1728_v51 = vmin.f32 %v1696_v6, 6.0 }
 0x47d   :  { %v6126_v59 = vpop.eup %6125  ;;  %v1729_v10 = vmin.f32 %v1697_v23, 6.0  ;;  %v1667_v50 = vadd.f32 %v7583_v56, %v1631_v26  ;;  %v1597_v14 = vmul.f32 %v6124_v22, %v10483_v36 }
 0x47e   :  { %v1668_v30 = vadd.f32 %v7583_v56, %v1632_v35  ;;  %v1598_v17 = vmul.f32 %v6126_v59, %v10484_v3  ;;  %v1730_v20 = vmin.f32 %v1698_v38, 6.0 }
 0x47f   :  { %v1767_v60 = vpack.c.bf16 %v1729_v10, %v1728_v51  ;;  %v1699_v44 = vmax.f32 %v1667_v50, 0.0  ;;  %v1633_v1 = vmul.f32 %v7571_v63, %v1597_v14 }
 0x480   :  { %v6128_v46 = vpop.eup %6127  ;;  %v1634_v39 = vmul.f32 %v7571_v63, %v1598_v17  ;;  %v1700_v32 = vmax.f32 %v1668_v30, 0.0 }
 0x481   :  { %5719 = vmatmul.mubr.bf16.gmra.mxu0 %v1766_v53  ;;  %v1731_v55 = vmin.f32 %v1699_v44, 6.0  ;;  %v1669_v42 = vadd.f32 %v7583_v56, %v1633_v1  ;;  %v1599_v37 = vmul.f32 %v6128_v46, %v10485_v13 }
 0x482   :  { %5722 = vmatprep.mubr.bf16.mxu0 %v1767_v60  ;;  %v1670_v31 = vadd.f32 %v7583_v56, %v1634_v39  ;;  %v1732_v25 = vmin.f32 %v1700_v32, 6.0 }
 0x483   :  { %v1768_v41 = vpack.c.bf16 %v1731_v55, %v1730_v20  ;;  %v1701_v58 = vmax.f32 %v1669_v42, 0.0  ;;  %v1635_v29 = vmul.f32 %v7571_v63, %v1599_v37  ;;  %v7760_v63 = vrot.slane %v7756_v0, %v10486_v9 }
 0x484   :  { %v1702_v49 = vmax.f32 %v1670_v31, 0.0 }
 0x485   :  { %v1733_v5 = vmin.f32 %v1701_v58, 6.0  ;;  %v1671_v54 = vadd.f32 %v7583_v56, %v1635_v29 }
 0x486   :  { %v1734_v57 = vmin.f32 %v1702_v49, 6.0 }
 0x487   :  { %v1769_v24 = vpack.c.bf16 %v1733_v5, %v1732_v25  ;;  %v1703_v2 = vmax.f32 %v1671_v54, 0.0 }
 0x489   :  { %5723 = vmatmul.mubr.bf16.gmra.mxu0 %v1768_v41  ;;  %v1735_v40 = vmin.f32 %v1703_v2, 6.0 }
 0x48a   :  { %5726 = vmatprep.mubr.bf16.mxu0 %v1769_v24 }
 0x48b   :  { %v1770_v33 = vpack.c.bf16 %v1735_v40, %v1734_v57 }
 0x491   :  { %5727 = vmatmul.mubr.bf16.gmra.mxu0 %v1770_v33 }
 0x50c   :  { %v5700_v12 = vpop.f32.mrf.mxu0 }
 0x50d   :  { %v7767_v61 = vadd.f32 %v5700_v12, %v7760_v63 }
 0x50e   :  { %v1857_v47 = vpop.f32.mrf.mxu0 }
 0x50f   :  { %v7763_v56 = vadd.f32 %v1857_v47, %v7760_v63 }
 0x510   :  { %v5701_v52 = vpop.f32.mrf.mxu0 }
 0x511   :  { %1984 = vadd.xlane.f32.xlu0 %v7763_v56  ;;  %v7775_v43 = vadd.f32 %v5701_v52, %v7760_v63 }
 0x512   :  { %v1860_v48 = vpop.f32.mrf.mxu0 }
 0x513   :  { %v7770_v18 = vadd.f32 %v1860_v48, %v7760_v63 }
 0x515   :  { %1986 = vadd.xlane.f32.xlu1 %v7770_v18  ;;  %1988 = vadd.xlane.f32.xlu0 %v7767_v61 }
 0x518   :  { %v5704_v8 = vpop.f32.mrf.mxu0 }
 0x519   :  { %1990 = vadd.xlane.f32.xlu1 %v7775_v43  ;;  %v7783_v27 = vadd.f32 %v5704_v8, %v7760_v63 }
 0x51a   :  { %v1873_v62 = vpop.f32.mrf.mxu0 }
 0x51b   :  { %v7779_v4 = vadd.f32 %v1873_v62, %v7760_v63  ;;  %v5969_v62 = vld [vmem:[#allocation5 + $0x110] sm:$0xff]  }
 0x51c   :  { %v5705_v11 = vpop.f32.mrf.mxu0  ;;  %5730 = vmatprep.subr.bf16.mxu1 %v5969_v62 }
 0x51d   :  { %1992 = vadd.xlane.f32.xlu0 %v7779_v4  ;;  %v7791_v19 = vadd.f32 %v5705_v11, %v7760_v63  ;;  %v5970_v11 = vld [vmem:[#allocation5 + $0x108] sm:$0xff]   ;;  %5731 = vmatpush3.bf16.msra.mxu1 %v5969_v62 }
 0x51e   :  { %v1876_v15 = vpop.f32.mrf.mxu0  ;;  %5732 = vmatprep.subr.bf16.mxu1 %v5970_v11 }
 0x51f   :  { %v7786_v16 = vadd.f32 %v1876_v15, %v7760_v63  ;;  %v5971_v15 = vld [vmem:[#allocation5 + $0x100] sm:$0xff]  }
 0x521   :  { %1994 = vadd.xlane.f32.xlu1 %v7786_v16  ;;  %1996 = vadd.xlane.f32.xlu0 %v7783_v27 }
 0x522   :  { %v5708_v6 = vpop.f32.mrf.mxu0  ;;  %5733 = vmatpush3.bf16.msra.mxu1 %v5970_v11 }
 0x523   :  { %v7799_v22 = vadd.f32 %v5708_v6, %v7760_v63  ;;  %5734 = vmatprep.subr.bf16.mxu1 %v5971_v15  ;;  %v5972_v6 = vld [vmem:[#allocation5 + $0xf8] sm:$0xff]  }
 0x524   :  { %v1889_v7 = vpop.f32.mrf.mxu0 }
 0x525   :  { %v7794_v34 = vadd.f32 %v1889_v7, %v7760_v63  ;;  %1998 = vadd.xlane.f32.xlu1 %v7791_v19 }
 0x526   :  { %v5709_v23 = vpop.f32.mrf.mxu0  ;;  %5735 = vmatpush3.bf16.msra.mxu1 %v5971_v15 }
 0x527   :  { %2000 = vadd.xlane.f32.xlu0 %v7794_v34  ;;  %v7807_v38 = vadd.f32 %v5709_v23, %v7760_v63  ;;  %5736 = vmatprep.subr.bf16.mxu1 %v5972_v6 }
 0x528   :  { %v1892_v26 = vpop.f32.mrf.mxu0 }
 0x529   :  { %v7802_v53 = vadd.f32 %v1892_v26, %v7760_v63 }
 0x52a   :  { %5737 = vmatpush3.bf16.msra.mxu1 %v5972_v6 }
 0x52b   :  { %2002 = vadd.xlane.f32.xlu1 %v7802_v53  ;;  %2004 = vadd.xlane.f32.xlu0 %v7799_v22 }
 0x52e   :  { %v5712_v35 = vpop.f32.mrf.mxu0 }
 0x52f   :  { %2006 = vadd.xlane.f32.xlu1 %v7807_v38  ;;  %v7815_v36 = vadd.f32 %v5712_v35, %v7760_v63 }
 0x530   :  { %v1905_v59 = vpop.f32.mrf.mxu0 }
 0x531   :  { %v7811_v51 = vadd.f32 %v1905_v59, %v7760_v63 }
 0x532   :  { %v5713_v10 = vpop.f32.mrf.mxu0 }
 0x533   :  { %2008 = vadd.xlane.f32.xlu0 %v7811_v51  ;;  %v7823_v30 = vadd.f32 %v5713_v10, %v7760_v63 }
 0x534   :  { %v1908_v50 = vpop.f32.mrf.mxu0 }
 0x535   :  { %v7818_v14 = vadd.f32 %v1908_v50, %v7760_v63 }
 0x537   :  { %2010 = vadd.xlane.f32.xlu1 %v7818_v14  ;;  %2012 = vadd.xlane.f32.xlu0 %v7815_v36 }
 0x539   :  { %v5716_v3 = vpop.f32.mrf.mxu0 }
 0x53a   :  { %v7831_v46 = vadd.f32 %v5716_v3, %v7760_v63 }
 0x53b   :  { %v1921_v17 = vpop.f32.mrf.mxu0  ;;  %2014 = vadd.xlane.f32.xlu1 %v7823_v30 }
 0x53c   :  { %v7827_v60 = vadd.f32 %v1921_v17, %v7760_v63 }
 0x53d   :  { %v5717_v44 = vpop.f32.mrf.mxu0 }
 0x53e   :  { %2016 = vadd.xlane.f32.xlu0 %v7827_v60  ;;  %v7839_v42 = vadd.f32 %v5717_v44, %v7760_v63 }
 0x53f   :  { %v1924_v1 = vpop.f32.mrf.mxu0 }
 0x540   :  { %v7834_v20 = vadd.f32 %v1924_v1, %v7760_v63 }
 0x541   :  { %v5720_v39 = vpop.f32.mrf.mxu0 }
 0x542   :  { %2018 = vadd.xlane.f32.xlu1 %v7834_v20  ;;  %2020 = vadd.xlane.f32.xlu0 %v7831_v46  ;;  %v7847_v31 = vadd.f32 %v5720_v39, %v7760_v63 }
 0x543   :  { %v1937_v55 = vpop.f32.mrf.mxu0 }
 0x544   :  { %v7842_v32 = vadd.f32 %v1937_v55, %v7760_v63 }
 0x545   :  { %v5721_v13 = vpop.f32.mrf.mxu0 }
 0x546   :  { %2022 = vadd.xlane.f32.xlu1 %v7839_v42  ;;  %2024 = vadd.xlane.f32.xlu0 %v7842_v32  ;;  %v7855_v25 = vadd.f32 %v5721_v13, %v7760_v63 }
 0x547   :  { %v1940_v37 = vpop.f32.mrf.mxu0 }
 0x548   :  { %v7850_v41 = vadd.f32 %v1940_v37, %v7760_v63 }
 0x549   :  { %v5724_v58 = vpop.f32.mrf.mxu0 }
 0x54a   :  { %2026 = vadd.xlane.f32.xlu1 %v7850_v41  ;;  %2028 = vadd.xlane.f32.xlu0 %v7847_v31  ;;  %v7863_v24 = vadd.f32 %v5724_v58, %v7760_v63 }
 0x54b   :  { %v1953_v29 = vpop.f32.mrf.mxu0 }
 0x54c   :  { %v7858_v5 = vadd.f32 %v1953_v29, %v7760_v63 }
 0x54d   :  { %v5725_v54 = vpop.f32.mrf.mxu0 }
 0x54e   :  { %2030 = vadd.xlane.f32.xlu1 %v7855_v25  ;;  %2032 = vadd.xlane.f32.xlu0 %v7858_v5  ;;  %v7871_v33 = vadd.f32 %v5725_v54, %v7760_v63 }
 0x54f   :  { %v1956_v49 = vpop.f32.mrf.mxu0 }
 0x550   :  { %v7866_v2 = vadd.f32 %v1956_v49, %v7760_v63 }
 0x551   :  { %v5728_v57 = vpop.f32.mrf.mxu0 }
 0x552   :  { %2034 = vadd.xlane.f32.xlu1 %v7866_v2  ;;  %2036 = vadd.xlane.f32.xlu0 %v7863_v24  ;;  %v7879_v52 = vadd.f32 %v5728_v57, %v7760_v63 }
 0x553   :  { %v1969_v40 = vpop.f32.mrf.mxu0 }
 0x554   :  { %v7874_v28 = vadd.f32 %v1969_v40, %v7760_v63 }
 0x555   :  { %v5729_v12 = vpop.f32.mrf.mxu0 }
 0x556   :  { %2038 = vadd.xlane.f32.xlu1 %v7871_v33  ;;  %2040 = vadd.xlane.f32.xlu0 %v7874_v28  ;;  %v7887_v8 = vadd.f32 %v5729_v12, %v7760_v63 }
 0x557   :  { %v1972_v47 = vpop.f32.mrf.mxu0 }
 0x558   :  { %v7882_v48 = vadd.f32 %v1972_v47, %v7760_v63 }
 0x55a   :  { %2042 = vadd.xlane.f32.xlu1 %v7882_v48  ;;  %2044 = vadd.xlane.f32.xlu0 %v7879_v52 }
 0x55e   :  { %2046 = vadd.xlane.f32.xlu1 %v7887_v8 }
 0x59a   :  { %v1985_v7 = vpop.xlane.xlu0 %1984 }
 0x59b   :  { %v7890_v23 = vmul.f32 0.03125, %v1985_v7 }
 0x59d   :  { %v7894_v63 = vsub.f32 %v7763_v56, %v7890_v23 }
 0x59e   :  { %v1987_v26 = vpop.xlane.xlu1 %1986  ;;  %v1989_v35 = vpop.xlane.xlu0 %1988 }
 0x59f   :  { %v7896_v59 = vmul.f32 0.03125, %v1987_v26  ;;  %v7898_v10 = vmul.f32 0.03125, %v1989_v35  ;;  %v2112_v50 = vmul.f32 %v7894_v63, %v7894_v63 }
 0x5a1   :  { %2144 = vadd.xlane.f32.xlu0 %v2112_v50  ;;  %v7904_v3 = vsub.f32 %v7770_v18, %v7896_v59  ;;  %v7908_v17 = vsub.f32 %v7767_v61, %v7898_v10 }
 0x5a2   :  { %v1991_v56 = vpop.xlane.xlu1 %1990 }
 0x5a3   :  { %v7910_v44 = vmul.f32 0.03125, %v1991_v56  ;;  %v2113_v1 = vmul.f32 %v7904_v3, %v7904_v3  ;;  %v2114_v39 = vmul.f32 %v7908_v17, %v7908_v17 }
 0x5a5   :  { %2146 = vadd.xlane.f32.xlu1 %v2113_v1  ;;  %2148 = vadd.xlane.f32.xlu0 %v2114_v39  ;;  %v7918_v18 = vsub.f32 %v7775_v43, %v7910_v44 }
 0x5a6   :  { %v1993_v55 = vpop.xlane.xlu0 %1992 }
 0x5a7   :  { %v7920_v13 = vmul.f32 0.03125, %v1993_v55  ;;  %v2115_v61 = vmul.f32 %v7918_v18, %v7918_v18 }
 0x5a9   :  { %v7926_v37 = vsub.f32 %v7779_v4, %v7920_v13  ;;  %2150 = vadd.xlane.f32.xlu1 %v2115_v61 }
 0x5aa   :  { %v1995_v58 = vpop.xlane.xlu1 %1994  ;;  %v1997_v29 = vpop.xlane.xlu0 %1996 }
 0x5ab   :  { %v7928_v54 = vmul.f32 0.03125, %v1995_v58  ;;  %v7930_v49 = vmul.f32 0.03125, %v1997_v29  ;;  %v2116_v43 = vmul.f32 %v7926_v37, %v7926_v37 }
 0x5ad   :  { %2152 = vadd.xlane.f32.xlu0 %v2116_v43  ;;  %v7936_v57 = vsub.f32 %v7786_v16, %v7928_v54  ;;  %v7940_v40 = vsub.f32 %v7783_v27, %v7930_v49 }
 0x5ae   :  { %v1999_v4 = vpop.xlane.xlu1 %1998 }
 0x5af   :  { %v7942_v12 = vmul.f32 0.03125, %v1999_v4  ;;  %v2117_v47 = vmul.f32 %v7936_v57, %v7936_v57  ;;  %v2118_v62 = vmul.f32 %v7940_v40, %v7940_v40 }
 0x5b0   :  { %v2001_v11 = vpop.xlane.xlu0 %2000 }
 0x5b1   :  { %v7948_v15 = vmul.f32 0.03125, %v2001_v11  ;;  %2154 = vadd.xlane.f32.xlu1 %v2117_v47  ;;  %2156 = vadd.xlane.f32.xlu0 %v2118_v62  ;;  %v7952_v16 = vsub.f32 %v7791_v19, %v7942_v12 }
 0x5b3   :  { %v2119_v27 = vmul.f32 %v7952_v16, %v7952_v16  ;;  %v7958_v6 = vsub.f32 %v7794_v34, %v7948_v15 }
 0x5b4   :  { %v2003_v7 = vpop.xlane.xlu1 %2002  ;;  %v2005_v26 = vpop.xlane.xlu0 %2004 }
 0x5b5   :  { %v7960_v35 = vmul.f32 0.03125, %v2003_v7  ;;  %v7962_v50 = vmul.f32 0.03125, %v2005_v26  ;;  %2158 = vadd.xlane.f32.xlu1 %v2119_v27  ;;  %v2120_v56 = vmul.f32 %v7958_v6, %v7958_v6 }
 0x5b7   :  { %2160 = vadd.xlane.f32.xlu0 %v2120_v56  ;;  %v7968_v19 = vsub.f32 %v7802_v53, %v7960_v35  ;;  %v7972_v1 = vsub.f32 %v7799_v22, %v7962_v50 }
 0x5b8   :  { %v2007_v34 = vpop.xlane.xlu1 %2006 }
 0x5b9   :  { %v7974_v39 = vmul.f32 0.03125, %v2007_v34  ;;  %v2121_v55 = vmul.f32 %v7968_v19, %v7968_v19  ;;  %v2122_v61 = vmul.f32 %v7972_v1, %v7972_v1 }
 0x5bb   :  { %2162 = vadd.xlane.f32.xlu1 %v2121_v55  ;;  %2164 = vadd.xlane.f32.xlu0 %v2122_v61  ;;  %v7982_v58 = vsub.f32 %v7807_v38, %v7974_v39  ;;  %v5973_v55 = vld [vmem:[#allocation5 + $0xf0] sm:$0xff]  }
 0x5bc   :  { %v2009_v53 = vpop.xlane.xlu0 %2008  ;;  %5738 = vmatprep.subr.bf16.mxu1 %v5973_v55 }
 0x5bd   :  { %v7984_v29 = vmul.f32 0.03125, %v2009_v53  ;;  %v2123_v22 = vmul.f32 %v7982_v58, %v7982_v58  ;;  %5739 = vmatpush3.bf16.msra.mxu1 %v5973_v55 }
 0x5bf   :  { %2166 = vadd.xlane.f32.xlu1 %v2123_v22  ;;  %v7990_v43 = vsub.f32 %v7811_v51, %v7984_v29 }
 0x5c0   :  { %v2011_v4 = vpop.xlane.xlu1 %2010  ;;  %v2013_v47 = vpop.xlane.xlu0 %2012 }
 0x5c1   :  { %v7992_v62 = vmul.f32 0.03125, %v2011_v4  ;;  %v7994_v11 = vmul.f32 0.03125, %v2013_v47  ;;  %v2124_v38 = vmul.f32 %v7990_v43, %v7990_v43 }
 0x5c3   :  { %2168 = vadd.xlane.f32.xlu0 %v2124_v38  ;;  %v8000_v27 = vsub.f32 %v7818_v14, %v7992_v62  ;;  %v8004_v7 = vsub.f32 %v7815_v36, %v7994_v11  ;;  %v5974_v36 = vld [vmem:[#allocation5 + $0xe8] sm:$0xff]  }
 0x5c4   :  { %v2015_v51 = vpop.xlane.xlu1 %2014  ;;  %5740 = vmatprep.subr.bf16.mxu1 %v5974_v36 }
 0x5c5   :  { %10487 = vst [vmem:[#allocation33_spill] sm:$0xff] %v8000_v27  ;;  %10488 = vst [vmem:[#allocation12_spill] sm:$0xff] %v8004_v7  ;;  %v8006_v26 = vmul.f32 0.03125, %v2015_v51  ;;  %v2125_v56 = vmul.f32 %v8000_v27, %v8000_v27  ;;  %v2126_v34 = vmul.f32 %v8004_v7, %v8004_v7  ;;  %5741 = vmatpush3.bf16.msra.mxu1 %v5974_v36 }
 0x5c7   :  { %v2017_v61 = vpop.xlane.xlu0 %2016  ;;  %2170 = vadd.xlane.f32.xlu1 %v2125_v56  ;;  %2172 = vadd.xlane.f32.xlu0 %v2126_v34  ;;  %v8014_v14 = vsub.f32 %v7823_v30, %v8006_v26  ;;  %v5975_v34 = vld [vmem:[#allocation5 + $0xe0] sm:$0xff]  }
 0x5c8   :  { %v8016_v53 = vmul.f32 0.03125, %v2017_v61  ;;  %5742 = vmatprep.subr.bf16.mxu1 %v5975_v34 }
 0x5c9   :  { %10489 = vst [vmem:[#allocation13_spill] sm:$0xff] %v8014_v14  ;;  %v2127_v22 = vmul.f32 %v8014_v14, %v8014_v14  ;;  %5743 = vmatpush3.bf16.msra.mxu1 %v5975_v34 }
 0x5ca   :  { %v8022_v4 = vsub.f32 %v7827_v60, %v8016_v53 }
 0x5cb   :  { %v2019_v47 = vpop.xlane.xlu1 %2018  ;;  %v2021_v38 = vpop.xlane.xlu0 %2020  ;;  %2174 = vadd.xlane.f32.xlu1 %v2127_v22 }
 0x5cc   :  { %10490 = vst [vmem:[#allocation14_spill] sm:$0xff] %v8022_v4  ;;  %v8024_v51 = vmul.f32 0.03125, %v2019_v47  ;;  %v8026_v30 = vmul.f32 0.03125, %v2021_v38  ;;  %v2128_v56 = vmul.f32 %v8022_v4, %v8022_v4 }
 0x5ce   :  { %2176 = vadd.xlane.f32.xlu0 %v2128_v56  ;;  %v8032_v55 = vsub.f32 %v7834_v20, %v8024_v51  ;;  %v8036_v60 = vsub.f32 %v7831_v46, %v8026_v30 }
 0x5cf   :  { %v2023_v61 = vpop.xlane.xlu1 %2022  ;;  %v2025_v22 = vpop.xlane.xlu0 %2024 }
 0x5d0   :  { %10491 = vst [vmem:[#allocation15_spill] sm:$0xff] %v8032_v55  ;;  %10492 = vst [vmem:[#allocation16_spill] sm:$0xff] %v8036_v60  ;;  %v8038_v47 = vmul.f32 0.03125, %v2023_v61  ;;  %v8040_v38 = vmul.f32 0.03125, %v2025_v22  ;;  %v2129_v9 = vmul.f32 %v8032_v55, %v8032_v55  ;;  %v2130_v36 = vmul.f32 %v8036_v60, %v8036_v60 }
 0x5d2   :  { %2178 = vadd.xlane.f32.xlu1 %v2129_v9  ;;  %2180 = vadd.xlane.f32.xlu0 %v2130_v36  ;;  %v8048_v46 = vsub.f32 %v7839_v42, %v8038_v47  ;;  %v8052_v20 = vsub.f32 %v7842_v32, %v8040_v38 }
 0x5d3   :  { %v2027_v56 = vpop.xlane.xlu1 %2026  ;;  %v2029_v61 = vpop.xlane.xlu0 %2028 }
 0x5d4   :  { %10493 = vst [vmem:[#allocation17_spill] sm:$0xff] %v8048_v46  ;;  %10494 = vst [vmem:[#allocation18_spill] sm:$0xff] %v8052_v20  ;;  %v8054_v22 = vmul.f32 0.03125, %v2027_v56  ;;  %v8056_v4 = vmul.f32 0.03125, %v2029_v61  ;;  %v2131_v60 = vmul.f32 %v8048_v46, %v8048_v46  ;;  %v2132_v9 = vmul.f32 %v8052_v20, %v8052_v20 }
 0x5d6   :  { %2182 = vadd.xlane.f32.xlu1 %v2131_v60  ;;  %2184 = vadd.xlane.f32.xlu0 %v2132_v9  ;;  %v8064_v42 = vsub.f32 %v7850_v41, %v8054_v22  ;;  %v8068_v32 = vsub.f32 %v7847_v31, %v8056_v4  ;;  %v5976_v9 = vld [vmem:[#allocation5 + $0xd8] sm:$0xff]  }
 0x5d7   :  { %v2031_v34 = vpop.xlane.xlu1 %2030  ;;  %v2033_v36 = vpop.xlane.xlu0 %2032  ;;  %5744 = vmatprep.subr.bf16.mxu1 %v5976_v9 }
 0x5d8   :  { %10495 = vst [vmem:[#allocation19_spill] sm:$0xff] %v8064_v42  ;;  %10496 = vst [vmem:[#allocation20_spill] sm:$0xff] %v8068_v32  ;;  %v8070_v56 = vmul.f32 0.03125, %v2031_v34  ;;  %v8072_v61 = vmul.f32 0.03125, %v2033_v36  ;;  %v2133_v46 = vmul.f32 %v8064_v42, %v8064_v42  ;;  %v2134_v60 = vmul.f32 %v8068_v32, %v8068_v32  ;;  %5745 = vmatpush3.bf16.msra.mxu1 %v5976_v9 }
 0x5da   :  { %2186 = vadd.xlane.f32.xlu1 %v2133_v46  ;;  %2188 = vadd.xlane.f32.xlu0 %v2134_v60  ;;  %v8080_v41 = vsub.f32 %v7855_v25, %v8070_v56  ;;  %v8084_v31 = vsub.f32 %v7858_v5, %v8072_v61 }
 0x5db   :  { %v2035_v34 = vpop.xlane.xlu1 %2034  ;;  %v2037_v36 = vpop.xlane.xlu0 %2036 }
 0x5dc   :  { %10497 = vst [vmem:[#allocation21_spill] sm:$0xff] %v8080_v41  ;;  %10498 = vst [vmem:[#allocation22_spill] sm:$0xff] %v8084_v31  ;;  %v8086_v20 = vmul.f32 0.03125, %v2035_v34  ;;  %v8088_v42 = vmul.f32 0.03125, %v2037_v36  ;;  %v2135_v32 = vmul.f32 %v8080_v41, %v8080_v41  ;;  %v2136_v46 = vmul.f32 %v8084_v31, %v8084_v31 }
 0x5de   :  { %2190 = vadd.xlane.f32.xlu1 %v2135_v32  ;;  %2192 = vadd.xlane.f32.xlu0 %v2136_v46  ;;  %v8096_v25 = vsub.f32 %v7866_v2, %v8086_v20  ;;  %v8100_v5 = vsub.f32 %v7863_v24, %v8088_v42 }
 0x5df   :  { %v2039_v60 = vpop.xlane.xlu1 %2038  ;;  %v2041_v34 = vpop.xlane.xlu0 %2040 }
 0x5e0   :  { %10499 = vst [vmem:[#allocation23_spill] sm:$0xff] %v8096_v25  ;;  %10500 = vst [vmem:[#allocation24_spill] sm:$0xff] %v8100_v5  ;;  %v8102_v36 = vmul.f32 0.03125, %v2039_v60  ;;  %v8104_v55 = vmul.f32 0.03125, %v2041_v34  ;;  %v2137_v31 = vmul.f32 %v8096_v25, %v8096_v25  ;;  %v2138_v32 = vmul.f32 %v8100_v5, %v8100_v5 }
 0x5e1   :  { %v2211_v5 = vmul.f32 96.0, %v7910_v44 }
 0x5e2   :  { %2194 = vadd.xlane.f32.xlu1 %v2137_v31  ;;  %2196 = vadd.xlane.f32.xlu0 %v2138_v32  ;;  %v8112_v2 = vsub.f32 %v7871_v33, %v8102_v36  ;;  %v8116_v24 = vsub.f32 %v7874_v28, %v8104_v55 }
 0x5e3   :  { %v2043_v9 = vpop.xlane.xlu1 %2042  ;;  %v2045_v46 = vpop.xlane.xlu0 %2044  ;;  %v2243_v27 = vmul.f32 %v2211_v5, %v7910_v44 }
 0x5e4   :  { %10501 = vst [vmem:[#allocation25_spill] sm:$0xff] %v8112_v2  ;;  %10502 = vst [vmem:[#allocation26_spill] sm:$0xff] %v8116_v24  ;;  %v8118_v60 = vmul.f32 0.03125, %v2043_v9  ;;  %v8120_v34 = vmul.f32 0.03125, %v2045_v46  ;;  %v2139_v25 = vmul.f32 %v8112_v2, %v8112_v2  ;;  %v2140_v31 = vmul.f32 %v8116_v24, %v8116_v24 }
 0x5e6   :  { %2198 = vadd.xlane.f32.xlu1 %v2139_v25  ;;  %2200 = vadd.xlane.f32.xlu0 %v2140_v31  ;;  %v8128_v33 = vsub.f32 %v7882_v48, %v8118_v60  ;;  %v8132_v28 = vsub.f32 %v7879_v52, %v8120_v34  ;;  %v2208_v52 = vmul.f32 96.0, %v7890_v23 }
 0x5e7   :  { %v2047_v32 = vpop.xlane.xlu1 %2046 }
 0x5e8   :  { %10503 = vst [vmem:[#allocation27_spill] sm:$0xff] %v8128_v33  ;;  %10504 = vst [vmem:[#allocation28_spill] sm:$0xff] %v8132_v28  ;;  %v8134_v9 = vmul.f32 0.03125, %v2047_v32  ;;  %v2141_v46 = vmul.f32 %v8128_v33, %v8128_v33  ;;  %v2142_v2 = vmul.f32 %v8132_v28, %v8132_v28  ;;  %v2240_v31 = vmul.f32 %v2208_v52, %v7890_v23 }
 0x5e9   :  { %v2209_v32 = vmul.f32 96.0, %v7896_v59  ;;  %v2210_v33 = vmul.f32 96.0, %v7898_v10  ;;  %v2212_v23 = vmul.f32 96.0, %v7920_v13 }
 0x5ea   :  { %10505 = vst [vmem:[#allocation29_spill] sm:$0xff] %v8134_v9  ;;  %2202 = vadd.xlane.f32.xlu1 %v2141_v46  ;;  %2204 = vadd.xlane.f32.xlu0 %v2142_v2  ;;  %v8142_v25 = vsub.f32 %v7887_v8, %v8134_v9 }
 0x5eb   :  { %v2241_v2 = vmul.f32 %v2209_v32, %v7896_v59  ;;  %v2242_v8 = vmul.f32 %v2210_v33, %v7898_v10  ;;  %v2244_v33 = vmul.f32 %v2212_v23, %v7920_v13  ;;  %v2214_v32 = vmul.f32 96.0, %v7930_v49 }
 0x5ec   :  { %10506 = vst [vmem:[#allocation30_spill] sm:$0xff] %v8142_v25  ;;  %v2143_v48 = vmul.f32 %v8142_v25, %v8142_v25  ;;  %v2219_v13 = vmul.f32 96.0, %v7974_v39 }
 0x5ed   :  { %v2246_v23 = vmul.f32 %v2214_v32, %v7930_v49 }
 0x5ee   :  { %2206 = vadd.xlane.f32.xlu1 %v2143_v48  ;;  %v8174_v49 = vmul.f32 %v2219_v13, %v7974_v39  ;;  %v2226_v39 = vmul.f32 96.0, %v8026_v30 }
 0x62a   :  { %v2145_v24 = vpop.xlane.xlu0 %2144 }
 0x62b   :  { %v2272_v28 = vsub.f32 %v2145_v24, %v2240_v31 }
 0x62d   :  { %v2304_v46 = vmul.f32 0.03125, %v2272_v28  ;;  %v2213_v28 = vmul.f32 96.0, %v7928_v54 }
 0x62e   :  { %v2147_v41 = vpop.xlane.xlu1 %2146  ;;  %v2149_v25 = vpop.xlane.xlu0 %2148 }
 0x62f   :  { %v2336_v48 = vadd.f32 1e-05, %v2304_v46  ;;  %v2273_v9 = vsub.f32 %v2147_v41, %v2241_v2  ;;  %v2274_v14 = vsub.f32 %v2149_v25, %v2242_v8  ;;  %v2215_v41 = vmul.f32 96.0, %v7942_v12 }
 0x630   :  { %v2216_v25 = vmul.f32 96.0, %v7948_v15  ;;  %v2245_v5 = vmul.f32 %v2213_v28, %v7928_v54  ;;  %v2220_v2 = vmul.f32 96.0, %v7984_v29  ;;  %v2221_v8 = vmul.f32 96.0, %v7992_v62 }
 0x631   :  { %6129 = vrsqrt.f32 %v2336_v48  ;;  %v2305_v52 = vmul.f32 0.03125, %v2273_v9  ;;  %v2306_v7 = vmul.f32 0.03125, %v2274_v14  ;;  %v2217_v14 = vmul.f32 96.0, %v7960_v35 }
 0x632   :  { %v2151_v24 = vpop.xlane.xlu1 %2150  ;;  %v2222_v28 = vmul.f32 96.0, %v7994_v11 }
 0x633   :  { %v2337_v59 = vadd.f32 1e-05, %v2305_v52  ;;  %v2338_v31 = vadd.f32 1e-05, %v2306_v7  ;;  %v2275_v10 = vsub.f32 %v2151_v24, %v2243_v27  ;;  %v2218_v7 = vmul.f32 96.0, %v7962_v50 }
 0x634   :  { %v2247_v52 = vmul.f32 %v2215_v41, %v7942_v12  ;;  %v2248_v24 = vmul.f32 %v2216_v25, %v7948_v15  ;;  %v2249_v54 = vmul.f32 %v2217_v14, %v7960_v35  ;;  %v8177_v12 = vmul.f32 %v2220_v2, %v7984_v29 }
 0x635   :  { %6131 = vrsqrt.f32 %v2337_v59  ;;  %v2307_v46 = vmul.f32 0.03125, %v2275_v10  ;;  %v2223_v10 = vmul.f32 96.0, %v8006_v26  ;;  %v8180_v15 = vmul.f32 %v2221_v8, %v7992_v62 }
 0x636   :  { %v2153_v9 = vpop.xlane.xlu0 %2152  ;;  %6133 = vrsqrt.f32 %v2338_v31  ;;  %v2224_v35 = vmul.f32 96.0, %v8016_v53  ;;  %v2225_v25 = vmul.f32 96.0, %v8024_v51  ;;  %v8193_v29 = vrot.slane %v7756_v0, %v6920_v45 }
 0x637   :  { %v2276_v44 = vsub.f32 %v2153_v9, %v2244_v33  ;;  %v2339_v27 = vadd.f32 1e-05, %v2307_v46  ;;  %v2227_v2 = vmul.f32 96.0, %v8038_v47 }
 0x639   :  { %v2308_v48 = vmul.f32 0.03125, %v2276_v44  ;;  %6135 = vrsqrt.f32 %v2339_v27  ;;  %v2250_v44 = vmul.f32 %v2218_v7, %v7962_v50  ;;  %v8188_v50 = vmul.f32 %v2223_v10, %v8006_v26 }
 0x63a   :  { %v2155_v59 = vpop.xlane.xlu1 %2154  ;;  %v2157_v31 = vpop.xlane.xlu0 %2156  ;;  %v8202_v26 = vrot.slane %v7756_v0, %v6923_v21  ;;  %v2230_v10 = vmul.f32 96.0, %v8056_v4  ;;  %v8212_v0 = vmul.f32 %v2226_v39, %v8026_v30 }
 0x63b   :  { %v2340_v33 = vadd.f32 1e-05, %v2308_v48  ;;  %v2277_v46 = vsub.f32 %v2155_v59, %v2245_v5  ;;  %v2278_v9 = vsub.f32 %v2157_v31, %v2246_v23  ;;  %v8185_v5 = vmul.f32 %v2222_v28, %v7994_v11 }
 0x63c   :  { %v8197_v48 = vmul.f32 %v2224_v35, %v8016_v53  ;;  %v2228_v23 = vmul.f32 96.0, %v8040_v38  ;;  %v8206_v28 = vmul.f32 %v2225_v25, %v8024_v51  ;;  %v2229_v53 = vmul.f32 96.0, %v8054_v22 }
 0x63d   :  { %6137 = vrsqrt.f32 %v2340_v33  ;;  %v2309_v32 = vmul.f32 0.03125, %v2277_v46  ;;  %v2310_v41 = vmul.f32 0.03125, %v2278_v9  ;;  %v8215_v9 = vmul.f32 %v2227_v2, %v8038_v47 }
 0x63e   :  { %v2159_v14 = vpop.xlane.xlu1 %2158  ;;  %v6130_v62 = vpop.eup %6129  ;;  %v8220_v25 = vmul.f32 %v2228_v23, %v8040_v38 }
 0x63f   :  { %v2341_v7 = vadd.f32 1e-05, %v2309_v32  ;;  %v2342_v27 = vadd.f32 1e-05, %v2310_v41  ;;  %v2279_v13 = vsub.f32 %v2159_v14, %v2247_v52  ;;  %v2400_v11 = vmul.f32 %v6130_v62, %v7894_v63 }
 0x640   :  { %v2161_v8 = vpop.xlane.xlu0 %2160  ;;  %v2231_v14 = vmul.f32 96.0, %v8070_v56 }
 0x641   :  { %6139 = vrsqrt.f32 %v2341_v7  ;;  %v2311_v59 = vmul.f32 0.03125, %v2279_v13  ;;  %v2280_v31 = vsub.f32 %v2161_v8, %v2248_v24  ;;  %v2436_v52 = vmul.f32 %v8193_v29, %v2400_v11 }
 0x642   :  { %6141 = vrsqrt.f32 %v2342_v27  ;;  %v6132_v63 = vpop.eup %6131  ;;  %v8226_v27 = vmul.f32 %v2229_v53, %v8054_v22 }
 0x643   :  { %v2343_v33 = vadd.f32 1e-05, %v2311_v59  ;;  %v2312_v46 = vmul.f32 0.03125, %v2280_v31  ;;  %v6134_v24 = vpop.eup %6133  ;;  %v2401_v32 = vmul.f32 %v6132_v63, %v7904_v3  ;;  %v2472_v41 = vadd.f32 %v8202_v26, %v2436_v52 }
 0x644   :  { %v2163_v35 = vpop.xlane.xlu1 %2162  ;;  %v2165_v51 = vpop.xlane.xlu0 %2164  ;;  %v2402_v62 = vmul.f32 %v6134_v24, %v7908_v17  ;;  %v8229_v3 = vmul.f32 %v2230_v10, %v8056_v4  ;;  %v8238_v31 = vmul.f32 %v2231_v14, %v8070_v56 }
 0x645   :  { %6143 = vrsqrt.f32 %v2343_v33  ;;  %v2344_v30 = vadd.f32 1e-05, %v2312_v46  ;;  %v2281_v39 = vsub.f32 %v2163_v35, %v2249_v54  ;;  %v2282_v7 = vsub.f32 %v2165_v51, %v2250_v44 }
 0x646   :  { %v2437_v47 = vmul.f32 %v8193_v29, %v2401_v32  ;;  %v6136_v13 = vpop.eup %6135  ;;  %v2504_v2 = vmax.f32 %v2472_v41, 0.0  ;;  %v2438_v8 = vmul.f32 %v8193_v29, %v2402_v62  ;;  %v2232_v44 = vmul.f32 96.0, %v8072_v61 }
 0x647   :  { %6145 = vrsqrt.f32 %v2344_v30  ;;  %v2313_v38 = vmul.f32 0.03125, %v2281_v39  ;;  %v2403_v17 = vmul.f32 %v6136_v13, %v7918_v18  ;;  %v2314_v11 = vmul.f32 0.03125, %v2282_v7 }
 0x648   :  { %v2167_v23 = vpop.xlane.xlu1 %2166  ;;  %v2473_v54 = vadd.f32 %v8202_v26, %v2437_v47  ;;  %v2474_v4 = vadd.f32 %v8202_v26, %v2438_v8  ;;  %v2233_v18 = vmul.f32 96.0, %v8086_v20  ;;  %v2536_v46 = vmin.f32 %v2504_v2, 6.0 }
 0x649   :  { %v2345_v59 = vadd.f32 1e-05, %v2313_v38  ;;  %v2283_v22 = vsub.f32 %v2167_v23, %v8174_v49  ;;  %v2346_v53 = vadd.f32 1e-05, %v2314_v11  ;;  %v2439_v63 = vmul.f32 %v8193_v29, %v2403_v17 }
 0x64a   :  { %v6138_v52 = vpop.eup %6137  ;;  %v2505_v10 = vmax.f32 %v2473_v54, 0.0  ;;  %v2506_v32 = vmax.f32 %v2474_v4, 0.0  ;;  %v8247_v62 = vmul.f32 %v2232_v44, %v8072_v61  ;;  %v8250_v47 = vmul.f32 %v2233_v18, %v8086_v20 }
 0x64b   :  { %6147 = vrsqrt.f32 %v2345_v59  ;;  %v2315_v33 = vmul.f32 0.03125, %v2283_v22  ;;  %v2404_v24 = vmul.f32 %v6138_v52, %v7926_v37  ;;  %v2475_v51 = vadd.f32 %v8202_v26, %v2439_v63 }
 0x64c   :  { %6149 = vrsqrt.f32 %v2346_v53  ;;  %v2169_v35 = vpop.xlane.xlu0 %2168  ;;  %v2537_v49 = vmin.f32 %v2505_v10, 6.0  ;;  %v2234_v37 = vmul.f32 96.0, %v8088_v42  ;;  %v2538_v61 = vmin.f32 %v2506_v32, 6.0 }
 0x64d   :  { %v2347_v56 = vadd.f32 1e-05, %v2315_v33  ;;  %v2284_v41 = vsub.f32 %v2169_v35, %v8177_v12  ;;  %v2440_v14 = vmul.f32 %v8193_v29, %v2404_v24  ;;  %v2507_v7 = vmax.f32 %v2475_v51, 0.0 }
 0x64e   :  { %v6140_v30 = vpop.eup %6139  ;;  %v2587_v39 = vpack.c.bf16 %v2537_v49, %v2536_v46  ;;  %v2235_v54 = vmul.f32 96.0, %v8102_v36  ;;  %v2236_v10 = vmul.f32 96.0, %v8104_v55  ;;  %v8266_v24 = vmul.f32 %v2234_v37, %v8088_v42 }
 0x64f   :  { %v6142_v13 = vpop.eup %6141  ;;  %6151 = vrsqrt.f32 %v2347_v56  ;;  %v2316_v38 = vmul.f32 0.03125, %v2284_v41  ;;  %v2405_v2 = vmul.f32 %v6140_v30, %v7936_v57  ;;  %v2476_v12 = vadd.f32 %v8202_v26, %v2440_v14 }
 0x650   :  { %v2171_v8 = vpop.xlane.xlu1 %2170  ;;  %v2173_v17 = vpop.xlane.xlu0 %2172  ;;  %5746 = vmatprep.mubr.bf16.mxu1 %v2587_v39  ;;  %v2539_v11 = vmin.f32 %v2507_v7, 6.0  ;;  %v2406_v23 = vmul.f32 %v6142_v13, %v7940_v40  ;;  %v8269_v35 = vmul.f32 %v2235_v54, %v8102_v36 }
 0x651   :  { %v2348_v20 = vadd.f32 1e-05, %v2316_v38  ;;  %v2285_v44 = vsub.f32 %v2171_v8, %v8180_v15  ;;  %v2286_v59 = vsub.f32 %v2173_v17, %v8185_v5  ;;  %v2441_v22 = vmul.f32 %v8193_v29, %v2405_v2 }
 0x652   :  { %v6144_v4 = vpop.eup %6143  ;;  %v2588_v57 = vpack.c.bf16 %v2539_v11, %v2538_v61  ;;  %v2508_v52 = vmax.f32 %v2476_v12, 0.0  ;;  %v2442_v53 = vmul.f32 %v8193_v29, %v2406_v23  ;;  %v2237_v38 = vmul.f32 96.0, %v8118_v60 }
 0x653   :  { %6153 = vrsqrt.f32 %v2348_v20  ;;  %v2317_v63 = vmul.f32 0.03125, %v2285_v44  ;;  %v2318_v18 = vmul.f32 0.03125, %v2286_v59  ;;  %v2477_v40 = vadd.f32 %v8202_v26, %v2441_v22 }
 0x654   :  { %v6146_v33 = vpop.eup %6145  ;;  %v2175_v46 = vpop.xlane.xlu1 %2174  ;;  %5747 = vmatmul.mubr.bf16.vlgmr.msra.gmra.mxu1 %v2588_v57  ;;  %v2407_v15 = vmul.f32 %v6144_v4, %v7952_v16  ;;  %v2478_v5 = vadd.f32 %v8202_v26, %v2442_v53  ;;  %v2540_v41 = vmin.f32 %v2508_v52, 6.0  ;;  %v8275_v16 = vmul.f32 %v2236_v10, %v8104_v55 }
 0x655   :  { %v2349_v49 = vadd.f32 1e-05, %v2317_v63  ;;  %v2350_v51 = vadd.f32 1e-05, %v2318_v18  ;;  %v2287_v32 = vsub.f32 %v2175_v46, %v8188_v50  ;;  %v2509_v56 = vmax.f32 %v2477_v40, 0.0 }
 0x656   :  { %v2443_v14 = vmul.f32 %v8193_v29, %v2407_v15  ;;  %v2408_v30 = vmul.f32 %v6146_v33, %v7958_v6  ;;  %v2510_v37 = vmax.f32 %v2478_v5, 0.0  ;;  %v2238_v23 = vmul.f32 96.0, %v8120_v34 }
 0x657   :  { %6155 = vrsqrt.f32 %v2349_v49  ;;  %v2319_v39 = vmul.f32 0.03125, %v2287_v32  ;;  %v2177_v42 = vpop.xlane.xlu0 %2176  ;;  %v2541_v7 = vmin.f32 %v2509_v56, 6.0 }
 0x658   :  { %v6148_v36 = vpop.eup %6147  ;;  %6157 = vrsqrt.f32 %v2350_v51  ;;  %v2288_v13 = vsub.f32 %v2177_v42, %v8197_v48  ;;  %v2479_v50 = vadd.f32 %v8202_v26, %v2443_v14  ;;  %v2444_v55 = vmul.f32 %v8193_v29, %v2408_v30 }
 0x659   :  { %v6150_v2 = vpop.eup %6149  ;;  %v2351_v12 = vadd.f32 1e-05, %v2319_v39  ;;  %v2589_v8 = vpack.c.bf16 %v2541_v7, %v2540_v41  ;;  %v2409_v6 = vmul.f32 %v6148_v36, %v7968_v19  ;;  %v2542_v20 = vmin.f32 %v2510_v37, 6.0 }
 0x65a   :  { %v2320_v17 = vmul.f32 0.03125, %v2288_v13  ;;  %v2511_v61 = vmax.f32 %v2479_v50, 0.0  ;;  %v2410_v11 = vmul.f32 %v6150_v2, %v7972_v1  ;;  %v2480_v59 = vadd.f32 %v8202_v26, %v2444_v55 }
 0x65b   :  { %6159 = vrsqrt.f32 %v2351_v12  ;;  %v2179_v54 = vpop.xlane.xlu1 %2178  ;;  %v2181_v48 = vpop.xlane.xlu0 %2180  ;;  %5750 = vmatprep.mubr.bf16.mxu1 %v2589_v8  ;;  %v2445_v44 = vmul.f32 %v8193_v29, %v2409_v6  ;;  %v8298_v36 = vmul.f32 %v2237_v38, %v8118_v60  ;;  %v10507_v38 = vld [vmem:[#allocation33_spill] sm:$0xff] }
 0x65c   :  { %v6152_v22 = vpop.eup %6151  ;;  %v2352_v4 = vadd.f32 1e-05, %v2320_v17  ;;  %v2289_v19 = vsub.f32 %v2179_v54, %v8206_v28  ;;  %v2290_v57 = vsub.f32 %v2181_v48, %v8212_v0  ;;  %v2543_v52 = vmin.f32 %v2511_v61, 6.0 }
 0x65d   :  { %v2481_v1 = vadd.f32 %v8202_v26, %v2445_v44  ;;  %v2512_v53 = vmax.f32 %v2480_v59, 0.0  ;;  %v2411_v10 = vmul.f32 %v6152_v22, %v7982_v58  ;;  %v2446_v63 = vmul.f32 %v8193_v29, %v2410_v11 }
 0x65e   :  { %6161 = vrsqrt.f32 %v2352_v4  ;;  %v2321_v18 = vmul.f32 0.03125, %v2289_v19  ;;  %v2322_v40 = vmul.f32 0.03125, %v2290_v57  ;;  %v2590_v33 = vpack.c.bf16 %v2543_v52, %v2542_v20 }
 0x65f   :  { %v2183_v46 = vpop.xlane.xlu1 %2182  ;;  %v2185_v15 = vpop.xlane.xlu0 %2184  ;;  %v2513_v5 = vmax.f32 %v2481_v1, 0.0  ;;  %v2544_v49 = vmin.f32 %v2512_v53, 6.0  ;;  %v2447_v28 = vmul.f32 %v8193_v29, %v2411_v10  ;;  %v2482_v0 = vadd.f32 %v8202_v26, %v2446_v63  ;;  %v10509_v63 = vld [vmem:[#allocation13_spill] sm:$0xff] }
 0x660   :  { %v6154_v51 = vpop.eup %6153  ;;  %v2353_v32 = vadd.f32 1e-05, %v2321_v18  ;;  %v2354_v56 = vadd.f32 1e-05, %v2322_v40  ;;  %v2291_v41 = vsub.f32 %v2183_v46, %v8215_v9  ;;  %v2292_v58 = vsub.f32 %v2185_v15, %v8220_v25  ;;  %5751 = vmatmul.mubr.bf16.gmra.mxu1 %v2590_v33  ;;  %v10510_v15 = vld [vmem:[#allocation29_spill] sm:$0xff] }
 0x661   :  { %v2545_v14 = vmin.f32 %v2513_v5, 6.0  ;;  %v2483_v30 = vadd.f32 %v8202_v26, %v2447_v28  ;;  %v2514_v39 = vmax.f32 %v2482_v0, 0.0  ;;  %v2412_v42 = vmul.f32 %v6154_v51, %v7990_v43 }
 0x662   :  { %6163 = vrsqrt.f32 %v2353_v32  ;;  %v2323_v7 = vmul.f32 0.03125, %v2291_v41  ;;  %v2324_v37 = vmul.f32 0.03125, %v2292_v58  ;;  %v8301_v25 = vmul.f32 %v2238_v23, %v8120_v34  ;;  %v10508_v34 = vld [vmem:[#allocation12_spill] sm:$0xff] }
 0x663   :  { %6165 = vrsqrt.f32 %v2354_v56  ;;  %v2187_v13 = vpop.xlane.xlu1 %2186  ;;  %v2189_v50 = vpop.xlane.xlu0 %2188  ;;  %v2591_v2 = vpack.c.bf16 %v2545_v14, %v2544_v49  ;;  %v2515_v9 = vmax.f32 %v2483_v30, 0.0  ;;  %v2546_v61 = vmin.f32 %v2514_v39, 6.0 }
 0x664   :  { %v6156_v12 = vpop.eup %6155  ;;  %v2355_v8 = vadd.f32 1e-05, %v2323_v7  ;;  %v2356_v6 = vadd.f32 1e-05, %v2324_v37  ;;  %v2293_v55 = vsub.f32 %v2187_v13, %v8226_v27  ;;  %v2294_v43 = vsub.f32 %v2189_v50, %v8229_v3 }
 0x665   :  { %v6158_v17 = vpop.eup %6157  ;;  %5754 = vmatprep.mubr.bf16.mxu1 %v2591_v2  ;;  %v2547_v60 = vmin.f32 %v2515_v9, 6.0  ;;  %v2413_v11 = vmul.f32 %v6156_v12, %v10507_v38  ;;  %v2448_v54 = vmul.f32 %v8193_v29, %v2412_v42  ;;  %v2239_v5 = vmul.f32 96.0, %v10510_v15  ;;  %v10511_v42 = vld [vmem:[#allocation14_spill] sm:$0xff] }
 0x666   :  { %6167 = vrsqrt.f32 %v2355_v8  ;;  %v2325_v48 = vmul.f32 0.03125, %v2293_v55  ;;  %v2326_v20 = vmul.f32 0.03125, %v2294_v43  ;;  %v2414_v23 = vmul.f32 %v6158_v17, %v10508_v34 }
 0x667   :  { %6169 = vrsqrt.f32 %v2356_v6  ;;  %v2191_v44 = vpop.xlane.xlu1 %2190  ;;  %v2193_v59 = vpop.xlane.xlu0 %2192  ;;  %v2592_v22 = vpack.c.bf16 %v2547_v60, %v2546_v61  ;;  %v2449_v27 = vmul.f32 %v8193_v29, %v2413_v11  ;;  %v2484_v3 = vadd.f32 %v8202_v26, %v2448_v54  ;;  %v10512_v11 = vld [vmem:[#allocation15_spill] sm:$0xff] }
 0x668   :  { %v6160_v4 = vpop.eup %6159  ;;  %v2357_v19 = vadd.f32 1e-05, %v2325_v48  ;;  %v2358_v57 = vadd.f32 1e-05, %v2326_v20  ;;  %v2295_v52 = vsub.f32 %v2191_v44, %v8238_v31  ;;  %v2296_v1 = vsub.f32 %v2193_v59, %v8247_v62 }
 0x669   :  { %5755 = vmatmul.mubr.bf16.gmra.mxu1 %v2592_v22  ;;  %v2485_v53 = vadd.f32 %v8202_v26, %v2449_v27  ;;  %v2516_v10 = vmax.f32 %v2484_v3, 0.0  ;;  %v2415_v18 = vmul.f32 %v6160_v4, %v10509_v63  ;;  %v2450_v40 = vmul.f32 %v8193_v29, %v2414_v23  ;;  %v10513_v23 = vld [vmem:[#allocation16_spill] sm:$0xff]  ;;  %v10514_v63 = vld [vmem:[#allocation17_spill] sm:$0xff] }
 0x66a   :  { %6171 = vrsqrt.f32 %v2357_v19  ;;  %v2327_v33 = vmul.f32 0.03125, %v2295_v52  ;;  %v2328_v46 = vmul.f32 0.03125, %v2296_v1  ;;  %v2271_v50 = vmul.f32 %v2239_v5, %v10510_v15  ;;  %v10515_v15 = vld [vmem:[#allocation18_spill] sm:$0xff] }
 0x66b   :  { %v6162_v49 = vpop.eup %6161  ;;  %6173 = vrsqrt.f32 %v2358_v57  ;;  %v2195_v28 = vpop.xlane.xlu1 %2194  ;;  %v2517_v31 = vmax.f32 %v2485_v53, 0.0  ;;  %v2548_v51 = vmin.f32 %v2516_v10, 6.0  ;;  %v2451_v62 = vmul.f32 %v8193_v29, %v2415_v18 }
 0x66c   :  { %v2197_v0 = vpop.xlane.xlu0 %2196  ;;  %v2359_v32 = vadd.f32 1e-05, %v2327_v33  ;;  %v2360_v56 = vadd.f32 1e-05, %v2328_v46  ;;  %v2297_v41 = vsub.f32 %v2195_v28, %v8250_v47  ;;  %v2486_v30 = vadd.f32 %v8202_v26, %v2450_v40 }
 0x66d   :  { %v2298_v58 = vsub.f32 %v2197_v0, %v8266_v24  ;;  %v2549_v14 = vmin.f32 %v2517_v31, 6.0  ;;  %v2487_v39 = vadd.f32 %v8202_v26, %v2451_v62  ;;  %v2416_v7 = vmul.f32 %v6162_v49, %v10511_v42 }
 0x66e   :  { %6175 = vrsqrt.f32 %v2359_v32  ;;  %v2329_v37 = vmul.f32 0.03125, %v2297_v41  ;;  %v2518_v47 = vmax.f32 %v2486_v30, 0.0 }
 0x66f   :  { %v2330_v13 = vmul.f32 0.03125, %v2298_v58  ;;  %v6164_v2 = vpop.eup %6163  ;;  %6177 = vrsqrt.f32 %v2360_v56  ;;  %v2199_v9 = vpop.xlane.xlu1 %2198  ;;  %v2593_v8 = vpack.c.bf16 %v2549_v14, %v2548_v51  ;;  %v2519_v6 = vmax.f32 %v2487_v39, 0.0  ;;  %v10516_v14 = vld [vmem:[#allocation19_spill] sm:$0xff] }
 0x670   :  { %v2201_v12 = vpop.xlane.xlu0 %2200  ;;  %v6166_v24 = vpop.eup %6165  ;;  %v2361_v55 = vadd.f32 1e-05, %v2329_v37  ;;  %v2299_v17 = vsub.f32 %v2199_v9, %v8269_v35  ;;  %v2550_v60 = vmin.f32 %v2518_v47, 6.0  ;;  %v2417_v54 = vmul.f32 %v6164_v2, %v10512_v11  ;;  %v10517_v37 = vld [vmem:[#allocation20_spill] sm:$0xff] }
 0x671   :  { %v2362_v43 = vadd.f32 1e-05, %v2330_v13  ;;  %v2300_v61 = vsub.f32 %v2201_v12, %v8275_v16  ;;  %5758 = vmatprep.mubr.bf16.mxu1 %v2593_v8  ;;  %v2551_v38 = vmin.f32 %v2519_v6, 6.0  ;;  %v2452_v48 = vmul.f32 %v8193_v29, %v2416_v7 }
 0x672   :  { %6179 = vrsqrt.f32 %v2361_v55  ;;  %v2331_v20 = vmul.f32 0.03125, %v2299_v17  ;;  %v2418_v44 = vmul.f32 %v6166_v24, %v10513_v23  ;;  %v2453_v35 = vmul.f32 %v8193_v29, %v2417_v54  ;;  %v10518_v55 = vld [vmem:[#allocation21_spill] sm:$0xff] }
 0x673   :  { %v2332_v34 = vmul.f32 0.03125, %v2300_v61  ;;  %v6168_v59 = vpop.eup %6167  ;;  %6181 = vrsqrt.f32 %v2362_v43  ;;  %v2203_v22 = vpop.xlane.xlu1 %2202  ;;  %v2594_v3 = vpack.c.bf16 %v2551_v38, %v2550_v60  ;;  %v2488_v16 = vadd.f32 %v8202_v26, %v2452_v48  ;;  %v10519_v38 = vld [vmem:[#allocation22_spill] sm:$0xff] }
 0x674   :  { %v2205_v27 = vpop.xlane.xlu0 %2204  ;;  %v6170_v4 = vpop.eup %6169  ;;  %v2363_v19 = vadd.f32 1e-05, %v2331_v20  ;;  %v2301_v52 = vsub.f32 %v2203_v22, %v8298_v36  ;;  %v2489_v53 = vadd.f32 %v8202_v26, %v2453_v35  ;;  %v2419_v18 = vmul.f32 %v6168_v59, %v10514_v63  ;;  %v10520_v35 = vld [vmem:[#allocation23_spill] sm:$0xff] }
 0x675   :  { %v2364_v57 = vadd.f32 1e-05, %v2332_v34  ;;  %v2302_v1 = vsub.f32 %v2205_v27, %v8301_v25  ;;  %5759 = vmatmul.mubr.bf16.gmra.mxu1 %v2594_v3  ;;  %v2520_v10 = vmax.f32 %v2488_v16, 0.0  ;;  %v2454_v40 = vmul.f32 %v8193_v29, %v2418_v44 }
 0x676   :  { %6183 = vrsqrt.f32 %v2363_v19  ;;  %v2333_v33 = vmul.f32 0.03125, %v2301_v52  ;;  %v2420_v5 = vmul.f32 %v6170_v4, %v10515_v15  ;;  %v2521_v0 = vmax.f32 %v2489_v53, 0.0  ;;  %v10521_v52 = vld [vmem:[#allocation24_spill] sm:$0xff] }
 0x677   :  { %v2334_v46 = vmul.f32 0.03125, %v2302_v1  ;;  %v6172_v49 = vpop.eup %6171  ;;  %6185 = vrsqrt.f32 %v2364_v57  ;;  %v2207_v28 = vpop.xlane.xlu1 %2206  ;;  %v2552_v36 = vmin.f32 %v2520_v10, 6.0  ;;  %v2455_v25 = vmul.f32 %v8193_v29, %v2419_v18 }
 0x678   :  { %v6174_v31 = vpop.eup %6173  ;;  %v2365_v51 = vadd.f32 1e-05, %v2333_v33  ;;  %v2303_v32 = vsub.f32 %v2207_v28, %v2271_v50  ;;  %v2490_v56 = vadd.f32 %v8202_v26, %v2454_v40  ;;  %v2553_v41 = vmin.f32 %v2521_v0, 6.0  ;;  %v10522_v28 = vld [vmem:[#allocation25_spill] sm:$0xff] }
 0x679   :  { %v2366_v62 = vadd.f32 1e-05, %v2334_v46  ;;  %v2491_v58 = vadd.f32 %v8202_v26, %v2455_v25  ;;  %v2421_v30 = vmul.f32 %v6172_v49, %v10516_v14  ;;  %v2456_v39 = vmul.f32 %v8193_v29, %v2420_v5  ;;  %v10523_v25 = vld [vmem:[#allocation26_spill] sm:$0xff] }
 0x67a   :  { %6187 = vrsqrt.f32 %v2365_v51  ;;  %v2335_v42 = vmul.f32 0.03125, %v2303_v32  ;;  %v2522_v7 = vmax.f32 %v2490_v56, 0.0  ;;  %v2422_v13 = vmul.f32 %v6174_v31, %v10517_v37 }
 0x67b   :  { %v6176_v2 = vpop.eup %6175  ;;  %6189 = vrsqrt.f32 %v2366_v62  ;;  %v2595_v9 = vpack.c.bf16 %v2553_v41, %v2552_v36  ;;  %v2523_v12 = vmax.f32 %v2491_v58, 0.0  ;;  %v2457_v50 = vmul.f32 %v8193_v29, %v2421_v30 }
 0x67c   :  { %v6178_v8 = vpop.eup %6177  ;;  %v2367_v47 = vadd.f32 1e-05, %v2335_v42  ;;  %v2554_v6 = vmin.f32 %v2522_v7, 6.0  ;;  %v2492_v24 = vadd.f32 %v8202_v26, %v2456_v39  ;;  %v2423_v43 = vmul.f32 %v6176_v2, %v10518_v55  ;;  %v10524_v7 = vld [vmem:[#allocation27_spill] sm:$0xff]  ;;  %v10525_v2 = vld [vmem:[#allocation28_spill] sm:$0xff] }
 0x67d   :  { %5762 = vmatprep.mubr.bf16.mxu1 %v2595_v9  ;;  %v2555_v17 = vmin.f32 %v2523_v12, 6.0  ;;  %v2493_v61 = vadd.f32 %v8202_v26, %v2457_v50  ;;  %v2458_v60 = vmul.f32 %v8193_v29, %v2422_v13  ;;  %v2424_v11 = vmul.f32 %v6178_v8, %v10519_v38 }
 0x67e   :  { %6191 = vrsqrt.f32 %v2367_v47  ;;  %v2524_v54 = vmax.f32 %v2492_v24, 0.0  ;;  %v2459_v48 = vmul.f32 %v8193_v29, %v2423_v43 }
 0x67f   :  { %v6180_v20 = vpop.eup %6179  ;;  %v2596_v34 = vpack.c.bf16 %v2555_v17, %v2554_v6  ;;  %v2525_v23 = vmax.f32 %v2493_v61, 0.0  ;;  %v2494_v44 = vadd.f32 %v8202_v26, %v2458_v60  ;;  %v2460_v59 = vmul.f32 %v8193_v29, %v2424_v11  ;;  %v10526_v61 = vld [vmem:[#allocation30_spill] sm:$0xff] }
 0x680   :  { %v6182_v22 = vpop.eup %6181  ;;  %v2556_v27 = vmin.f32 %v2524_v54, 6.0  ;;  %v2495_v3 = vadd.f32 %v8202_v26, %v2459_v48  ;;  %v2425_v16 = vmul.f32 %v6180_v20, %v10520_v35 }
 0x681   :  { %5763 = vmatmul.mubr.bf16.gmra.mxu1 %v2596_v34  ;;  %v2557_v4 = vmin.f32 %v2525_v23, 6.0  ;;  %v2526_v19 = vmax.f32 %v2494_v44, 0.0  ;;  %v2496_v57 = vadd.f32 %v8202_v26, %v2460_v59  ;;  %v2426_v1 = vmul.f32 %v6182_v22, %v10521_v52 }
 0x682   :  { %v2527_v53 = vmax.f32 %v2495_v3, 0.0  ;;  %v2461_v10 = vmul.f32 %v8193_v29, %v2425_v16  ;;  %v2585_v16 = vld [vmem:[#allocation5 + $0x118] sm:$0x3] }
 0x683   :  { %v6184_v63 = vpop.eup %6183  ;;  %v2597_v18 = vpack.c.bf16 %v2557_v4, %v2556_v27  ;;  %v2558_v40 = vmin.f32 %v2526_v19, 6.0  ;;  %v2462_v33 = vmul.f32 %v8193_v29, %v2426_v1  ;;  %v2528_v49 = vmax.f32 %v2496_v57, 0.0  ;;  %v10527_v57 = vld [vmem:[#allocation11_spill] sm:$0xff] }
 0x684   :  { %v6186_v46 = vpop.eup %6185  ;;  %v2559_v15 = vmin.f32 %v2527_v53, 6.0  ;;  %v2497_v5 = vadd.f32 %v8202_v26, %v2461_v10  ;;  %v2427_v0 = vmul.f32 %v6184_v63, %v10522_v28  ;;  %v8374_v4 = vunpack.c.l.bf16 %v2585_v16 }
 0x685   :  { %5766 = vmatprep.mubr.bf16.mxu1 %v2597_v18  ;;  %v2498_v36 = vadd.f32 %v8202_v26, %v2462_v33  ;;  %v2428_v31 = vmul.f32 %v6186_v46, %v10523_v25  ;;  %v2560_v30 = vmin.f32 %v2528_v49, 6.0 }
 0x686   :  { %v2598_v51 = vpack.c.bf16 %v2559_v15, %v2558_v40  ;;  %v2529_v62 = vmax.f32 %v2497_v5, 0.0  ;;  %v2463_v32 = vmul.f32 %v8193_v29, %v2427_v0 }
 0x687   :  { %v6188_v56 = vpop.eup %6187  ;;  %v2530_v41 = vmax.f32 %v2498_v36, 0.0  ;;  %v2464_v58 = vmul.f32 %v8193_v29, %v2428_v31 }
 0x688   :  { %v6190_v14 = vpop.eup %6189  ;;  %v2561_v39 = vmin.f32 %v2529_v62, 6.0  ;;  %v2499_v42 = vadd.f32 %v8202_v26, %v2463_v32  ;;  %v2429_v37 = vmul.f32 %v6188_v56, %v10524_v7 }
 0x689   :  { %5767 = vmatmul.mubr.bf16.gmra.mxu1 %v2598_v51  ;;  %v2500_v13 = vadd.f32 %v8202_v26, %v2464_v58  ;;  %v2430_v9 = vmul.f32 %v6190_v14, %v10525_v2  ;;  %v2562_v6 = vmin.f32 %v2530_v41, 6.0 }
 0x68a   :  { %v2599_v12 = vpack.c.bf16 %v2561_v39, %v2560_v30  ;;  %v2531_v50 = vmax.f32 %v2499_v42, 0.0  ;;  %v2465_v8 = vmul.f32 %v8193_v29, %v2429_v37 }
 0x68b   :  { %v6192_v47 = vpop.eup %6191  ;;  %v2466_v24 = vmul.f32 %v8193_v29, %v2430_v9  ;;  %v2532_v17 = vmax.f32 %v2500_v13, 0.0 }
 0x68c   :  { %5770 = vmatprep.mubr.bf16.mxu1 %v2599_v12  ;;  %v2563_v55 = vmin.f32 %v2531_v50, 6.0  ;;  %v2501_v43 = vadd.f32 %v8202_v26, %v2465_v8  ;;  %v2431_v60 = vmul.f32 %v6192_v47, %v10526_v61 }
 0x68d   :  { %v2502_v38 = vadd.f32 %v8202_v26, %v2466_v24  ;;  %v2564_v20 = vmin.f32 %v2532_v17, 6.0 }
 0x68e   :  { %v2600_v11 = vpack.c.bf16 %v2563_v55, %v2562_v6  ;;  %v2533_v54 = vmax.f32 %v2501_v43, 0.0  ;;  %v2467_v48 = vmul.f32 %v8193_v29, %v2431_v60  ;;  %v8378_v29 = vrot.slane %v8374_v4, %v10527_v57 }
 0x68f   :  { %v2534_v44 = vmax.f32 %v2502_v38, 0.0 }
 0x690   :  { %v2565_v34 = vmin.f32 %v2533_v54, 6.0  ;;  %v2503_v23 = vadd.f32 %v8202_v26, %v2467_v48 }
 0x691   :  { %5771 = vmatmul.mubr.bf16.gmra.mxu1 %v2600_v11  ;;  %v2566_v27 = vmin.f32 %v2534_v44, 6.0 }
 0x692   :  { %v2601_v59 = vpack.c.bf16 %v2565_v34, %v2564_v20  ;;  %v2535_v22 = vmax.f32 %v2503_v23, 0.0 }
 0x694   :  { %5774 = vmatprep.mubr.bf16.mxu1 %v2601_v59  ;;  %v2567_v3 = vmin.f32 %v2535_v22, 6.0 }
 0x696   :  { %v2602_v35 = vpack.c.bf16 %v2567_v3, %v2566_v27 }
 0x699   :  { %5775 = vmatmul.mubr.bf16.gmra.mxu1 %v2602_v35 }
 0x714   :  { %v5748_v19 = vpop.f32.mrf.mxu1 }
 0x715   :  { %v8385_v10 = vadd.f32 %v5748_v19, %v8378_v29 }
 0x716   :  { %v2689_v52 = vpop.f32.mrf.mxu1 }
 0x717   :  { %v8381_v26 = vadd.f32 %v2689_v52, %v8378_v29 }
 0x718   :  { %v5749_v1 = vpop.f32.mrf.mxu1 }
 0x719   :  { %2816 = vadd.xlane.f32.xlu0 %v8381_v26  ;;  %v8393_v18 = vadd.f32 %v5749_v1, %v8378_v29 }
 0x71a   :  { %v2692_v53 = vpop.f32.mrf.mxu1 }
 0x71b   :  { %v8388_v63 = vadd.f32 %v2692_v53, %v8378_v29 }
 0x71d   :  { %2818 = vadd.xlane.f32.xlu1 %v8388_v63  ;;  %2820 = vadd.xlane.f32.xlu0 %v8385_v10 }
 0x720   :  { %v5752_v40 = vpop.f32.mrf.mxu1 }
 0x721   :  { %2822 = vadd.xlane.f32.xlu1 %v8393_v18  ;;  %v8401_v49 = vadd.f32 %v5752_v40, %v8378_v29 }
 0x722   :  { %v2705_v33 = vpop.f32.mrf.mxu1 }
 0x723   :  { %v8397_v46 = vadd.f32 %v2705_v33, %v8378_v29  ;;  %v5977_v33 = vld [vmem:[#allocation5 + $0x158] sm:$0xff]  }
 0x724   :  { %v5753_v15 = vpop.f32.mrf.mxu1  ;;  %5778 = vmatprep.subr.bf16.mxu0 %v5977_v33 }
 0x725   :  { %2824 = vadd.xlane.f32.xlu0 %v8397_v46  ;;  %v8409_v36 = vadd.f32 %v5753_v15, %v8378_v29  ;;  %v5978_v15 = vld [vmem:[#allocation5 + $0x150] sm:$0xff]   ;;  %5779 = vmatpush3.bf16.msra.mxu0 %v5977_v33 }
 0x726   :  { %v2708_v5 = vpop.f32.mrf.mxu1  ;;  %5780 = vmatprep.subr.bf16.mxu0 %v5978_v15 }
 0x727   :  { %v8404_v28 = vadd.f32 %v2708_v5, %v8378_v29  ;;  %v5979_v5 = vld [vmem:[#allocation5 + $0x148] sm:$0xff]  }
 0x729   :  { %v5756_v0 = vpop.f32.mrf.mxu1  ;;  %2826 = vadd.xlane.f32.xlu1 %v8404_v28  ;;  %2828 = vadd.xlane.f32.xlu0 %v8401_v49 }
 0x72a   :  { %v8417_v32 = vadd.f32 %v5756_v0, %v8378_v29  ;;  %5781 = vmatpush3.bf16.msra.mxu0 %v5978_v15  ;;  %v5980_v0 = vld [vmem:[#allocation5 + $0x140] sm:$0xff]  }
 0x72b   :  { %v2721_v25 = vpop.f32.mrf.mxu1  ;;  %5782 = vmatprep.subr.bf16.mxu0 %v5979_v5 }
 0x72c   :  { %v8412_v31 = vadd.f32 %v2721_v25, %v8378_v29 }
 0x72d   :  { %v5757_v51 = vpop.f32.mrf.mxu1  ;;  %2830 = vadd.xlane.f32.xlu1 %v8409_v36 }
 0x72e   :  { %2832 = vadd.xlane.f32.xlu0 %v8412_v31  ;;  %v8425_v41 = vadd.f32 %v5757_v51, %v8378_v29  ;;  %5783 = vmatpush3.bf16.msra.mxu0 %v5979_v5 }
 0x72f   :  { %v2724_v62 = vpop.f32.mrf.mxu1  ;;  %5784 = vmatprep.subr.bf16.mxu0 %v5980_v0 }
 0x730   :  { %v8420_v56 = vadd.f32 %v2724_v62, %v8378_v29 }
 0x732   :  { %2834 = vadd.xlane.f32.xlu1 %v8420_v56  ;;  %2836 = vadd.xlane.f32.xlu0 %v8417_v32 }
 0x733   :  { %5785 = vmatpush3.bf16.msra.mxu0 %v5980_v0 }
 0x735   :  { %v5760_v58 = vpop.f32.mrf.mxu1 }
 0x736   :  { %2838 = vadd.xlane.f32.xlu1 %v8425_v41  ;;  %v8433_v7 = vadd.f32 %v5760_v58, %v8378_v29 }
 0x737   :  { %v2737_v14 = vpop.f32.mrf.mxu1 }
 0x738   :  { %v8429_v30 = vadd.f32 %v2737_v14, %v8378_v29 }
 0x739   :  { %v5761_v39 = vpop.f32.mrf.mxu1 }
 0x73a   :  { %2840 = vadd.xlane.f32.xlu0 %v8429_v30  ;;  %v8441_v13 = vadd.f32 %v5761_v39, %v8378_v29 }
 0x73b   :  { %v2740_v42 = vpop.f32.mrf.mxu1 }
 0x73c   :  { %v8436_v37 = vadd.f32 %v2740_v42, %v8378_v29 }
 0x73e   :  { %2842 = vadd.xlane.f32.xlu1 %v8436_v37  ;;  %2844 = vadd.xlane.f32.xlu0 %v8433_v7 }
 0x741   :  { %v5764_v2 = vpop.f32.mrf.mxu1 }
 0x742   :  { %2846 = vadd.xlane.f32.xlu1 %v8441_v13  ;;  %v8449_v47 = vadd.f32 %v5764_v2, %v8378_v29 }
 0x743   :  { %v2753_v9 = vpop.f32.mrf.mxu1 }
 0x744   :  { %v8445_v12 = vadd.f32 %v2753_v9, %v8378_v29 }
 0x745   :  { %v5765_v50 = vpop.f32.mrf.mxu1 }
 0x746   :  { %2848 = vadd.xlane.f32.xlu0 %v8445_v12  ;;  %v8457_v43 = vadd.f32 %v5765_v50, %v8378_v29 }
 0x747   :  { %v2756_v8 = vpop.f32.mrf.mxu1 }
 0x748   :  { %v8452_v6 = vadd.f32 %v2756_v8, %v8378_v29 }
 0x749   :  { %v5768_v24 = vpop.f32.mrf.mxu1 }
 0x74a   :  { %2850 = vadd.xlane.f32.xlu1 %v8452_v6  ;;  %2852 = vadd.xlane.f32.xlu0 %v8449_v47  ;;  %v8465_v38 = vadd.f32 %v5768_v24, %v8378_v29 }
 0x74b   :  { %v2769_v55 = vpop.f32.mrf.mxu1 }
 0x74c   :  { %v8460_v17 = vadd.f32 %v2769_v55, %v8378_v29 }
 0x74d   :  { %v5769_v61 = vpop.f32.mrf.mxu1 }
 0x74e   :  { %2854 = vadd.xlane.f32.xlu1 %v8457_v43  ;;  %2856 = vadd.xlane.f32.xlu0 %v8460_v17  ;;  %v8473_v20 = vadd.f32 %v5769_v61, %v8378_v29 }
 0x74f   :  { %v2772_v60 = vpop.f32.mrf.mxu1 }
 0x750   :  { %v8468_v11 = vadd.f32 %v2772_v60, %v8378_v29 }
 0x751   :  { %v5772_v54 = vpop.f32.mrf.mxu1 }
 0x752   :  { %2858 = vadd.xlane.f32.xlu1 %v8468_v11  ;;  %2860 = vadd.xlane.f32.xlu0 %v8465_v38  ;;  %v8481_v59 = vadd.f32 %v5772_v54, %v8378_v29 }
 0x753   :  { %v2785_v48 = vpop.f32.mrf.mxu1 }
 0x754   :  { %v8476_v34 = vadd.f32 %v2785_v48, %v8378_v29 }
 0x755   :  { %v5773_v23 = vpop.f32.mrf.mxu1 }
 0x756   :  { %2862 = vadd.xlane.f32.xlu1 %v8473_v20  ;;  %2864 = vadd.xlane.f32.xlu0 %v8476_v34  ;;  %v8489_v35 = vadd.f32 %v5773_v23, %v8378_v29 }
 0x757   :  { %v2788_v44 = vpop.f32.mrf.mxu1 }
 0x758   :  { %v8484_v22 = vadd.f32 %v2788_v44, %v8378_v29 }
 0x759   :  { %v5776_v27 = vpop.f32.mrf.mxu1 }
 0x75a   :  { %2866 = vadd.xlane.f32.xlu1 %v8484_v22  ;;  %2868 = vadd.xlane.f32.xlu0 %v8481_v59  ;;  %v8497_v1 = vadd.f32 %v5776_v27, %v8378_v29 }
 0x75b   :  { %v2801_v3 = vpop.f32.mrf.mxu1 }
 0x75c   :  { %v8492_v16 = vadd.f32 %v2801_v3, %v8378_v29 }
 0x75d   :  { %v5777_v19 = vpop.f32.mrf.mxu1 }
 0x75e   :  { %2870 = vadd.xlane.f32.xlu1 %v8489_v35  ;;  %2872 = vadd.xlane.f32.xlu0 %v8492_v16  ;;  %v8505_v40 = vadd.f32 %v5777_v19, %v8378_v29 }
 0x75f   :  { %v2804_v52 = vpop.f32.mrf.mxu1 }
 0x760   :  { %v8500_v53 = vadd.f32 %v2804_v52, %v8378_v29 }
 0x762   :  { %2874 = vadd.xlane.f32.xlu1 %v8500_v53  ;;  %2876 = vadd.xlane.f32.xlu0 %v8497_v1 }
 0x766   :  { %2878 = vadd.xlane.f32.xlu1 %v8505_v40 }
 0x7a2   :  { %v2817_v25 = vpop.xlane.xlu0 %2816 }
 0x7a3   :  { %v8508_v51 = vmul.f32 0.020833334, %v2817_v25 }
 0x7a5   :  { %v8512_v29 = vsub.f32 %v8381_v26, %v8508_v51 }
 0x7a6   :  { %v2819_v62 = vpop.xlane.xlu1 %2818  ;;  %v2821_v58 = vpop.xlane.xlu0 %2820 }
 0x7a7   :  { %v8514_v14 = vmul.f32 0.020833334, %v2819_v62  ;;  %v8516_v39 = vmul.f32 0.020833334, %v2821_v58  ;;  %v2944_v42 = vmul.f32 %v8512_v29, %v8512_v29 }
 0x7a9   :  { %2976 = vadd.xlane.f32.xlu0 %v2944_v42  ;;  %v8522_v2 = vsub.f32 %v8388_v63, %v8514_v14  ;;  %v8526_v9 = vsub.f32 %v8385_v10, %v8516_v39 }
 0x7aa   :  { %v2823_v26 = vpop.xlane.xlu1 %2822 }
 0x7ab   :  { %v8528_v50 = vmul.f32 0.020833334, %v2823_v26  ;;  %v2945_v8 = vmul.f32 %v8522_v2, %v8522_v2  ;;  %v2946_v24 = vmul.f32 %v8526_v9, %v8526_v9 }
 0x7ad   :  { %2978 = vadd.xlane.f32.xlu1 %v2945_v8  ;;  %2980 = vadd.xlane.f32.xlu0 %v2946_v24  ;;  %v8536_v55 = vsub.f32 %v8393_v18, %v8528_v50 }
 0x7ae   :  { %v2825_v63 = vpop.xlane.xlu0 %2824 }
 0x7af   :  { %v8538_v61 = vmul.f32 0.020833334, %v2825_v63  ;;  %v2947_v10 = vmul.f32 %v8536_v55, %v8536_v55 }
 0x7b1   :  { %2982 = vadd.xlane.f32.xlu1 %v2947_v10  ;;  %v8544_v60 = vsub.f32 %v8397_v46, %v8538_v61 }
 0x7b2   :  { %v2827_v54 = vpop.xlane.xlu1 %2826  ;;  %v2829_v48 = vpop.xlane.xlu0 %2828 }
 0x7b3   :  { %v8546_v23 = vmul.f32 0.020833334, %v2827_v54  ;;  %v8548_v44 = vmul.f32 0.020833334, %v2829_v48  ;;  %v2948_v18 = vmul.f32 %v8544_v60, %v8544_v60 }
 0x7b5   :  { %2984 = vadd.xlane.f32.xlu0 %v2948_v18  ;;  %v8554_v27 = vsub.f32 %v8404_v28, %v8546_v23  ;;  %v8558_v3 = vsub.f32 %v8401_v49, %v8548_v44 }
 0x7b6   :  { %v2831_v46 = vpop.xlane.xlu1 %2830 }
 0x7b7   :  { %v8560_v19 = vmul.f32 0.020833334, %v2831_v46  ;;  %v2833_v52 = vpop.xlane.xlu0 %2832  ;;  %v2949_v33 = vmul.f32 %v8554_v27, %v8554_v27  ;;  %v2950_v15 = vmul.f32 %v8558_v3, %v8558_v3 }
 0x7b8   :  { %v8566_v5 = vmul.f32 0.020833334, %v2833_v52 }
 0x7b9   :  { %2986 = vadd.xlane.f32.xlu1 %v2949_v33  ;;  %2988 = vadd.xlane.f32.xlu0 %v2950_v15  ;;  %v8570_v28 = vsub.f32 %v8409_v36, %v8560_v19 }
 0x7ba   :  { %v8574_v49 = vsub.f32 %v8412_v31, %v8566_v5 }
 0x7bb   :  { %v2835_v0 = vpop.xlane.xlu1 %2834  ;;  %v2837_v25 = vpop.xlane.xlu0 %2836  ;;  %v2951_v62 = vmul.f32 %v8570_v28, %v8570_v28 }
 0x7bc   :  { %v8578_v58 = vmul.f32 0.020833334, %v2835_v0  ;;  %v8580_v42 = vmul.f32 0.020833334, %v2837_v25  ;;  %v2952_v26 = vmul.f32 %v8574_v49, %v8574_v49 }
 0x7bd   :  { %2990 = vadd.xlane.f32.xlu1 %v2951_v62 }
 0x7be   :  { %2992 = vadd.xlane.f32.xlu0 %v2952_v26  ;;  %v8586_v36 = vsub.f32 %v8420_v56, %v8578_v58  ;;  %v8590_v31 = vsub.f32 %v8417_v32, %v8580_v42 }
 0x7bf   :  { %v2839_v8 = vpop.xlane.xlu1 %2838 }
 0x7c0   :  { %v8592_v24 = vmul.f32 0.020833334, %v2839_v8  ;;  %v2953_v63 = vmul.f32 %v8586_v36, %v8586_v36  ;;  %v2954_v10 = vmul.f32 %v8590_v31, %v8590_v31 }
 0x7c2   :  { %2994 = vadd.xlane.f32.xlu1 %v2953_v63  ;;  %2996 = vadd.xlane.f32.xlu0 %v2954_v10  ;;  %v8600_v54 = vsub.f32 %v8425_v41, %v8592_v24  ;;  %v5981_v63 = vld [vmem:[#allocation5 + $0x138] sm:$0xff]  }
 0x7c3   :  { %v2841_v56 = vpop.xlane.xlu0 %2840  ;;  %5786 = vmatprep.subr.bf16.mxu0 %v5981_v63 }
 0x7c4   :  { %v8602_v48 = vmul.f32 0.020833334, %v2841_v56  ;;  %v2955_v32 = vmul.f32 %v8600_v54, %v8600_v54  ;;  %5787 = vmatpush3.bf16.msra.mxu0 %v5981_v63 }
 0x7c6   :  { %2998 = vadd.xlane.f32.xlu1 %v2955_v32  ;;  %v8608_v18 = vsub.f32 %v8429_v30, %v8602_v48 }
 0x7c7   :  { %v2843_v46 = vpop.xlane.xlu1 %2842  ;;  %v2845_v52 = vpop.xlane.xlu0 %2844 }
 0x7c8   :  { %v8610_v33 = vmul.f32 0.020833334, %v2843_v46  ;;  %v8612_v15 = vmul.f32 0.020833334, %v2845_v52  ;;  %v2956_v41 = vmul.f32 %v8608_v18, %v8608_v18 }
 0x7ca   :  { %3000 = vadd.xlane.f32.xlu0 %v2956_v41  ;;  %v8618_v0 = vsub.f32 %v8436_v37, %v8610_v33  ;;  %v8622_v25 = vsub.f32 %v8433_v7, %v8612_v15  ;;  %v5982_v7 = vld [vmem:[#allocation5 + $0x130] sm:$0xff]  }
 0x7cb   :  { %v2847_v30 = vpop.xlane.xlu1 %2846  ;;  %5788 = vmatprep.subr.bf16.mxu0 %v5982_v7 }
 0x7cc   :  { %10528 = vst [vmem:[#allocation31_spill] sm:$0xff] %v8618_v0  ;;  %10529 = vst [vmem:[#allocation32_spill] sm:$0xff] %v8622_v25  ;;  %v8624_v62 = vmul.f32 0.020833334, %v2847_v30  ;;  %v2957_v26 = vmul.f32 %v8618_v0, %v8618_v0  ;;  %v2958_v8 = vmul.f32 %v8622_v25, %v8622_v25  ;;  %v5983_v30 = vld [vmem:[#allocation5 + $0x128] sm:$0xff]   ;;  %5789 = vmatpush3.bf16.msra.mxu0 %v5982_v7 }
 0x7cd   :  { %5790 = vmatprep.subr.bf16.mxu0 %v5983_v30 }
 0x7ce   :  { %3002 = vadd.xlane.f32.xlu1 %v2957_v26  ;;  %3004 = vadd.xlane.f32.xlu0 %v2958_v8  ;;  %v8632_v37 = vsub.f32 %v8441_v13, %v8624_v62 }
 0x7cf   :  { %v2849_v10 = vpop.xlane.xlu0 %2848 }
 0x7d0   :  { %10530 = vst [vmem:[#allocation33_spill] sm:$0xff] %v8632_v37  ;;  %v8634_v56 = vmul.f32 0.020833334, %v2849_v10  ;;  %v2959_v32 = vmul.f32 %v8632_v37, %v8632_v37  ;;  %5791 = vmatpush3.bf16.msra.mxu0 %v5983_v30 }
 0x7d2   :  { %3006 = vadd.xlane.f32.xlu1 %v2959_v32  ;;  %v8640_v46 = vsub.f32 %v8445_v12, %v8634_v56 }
 0x7d3   :  { %v2851_v52 = vpop.xlane.xlu1 %2850  ;;  %v2853_v41 = vpop.xlane.xlu0 %2852 }
 0x7d4   :  { %10531 = vst [vmem:[#allocation12_spill] sm:$0xff] %v8640_v46  ;;  %v8642_v13 = vmul.f32 0.020833334, %v2851_v52  ;;  %v8644_v26 = vmul.f32 0.020833334, %v2853_v41  ;;  %v2960_v8 = vmul.f32 %v8640_v46, %v8640_v46 }
 0x7d6   :  { %3008 = vadd.xlane.f32.xlu0 %v2960_v8  ;;  %v8650_v63 = vsub.f32 %v8452_v6, %v8642_v13  ;;  %v8654_v12 = vsub.f32 %v8449_v47, %v8644_v26 }
 0x7d7   :  { %v2855_v10 = vpop.xlane.xlu1 %2854  ;;  %v2857_v32 = vpop.xlane.xlu0 %2856 }
 0x7d8   :  { %10532 = vst [vmem:[#allocation13_spill] sm:$0xff] %v8650_v63  ;;  %10533 = vst [vmem:[#allocation29_spill] sm:$0xff] %v8654_v12  ;;  %v8656_v52 = vmul.f32 0.020833334, %v2855_v10  ;;  %v8658_v41 = vmul.f32 0.020833334, %v2857_v32  ;;  %v2961_v57 = vmul.f32 %v8650_v63, %v8650_v63  ;;  %v2962_v7 = vmul.f32 %v8654_v12, %v8654_v12 }
 0x7da   :  { %3010 = vadd.xlane.f32.xlu1 %v2961_v57  ;;  %3012 = vadd.xlane.f32.xlu0 %v2962_v7  ;;  %v8666_v6 = vsub.f32 %v8457_v43, %v8656_v52  ;;  %v8670_v47 = vsub.f32 %v8460_v17, %v8658_v41 }
 0x7db   :  { %v2859_v8 = vpop.xlane.xlu1 %2858  ;;  %v2861_v10 = vpop.xlane.xlu0 %2860 }
 0x7dc   :  { %10534 = vst [vmem:[#allocation14_spill] sm:$0xff] %v8666_v6  ;;  %10535 = vst [vmem:[#allocation15_spill] sm:$0xff] %v8670_v47  ;;  %v8672_v32 = vmul.f32 0.020833334, %v2859_v8  ;;  %v8674_v46 = vmul.f32 0.020833334, %v2861_v10  ;;  %v2963_v12 = vmul.f32 %v8666_v6, %v8666_v6  ;;  %v2964_v57 = vmul.f32 %v8670_v47, %v8670_v47 }
 0x7dd   :  { %v5984_v8 = vld [vmem:[#allocation5 + $0x120] sm:$0xff]  }
 0x7de   :  { %3014 = vadd.xlane.f32.xlu1 %v2963_v12  ;;  %3016 = vadd.xlane.f32.xlu0 %v2964_v57  ;;  %v8682_v43 = vsub.f32 %v8468_v11, %v8672_v32  ;;  %v8686_v17 = vsub.f32 %v8465_v38, %v8674_v46 }
 0x7df   :  { %v2863_v30 = vpop.xlane.xlu1 %2862  ;;  %v2865_v7 = vpop.xlane.xlu0 %2864  ;;  %5792 = vmatprep.subr.bf16.mxu0 %v5984_v8 }
 0x7e0   :  { %10536 = vst [vmem:[#allocation16_spill] sm:$0xff] %v8682_v43  ;;  %10537 = vst [vmem:[#allocation17_spill] sm:$0xff] %v8686_v17  ;;  %v8688_v10 = vmul.f32 0.020833334, %v2863_v30  ;;  %v8690_v63 = vmul.f32 0.020833334, %v2865_v7  ;;  %v2965_v47 = vmul.f32 %v8682_v43, %v8682_v43  ;;  %v2966_v12 = vmul.f32 %v8686_v17, %v8686_v17  ;;  %5793 = vmatpush3.bf16.msra.mxu0 %v5984_v8 }
 0x7e2   :  { %3018 = vadd.xlane.f32.xlu1 %v2965_v47  ;;  %3020 = vadd.xlane.f32.xlu0 %v2966_v12  ;;  %v8698_v38 = vsub.f32 %v8473_v20, %v8688_v10  ;;  %v8702_v11 = vsub.f32 %v8476_v34, %v8690_v63 }
 0x7e3   :  { %v2867_v57 = vpop.xlane.xlu1 %2866  ;;  %v2869_v30 = vpop.xlane.xlu0 %2868 }
 0x7e4   :  { %10538 = vst [vmem:[#allocation18_spill] sm:$0xff] %v8698_v38  ;;  %10539 = vst [vmem:[#allocation19_spill] sm:$0xff] %v8702_v11  ;;  %v8704_v7 = vmul.f32 0.020833334, %v2867_v57  ;;  %v8706_v43 = vmul.f32 0.020833334, %v2869_v30  ;;  %v2967_v17 = vmul.f32 %v8698_v38, %v8698_v38  ;;  %v2968_v47 = vmul.f32 %v8702_v11, %v8702_v11 }
 0x7e6   :  { %3022 = vadd.xlane.f32.xlu1 %v2967_v17  ;;  %3024 = vadd.xlane.f32.xlu0 %v2968_v47  ;;  %v8714_v20 = vsub.f32 %v8484_v22, %v8704_v7  ;;  %v8718_v34 = vsub.f32 %v8481_v59, %v8706_v43 }
 0x7e7   :  { %v2871_v8 = vpop.xlane.xlu1 %2870  ;;  %v2873_v12 = vpop.xlane.xlu0 %2872 }
 0x7e8   :  { %10540 = vst [vmem:[#allocation20_spill] sm:$0xff] %v8714_v20  ;;  %10541 = vst [vmem:[#allocation21_spill] sm:$0xff] %v8718_v34  ;;  %v8720_v57 = vmul.f32 0.020833334, %v2871_v8  ;;  %v8722_v30 = vmul.f32 0.020833334, %v2873_v12  ;;  %v2969_v38 = vmul.f32 %v8714_v20, %v8714_v20  ;;  %v2970_v17 = vmul.f32 %v8718_v34, %v8718_v34 }
 0x7e9   :  { %v3043_v34 = vmul.f32 80.0, %v8528_v50 }
 0x7ea   :  { %3026 = vadd.xlane.f32.xlu1 %v2969_v38  ;;  %3028 = vadd.xlane.f32.xlu0 %v2970_v17  ;;  %v8730_v22 = vsub.f32 %v8489_v35, %v8720_v57  ;;  %v8734_v59 = vsub.f32 %v8492_v16, %v8722_v30 }
 0x7eb   :  { %v2875_v47 = vpop.xlane.xlu1 %2874  ;;  %v2877_v8 = vpop.xlane.xlu0 %2876  ;;  %v3075_v0 = vmul.f32 %v3043_v34, %v8528_v50  ;;  %v3049_v50 = vmul.f32 80.0, %v8578_v58  ;;  %v3050_v34 = vmul.f32 80.0, %v8580_v42 }
 0x7ec   :  { %10542 = vst [vmem:[#allocation22_spill] sm:$0xff] %v8730_v22  ;;  %10543 = vst [vmem:[#allocation23_spill] sm:$0xff] %v8734_v59  ;;  %v8736_v12 = vmul.f32 0.020833334, %v2875_v47  ;;  %v8738_v11 = vmul.f32 0.020833334, %v2877_v8  ;;  %v2971_v20 = vmul.f32 %v8730_v22, %v8730_v22  ;;  %v2972_v38 = vmul.f32 %v8734_v59, %v8734_v59 }
 0x7ee   :  { %3030 = vadd.xlane.f32.xlu1 %v2971_v20  ;;  %3032 = vadd.xlane.f32.xlu0 %v2972_v38  ;;  %v8746_v35 = vsub.f32 %v8500_v53, %v8736_v12  ;;  %v8750_v16 = vsub.f32 %v8497_v1, %v8738_v11  ;;  %v3040_v1 = vmul.f32 80.0, %v8508_v51 }
 0x7ef   :  { %v2879_v17 = vpop.xlane.xlu1 %2878 }
 0x7f0   :  { %10544 = vst [vmem:[#allocation24_spill] sm:$0xff] %v8746_v35  ;;  %10545 = vst [vmem:[#allocation25_spill] sm:$0xff] %v8750_v16  ;;  %v8752_v47 = vmul.f32 0.020833334, %v2879_v17  ;;  %v2973_v8 = vmul.f32 %v8746_v35, %v8746_v35  ;;  %v2974_v22 = vmul.f32 %v8750_v16, %v8750_v16  ;;  %v3072_v38 = vmul.f32 %v3040_v1, %v8508_v51 }
 0x7f1   :  { %v3041_v17 = vmul.f32 80.0, %v8514_v14  ;;  %v3042_v35 = vmul.f32 80.0, %v8516_v39  ;;  %v3044_v51 = vmul.f32 80.0, %v8538_v61 }
 0x7f2   :  { %10546 = vst [vmem:[#allocation26_spill] sm:$0xff] %v8752_v47  ;;  %3034 = vadd.xlane.f32.xlu1 %v2973_v8  ;;  %3036 = vadd.xlane.f32.xlu0 %v2974_v22  ;;  %v8760_v20 = vsub.f32 %v8505_v40, %v8752_v47 }
 0x7f3   :  { %v3073_v22 = vmul.f32 %v3041_v17, %v8514_v14  ;;  %v3074_v40 = vmul.f32 %v3042_v35, %v8516_v39  ;;  %v3076_v39 = vmul.f32 %v3044_v51, %v8538_v61  ;;  %v3045_v35 = vmul.f32 80.0, %v8546_v23 }
 0x7f4   :  { %10547 = vst [vmem:[#allocation27_spill] sm:$0xff] %v8760_v20  ;;  %v2975_v53 = vmul.f32 %v8760_v20, %v8760_v20  ;;  %v3046_v17 = vmul.f32 80.0, %v8548_v44 }
 0x7f6   :  { %3038 = vadd.xlane.f32.xlu1 %v2975_v53  ;;  %v3078_v51 = vmul.f32 %v3046_v17, %v8548_v44 }
 0x832   :  { %v2977_v59 = vpop.xlane.xlu0 %2976 }
 0x833   :  { %v3104_v16 = vsub.f32 %v2977_v59, %v3072_v38 }
 0x835   :  { %v3136_v8 = vmul.f32 0.020833334, %v3104_v16 }
 0x836   :  { %v2979_v6 = vpop.xlane.xlu1 %2978  ;;  %v2981_v20 = vpop.xlane.xlu0 %2980 }
 0x837   :  { %v3168_v53 = vadd.f32 1e-05, %v3136_v8  ;;  %v3105_v47 = vsub.f32 %v2979_v6, %v3073_v22  ;;  %v3106_v37 = vsub.f32 %v2981_v20, %v3074_v40  ;;  %v3047_v20 = vmul.f32 80.0, %v8560_v19 }
 0x838   :  { %v3048_v8 = vmul.f32 80.0, %v8566_v5  ;;  %v3077_v22 = vmul.f32 %v3045_v35, %v8546_v23  ;;  %v3053_v40 = vmul.f32 80.0, %v8610_v33 }
 0x839   :  { %6193 = vrsqrt.f32 %v3168_v53  ;;  %v3137_v1 = vmul.f32 0.020833334, %v3105_v47  ;;  %v3138_v25 = vmul.f32 0.020833334, %v3106_v37  ;;  %v3052_v47 = vmul.f32 80.0, %v8602_v48 }
 0x83a   :  { %v2983_v59 = vpop.xlane.xlu1 %2982  ;;  %v8796_v44 = vmul.f32 %v3053_v40, %v8610_v33  ;;  %v3058_v33 = vmul.f32 80.0, %v8644_v26 }
 0x83b   :  { %v3169_v16 = vadd.f32 1e-05, %v3137_v1  ;;  %v3170_v38 = vadd.f32 1e-05, %v3138_v25  ;;  %v3107_v14 = vsub.f32 %v2983_v59, %v3075_v0  ;;  %v3051_v0 = vmul.f32 80.0, %v8592_v24 }
 0x83c   :  { %v3079_v1 = vmul.f32 %v3047_v20, %v8560_v19  ;;  %v3054_v19 = vmul.f32 80.0, %v8612_v15 }
 0x83d   :  { %6195 = vrsqrt.f32 %v3169_v16  ;;  %v3139_v6 = vmul.f32 0.020833334, %v3107_v14  ;;  %v3081_v14 = vmul.f32 %v3049_v50, %v8578_v58  ;;  %v3056_v58 = vmul.f32 80.0, %v8634_v56 }
 0x83e   :  { %6197 = vrsqrt.f32 %v3170_v38  ;;  %v2985_v37 = vpop.xlane.xlu0 %2984  ;;  %v3080_v38 = vmul.f32 %v3048_v8, %v8566_v5  ;;  %v3055_v5 = vmul.f32 80.0, %v8624_v62  ;;  %v8809_v50 = vrot.slane %v8374_v4, %v6923_v21 }
 0x83f   :  { %v3171_v25 = vadd.f32 1e-05, %v3139_v6  ;;  %v3108_v61 = vsub.f32 %v2985_v37, %v3076_v39  ;;  %v3082_v39 = vmul.f32 %v3050_v34, %v8580_v42  ;;  %v8790_v6 = vmul.f32 %v3051_v0, %v8592_v24 }
 0x840   :  { %v8803_v24 = vrot.slane %v8374_v4, %v6920_v45  ;;  %v3059_v34 = vmul.f32 80.0, %v8656_v52 }
 0x841   :  { %6199 = vrsqrt.f32 %v3171_v25  ;;  %v3140_v53 = vmul.f32 0.020833334, %v3108_v61  ;;  %v8793_v25 = vmul.f32 %v3052_v47, %v8602_v48  ;;  %v3057_v48 = vmul.f32 80.0, %v8642_v13 }
 0x842   :  { %v2987_v59 = vpop.xlane.xlu1 %2986  ;;  %v2989_v16 = vpop.xlane.xlu0 %2988 }
 0x843   :  { %v3172_v23 = vadd.f32 1e-05, %v3140_v53  ;;  %v3109_v35 = vsub.f32 %v2987_v59, %v3077_v22  ;;  %v3110_v37 = vsub.f32 %v2989_v16, %v3078_v51  ;;  %v8814_v51 = vmul.f32 %v3054_v19, %v8612_v15 }
 0x844   :  { %v8817_v59 = vmul.f32 %v3055_v5, %v8624_v62  ;;  %v8820_v16 = vmul.f32 %v3056_v58, %v8634_v56  ;;  %v8828_v15 = vmul.f32 %v3058_v33, %v8644_v26 }
 0x845   :  { %6201 = vrsqrt.f32 %v3172_v23  ;;  %v3141_v42 = vmul.f32 0.020833334, %v3109_v35  ;;  %v3142_v17 = vmul.f32 0.020833334, %v3110_v37  ;;  %v3060_v35 = vmul.f32 80.0, %v8658_v41 }
 0x846   :  { %v6194_v20 = vpop.eup %6193  ;;  %v2991_v8 = vpop.xlane.xlu1 %2990 }
 0x847   :  { %v3173_v0 = vadd.f32 1e-05, %v3141_v42  ;;  %v3174_v61 = vadd.f32 1e-05, %v3142_v17  ;;  %v3111_v47 = vsub.f32 %v2991_v8, %v3079_v1  ;;  %v2993_v22 = vpop.xlane.xlu0 %2992  ;;  %v3232_v40 = vmul.f32 %v6194_v20, %v8512_v29 }
 0x848   :  { %v3112_v53 = vsub.f32 %v2993_v22, %v3080_v38  ;;  %v8825_v29 = vmul.f32 %v3057_v48, %v8642_v13  ;;  %v8833_v42 = vmul.f32 %v3059_v34, %v8656_v52  ;;  %v8838_v33 = vmul.f32 %v3060_v35, %v8658_v41 }
 0x849   :  { %6203 = vrsqrt.f32 %v3173_v0  ;;  %v3143_v4 = vmul.f32 0.020833334, %v3111_v47  ;;  %v3268_v23 = vmul.f32 %v8803_v24, %v3232_v40  ;;  %v3063_v35 = vmul.f32 80.0, %v8688_v10 }
 0x84a   :  { %v6196_v1 = vpop.eup %6195  ;;  %6205 = vrsqrt.f32 %v3174_v61  ;;  %v3144_v37 = vmul.f32 0.020833334, %v3112_v53 }
 0x84b   :  { %v6198_v62 = vpop.eup %6197  ;;  %v3175_v38 = vadd.f32 1e-05, %v3143_v4  ;;  %v2995_v19 = vpop.xlane.xlu1 %2994  ;;  %v3233_v5 = vmul.f32 %v6196_v1, %v8522_v2  ;;  %v3304_v58 = vadd.f32 %v8809_v50, %v3268_v23 }
 0x84c   :  { %v2997_v56 = vpop.xlane.xlu0 %2996  ;;  %v3234_v17 = vmul.f32 %v6198_v62, %v8526_v9  ;;  %v3176_v20 = vadd.f32 1e-05, %v3144_v37  ;;  %v3113_v8 = vsub.f32 %v2995_v19, %v3081_v14  ;;  %v3061_v14 = vmul.f32 80.0, %v8672_v32 }
 0x84d   :  { %v3114_v13 = vsub.f32 %v2997_v56, %v3082_v39  ;;  %6207 = vrsqrt.f32 %v3175_v38  ;;  %v3269_v26 = vmul.f32 %v8803_v24, %v3233_v5  ;;  %v3336_v48 = vmax.f32 %v3304_v58, 0.0 }
 0x84e   :  { %v6200_v0 = vpop.eup %6199  ;;  %6209 = vrsqrt.f32 %v3176_v20  ;;  %v3145_v2 = vmul.f32 0.020833334, %v3113_v8  ;;  %v3270_v47 = vmul.f32 %v8803_v24, %v3234_v17  ;;  %v3062_v39 = vmul.f32 80.0, %v8674_v46 }
 0x84f   :  { %v3146_v61 = vmul.f32 0.020833334, %v3114_v13  ;;  %v3235_v52 = vmul.f32 %v6200_v0, %v8536_v55  ;;  %v2999_v34 = vpop.xlane.xlu1 %2998  ;;  %v3305_v9 = vadd.f32 %v8809_v50, %v3269_v26  ;;  %v3064_v55 = vmul.f32 80.0, %v8690_v63 }
 0x850   :  { %v3177_v22 = vadd.f32 1e-05, %v3145_v2  ;;  %v3115_v41 = vsub.f32 %v2999_v34, %v8790_v6  ;;  %v3306_v53 = vadd.f32 %v8809_v50, %v3270_v47  ;;  %v3368_v62 = vmin.f32 %v3336_v48, 6.0 }
 0x851   :  { %v3178_v40 = vadd.f32 1e-05, %v3146_v61  ;;  %v3337_v4 = vmax.f32 %v3305_v9, 0.0  ;;  %v3271_v23 = vmul.f32 %v8803_v24, %v3235_v52  ;;  %v8854_v20 = vmul.f32 %v3061_v14, %v8672_v32 }
 0x852   :  { %v6202_v1 = vpop.eup %6201  ;;  %6211 = vrsqrt.f32 %v3177_v22  ;;  %v3147_v37 = vmul.f32 0.020833334, %v3115_v41  ;;  %v3338_v38 = vmax.f32 %v3306_v53, 0.0  ;;  %v8857_v8 = vmul.f32 %v3062_v39, %v8674_v46 }
 0x853   :  { %6213 = vrsqrt.f32 %v3178_v40  ;;  %v3001_v19 = vpop.xlane.xlu0 %3000  ;;  %v3369_v56 = vmin.f32 %v3337_v4, 6.0  ;;  %v3307_v5 = vadd.f32 %v8809_v50, %v3271_v23  ;;  %v3236_v6 = vmul.f32 %v6202_v1, %v8544_v60 }
 0x854   :  { %v3179_v58 = vadd.f32 1e-05, %v3147_v37  ;;  %v3116_v17 = vsub.f32 %v3001_v19, %v8793_v25  ;;  %v8861_v0 = vmul.f32 %v3063_v35, %v8688_v10  ;;  %v8864_v60 = vmul.f32 %v3064_v55, %v8690_v63 }
 0x855   :  { %v3419_v13 = vpack.c.bf16 %v3369_v56, %v3368_v62  ;;  %v3339_v26 = vmax.f32 %v3307_v5, 0.0  ;;  %v3272_v48 = vmul.f32 %v8803_v24, %v3236_v6  ;;  %v3065_v25 = vmul.f32 80.0, %v8704_v7 }
 0x856   :  { %v6204_v2 = vpop.eup %6203  ;;  %6215 = vrsqrt.f32 %v3179_v58  ;;  %v3148_v61 = vmul.f32 0.020833334, %v3116_v17  ;;  %v3370_v46 = vmin.f32 %v3338_v38, 6.0  ;;  %v3066_v4 = vmul.f32 80.0, %v8706_v43 }
 0x857   :  { %v6206_v32 = vpop.eup %6205  ;;  %v3003_v47 = vpop.xlane.xlu1 %3002  ;;  %5794 = vmatprep.mubr.bf16.mxu0 %v3419_v13  ;;  %v3371_v34 = vmin.f32 %v3339_v26, 6.0  ;;  %v3237_v9 = vmul.f32 %v6204_v2, %v8554_v27  ;;  %v3308_v14 = vadd.f32 %v8809_v50, %v3272_v48  ;;  %v3067_v62 = vmul.f32 80.0, %v8720_v57 }
 0x858   :  { %v3005_v52 = vpop.xlane.xlu0 %3004  ;;  %v3180_v10 = vadd.f32 1e-05, %v3148_v61  ;;  %v3117_v39 = vsub.f32 %v3003_v47, %v8796_v44  ;;  %v3238_v63 = vmul.f32 %v6206_v32, %v8558_v3  ;;  %v8878_v3 = vmul.f32 %v3065_v25, %v8704_v7 }
 0x859   :  { %v3118_v22 = vsub.f32 %v3005_v52, %v8814_v51  ;;  %v3420_v40 = vpack.c.bf16 %v3371_v34, %v3370_v46  ;;  %v3273_v41 = vmul.f32 %v8803_v24, %v3237_v9  ;;  %v3340_v53 = vmax.f32 %v3308_v14, 0.0 }
 0x85a   :  { %v6208_v23 = vpop.eup %6207  ;;  %6217 = vrsqrt.f32 %v3180_v10  ;;  %v3149_v35 = vmul.f32 0.020833334, %v3117_v39  ;;  %v3274_v27 = vmul.f32 %v8803_v24, %v3238_v63  ;;  %v3068_v13 = vmul.f32 80.0, %v8722_v30 }
 0x85b   :  { %v3150_v55 = vmul.f32 0.020833334, %v3118_v22  ;;  %v6210_v1 = vpop.eup %6209  ;;  %v3007_v37 = vpop.xlane.xlu1 %3006  ;;  %5795 = vmatmul.mubr.bf16.vlgmr.msra.gmra.mxu0 %v3420_v40  ;;  %v3309_v44 = vadd.f32 %v8809_v50, %v3273_v41  ;;  %v3239_v51 = vmul.f32 %v6208_v23, %v8570_v28  ;;  %v3372_v26 = vmin.f32 %v3340_v53, 6.0 }
 0x85c   :  { %v3181_v38 = vadd.f32 1e-05, %v3149_v35  ;;  %v3119_v56 = vsub.f32 %v3007_v37, %v8817_v59  ;;  %v3310_v5 = vadd.f32 %v8809_v50, %v3274_v27  ;;  %v3240_v17 = vmul.f32 %v6210_v1, %v8574_v49 }
 0x85d   :  { %v3182_v19 = vadd.f32 1e-05, %v3150_v55  ;;  %v3341_v6 = vmax.f32 %v3309_v44, 0.0  ;;  %v3275_v58 = vmul.f32 %v8803_v24, %v3239_v51  ;;  %v8890_v49 = vmul.f32 %v3066_v4, %v8706_v43 }
 0x85e   :  { %6219 = vrsqrt.f32 %v3181_v38  ;;  %v3151_v28 = vmul.f32 0.020833334, %v3119_v56  ;;  %v3342_v7 = vmax.f32 %v3310_v5, 0.0  ;;  %v3276_v59 = vmul.f32 %v8803_v24, %v3240_v17 }
 0x85f   :  { %v6212_v48 = vpop.eup %6211  ;;  %6221 = vrsqrt.f32 %v3182_v19  ;;  %v3009_v2 = vpop.xlane.xlu0 %3008  ;;  %v3373_v61 = vmin.f32 %v3341_v6, 6.0  ;;  %v3311_v25 = vadd.f32 %v8809_v50, %v3275_v58  ;;  %v8897_v63 = vmul.f32 %v3067_v62, %v8720_v57 }
 0x860   :  { %v6214_v32 = vpop.eup %6213  ;;  %v3183_v47 = vadd.f32 1e-05, %v3151_v28  ;;  %v3120_v52 = vsub.f32 %v3009_v2, %v8820_v16  ;;  %v3241_v46 = vmul.f32 %v6212_v48, %v8586_v36  ;;  %v3312_v14 = vadd.f32 %v8809_v50, %v3276_v59 }
 0x861   :  { %v3421_v34 = vpack.c.bf16 %v3373_v61, %v3372_v26  ;;  %v3343_v9 = vmax.f32 %v3311_v25, 0.0  ;;  %v3242_v10 = vmul.f32 %v6214_v32, %v8590_v31  ;;  %v3374_v43 = vmin.f32 %v3342_v7, 6.0 }
 0x862   :  { %6223 = vrsqrt.f32 %v3183_v47  ;;  %v3152_v39 = vmul.f32 0.020833334, %v3120_v52  ;;  %v3277_v22 = vmul.f32 %v8803_v24, %v3241_v46  ;;  %v8900_v36 = vmul.f32 %v3068_v13, %v8722_v30 }
 0x863   :  { %v6216_v40 = vpop.eup %6215  ;;  %v3011_v16 = vpop.xlane.xlu1 %3010  ;;  %5798 = vmatprep.mubr.bf16.mxu0 %v3421_v34  ;;  %v3375_v53 = vmin.f32 %v3343_v9, 6.0  ;;  %v3278_v4 = vmul.f32 %v8803_v24, %v3242_v10  ;;  %v3344_v27 = vmax.f32 %v3312_v14, 0.0  ;;  %v3070_v5 = vmul.f32 80.0, %v8738_v11  ;;  %v10548_v10 = vld [vmem:[#allocation31_spill] sm:$0xff] }
 0x864   :  { %v3013_v41 = vpop.xlane.xlu0 %3012  ;;  %v3184_v23 = vadd.f32 1e-05, %v3152_v39  ;;  %v3121_v31 = vsub.f32 %v3011_v16, %v8825_v29  ;;  %v3313_v55 = vadd.f32 %v8809_v50, %v3277_v22  ;;  %v3243_v1 = vmul.f32 %v6216_v40, %v8600_v54  ;;  %v10549_v40 = vld [vmem:[#allocation32_spill] sm:$0xff] }
 0x865   :  { %v3122_v35 = vsub.f32 %v3013_v41, %v8828_v15  ;;  %v3422_v57 = vpack.c.bf16 %v3375_v53, %v3374_v43  ;;  %v3314_v37 = vadd.f32 %v8809_v50, %v3278_v4  ;;  %v3069_v15 = vmul.f32 80.0, %v8736_v12 }
 0x866   :  { %6225 = vrsqrt.f32 %v3184_v23  ;;  %v3153_v44 = vmul.f32 0.020833334, %v3121_v31  ;;  %v3345_v30 = vmax.f32 %v3313_v55, 0.0  ;;  %v3279_v29 = vmul.f32 %v8803_v24, %v3243_v1 }
 0x867   :  { %v3154_v51 = vmul.f32 0.020833334, %v3122_v35  ;;  %v6218_v62 = vpop.eup %6217  ;;  %v3015_v38 = vpop.xlane.xlu1 %3014  ;;  %5799 = vmatmul.mubr.bf16.gmra.mxu0 %v3422_v57  ;;  %v3346_v56 = vmax.f32 %v3314_v37, 0.0  ;;  %v3376_v13 = vmin.f32 %v3344_v27, 6.0  ;;  %v8922_v53 = vmul.f32 %v3069_v15, %v8736_v12 }
 0x868   :  { %v3017_v19 = vpop.xlane.xlu0 %3016  ;;  %v3185_v6 = vadd.f32 1e-05, %v3153_v44  ;;  %v3123_v54 = vsub.f32 %v3015_v38, %v8833_v42  ;;  %v3377_v28 = vmin.f32 %v3345_v30, 6.0  ;;  %v3315_v26 = vadd.f32 %v8809_v50, %v3279_v29  ;;  %v10550_v44 = vld [vmem:[#allocation33_spill] sm:$0xff] }
 0x869   :  { %v3186_v58 = vadd.f32 1e-05, %v3154_v51  ;;  %v3124_v17 = vsub.f32 %v3017_v19, %v8838_v33  ;;  %v3244_v7 = vmul.f32 %v6218_v62, %v8608_v18  ;;  %v3378_v61 = vmin.f32 %v3346_v56, 6.0 }
 0x86a   :  { %6227 = vrsqrt.f32 %v3185_v6  ;;  %v3155_v48 = vmul.f32 0.020833334, %v3123_v54  ;;  %v3423_v47 = vpack.c.bf16 %v3377_v28, %v3376_v13  ;;  %v3347_v52 = vmax.f32 %v3315_v26, 0.0  ;;  %v10551_v26 = vld [vmem:[#allocation12_spill] sm:$0xff] }
 0x86b   :  { %v3156_v2 = vmul.f32 0.020833334, %v3124_v17  ;;  %v6220_v25 = vpop.eup %6219  ;;  %6229 = vrsqrt.f32 %v3186_v58  ;;  %v3019_v59 = vpop.xlane.xlu1 %3018  ;;  %v3280_v42 = vmul.f32 %v8803_v24, %v3244_v7  ;;  %v8928_v37 = vmul.f32 %v3070_v5, %v8738_v11 }
 0x86c   :  { %v3021_v32 = vpop.xlane.xlu0 %3020  ;;  %v6222_v46 = vpop.eup %6221  ;;  %v3187_v33 = vadd.f32 1e-05, %v3155_v48  ;;  %v3125_v9 = vsub.f32 %v3019_v59, %v8854_v20  ;;  %5802 = vmatprep.mubr.bf16.mxu0 %v3423_v47  ;;  %v3379_v18 = vmin.f32 %v3347_v52, 6.0  ;;  %v3245_v39 = vmul.f32 %v6220_v25, %v10548_v10 }
 0x86d   :  { %v3188_v34 = vadd.f32 1e-05, %v3156_v2  ;;  %v3126_v14 = vsub.f32 %v3021_v32, %v8857_v8  ;;  %v3316_v22 = vadd.f32 %v8809_v50, %v3280_v42  ;;  %v3246_v16 = vmul.f32 %v6222_v46, %v10549_v40 }
 0x86e   :  { %6231 = vrsqrt.f32 %v3187_v33  ;;  %v3157_v41 = vmul.f32 0.020833334, %v3125_v9  ;;  %v3424_v31 = vpack.c.bf16 %v3379_v18, %v3378_v61  ;;  %v3281_v8 = vmul.f32 %v8803_v24, %v3245_v39  ;;  %v10552_v61 = vld [vmem:[#allocation26_spill] sm:$0xff]  ;;  %v10553_v18 = vld [vmem:[#allocation13_spill] sm:$0xff] }
 0x86f   :  { %v3158_v43 = vmul.f32 0.020833334, %v3126_v14  ;;  %v6224_v4 = vpop.eup %6223  ;;  %6233 = vrsqrt.f32 %v3188_v34  ;;  %v3023_v23 = vpop.xlane.xlu1 %3022  ;;  %v3348_v35 = vmax.f32 %v3316_v22, 0.0  ;;  %v3282_v30 = vmul.f32 %v8803_v24, %v3246_v16  ;;  %v10554_v22 = vld [vmem:[#allocation29_spill] sm:$0xff] }
 0x870   :  { %v3025_v20 = vpop.xlane.xlu0 %3024  ;;  %v3189_v55 = vadd.f32 1e-05, %v3157_v41  ;;  %v3127_v27 = vsub.f32 %v3023_v23, %v8861_v0  ;;  %5803 = vmatmul.mubr.bf16.gmra.mxu0 %v3424_v31  ;;  %v3317_v12 = vadd.f32 %v8809_v50, %v3281_v8  ;;  %v3247_v51 = vmul.f32 %v6224_v4, %v10550_v44  ;;  %v10555_v44 = vld [vmem:[#allocation14_spill] sm:$0xff] }
 0x871   :  { %v3190_v57 = vadd.f32 1e-05, %v3158_v43  ;;  %v3128_v1 = vsub.f32 %v3025_v20, %v8864_v60  ;;  %v3380_v19 = vmin.f32 %v3348_v35, 6.0  ;;  %v3318_v11 = vadd.f32 %v8809_v50, %v3282_v30 }
 0x872   :  { %6235 = vrsqrt.f32 %v3189_v55  ;;  %v3159_v62 = vmul.f32 0.020833334, %v3127_v27  ;;  %v3349_v15 = vmax.f32 %v3317_v12, 0.0  ;;  %v3283_v60 = vmul.f32 %v8803_v24, %v3247_v51 }
 0x873   :  { %v3160_v38 = vmul.f32 0.020833334, %v3128_v1  ;;  %v6226_v29 = vpop.eup %6225  ;;  %6237 = vrsqrt.f32 %v3190_v57  ;;  %v3027_v56 = vpop.xlane.xlu1 %3026  ;;  %v3350_v28 = vmax.f32 %v3318_v11, 0.0  ;;  %v3071_v25 = vmul.f32 80.0, %v10552_v61 }
 0x874   :  { %v3029_v0 = vpop.xlane.xlu0 %3028  ;;  %v3191_v5 = vadd.f32 1e-05, %v3159_v62  ;;  %v3129_v58 = vsub.f32 %v3027_v56, %v8878_v3  ;;  %v3381_v17 = vmin.f32 %v3349_v15, 6.0  ;;  %v3319_v13 = vadd.f32 %v8809_v50, %v3283_v60 }
 0x875   :  { %v3192_v6 = vadd.f32 1e-05, %v3160_v38  ;;  %v3130_v54 = vsub.f32 %v3029_v0, %v8890_v49  ;;  %v3248_v7 = vmul.f32 %v6226_v29, %v10551_v26  ;;  %v3382_v3 = vmin.f32 %v3350_v28, 6.0 }
 0x876   :  { %6239 = vrsqrt.f32 %v3191_v5  ;;  %v3161_v48 = vmul.f32 0.020833334, %v3129_v58  ;;  %v3425_v52 = vpack.c.bf16 %v3381_v17, %v3380_v19  ;;  %v3351_v42 = vmax.f32 %v3319_v13, 0.0  ;;  %v10556_v19 = vld [vmem:[#allocation15_spill] sm:$0xff]  ;;  %v10557_v13 = vld [vmem:[#allocation16_spill] sm:$0xff] }
 0x877   :  { %v3162_v2 = vmul.f32 0.020833334, %v3130_v54  ;;  %v6228_v59 = vpop.eup %6227  ;;  %6241 = vrsqrt.f32 %v3192_v6  ;;  %v3031_v32 = vpop.xlane.xlu1 %3030  ;;  %v3284_v39 = vmul.f32 %v8803_v24, %v3248_v7  ;;  %v3103_v43 = vmul.f32 %v3071_v25, %v10552_v61 }
 0x878   :  { %v3033_v47 = vpop.xlane.xlu0 %3032  ;;  %v6230_v46 = vpop.eup %6229  ;;  %v3193_v49 = vadd.f32 1e-05, %v3161_v48  ;;  %v3131_v34 = vsub.f32 %v3031_v32, %v8897_v63  ;;  %5806 = vmatprep.mubr.bf16.mxu0 %v3425_v52  ;;  %v3383_v14 = vmin.f32 %v3351_v42, 6.0  ;;  %v3249_v10 = vmul.f32 %v6228_v59, %v10553_v18  ;;  %v10560_v18 = vld [vmem:[#allocation19_spill] sm:$0xff] }
 0x879   :  { %v3194_v33 = vadd.f32 1e-05, %v3162_v2  ;;  %v3132_v9 = vsub.f32 %v3033_v47, %v8900_v36  ;;  %v3250_v40 = vmul.f32 %v6230_v46, %v10554_v22  ;;  %v3320_v31 = vadd.f32 %v8809_v50, %v3284_v39  ;;  %v10558_v2 = vld [vmem:[#allocation17_spill] sm:$0xff] }
 0x87a   :  { %6243 = vrsqrt.f32 %v3193_v49  ;;  %v3163_v16 = vmul.f32 0.020833334, %v3131_v34  ;;  %v3426_v63 = vpack.c.bf16 %v3383_v14, %v3382_v3  ;;  %v3285_v36 = vmul.f32 %v8803_v24, %v3249_v10  ;;  %v10559_v49 = vld [vmem:[#allocation18_spill] sm:$0xff] }
 0x87b   :  { %v3164_v41 = vmul.f32 0.020833334, %v3132_v9  ;;  %v6232_v4 = vpop.eup %6231  ;;  %6245 = vrsqrt.f32 %v3194_v33  ;;  %v3035_v23 = vpop.xlane.xlu1 %3034  ;;  %v3352_v12 = vmax.f32 %v3320_v31, 0.0  ;;  %v3286_v30 = vmul.f32 %v8803_v24, %v3250_v40 }
 0x87c   :  { %v3037_v20 = vpop.xlane.xlu0 %3036  ;;  %v6234_v8 = vpop.eup %6233  ;;  %v3195_v35 = vadd.f32 1e-05, %v3163_v16  ;;  %v3133_v57 = vsub.f32 %v3035_v23, %v8922_v53  ;;  %5807 = vmatmul.mubr.bf16.gmra.mxu0 %v3426_v63  ;;  %v3321_v1 = vadd.f32 %v8809_v50, %v3285_v36  ;;  %v3251_v51 = vmul.f32 %v6232_v4, %v10555_v44  ;;  %v10561_v36 = vld [vmem:[#allocation20_spill] sm:$0xff] }
 0x87d   :  { %v3196_v55 = vadd.f32 1e-05, %v3164_v41  ;;  %v3134_v27 = vsub.f32 %v3037_v20, %v8928_v37  ;;  %v3252_v29 = vmul.f32 %v6234_v8, %v10556_v19  ;;  %v3384_v53 = vmin.f32 %v3352_v12, 6.0 }
 0x87e   :  { %6247 = vrsqrt.f32 %v3195_v35  ;;  %v3165_v62 = vmul.f32 0.020833334, %v3133_v57  ;;  %v3353_v15 = vmax.f32 %v3321_v1, 0.0  ;;  %v3287_v37 = vmul.f32 %v8803_v24, %v3251_v51  ;;  %v10562_v57 = vld [vmem:[#allocation21_spill] sm:$0xff] }
 0x87f   :  { %v3166_v38 = vmul.f32 0.020833334, %v3134_v27  ;;  %v6236_v56 = vpop.eup %6235  ;;  %6249 = vrsqrt.f32 %v3196_v55  ;;  %v3039_v0 = vpop.xlane.xlu1 %3038  ;;  %v3322_v58 = vadd.f32 %v8809_v50, %v3286_v30  ;;  %v3288_v26 = vmul.f32 %v8803_v24, %v3252_v29 }
 0x880   :  { %v6238_v60 = vpop.eup %6237  ;;  %v3197_v11 = vadd.f32 1e-05, %v3165_v62  ;;  %v3135_v6 = vsub.f32 %v3039_v0, %v3103_v43  ;;  %v3385_v54 = vmin.f32 %v3353_v15, 6.0  ;;  %v3323_v17 = vadd.f32 %v8809_v50, %v3287_v37  ;;  %v10563_v0 = vld [vmem:[#allocation22_spill] sm:$0xff]  ;;  %v10564_v37 = vld [vmem:[#allocation23_spill] sm:$0xff] }
 0x881   :  { %v3198_v5 = vadd.f32 1e-05, %v3166_v38  ;;  %v3253_v28 = vmul.f32 %v6236_v56, %v10557_v13  ;;  %v3354_v48 = vmax.f32 %v3322_v58, 0.0  ;;  %v3254_v61 = vmul.f32 %v6238_v60, %v10558_v2 }
 0x882   :  { %6251 = vrsqrt.f32 %v3197_v11  ;;  %v3167_v7 = vmul.f32 0.020833334, %v3135_v6  ;;  %v3427_v59 = vpack.c.bf16 %v3385_v54, %v3384_v53  ;;  %v3355_v32 = vmax.f32 %v3323_v17, 0.0 }
 0x883   :  { %v6240_v25 = vpop.eup %6239  ;;  %6253 = vrsqrt.f32 %v3198_v5  ;;  %v3289_v47 = vmul.f32 %v8803_v24, %v3253_v28  ;;  %v3386_v3 = vmin.f32 %v3354_v48, 6.0  ;;  %v3324_v46 = vadd.f32 %v8809_v50, %v3288_v26  ;;  %v10565_v48 = vld [vmem:[#allocation24_spill] sm:$0xff] }
 0x884   :  { %v6242_v52 = vpop.eup %6241  ;;  %v3199_v42 = vadd.f32 1e-05, %v3167_v7  ;;  %v3255_v33 = vmul.f32 %v6240_v25, %v10559_v49  ;;  %5810 = vmatprep.mubr.bf16.mxu0 %v3427_v59  ;;  %v3387_v34 = vmin.f32 %v3355_v32, 6.0  ;;  %v3290_v14 = vmul.f32 %v8803_v24, %v3254_v61  ;;  %v10566_v25 = vld [vmem:[#allocation25_spill] sm:$0xff] }
 0x885   :  { %v3325_v9 = vadd.f32 %v8809_v50, %v3289_v47  ;;  %v3256_v10 = vmul.f32 %v6242_v52, %v10560_v18  ;;  %v3356_v39 = vmax.f32 %v3324_v46, 0.0 }
 0x886   :  { %6255 = vrsqrt.f32 %v3199_v42  ;;  %v3291_v22 = vmul.f32 %v8803_v24, %v3255_v33  ;;  %v3428_v16 = vpack.c.bf16 %v3387_v34, %v3386_v3  ;;  %v3326_v43 = vadd.f32 %v8809_v50, %v3290_v14 }
 0x887   :  { %v6244_v40 = vpop.eup %6243  ;;  %v3357_v41 = vmax.f32 %v3325_v9, 0.0  ;;  %v3292_v4 = vmul.f32 %v8803_v24, %v3256_v10  ;;  %v3388_v20 = vmin.f32 %v3356_v39, 6.0  ;;  %v10567_v9 = vld [vmem:[#allocation27_spill] sm:$0xff] }
 0x888   :  { %v6246_v23 = vpop.eup %6245  ;;  %v3327_v63 = vadd.f32 %v8809_v50, %v3291_v22  ;;  %v3257_v31 = vmul.f32 %v6244_v40, %v10561_v36  ;;  %5811 = vmatmul.mubr.bf16.gmra.mxu0 %v3428_v16  ;;  %v3358_v35 = vmax.f32 %v3326_v43, 0.0 }
 0x889   :  { %v3389_v8 = vmin.f32 %v3357_v41, 6.0  ;;  %v3328_v55 = vadd.f32 %v8809_v50, %v3292_v4  ;;  %v3258_v27 = vmul.f32 %v6246_v23, %v10562_v57 }
 0x88a   :  { %v3359_v1 = vmax.f32 %v3327_v63, 0.0  ;;  %v3293_v12 = vmul.f32 %v8803_v24, %v3257_v31  ;;  %v3390_v30 = vmin.f32 %v3358_v35, 6.0  ;;  %v3417_v31 = vld [vmem:[#allocation5 + $0x160] sm:$0x3] }
 0x88b   :  { %v6248_v44 = vpop.eup %6247  ;;  %v3429_v51 = vpack.c.bf16 %v3389_v8, %v3388_v20  ;;  %v3294_v62 = vmul.f32 %v8803_v24, %v3258_v27  ;;  %v3360_v56 = vmax.f32 %v3328_v55, 0.0  ;;  %v8992_v8 = vunpack.c.l.bf16 %v3417_v31  ;;  %v10568_v55 = vld [vmem:[#allocation11_spill] sm:$0xff] }
 0x88c   :  { %v6250_v38 = vpop.eup %6249  ;;  %v3391_v19 = vmin.f32 %v3359_v1, 6.0  ;;  %v3329_v29 = vadd.f32 %v8809_v50, %v3293_v12  ;;  %v3259_v15 = vmul.f32 %v6248_v44, %v10563_v0 }
 0x88d   :  { %5814 = vmatprep.mubr.bf16.mxu0 %v3429_v51  ;;  %v3330_v53 = vadd.f32 %v8809_v50, %v3294_v62  ;;  %v3260_v60 = vmul.f32 %v6250_v38, %v10564_v37  ;;  %v3392_v28 = vmin.f32 %v3360_v56, 6.0 }
 0x88e   :  { %v3430_v11 = vpack.c.bf16 %v3391_v19, %v3390_v30  ;;  %v3361_v5 = vmax.f32 %v3329_v29, 0.0  ;;  %v3295_v6 = vmul.f32 %v8803_v24, %v3259_v15 }
 0x88f   :  { %v6252_v58 = vpop.eup %6251  ;;  %v3362_v54 = vmax.f32 %v3330_v53, 0.0  ;;  %v3296_v17 = vmul.f32 %v8803_v24, %v3260_v60 }
 0x890   :  { %v6254_v13 = vpop.eup %6253  ;;  %v3393_v26 = vmin.f32 %v3361_v5, 6.0  ;;  %v3331_v7 = vadd.f32 %v8809_v50, %v3295_v6  ;;  %v3261_v2 = vmul.f32 %v6252_v58, %v10565_v48  ;;  %5815 = vmatmul.mubr.bf16.gmra.mxu0 %v3430_v11 }
 0x891   :  { %v3332_v61 = vadd.f32 %v8809_v50, %v3296_v17  ;;  %v3262_v59 = vmul.f32 %v6254_v13, %v10566_v25  ;;  %v3394_v3 = vmin.f32 %v3362_v54, 6.0 }
 0x892   :  { %v3431_v32 = vpack.c.bf16 %v3393_v26, %v3392_v28  ;;  %v3363_v47 = vmax.f32 %v3331_v7, 0.0  ;;  %v3297_v52 = vmul.f32 %v8803_v24, %v3261_v2 }
 0x893   :  { %v6256_v42 = vpop.eup %6255  ;;  %v3298_v46 = vmul.f32 %v8803_v24, %v3262_v59  ;;  %v3364_v34 = vmax.f32 %v3332_v61, 0.0 }
 0x894   :  { %5818 = vmatprep.mubr.bf16.mxu0 %v3431_v32  ;;  %v3395_v49 = vmin.f32 %v3363_v47, 6.0  ;;  %v3333_v33 = vadd.f32 %v8809_v50, %v3297_v52  ;;  %v3263_v14 = vmul.f32 %v6256_v42, %v10567_v9 }
 0x895   :  { %v3334_v18 = vadd.f32 %v8809_v50, %v3298_v46  ;;  %v3396_v40 = vmin.f32 %v3364_v34, 6.0 }
 0x896   :  { %v3432_v10 = vpack.c.bf16 %v3395_v49, %v3394_v3  ;;  %v3365_v39 = vmax.f32 %v3333_v33, 0.0  ;;  %v3299_v22 = vmul.f32 %v8803_v24, %v3263_v14  ;;  %v8996_v24 = vrot.slane %v8992_v8, %v10568_v55 }
 0x897   :  { %v3366_v43 = vmax.f32 %v3334_v18, 0.0 }
 0x898   :  { %v3397_v16 = vmin.f32 %v3365_v39, 6.0  ;;  %v3335_v41 = vadd.f32 %v8809_v50, %v3299_v22  ;;  %5819 = vmatmul.mubr.bf16.gmra.mxu0 %v3432_v10 }
 0x899   :  { %v3398_v20 = vmin.f32 %v3366_v43, 6.0 }
 0x89a   :  { %v3433_v4 = vpack.c.bf16 %v3397_v16, %v3396_v40  ;;  %v3367_v23 = vmax.f32 %v3335_v41, 0.0 }
 0x89c   :  { %5822 = vmatprep.mubr.bf16.mxu0 %v3433_v4  ;;  %v3399_v63 = vmin.f32 %v3367_v23, 6.0 }
 0x89e   :  { %v3434_v36 = vpack.c.bf16 %v3399_v63, %v3398_v20 }
 0x8a0   :  { %5823 = vmatmul.mubr.bf16.gmra.mxu0 %v3434_v36 }
 0x91b   :  { %v5796_v35 = vpop.f32.mrf.mxu0 }
 0x91c   :  { %v9003_v12 = vadd.f32 %v5796_v35, %v8996_v24 }
 0x91d   :  { %v3521_v57 = vpop.f32.mrf.mxu0 }
 0x91e   :  { %v8999_v50 = vadd.f32 %v3521_v57, %v8996_v24 }
 0x91f   :  { %v5797_v27 = vpop.f32.mrf.mxu0 }
 0x920   :  { %3648 = vadd.xlane.f32.xlu0 %v8999_v50  ;;  %v9011_v51 = vadd.f32 %v5797_v27, %v8996_v24 }
 0x921   :  { %v3524_v1 = vpop.f32.mrf.mxu0 }
 0x922   :  { %v9006_v44 = vadd.f32 %v3524_v1, %v8996_v24 }
 0x924   :  { %3650 = vadd.xlane.f32.xlu1 %v9006_v44  ;;  %3652 = vadd.xlane.f32.xlu0 %v9003_v12 }
 0x927   :  { %v5800_v30 = vpop.f32.mrf.mxu0 }
 0x928   :  { %3654 = vadd.xlane.f32.xlu1 %v9011_v51  ;;  %v9019_v56 = vadd.f32 %v5800_v30, %v8996_v24 }
 0x929   :  { %v3537_v62 = vpop.f32.mrf.mxu0 }
 0x92a   :  { %v9015_v38 = vadd.f32 %v3537_v62, %v8996_v24  ;;  %v5985_v62 = vld [vmem:[#allocation5 + $0x1a0] sm:$0xff]  }
 0x92b   :  { %v5801_v19 = vpop.f32.mrf.mxu0  ;;  %5826 = vmatprep.subr.bf16.mxu1 %v5985_v62 }
 0x92c   :  { %3656 = vadd.xlane.f32.xlu0 %v9015_v38  ;;  %v9027_v53 = vadd.f32 %v5801_v19, %v8996_v24  ;;  %v5986_v19 = vld [vmem:[#allocation5 + $0x198] sm:$0xff]   ;;  %5827 = vmatpush3.bf16.msra.mxu1 %v5985_v62 }
 0x92d   :  { %v3540_v29 = vpop.f32.mrf.mxu0  ;;  %5828 = vmatprep.subr.bf16.mxu1 %v5986_v19 }
 0x92e   :  { %v9022_v0 = vadd.f32 %v3540_v29, %v8996_v24  ;;  %v5987_v29 = vld [vmem:[#allocation5 + $0x190] sm:$0xff]  }
 0x930   :  { %3658 = vadd.xlane.f32.xlu1 %v9022_v0  ;;  %3660 = vadd.xlane.f32.xlu0 %v9019_v56  ;;  %v5804_v15 = vpop.f32.mrf.mxu0 }
 0x931   :  { %v9035_v6 = vadd.f32 %v5804_v15, %v8996_v24  ;;  %5829 = vmatpush3.bf16.msra.mxu1 %v5986_v19  ;;  %v5988_v15 = vld [vmem:[#allocation5 + $0x188] sm:$0xff]  }
 0x932   :  { %v3553_v37 = vpop.f32.mrf.mxu0  ;;  %5830 = vmatprep.subr.bf16.mxu1 %v5987_v29 }
 0x933   :  { %v9030_v60 = vadd.f32 %v3553_v37, %v8996_v24 }
 0x934   :  { %3662 = vadd.xlane.f32.xlu1 %v9027_v53  ;;  %v5805_v11 = vpop.f32.mrf.mxu0 }
 0x935   :  { %3664 = vadd.xlane.f32.xlu0 %v9030_v60  ;;  %v9043_v54 = vadd.f32 %v5805_v11, %v8996_v24  ;;  %5831 = vmatpush3.bf16.msra.mxu1 %v5987_v29 }
 0x936   :  { %v3556_v5 = vpop.f32.mrf.mxu0  ;;  %5832 = vmatprep.subr.bf16.mxu1 %v5988_v15 }
 0x937   :  { %v9038_v58 = vadd.f32 %v3556_v5, %v8996_v24 }
 0x939   :  { %3666 = vadd.xlane.f32.xlu1 %v9038_v58  ;;  %3668 = vadd.xlane.f32.xlu0 %v9035_v6 }
 0x93a   :  { %5833 = vmatpush3.bf16.msra.mxu1 %v5988_v15 }
 0x93c   :  { %v5808_v17 = vpop.f32.mrf.mxu0 }
 0x93d   :  { %3670 = vadd.xlane.f32.xlu1 %v9043_v54  ;;  %v9051_v48 = vadd.f32 %v5808_v17, %v8996_v24 }
 0x93e   :  { %v3569_v13 = vpop.f32.mrf.mxu0 }
 0x93f   :  { %v9047_v28 = vadd.f32 %v3569_v13, %v8996_v24 }
 0x940   :  { %v5809_v26 = vpop.f32.mrf.mxu0 }
 0x941   :  { %3672 = vadd.xlane.f32.xlu0 %v9047_v28  ;;  %v9059_v61 = vadd.f32 %v5809_v26, %v8996_v24 }
 0x942   :  { %v3572_v7 = vpop.f32.mrf.mxu0 }
 0x943   :  { %v9054_v2 = vadd.f32 %v3572_v7, %v8996_v24 }
 0x945   :  { %3674 = vadd.xlane.f32.xlu1 %v9054_v2  ;;  %3676 = vadd.xlane.f32.xlu0 %v9051_v48 }
 0x948   :  { %v5812_v25 = vpop.f32.mrf.mxu0 }
 0x949   :  { %3678 = vadd.xlane.f32.xlu1 %v9059_v61  ;;  %v9067_v42 = vadd.f32 %v5812_v25, %v8996_v24 }
 0x94a   :  { %v3585_v59 = vpop.f32.mrf.mxu0 }
 0x94b   :  { %v9063_v32 = vadd.f32 %v3585_v59, %v8996_v24 }
 0x94c   :  { %v5813_v47 = vpop.f32.mrf.mxu0 }
 0x94d   :  { %3680 = vadd.xlane.f32.xlu0 %v9063_v32  ;;  %v9075_v33 = vadd.f32 %v5813_v47, %v8996_v24 }
 0x94e   :  { %v3588_v52 = vpop.f32.mrf.mxu0 }
 0x94f   :  { %v9070_v3 = vadd.f32 %v3588_v52, %v8996_v24 }
 0x950   :  { %v5816_v46 = vpop.f32.mrf.mxu0 }
 0x951   :  { %3682 = vadd.xlane.f32.xlu1 %v9070_v3  ;;  %3684 = vadd.xlane.f32.xlu0 %v9067_v42  ;;  %v9083_v18 = vadd.f32 %v5816_v46, %v8996_v24 }
 0x952   :  { %v3601_v49 = vpop.f32.mrf.mxu0 }
 0x953   :  { %v9078_v34 = vadd.f32 %v3601_v49, %v8996_v24 }
 0x954   :  { %v5817_v9 = vpop.f32.mrf.mxu0 }
 0x955   :  { %3686 = vadd.xlane.f32.xlu1 %v9075_v33  ;;  %3688 = vadd.xlane.f32.xlu0 %v9078_v34  ;;  %v9091_v40 = vadd.f32 %v5817_v9, %v8996_v24 }
 0x956   :  { %v3604_v14 = vpop.f32.mrf.mxu0 }
 0x957   :  { %v9086_v10 = vadd.f32 %v3604_v14, %v8996_v24 }
 0x958   :  { %v5820_v39 = vpop.f32.mrf.mxu0 }
 0x959   :  { %3690 = vadd.xlane.f32.xlu1 %v9086_v10  ;;  %3692 = vadd.xlane.f32.xlu0 %v9083_v18  ;;  %v9099_v4 = vadd.f32 %v5820_v39, %v8996_v24 }
 0x95a   :  { %v3617_v22 = vpop.f32.mrf.mxu0 }
 0x95b   :  { %v9094_v16 = vadd.f32 %v3617_v22, %v8996_v24 }
 0x95c   :  { %v5821_v41 = vpop.f32.mrf.mxu0 }
 0x95d   :  { %3694 = vadd.xlane.f32.xlu1 %v9091_v40  ;;  %3696 = vadd.xlane.f32.xlu0 %v9094_v16  ;;  %v9107_v36 = vadd.f32 %v5821_v41, %v8996_v24 }
 0x95e   :  { %v3620_v43 = vpop.f32.mrf.mxu0 }
 0x95f   :  { %v9102_v23 = vadd.f32 %v3620_v43, %v8996_v24 }
 0x960   :  { %v5824_v20 = vpop.f32.mrf.mxu0 }
 0x961   :  { %3698 = vadd.xlane.f32.xlu1 %v9102_v23  ;;  %3700 = vadd.xlane.f32.xlu0 %v9099_v4  ;;  %v9115_v27 = vadd.f32 %v5824_v20, %v8996_v24 }
 0x962   :  { %v3633_v63 = vpop.f32.mrf.mxu0 }
 0x963   :  { %v9110_v31 = vadd.f32 %v3633_v63, %v8996_v24 }
 0x964   :  { %v5825_v35 = vpop.f32.mrf.mxu0 }
 0x965   :  { %3702 = vadd.xlane.f32.xlu1 %v9107_v36  ;;  %3704 = vadd.xlane.f32.xlu0 %v9110_v31  ;;  %v9123_v30 = vadd.f32 %v5825_v35, %v8996_v24 }
 0x966   :  { %v3636_v57 = vpop.f32.mrf.mxu0 }
 0x967   :  { %v9118_v1 = vadd.f32 %v3636_v57, %v8996_v24 }
 0x969   :  { %3706 = vadd.xlane.f32.xlu1 %v9118_v1  ;;  %3708 = vadd.xlane.f32.xlu0 %v9115_v27 }
 0x96d   :  { %3710 = vadd.xlane.f32.xlu1 %v9123_v30 }
 0x9a9   :  { %v3649_v37 = vpop.xlane.xlu0 %3648 }
 0x9aa   :  { %v9126_v11 = vmul.f32 0.015625, %v3649_v37 }
 0x9ac   :  { %v9130_v24 = vsub.f32 %v8999_v50, %v9126_v11 }
 0x9ad   :  { %v3651_v5 = vpop.xlane.xlu1 %3650  ;;  %v3653_v17 = vpop.xlane.xlu0 %3652 }
 0x9ae   :  { %v9132_v13 = vmul.f32 0.015625, %v3651_v5  ;;  %v9134_v26 = vmul.f32 0.015625, %v3653_v17  ;;  %v3776_v7 = vmul.f32 %v9130_v24, %v9130_v24 }
 0x9b0   :  { %3808 = vadd.xlane.f32.xlu0 %v3776_v7  ;;  %v9140_v25 = vsub.f32 %v9006_v44, %v9132_v13  ;;  %v9144_v59 = vsub.f32 %v9003_v12, %v9134_v26 }
 0x9b1   :  { %v3655_v50 = vpop.xlane.xlu1 %3654 }
 0x9b2   :  { %v9146_v47 = vmul.f32 0.015625, %v3655_v50  ;;  %v3777_v52 = vmul.f32 %v9140_v25, %v9140_v25  ;;  %v3778_v46 = vmul.f32 %v9144_v59, %v9144_v59 }
 0x9b4   :  { %3810 = vadd.xlane.f32.xlu1 %v3777_v52  ;;  %3812 = vadd.xlane.f32.xlu0 %v3778_v46  ;;  %v9154_v49 = vsub.f32 %v9011_v51, %v9146_v47 }
 0x9b5   :  { %v3657_v44 = vpop.xlane.xlu0 %3656 }
 0x9b6   :  { %v9156_v9 = vmul.f32 0.015625, %v3657_v44  ;;  %v3779_v12 = vmul.f32 %v9154_v49, %v9154_v49 }
 0x9b8   :  { %3814 = vadd.xlane.f32.xlu1 %v3779_v12  ;;  %v9162_v14 = vsub.f32 %v9015_v38, %v9156_v9 }
 0x9b9   :  { %v3659_v39 = vpop.xlane.xlu1 %3658  ;;  %v3661_v22 = vpop.xlane.xlu0 %3660 }
 0x9ba   :  { %v9164_v41 = vmul.f32 0.015625, %v3659_v39  ;;  %v9166_v43 = vmul.f32 0.015625, %v3661_v22  ;;  %v3780_v51 = vmul.f32 %v9162_v14, %v9162_v14 }
 0x9bc   :  { %3816 = vadd.xlane.f32.xlu0 %v3780_v51  ;;  %v9172_v20 = vsub.f32 %v9022_v0, %v9164_v41  ;;  %v9176_v63 = vsub.f32 %v9019_v56, %v9166_v43 }
 0x9bd   :  { %v3663_v38 = vpop.xlane.xlu1 %3662 }
 0x9be   :  { %v9178_v35 = vmul.f32 0.015625, %v3663_v38  ;;  %v3781_v57 = vmul.f32 %v9172_v20, %v9172_v20  ;;  %v3782_v62 = vmul.f32 %v9176_v63, %v9176_v63  ;;  %v3665_v19 = vpop.xlane.xlu0 %3664 }
 0x9bf   :  { %v9184_v29 = vmul.f32 0.015625, %v3665_v19 }
 0x9c0   :  { %3818 = vadd.xlane.f32.xlu1 %v3781_v57  ;;  %3820 = vadd.xlane.f32.xlu0 %v3782_v62  ;;  %v9188_v0 = vsub.f32 %v9027_v53, %v9178_v35 }
 0x9c1   :  { %v9194_v15 = vsub.f32 %v9030_v60, %v9184_v29 }
 0x9c2   :  { %v3783_v56 = vmul.f32 %v9188_v0, %v9188_v0  ;;  %v3667_v37 = vpop.xlane.xlu1 %3666  ;;  %v3669_v5 = vpop.xlane.xlu0 %3668 }
 0x9c3   :  { %v9196_v17 = vmul.f32 0.015625, %v3667_v37  ;;  %v9198_v7 = vmul.f32 0.015625, %v3669_v5  ;;  %v3784_v50 = vmul.f32 %v9194_v15, %v9194_v15  ;;  %v5989_v5 = vld [vmem:[#allocation5 + $0x180] sm:$0xff]  }
 0x9c4   :  { %3822 = vadd.xlane.f32.xlu1 %v3783_v56  ;;  %5834 = vmatprep.subr.bf16.mxu1 %v5989_v5 }
 0x9c5   :  { %3824 = vadd.xlane.f32.xlu0 %v3784_v50  ;;  %v9204_v53 = vsub.f32 %v9038_v58, %v9196_v17  ;;  %v9208_v52 = vsub.f32 %v9035_v6, %v9198_v7  ;;  %5835 = vmatpush3.bf16.msra.mxu1 %v5989_v5 }
 0x9c6   :  { %v3671_v60 = vpop.xlane.xlu1 %3670 }
 0x9c7   :  { %v9210_v46 = vmul.f32 0.015625, %v3671_v60  ;;  %v3785_v44 = vmul.f32 %v9204_v53, %v9204_v53  ;;  %v3786_v12 = vmul.f32 %v9208_v52, %v9208_v52 }
 0x9c9   :  { %3826 = vadd.xlane.f32.xlu1 %v3785_v44  ;;  %3828 = vadd.xlane.f32.xlu0 %v3786_v12  ;;  %v9218_v39 = vsub.f32 %v9043_v54, %v9210_v46  ;;  %v5990_v12 = vld [vmem:[#allocation5 + $0x178] sm:$0xff]  }
 0x9ca   :  { %v3673_v58 = vpop.xlane.xlu0 %3672  ;;  %5836 = vmatprep.subr.bf16.mxu1 %v5990_v12 }
 0x9cb   :  { %v9220_v22 = vmul.f32 0.015625, %v3673_v58  ;;  %v3787_v6 = vmul.f32 %v9218_v39, %v9218_v39  ;;  %5837 = vmatpush3.bf16.msra.mxu1 %v5990_v12 }
 0x9cd   :  { %3830 = vadd.xlane.f32.xlu1 %v3787_v6  ;;  %v9226_v51 = vsub.f32 %v9047_v28, %v9220_v22 }
 0x9ce   :  { %v3675_v38 = vpop.xlane.xlu1 %3674  ;;  %v3677_v57 = vpop.xlane.xlu0 %3676 }
 0x9cf   :  { %v9228_v62 = vmul.f32 0.015625, %v3675_v38  ;;  %v9230_v19 = vmul.f32 0.015625, %v3677_v57  ;;  %v3788_v54 = vmul.f32 %v9226_v51, %v9226_v51 }
 0x9d1   :  { %3832 = vadd.xlane.f32.xlu0 %v3788_v54  ;;  %v9236_v56 = vsub.f32 %v9054_v2, %v9228_v62  ;;  %v9240_v37 = vsub.f32 %v9051_v48, %v9230_v19 }
 0x9d2   :  { %v3679_v28 = vpop.xlane.xlu1 %3678 }
 0x9d3   :  { %10569 = vst [vmem:[#allocation28_spill] sm:$0xff] %v9236_v56  ;;  %10570 = vst [vmem:[#allocation30_spill] sm:$0xff] %v9240_v37  ;;  %v9242_v50 = vmul.f32 0.015625, %v3679_v28  ;;  %v3789_v60 = vmul.f32 %v9236_v56, %v9236_v56  ;;  %v3790_v44 = vmul.f32 %v9240_v37, %v9240_v37  ;;  %v5991_v28 = vld [vmem:[#allocation5 + $0x170] sm:$0xff]  }
 0x9d4   :  { %5838 = vmatprep.subr.bf16.mxu1 %v5991_v28 }
 0x9d5   :  { %3834 = vadd.xlane.f32.xlu1 %v3789_v60  ;;  %3836 = vadd.xlane.f32.xlu0 %v3790_v44  ;;  %v9250_v2 = vsub.f32 %v9059_v61, %v9242_v50 }
 0x9d6   :  { %v3681_v48 = vpop.xlane.xlu0 %3680  ;;  %5839 = vmatpush3.bf16.msra.mxu1 %v5991_v28 }
 0x9d7   :  { %10571 = vst [vmem:[#allocation31_spill] sm:$0xff] %v9250_v2  ;;  %v9252_v58 = vmul.f32 0.015625, %v3681_v48  ;;  %v3791_v6 = vmul.f32 %v9250_v2, %v9250_v2 }
 0x9d9   :  { %3838 = vadd.xlane.f32.xlu1 %v3791_v6  ;;  %v9258_v38 = vsub.f32 %v9063_v32, %v9252_v58 }
 0x9da   :  { %v3683_v57 = vpop.xlane.xlu1 %3682  ;;  %v3685_v54 = vpop.xlane.xlu0 %3684 }
 0x9db   :  { %10572 = vst [vmem:[#allocation32_spill] sm:$0xff] %v9258_v38  ;;  %v9260_v61 = vmul.f32 0.015625, %v3683_v57  ;;  %v9262_v60 = vmul.f32 0.015625, %v3685_v54  ;;  %v3792_v5 = vmul.f32 %v9258_v38, %v9258_v38 }
 0x9dd   :  { %3840 = vadd.xlane.f32.xlu0 %v3792_v5  ;;  %v9268_v44 = vsub.f32 %v9070_v3, %v9260_v61  ;;  %v9272_v32 = vsub.f32 %v9067_v42, %v9262_v60 }
 0x9de   :  { %v3687_v48 = vpop.xlane.xlu1 %3686  ;;  %v3689_v12 = vpop.xlane.xlu0 %3688 }
 0x9df   :  { %10573 = vst [vmem:[#allocation33_spill] sm:$0xff] %v9268_v44  ;;  %10574 = vst [vmem:[#allocation12_spill] sm:$0xff] %v9272_v32  ;;  %v9274_v6 = vmul.f32 0.015625, %v3687_v48  ;;  %v9276_v57 = vmul.f32 0.015625, %v3689_v12  ;;  %v3793_v54 = vmul.f32 %v9268_v44, %v9268_v44  ;;  %v3794_v5 = vmul.f32 %v9272_v32, %v9272_v32 }
 0x9e1   :  { %3842 = vadd.xlane.f32.xlu1 %v3793_v54  ;;  %3844 = vadd.xlane.f32.xlu0 %v3794_v5  ;;  %v9284_v3 = vsub.f32 %v9075_v33, %v9274_v6  ;;  %v9288_v42 = vsub.f32 %v9078_v34, %v9276_v57 }
 0x9e2   :  { %v3691_v28 = vpop.xlane.xlu1 %3690  ;;  %v3693_v48 = vpop.xlane.xlu0 %3692 }
 0x9e3   :  { %10575 = vst [vmem:[#allocation26_spill] sm:$0xff] %v9284_v3  ;;  %10576 = vst [vmem:[#allocation13_spill] sm:$0xff] %v9288_v42  ;;  %v9290_v12 = vmul.f32 0.015625, %v3691_v28  ;;  %v9292_v55 = vmul.f32 0.015625, %v3693_v48  ;;  %v3795_v44 = vmul.f32 %v9284_v3, %v9284_v3  ;;  %v3796_v54 = vmul.f32 %v9288_v42, %v9288_v42  ;;  %v5992_v48 = vld [vmem:[#allocation5 + $0x168] sm:$0xff]  }
 0x9e4   :  { %5840 = vmatprep.subr.bf16.mxu1 %v5992_v48 }
 0x9e5   :  { %3846 = vadd.xlane.f32.xlu1 %v3795_v44  ;;  %3848 = vadd.xlane.f32.xlu0 %v3796_v54  ;;  %v9300_v33 = vsub.f32 %v9086_v10, %v9290_v12  ;;  %v9304_v34 = vsub.f32 %v9083_v18, %v9292_v55 }
 0x9e6   :  { %v3695_v5 = vpop.xlane.xlu1 %3694  ;;  %v3697_v28 = vpop.xlane.xlu0 %3696  ;;  %5841 = vmatpush3.bf16.msra.mxu1 %v5992_v48 }
 0x9e7   :  { %10577 = vst [vmem:[#allocation29_spill] sm:$0xff] %v9300_v33  ;;  %10578 = vst [vmem:[#allocation14_spill] sm:$0xff] %v9304_v34  ;;  %v9306_v32 = vmul.f32 0.015625, %v3695_v5  ;;  %v9308_v38 = vmul.f32 0.015625, %v3697_v28  ;;  %v3797_v42 = vmul.f32 %v9300_v33, %v9300_v33  ;;  %v3798_v44 = vmul.f32 %v9304_v34, %v9304_v34 }
 0x9e9   :  { %3850 = vadd.xlane.f32.xlu1 %v3797_v42  ;;  %3852 = vadd.xlane.f32.xlu0 %v3798_v44  ;;  %v9316_v18 = vsub.f32 %v9091_v40, %v9306_v32  ;;  %v9320_v10 = vsub.f32 %v9094_v16, %v9308_v38 }
 0x9ea   :  { %v3699_v54 = vpop.xlane.xlu1 %3698  ;;  %v3701_v5 = vpop.xlane.xlu0 %3700 }
 0x9eb   :  { %10579 = vst [vmem:[#allocation15_spill] sm:$0xff] %v9316_v18  ;;  %10580 = vst [vmem:[#allocation16_spill] sm:$0xff] %v9320_v10  ;;  %v9322_v28 = vmul.f32 0.015625, %v3699_v54  ;;  %v9324_v33 = vmul.f32 0.015625, %v3701_v5  ;;  %v3799_v34 = vmul.f32 %v9316_v18, %v9316_v18  ;;  %v3800_v42 = vmul.f32 %v9320_v10, %v9320_v10 }
 0x9ed   :  { %3854 = vadd.xlane.f32.xlu1 %v3799_v34  ;;  %3856 = vadd.xlane.f32.xlu0 %v3800_v42  ;;  %v9332_v40 = vsub.f32 %v9102_v23, %v9322_v28  ;;  %v9336_v16 = vsub.f32 %v9099_v4, %v9324_v33 }
 0x9ee   :  { %v3703_v48 = vpop.xlane.xlu1 %3702  ;;  %v3705_v44 = vpop.xlane.xlu0 %3704 }
 0x9ef   :  { %10581 = vst [vmem:[#allocation17_spill] sm:$0xff] %v9332_v40  ;;  %10582 = vst [vmem:[#allocation18_spill] sm:$0xff] %v9336_v16  ;;  %v9338_v54 = vmul.f32 0.015625, %v3703_v48  ;;  %v9340_v5 = vmul.f32 0.015625, %v3705_v44  ;;  %v3801_v18 = vmul.f32 %v9332_v40, %v9332_v40  ;;  %v3802_v34 = vmul.f32 %v9336_v16, %v9336_v16 }
 0x9f1   :  { %3858 = vadd.xlane.f32.xlu1 %v3801_v18  ;;  %3860 = vadd.xlane.f32.xlu0 %v3802_v34  ;;  %v9348_v23 = vsub.f32 %v9107_v36, %v9338_v54  ;;  %v9352_v4 = vsub.f32 %v9110_v31, %v9340_v5 }
 0x9f2   :  { %v3707_v42 = vpop.xlane.xlu1 %3706  ;;  %v3709_v48 = vpop.xlane.xlu0 %3708 }
 0x9f3   :  { %10583 = vst [vmem:[#allocation19_spill] sm:$0xff] %v9348_v23  ;;  %10584 = vst [vmem:[#allocation20_spill] sm:$0xff] %v9352_v4  ;;  %v9354_v44 = vmul.f32 0.015625, %v3707_v42  ;;  %v9356_v10 = vmul.f32 0.015625, %v3709_v48  ;;  %v3803_v40 = vmul.f32 %v9348_v23, %v9348_v23  ;;  %v3804_v18 = vmul.f32 %v9352_v4, %v9352_v4 }
 0x9f5   :  { %v9364_v36 = vsub.f32 %v9115_v27, %v9356_v10  ;;  %3862 = vadd.xlane.f32.xlu1 %v3803_v40  ;;  %3864 = vadd.xlane.f32.xlu0 %v3804_v18  ;;  %v9368_v31 = vsub.f32 %v9118_v1, %v9354_v44  ;;  %v3872_v1 = vmul.f32 64.0, %v9126_v11  ;;  %v3873_v18 = vmul.f32 64.0, %v9132_v13 }
 0x9f6   :  { %v3711_v34 = vpop.xlane.xlu1 %3710 }
 0x9f7   :  { %10585 = vst [vmem:[#allocation21_spill] sm:$0xff] %v9364_v36  ;;  %10586 = vst [vmem:[#allocation22_spill] sm:$0xff] %v9368_v31  ;;  %v9370_v42 = vmul.f32 0.015625, %v3711_v34  ;;  %v3805_v48 = vmul.f32 %v9368_v31, %v9368_v31  ;;  %v3806_v23 = vmul.f32 %v9364_v36, %v9364_v36  ;;  %v3904_v40 = vmul.f32 %v3872_v1, %v9126_v11 }
 0x9f8   :  { %v3874_v34 = vmul.f32 64.0, %v9134_v26  ;;  %v3876_v11 = vmul.f32 64.0, %v9156_v9 }
 0x9f9   :  { %10587 = vst [vmem:[#allocation23_spill] sm:$0xff] %v9370_v42  ;;  %v9378_v4 = vsub.f32 %v9123_v30, %v9370_v42  ;;  %3866 = vadd.xlane.f32.xlu1 %v3805_v48  ;;  %3868 = vadd.xlane.f32.xlu0 %v3806_v23  ;;  %v3905_v30 = vmul.f32 %v3873_v18, %v9132_v13  ;;  %v3875_v23 = vmul.f32 64.0, %v9146_v47 }
 0x9fa   :  { %v3906_v48 = vmul.f32 %v3874_v34, %v9134_v26  ;;  %v3908_v26 = vmul.f32 %v3876_v11, %v9156_v9  ;;  %v3877_v34 = vmul.f32 64.0, %v9164_v41  ;;  %v3883_v9 = vmul.f32 64.0, %v9210_v46 }
 0x9fb   :  { %10588 = vst [vmem:[#allocation24_spill] sm:$0xff] %v9378_v4  ;;  %v3807_v27 = vmul.f32 %v9378_v4, %v9378_v4  ;;  %v3907_v56 = vmul.f32 %v3875_v23, %v9146_v47 }
 0x9fd   :  { %3870 = vadd.xlane.f32.xlu1 %v3807_v27 }
 0xa39   :  { %v3809_v31 = vpop.xlane.xlu0 %3808 }
 0xa3a   :  { %v3936_v36 = vsub.f32 %v3809_v31, %v3904_v40 }
 0xa3c   :  { %v3968_v16 = vmul.f32 0.015625, %v3936_v36 }
 0xa3d   :  { %v3811_v3 = vpop.xlane.xlu1 %3810  ;;  %v3813_v4 = vpop.xlane.xlu0 %3812 }
 0xa3e   :  { %v4000_v27 = vadd.f32 1e-05, %v3968_v16  ;;  %v3937_v42 = vsub.f32 %v3811_v3, %v3905_v30  ;;  %v3938_v2 = vsub.f32 %v3813_v4, %v3906_v48  ;;  %v3878_v3 = vmul.f32 64.0, %v9166_v43 }
 0xa3f   :  { %v3879_v4 = vmul.f32 64.0, %v9178_v35  ;;  %v3881_v30 = vmul.f32 64.0, %v9196_v17  ;;  %v3909_v48 = vmul.f32 %v3877_v34, %v9164_v41  ;;  %v3885_v41 = vmul.f32 64.0, %v9228_v62 }
 0xa40   :  { %6257 = vrsqrt.f32 %v4000_v27  ;;  %v3969_v1 = vmul.f32 0.015625, %v3937_v42  ;;  %v3970_v37 = vmul.f32 0.015625, %v3938_v2  ;;  %v3880_v2 = vmul.f32 64.0, %v9184_v29 }
 0xa41   :  { %v3815_v31 = vpop.xlane.xlu1 %3814  ;;  %v3910_v23 = vmul.f32 %v3878_v3, %v9166_v43  ;;  %v3886_v43 = vmul.f32 64.0, %v9230_v19 }
 0xa42   :  { %v4001_v36 = vadd.f32 1e-05, %v3969_v1  ;;  %v4002_v40 = vadd.f32 1e-05, %v3970_v37  ;;  %v3939_v13 = vsub.f32 %v3815_v31, %v3907_v56  ;;  %v3882_v56 = vmul.f32 64.0, %v9198_v7 }
 0xa43   :  { %v3911_v1 = vmul.f32 %v3879_v4, %v9178_v35  ;;  %v3912_v31 = vmul.f32 %v3880_v2, %v9184_v29  ;;  %v9413_v29 = vrot.slane %v8992_v8, %v6920_v45  ;;  %v3889_v2 = vmul.f32 64.0, %v9260_v61 }
 0xa44   :  { %6259 = vrsqrt.f32 %v4001_v36  ;;  %v3971_v18 = vmul.f32 0.015625, %v3939_v13  ;;  %v3884_v36 = vmul.f32 64.0, %v9220_v22 }
 0xa45   :  { %6261 = vrsqrt.f32 %v4002_v40  ;;  %v3817_v16 = vpop.xlane.xlu0 %3816 }
 0xa46   :  { %v4003_v42 = vadd.f32 1e-05, %v3971_v18  ;;  %v3940_v47 = vsub.f32 %v3817_v16, %v3908_v26  ;;  %v3913_v18 = vmul.f32 %v3881_v30, %v9196_v17  ;;  %v3914_v16 = vmul.f32 %v3882_v56, %v9198_v7 }
 0xa47   :  { %v9416_v17 = vmul.f32 %v3884_v36, %v9220_v22  ;;  %v3887_v7 = vmul.f32 64.0, %v9242_v50  ;;  %v3890_v22 = vmul.f32 64.0, %v9262_v60 }
 0xa48   :  { %6263 = vrsqrt.f32 %v4003_v42  ;;  %v3972_v37 = vmul.f32 0.015625, %v3940_v47  ;;  %v9407_v42 = vmul.f32 %v3883_v9, %v9210_v46  ;;  %v3888_v46 = vmul.f32 64.0, %v9252_v58 }
 0xa49   :  { %v3819_v27 = vpop.xlane.xlu1 %3818  ;;  %v3821_v11 = vpop.xlane.xlu0 %3820 }
 0xa4a   :  { %v4004_v40 = vadd.f32 1e-05, %v3972_v37  ;;  %v3941_v13 = vsub.f32 %v3819_v27, %v3909_v48  ;;  %v3942_v26 = vsub.f32 %v3821_v11, %v3910_v23  ;;  %v9423_v48 = vmul.f32 %v3885_v41, %v9228_v62 }
 0xa4b   :  { %v9426_v23 = vmul.f32 %v3886_v43, %v9230_v19  ;;  %v9431_v27 = vrot.slane %v8992_v8, %v6923_v21  ;;  %v9438_v62 = vmul.f32 %v3888_v46, %v9252_v58  ;;  %v3891_v19 = vmul.f32 64.0, %v9274_v6 }
 0xa4c   :  { %6265 = vrsqrt.f32 %v4004_v40  ;;  %v3973_v35 = vmul.f32 0.015625, %v3941_v13  ;;  %v3974_v34 = vmul.f32 0.015625, %v3942_v26  ;;  %v9442_v8 = vmul.f32 %v3889_v2, %v9260_v61 }
 0xa4d   :  { %v6258_v3 = vpop.eup %6257  ;;  %v3823_v4 = vpop.xlane.xlu1 %3822  ;;  %v3893_v2 = vmul.f32 64.0, %v9290_v12 }
 0xa4e   :  { %v4005_v47 = vadd.f32 1e-05, %v3973_v35  ;;  %v4006_v30 = vadd.f32 1e-05, %v3974_v34  ;;  %v3943_v56 = vsub.f32 %v3823_v4, %v3911_v1  ;;  %v4064_v9 = vmul.f32 %v6258_v3, %v9130_v24  ;;  %v3825_v37 = vpop.xlane.xlu0 %3824 }
 0xa4f   :  { %v3944_v36 = vsub.f32 %v3825_v37, %v3912_v31  ;;  %v9435_v24 = vmul.f32 %v3887_v7, %v9242_v50  ;;  %v9447_v50 = vmul.f32 %v3890_v22, %v9262_v60  ;;  %v3892_v3 = vmul.f32 64.0, %v9276_v57 }
 0xa50   :  { %6267 = vrsqrt.f32 %v4005_v47  ;;  %v3975_v11 = vmul.f32 0.015625, %v3943_v56  ;;  %v4100_v1 = vmul.f32 %v9413_v29, %v4064_v9 }
 0xa51   :  { %v6260_v40 = vpop.eup %6259  ;;  %6269 = vrsqrt.f32 %v4006_v30  ;;  %v3976_v41 = vmul.f32 0.015625, %v3944_v36 }
 0xa52   :  { %v6262_v13 = vpop.eup %6261  ;;  %v4007_v26 = vadd.f32 1e-05, %v3975_v11  ;;  %v4065_v31 = vmul.f32 %v6260_v40, %v9140_v25  ;;  %v3827_v35 = vpop.xlane.xlu1 %3826  ;;  %v4136_v58 = vadd.f32 %v9431_v27, %v4100_v1  ;;  %v9453_v25 = vmul.f32 %v3891_v19, %v9274_v6 }
 0xa53   :  { %v4066_v43 = vmul.f32 %v6262_v13, %v9144_v59  ;;  %v3829_v34 = vpop.xlane.xlu0 %3828  ;;  %v4008_v4 = vadd.f32 1e-05, %v3976_v41  ;;  %v3945_v7 = vsub.f32 %v3827_v35, %v3913_v18  ;;  %v9466_v13 = vmul.f32 %v3893_v2, %v9290_v12 }
 0xa54   :  { %6271 = vrsqrt.f32 %v4007_v26  ;;  %v3946_v46 = vsub.f32 %v3829_v34, %v3914_v16  ;;  %v4101_v61 = vmul.f32 %v9413_v29, %v4065_v31  ;;  %v4168_v18 = vmax.f32 %v4136_v58, 0.0 }
 0xa55   :  { %v6264_v47 = vpop.eup %6263  ;;  %v4102_v59 = vmul.f32 %v9413_v29, %v4066_v43  ;;  %6273 = vrsqrt.f32 %v4008_v4  ;;  %v3977_v30 = vmul.f32 0.015625, %v3945_v7  ;;  %v9460_v16 = vmul.f32 %v3892_v3, %v9276_v57 }
 0xa56   :  { %v4067_v60 = vmul.f32 %v6264_v47, %v9154_v49  ;;  %v3978_v56 = vmul.f32 0.015625, %v3946_v46  ;;  %v3831_v9 = vpop.xlane.xlu1 %3830  ;;  %v4137_v37 = vadd.f32 %v9431_v27, %v4101_v61  ;;  %v3894_v26 = vmul.f32 64.0, %v9292_v55 }
 0xa57   :  { %v4138_v22 = vadd.f32 %v9431_v27, %v4102_v59  ;;  %v4009_v6 = vadd.f32 1e-05, %v3977_v30  ;;  %v3947_v36 = vsub.f32 %v3831_v9, %v9407_v42  ;;  %v4200_v35 = vmin.f32 %v4168_v18, 6.0 }
 0xa58   :  { %v4010_v11 = vadd.f32 1e-05, %v3978_v56  ;;  %v4103_v1 = vmul.f32 %v9413_v29, %v4067_v60  ;;  %v4169_v49 = vmax.f32 %v4137_v37, 0.0  ;;  %v3895_v34 = vmul.f32 64.0, %v9306_v32 }
 0xa59   :  { %v6266_v40 = vpop.eup %6265  ;;  %v4170_v19 = vmax.f32 %v4138_v22, 0.0  ;;  %6275 = vrsqrt.f32 %v4009_v6  ;;  %v3979_v41 = vmul.f32 0.015625, %v3947_v36  ;;  %v9475_v61 = vmul.f32 %v3894_v26, %v9292_v55 }
 0xa5a   :  { %v4139_v57 = vadd.f32 %v9431_v27, %v4103_v1  ;;  %v4068_v31 = vmul.f32 %v6266_v40, %v9162_v14  ;;  %6277 = vrsqrt.f32 %v4010_v11  ;;  %v3833_v43 = vpop.xlane.xlu0 %3832  ;;  %v4201_v42 = vmin.f32 %v4169_v49, 6.0 }
 0xa5b   :  { %v4011_v58 = vadd.f32 1e-05, %v3979_v41  ;;  %v3948_v3 = vsub.f32 %v3833_v43, %v9416_v17  ;;  %v4202_v47 = vmin.f32 %v4170_v19, 6.0  ;;  %v3896_v14 = vmul.f32 64.0, %v9308_v38 }
 0xa5c   :  { %v4171_v4 = vmax.f32 %v4139_v57, 0.0  ;;  %v4104_v12 = vmul.f32 %v9413_v29, %v4068_v31  ;;  %v4251_v46 = vpack.c.bf16 %v4201_v42, %v4200_v35  ;;  %v9481_v37 = vmul.f32 %v3895_v34, %v9306_v32 }
 0xa5d   :  { %v6268_v7 = vpop.eup %6267  ;;  %6279 = vrsqrt.f32 %v4011_v58  ;;  %v3980_v2 = vmul.f32 0.015625, %v3948_v3  ;;  %v3897_v55 = vmul.f32 64.0, %v9322_v28  ;;  %v9489_v40 = vmul.f32 %v3896_v14, %v9308_v38 }
 0xa5e   :  { %v6270_v59 = vpop.eup %6269  ;;  %v4203_v60 = vmin.f32 %v4171_v4, 6.0  ;;  %v4069_v30 = vmul.f32 %v6268_v7, %v9172_v20  ;;  %v3835_v56 = vpop.xlane.xlu1 %3834  ;;  %5842 = vmatprep.mubr.bf16.mxu1 %v4251_v46  ;;  %v4140_v17 = vadd.f32 %v9431_v27, %v4104_v12  ;;  %v3898_v32 = vmul.f32 64.0, %v9324_v33 }
 0xa5f   :  { %v3837_v9 = vpop.xlane.xlu0 %3836  ;;  %v4070_v18 = vmul.f32 %v6270_v59, %v9176_v63  ;;  %v4012_v22 = vadd.f32 1e-05, %v3980_v2  ;;  %v3949_v6 = vsub.f32 %v3835_v56, %v9423_v48  ;;  %v9497_v38 = vmul.f32 %v3897_v55, %v9322_v28 }
 0xa60   :  { %v3950_v11 = vsub.f32 %v3837_v9, %v9426_v23  ;;  %v4252_v36 = vpack.c.bf16 %v4203_v60, %v4202_v47  ;;  %v4105_v20 = vmul.f32 %v9413_v29, %v4069_v30  ;;  %v4172_v57 = vmax.f32 %v4140_v17, 0.0 }
 0xa61   :  { %v6272_v1 = vpop.eup %6271  ;;  %v4106_v49 = vmul.f32 %v9413_v29, %v4070_v18  ;;  %6281 = vrsqrt.f32 %v4012_v22  ;;  %v3981_v63 = vmul.f32 0.015625, %v3949_v6  ;;  %v3899_v4 = vmul.f32 64.0, %v9338_v54 }
 0xa62   :  { %v3982_v19 = vmul.f32 0.015625, %v3950_v11  ;;  %5843 = vmatmul.mubr.bf16.vlgmr.msra.gmra.mxu1 %v4252_v36  ;;  %v4071_v26 = vmul.f32 %v6272_v1, %v9188_v0  ;;  %v6274_v48 = vpop.eup %6273  ;;  %v3839_v41 = vpop.xlane.xlu1 %3838  ;;  %v4141_v23 = vadd.f32 %v9431_v27, %v4105_v20  ;;  %v3900_v46 = vmul.f32 64.0, %v9340_v5 }
 0xa63   :  { %v4142_v31 = vadd.f32 %v9431_v27, %v4106_v49  ;;  %v4013_v43 = vadd.f32 1e-05, %v3981_v63  ;;  %v3951_v42 = vsub.f32 %v3839_v41, %v9435_v24  ;;  %v4072_v0 = vmul.f32 %v6274_v48, %v9194_v15 }
 0xa64   :  { %v4014_v35 = vadd.f32 1e-05, %v3982_v19  ;;  %v4107_v34 = vmul.f32 %v9413_v29, %v4071_v26  ;;  %v4173_v58 = vmax.f32 %v4141_v23, 0.0  ;;  %v4204_v14 = vmin.f32 %v4172_v57, 6.0 }
 0xa65   :  { %v4174_v3 = vmax.f32 %v4142_v31, 0.0  ;;  %6283 = vrsqrt.f32 %v4013_v43  ;;  %v3983_v12 = vmul.f32 0.015625, %v3951_v42  ;;  %v4108_v24 = vmul.f32 %v9413_v29, %v4072_v0 }
 0xa66   :  { %v4143_v7 = vadd.f32 %v9431_v27, %v4107_v34  ;;  %v6276_v28 = vpop.eup %6275  ;;  %6285 = vrsqrt.f32 %v4014_v35  ;;  %v3841_v47 = vpop.xlane.xlu0 %3840  ;;  %v4205_v59 = vmin.f32 %v4173_v58, 6.0  ;;  %v9518_v49 = vmul.f32 %v3900_v46, %v9340_v5 }
 0xa67   :  { %v6278_v2 = vpop.eup %6277  ;;  %v4015_v60 = vadd.f32 1e-05, %v3983_v12  ;;  %v3952_v30 = vsub.f32 %v3841_v47, %v9438_v62  ;;  %v4073_v56 = vmul.f32 %v6276_v28, %v9204_v53  ;;  %v4206_v17 = vmin.f32 %v4174_v3, 6.0 }
 0xa68   :  { %v4175_v15 = vmax.f32 %v4143_v7, 0.0  ;;  %v4253_v9 = vpack.c.bf16 %v4205_v59, %v4204_v14  ;;  %v4144_v18 = vadd.f32 %v9431_v27, %v4108_v24  ;;  %v4074_v55 = vmul.f32 %v6278_v2, %v9208_v52 }
 0xa69   :  { %6287 = vrsqrt.f32 %v4015_v60  ;;  %v3984_v22 = vmul.f32 0.015625, %v3952_v30  ;;  %v4109_v11 = vmul.f32 %v9413_v29, %v4073_v56  ;;  %v9512_v62 = vmul.f32 %v3898_v32, %v9324_v33 }
 0xa6a   :  { %v4207_v6 = vmin.f32 %v4175_v15, 6.0  ;;  %v6280_v36 = vpop.eup %6279  ;;  %v3843_v1 = vpop.xlane.xlu1 %3842  ;;  %5846 = vmatprep.mubr.bf16.mxu1 %v4253_v9  ;;  %v9515_v53 = vmul.f32 %v3899_v4, %v9338_v54  ;;  %v4110_v52 = vmul.f32 %v9413_v29, %v4074_v55  ;;  %v4176_v23 = vmax.f32 %v4144_v18, 0.0  ;;  %v10589_v18 = vld [vmem:[#allocation28_spill] sm:$0xff] }
 0xa6b   :  { %v3845_v20 = vpop.xlane.xlu0 %3844  ;;  %v4016_v63 = vadd.f32 1e-05, %v3984_v22  ;;  %v3953_v19 = vsub.f32 %v3843_v1, %v9442_v8  ;;  %v4145_v41 = vadd.f32 %v9431_v27, %v4109_v11  ;;  %v4075_v33 = vmul.f32 %v6280_v36, %v9218_v39 }
 0xa6c   :  { %v3954_v26 = vsub.f32 %v3845_v20, %v9447_v50  ;;  %v4254_v48 = vpack.c.bf16 %v4207_v6, %v4206_v17  ;;  %v4146_v32 = vadd.f32 %v9431_v27, %v4110_v52  ;;  %v3901_v5 = vmul.f32 64.0, %v9354_v44  ;;  %v10590_v6 = vld [vmem:[#allocation30_spill] sm:$0xff] }
 0xa6d   :  { %6289 = vrsqrt.f32 %v4016_v63  ;;  %v3985_v54 = vmul.f32 0.015625, %v3953_v19  ;;  %v4177_v8 = vmax.f32 %v4145_v41, 0.0  ;;  %v4111_v50 = vmul.f32 %v9413_v29, %v4075_v33 }
 0xa6e   :  { %v3986_v57 = vmul.f32 0.015625, %v3954_v26  ;;  %5847 = vmatmul.mubr.bf16.gmra.mxu1 %v4254_v48  ;;  %v6282_v31 = vpop.eup %6281  ;;  %v3847_v43 = vpop.xlane.xlu1 %3846  ;;  %v4178_v42 = vmax.f32 %v4146_v32, 0.0  ;;  %v3902_v34 = vmul.f32 64.0, %v9356_v10  ;;  %v4208_v4 = vmin.f32 %v4176_v23, 6.0 }
 0xa6f   :  { %v3849_v35 = vpop.xlane.xlu0 %3848  ;;  %v4017_v58 = vadd.f32 1e-05, %v3985_v54  ;;  %v3955_v39 = vsub.f32 %v3847_v43, %v9453_v25  ;;  %v4209_v12 = vmin.f32 %v4177_v8, 6.0  ;;  %v4147_v7 = vadd.f32 %v9431_v27, %v4111_v50  ;;  %v10591_v54 = vld [vmem:[#allocation31_spill] sm:$0xff] }
 0xa70   :  { %v4018_v3 = vadd.f32 1e-05, %v3986_v57  ;;  %v3956_v0 = vsub.f32 %v3849_v35, %v9460_v16  ;;  %v4076_v46 = vmul.f32 %v6282_v31, %v9226_v51  ;;  %v4210_v14 = vmin.f32 %v4178_v42, 6.0 }
 0xa71   :  { %6291 = vrsqrt.f32 %v4017_v58  ;;  %v3987_v28 = vmul.f32 0.015625, %v3955_v39  ;;  %v4255_v60 = vpack.c.bf16 %v4209_v12, %v4208_v4  ;;  %v4179_v30 = vmax.f32 %v4147_v7, 0.0  ;;  %v10592_v7 = vld [vmem:[#allocation32_spill] sm:$0xff] }
 0xa72   :  { %v3988_v47 = vmul.f32 0.015625, %v3956_v0  ;;  %v6284_v59 = vpop.eup %6283  ;;  %6293 = vrsqrt.f32 %v4018_v3  ;;  %v3851_v24 = vpop.xlane.xlu1 %3850  ;;  %v4112_v25 = vmul.f32 %v9413_v29, %v4076_v46  ;;  %v9540_v20 = vmul.f32 %v3901_v5, %v9354_v44 }
 0xa73   :  { %v3853_v2 = vpop.xlane.xlu0 %3852  ;;  %v6286_v15 = vpop.eup %6285  ;;  %v4019_v16 = vadd.f32 1e-05, %v3987_v28  ;;  %v3957_v9 = vsub.f32 %v3851_v24, %v9466_v13  ;;  %5850 = vmatprep.mubr.bf16.mxu1 %v4255_v60  ;;  %v4211_v51 = vmin.f32 %v4179_v30, 6.0  ;;  %v4077_v55 = vmul.f32 %v6284_v59, %v10589_v18 }
 0xa74   :  { %v4020_v56 = vadd.f32 1e-05, %v3988_v47  ;;  %v3958_v17 = vsub.f32 %v3853_v2, %v9475_v61  ;;  %v4148_v22 = vadd.f32 %v9431_v27, %v4112_v25  ;;  %v4078_v11 = vmul.f32 %v6286_v15, %v10590_v6 }
 0xa75   :  { %6295 = vrsqrt.f32 %v4019_v16  ;;  %v3989_v36 = vmul.f32 0.015625, %v3957_v9  ;;  %v4256_v19 = vpack.c.bf16 %v4211_v51, %v4210_v14  ;;  %v4113_v61 = vmul.f32 %v9413_v29, %v4077_v55  ;;  %v10593_v14 = vld [vmem:[#allocation23_spill] sm:$0xff]  ;;  %v10594_v51 = vld [vmem:[#allocation33_spill] sm:$0xff] }
 0xa76   :  { %v3990_v1 = vmul.f32 0.015625, %v3958_v17  ;;  %v6288_v52 = vpop.eup %6287  ;;  %6297 = vrsqrt.f32 %v4020_v56  ;;  %v3855_v63 = vpop.xlane.xlu1 %3854  ;;  %v4180_v26 = vmax.f32 %v4148_v22, 0.0  ;;  %v9546_v32 = vmul.f32 %v3902_v34, %v9356_v10  ;;  %v10595_v22 = vld [vmem:[#allocation12_spill] sm:$0xff] }
 0xa77   :  { %v3857_v13 = vpop.xlane.xlu0 %3856  ;;  %v4021_v48 = vadd.f32 1e-05, %v3989_v36  ;;  %v3959_v23 = vsub.f32 %v3855_v63, %v9481_v37  ;;  %5851 = vmatmul.mubr.bf16.gmra.mxu1 %v4256_v19  ;;  %v4149_v44 = vadd.f32 %v9431_v27, %v4113_v61  ;;  %v4079_v57 = vmul.f32 %v6288_v52, %v10591_v54  ;;  %v10596_v54 = vld [vmem:[#allocation26_spill] sm:$0xff] }
 0xa78   :  { %v4022_v41 = vadd.f32 1e-05, %v3990_v1  ;;  %v3960_v33 = vsub.f32 %v3857_v13, %v9489_v40  ;;  %v4114_v5 = vmul.f32 %v9413_v29, %v4078_v11  ;;  %v4212_v35 = vmin.f32 %v4180_v26, 6.0 }
 0xa79   :  { %6299 = vrsqrt.f32 %v4021_v48  ;;  %v3991_v31 = vmul.f32 0.015625, %v3959_v23  ;;  %v4181_v42 = vmax.f32 %v4149_v44, 0.0  ;;  %v4115_v40 = vmul.f32 %v9413_v29, %v4079_v57 }
 0xa7a   :  { %v3992_v43 = vmul.f32 0.015625, %v3960_v33  ;;  %v6290_v8 = vpop.eup %6289  ;;  %6301 = vrsqrt.f32 %v4022_v41  ;;  %v3859_v50 = vpop.xlane.xlu1 %3858  ;;  %v4150_v10 = vadd.f32 %v9431_v27, %v4114_v5  ;;  %v3903_v59 = vmul.f32 64.0, %v10593_v14 }
 0xa7b   :  { %v3861_v37 = vpop.xlane.xlu0 %3860  ;;  %v4023_v34 = vadd.f32 1e-05, %v3991_v31  ;;  %v3961_v3 = vsub.f32 %v3859_v50, %v9497_v38  ;;  %v4213_v0 = vmin.f32 %v4181_v42, 6.0  ;;  %v4151_v4 = vadd.f32 %v9431_v27, %v4115_v40 }
 0xa7c   :  { %v4024_v58 = vadd.f32 1e-05, %v3992_v43  ;;  %v3962_v39 = vsub.f32 %v3861_v37, %v9512_v62  ;;  %v4182_v12 = vmax.f32 %v4150_v10, 0.0  ;;  %v4080_v46 = vmul.f32 %v6290_v8, %v10592_v7 }
 0xa7d   :  { %6303 = vrsqrt.f32 %v4023_v34  ;;  %v3993_v28 = vmul.f32 0.015625, %v3961_v3  ;;  %v4257_v30 = vpack.c.bf16 %v4213_v0, %v4212_v35  ;;  %v4183_v25 = vmax.f32 %v4151_v4, 0.0  ;;  %v10597_v35 = vld [vmem:[#allocation13_spill] sm:$0xff] }
 0xa7e   :  { %v3994_v47 = vmul.f32 0.015625, %v3962_v39  ;;  %v6292_v24 = vpop.eup %6291  ;;  %6305 = vrsqrt.f32 %v4024_v58  ;;  %v3863_v2 = vpop.xlane.xlu1 %3862  ;;  %v4214_v38 = vmin.f32 %v4182_v12, 6.0  ;;  %v4116_v55 = vmul.f32 %v9413_v29, %v4080_v46  ;;  %v10598_v4 = vld [vmem:[#allocation29_spill] sm:$0xff] }
 0xa7f   :  { %v3865_v60 = vpop.xlane.xlu0 %3864  ;;  %v6294_v15 = vpop.eup %6293  ;;  %v4025_v62 = vadd.f32 1e-05, %v3993_v28  ;;  %v3963_v56 = vsub.f32 %v3863_v2, %v9515_v53  ;;  %5854 = vmatprep.mubr.bf16.mxu1 %v4257_v30  ;;  %v4215_v17 = vmin.f32 %v4183_v25, 6.0  ;;  %v4081_v18 = vmul.f32 %v6292_v24, %v10594_v51  ;;  %v10601_v51 = vld [vmem:[#allocation16_spill] sm:$0xff] }
 0xa80   :  { %v4026_v16 = vadd.f32 1e-05, %v3994_v47  ;;  %v3964_v9 = vsub.f32 %v3865_v60, %v9518_v49  ;;  %v4082_v6 = vmul.f32 %v6294_v15, %v10595_v22  ;;  %v3935_v1 = vmul.f32 %v3903_v59, %v10593_v14  ;;  %v10599_v47 = vld [vmem:[#allocation14_spill] sm:$0xff] }
 0xa81   :  { %6307 = vrsqrt.f32 %v4025_v62  ;;  %v3995_v11 = vmul.f32 0.015625, %v3963_v56  ;;  %v4258_v53 = vpack.c.bf16 %v4215_v17, %v4214_v38  ;;  %v4117_v49 = vmul.f32 %v9413_v29, %v4081_v18  ;;  %v10600_v62 = vld [vmem:[#allocation15_spill] sm:$0xff] }
 0xa82   :  { %v3996_v36 = vmul.f32 0.015625, %v3964_v9  ;;  %v6296_v52 = vpop.eup %6295  ;;  %6309 = vrsqrt.f32 %v4026_v16  ;;  %v3867_v63 = vpop.xlane.xlu1 %3866  ;;  %v4152_v19 = vadd.f32 %v9431_v27, %v4116_v55  ;;  %v4118_v5 = vmul.f32 %v9413_v29, %v4082_v6 }
 0xa83   :  { %v3869_v13 = vpop.xlane.xlu0 %3868  ;;  %v6298_v61 = vpop.eup %6297  ;;  %v4027_v26 = vadd.f32 1e-05, %v3995_v11  ;;  %v3965_v41 = vsub.f32 %v3867_v63, %v9540_v20  ;;  %5855 = vmatmul.mubr.bf16.gmra.mxu1 %v4258_v53  ;;  %v4153_v33 = vadd.f32 %v9431_v27, %v4117_v49  ;;  %v4083_v57 = vmul.f32 %v6296_v52, %v10596_v54  ;;  %v10602_v49 = vld [vmem:[#allocation17_spill] sm:$0xff] }
 0xa84   :  { %v4028_v48 = vadd.f32 1e-05, %v3996_v36  ;;  %v3966_v23 = vsub.f32 %v3869_v13, %v9546_v32  ;;  %v4184_v44 = vmax.f32 %v4152_v19, 0.0  ;;  %v4084_v8 = vmul.f32 %v6298_v61, %v10597_v35 }
 0xa85   :  { %6311 = vrsqrt.f32 %v4027_v26  ;;  %v3997_v31 = vmul.f32 0.015625, %v3965_v41  ;;  %v4185_v42 = vmax.f32 %v4153_v33, 0.0  ;;  %v4119_v32 = vmul.f32 %v9413_v29, %v4083_v57  ;;  %v10603_v41 = vld [vmem:[#allocation18_spill] sm:$0xff] }
 0xa86   :  { %v3998_v43 = vmul.f32 0.015625, %v3966_v23  ;;  %v6300_v50 = vpop.eup %6299  ;;  %6313 = vrsqrt.f32 %v4028_v48  ;;  %v3871_v37 = vpop.xlane.xlu1 %3870  ;;  %v4216_v20 = vmin.f32 %v4184_v44, 6.0  ;;  %v4154_v3 = vadd.f32 %v9431_v27, %v4118_v5 }
 0xa87   :  { %v6302_v40 = vpop.eup %6301  ;;  %v4029_v10 = vadd.f32 1e-05, %v3997_v31  ;;  %v3967_v58 = vsub.f32 %v3871_v37, %v3935_v1  ;;  %v4217_v39 = vmin.f32 %v4185_v42, 6.0  ;;  %v4155_v0 = vadd.f32 %v9431_v27, %v4119_v32  ;;  %v10604_v37 = vld [vmem:[#allocation19_spill] sm:$0xff]  ;;  %v10605_v32 = vld [vmem:[#allocation20_spill] sm:$0xff] }
 0xa88   :  { %v4030_v34 = vadd.f32 1e-05, %v3998_v43  ;;  %v4085_v12 = vmul.f32 %v6300_v50, %v10598_v4  ;;  %v4120_v7 = vmul.f32 %v9413_v29, %v4084_v8  ;;  %v4186_v28 = vmax.f32 %v4154_v3, 0.0 }
 0xa89   :  { %6315 = vrsqrt.f32 %v4029_v10  ;;  %v3999_v46 = vmul.f32 0.015625, %v3967_v58  ;;  %v4086_v14 = vmul.f32 %v6302_v40, %v10599_v47  ;;  %v4259_v24 = vpack.c.bf16 %v4217_v39, %v4216_v20 }
 0xa8a   :  { %v6304_v59 = vpop.eup %6303  ;;  %6317 = vrsqrt.f32 %v4030_v34  ;;  %v4187_v2 = vmax.f32 %v4155_v0, 0.0  ;;  %v4121_v60 = vmul.f32 %v9413_v29, %v4085_v12  ;;  %v4218_v38 = vmin.f32 %v4186_v28, 6.0  ;;  %v10606_v28 = vld [vmem:[#allocation22_spill] sm:$0xff] }
 0xa8b   :  { %v6306_v30 = vpop.eup %6305  ;;  %v4031_v25 = vadd.f32 1e-05, %v3999_v46  ;;  %v4156_v15 = vadd.f32 %v9431_v27, %v4120_v7  ;;  %v4087_v16 = vmul.f32 %v6304_v59, %v10600_v62  ;;  %5858 = vmatprep.mubr.bf16.mxu1 %v4259_v24  ;;  %v4122_v17 = vmul.f32 %v9413_v29, %v4086_v14  ;;  %v10607_v59 = vld [vmem:[#allocation21_spill] sm:$0xff] }
 0xa8c   :  { %v4219_v56 = vmin.f32 %v4187_v2, 6.0  ;;  %v4157_v9 = vadd.f32 %v9431_v27, %v4121_v60  ;;  %v4088_v18 = vmul.f32 %v6306_v30, %v10601_v51 }
 0xa8d   :  { %6319 = vrsqrt.f32 %v4031_v25  ;;  %v4188_v55 = vmax.f32 %v4156_v15, 0.0  ;;  %v4123_v22 = vmul.f32 %v9413_v29, %v4087_v16  ;;  %v4158_v1 = vadd.f32 %v9431_v27, %v4122_v17 }
 0xa8e   :  { %v6308_v6 = vpop.eup %6307  ;;  %v4260_v11 = vpack.c.bf16 %v4219_v56, %v4218_v38  ;;  %v4189_v36 = vmax.f32 %v4157_v9, 0.0  ;;  %v4124_v52 = vmul.f32 %v9413_v29, %v4088_v18  ;;  %v10608_v9 = vld [vmem:[#allocation24_spill] sm:$0xff] }
 0xa8f   :  { %v6310_v63 = vpop.eup %6309  ;;  %v4220_v13 = vmin.f32 %v4188_v55, 6.0  ;;  %v4159_v53 = vadd.f32 %v9431_v27, %v4123_v22  ;;  %v4089_v19 = vmul.f32 %v6308_v6, %v10602_v49  ;;  %v4190_v26 = vmax.f32 %v4158_v1, 0.0 }
 0xa90   :  { %5859 = vmatmul.mubr.bf16.gmra.mxu1 %v4260_v11  ;;  %v4221_v61 = vmin.f32 %v4189_v36, 6.0  ;;  %v4160_v48 = vadd.f32 %v9431_v27, %v4124_v52  ;;  %v4090_v23 = vmul.f32 %v6310_v63, %v10603_v41 }
 0xa91   :  { %v4191_v33 = vmax.f32 %v4159_v53, 0.0  ;;  %v4125_v44 = vmul.f32 %v9413_v29, %v4089_v19  ;;  %v4222_v5 = vmin.f32 %v4190_v26, 6.0  ;;  %v4249_v19 = vld [vmem:[#allocation5 + $0x1a8] sm:$0x3] }
 0xa92   :  { %v6312_v54 = vpop.eup %6311  ;;  %v4261_v57 = vpack.c.bf16 %v4221_v61, %v4220_v13  ;;  %v4126_v31 = vmul.f32 %v9413_v29, %v4090_v23  ;;  %v4192_v50 = vmax.f32 %v4160_v48, 0.0  ;;  %v9610_v61 = vunpack.c.l.bf16 %v4249_v19  ;;  %v10609_v48 = vld [vmem:[#allocation11_spill] sm:$0xff] }
 0xa93   :  { %v6314_v43 = vpop.eup %6313  ;;  %v4223_v35 = vmin.f32 %v4191_v33, 6.0  ;;  %v4161_v8 = vadd.f32 %v9431_v27, %v4125_v44  ;;  %v4091_v42 = vmul.f32 %v6312_v54, %v10604_v37 }
 0xa94   :  { %5862 = vmatprep.mubr.bf16.mxu1 %v4261_v57  ;;  %v4162_v20 = vadd.f32 %v9431_v27, %v4126_v31  ;;  %v4092_v40 = vmul.f32 %v6314_v43, %v10605_v32  ;;  %v4224_v12 = vmin.f32 %v4192_v50, 6.0 }
 0xa95   :  { %v4262_v10 = vpack.c.bf16 %v4223_v35, %v4222_v5  ;;  %v4193_v34 = vmax.f32 %v4161_v8, 0.0  ;;  %v4127_v58 = vmul.f32 %v9413_v29, %v4091_v42 }
 0xa96   :  { %v6316_v3 = vpop.eup %6315  ;;  %v4194_v39 = vmax.f32 %v4162_v20, 0.0  ;;  %v4128_v0 = vmul.f32 %v9413_v29, %v4092_v40 }
 0xa97   :  { %v6318_v4 = vpop.eup %6317  ;;  %v4225_v7 = vmin.f32 %v4193_v34, 6.0  ;;  %v4163_v46 = vadd.f32 %v9431_v27, %v4127_v58  ;;  %v4093_v47 = vmul.f32 %v6316_v3, %v10606_v28 }
 0xa98   :  { %5863 = vmatmul.mubr.bf16.gmra.mxu1 %v4262_v10  ;;  %v4164_v14 = vadd.f32 %v9431_v27, %v4128_v0  ;;  %v4094_v24 = vmul.f32 %v6318_v4, %v10607_v59  ;;  %v4226_v38 = vmin.f32 %v4194_v39, 6.0 }
 0xa99   :  { %v4263_v2 = vpack.c.bf16 %v4225_v7, %v4224_v12  ;;  %v4195_v60 = vmax.f32 %v4163_v46, 0.0  ;;  %v4129_v30 = vmul.f32 %v9413_v29, %v4093_v47 }
 0xa9a   :  { %v6320_v25 = vpop.eup %6319  ;;  %v4130_v15 = vmul.f32 %v9413_v29, %v4094_v24  ;;  %v4196_v56 = vmax.f32 %v4164_v14, 0.0 }
 0xa9b   :  { %5866 = vmatprep.mubr.bf16.mxu1 %v4263_v2  ;;  %v4227_v62 = vmin.f32 %v4195_v60, 6.0  ;;  %v4165_v16 = vadd.f32 %v9431_v27, %v4129_v30  ;;  %v4095_v17 = vmul.f32 %v6320_v25, %v10608_v9 }
 0xa9c   :  { %v4166_v51 = vadd.f32 %v9431_v27, %v4130_v15  ;;  %v4228_v6 = vmin.f32 %v4196_v56, 6.0 }
 0xa9d   :  { %v4264_v18 = vpack.c.bf16 %v4227_v62, %v4226_v38  ;;  %v4197_v55 = vmax.f32 %v4165_v16, 0.0  ;;  %v4131_v22 = vmul.f32 %v9413_v29, %v4095_v17  ;;  %v9614_v29 = vrot.slane %v9610_v61, %v10609_v48 }
 0xa9e   :  { %v4198_v1 = vmax.f32 %v4166_v51, 0.0 }
 0xa9f   :  { %v4229_v11 = vmin.f32 %v4197_v55, 6.0  ;;  %v4167_v36 = vadd.f32 %v9431_v27, %v4131_v22 }
 0xaa0   :  { %5867 = vmatmul.mubr.bf16.gmra.mxu1 %v4264_v18  ;;  %v4230_v13 = vmin.f32 %v4198_v1, 6.0 }
 0xaa1   :  { %v4265_v52 = vpack.c.bf16 %v4229_v11, %v4228_v6  ;;  %v4199_v63 = vmax.f32 %v4167_v36, 0.0 }
 0xaa3   :  { %5870 = vmatprep.mubr.bf16.mxu1 %v4265_v52  ;;  %v4231_v53 = vmin.f32 %v4199_v63, 6.0 }
 0xaa5   :  { %v4266_v49 = vpack.c.bf16 %v4231_v53, %v4230_v13 }
 0xaa8   :  { %5871 = vmatmul.mubr.bf16.gmra.mxu1 %v4266_v49 }
 0xb22   :  { %v5844_v26 = vpop.f32.mrf.mxu1 }
 0xb23   :  { %v9621_v44 = vadd.f32 %v5844_v26, %v9614_v29 }
 0xb24   :  { %v4353_v41 = vpop.f32.mrf.mxu1 }
 0xb25   :  { %v9617_v27 = vadd.f32 %v4353_v41, %v9614_v29 }
 0xb26   :  { %v5845_v23 = vpop.f32.mrf.mxu1 }
 0xb27   :  { %4480 = vadd.xlane.f32.xlu0 %v9617_v27  ;;  %v9629_v57 = vadd.f32 %v5845_v23, %v9614_v29 }
 0xb28   :  { %v4356_v33 = vpop.f32.mrf.mxu1 }
 0xb29   :  { %v9624_v54 = vadd.f32 %v4356_v33, %v9614_v29 }
 0xb2b   :  { %4482 = vadd.xlane.f32.xlu1 %v9624_v54  ;;  %4484 = vadd.xlane.f32.xlu0 %v9621_v44 }
 0xb2e   :  { %v5848_v5 = vpop.f32.mrf.mxu1 }
 0xb2f   :  { %4486 = vadd.xlane.f32.xlu1 %v9629_v57  ;;  %v9637_v50 = vadd.f32 %v5848_v5, %v9614_v29 }
 0xb30   :  { %v4369_v31 = vpop.f32.mrf.mxu1 }
 0xb31   :  { %v9633_v43 = vadd.f32 %v4369_v31, %v9614_v29  ;;  %v5993_v31 = vld [vmem:[#allocation5 + $0x1e8] sm:$0xff]  }
 0xb32   :  { %v5849_v35 = vpop.f32.mrf.mxu1  ;;  %5874 = vmatprep.subr.bf16.mxu0 %v5993_v31 }
 0xb33   :  { %4488 = vadd.xlane.f32.xlu0 %v9633_v43  ;;  %v9645_v42 = vadd.f32 %v5849_v35, %v9614_v29  ;;  %v5994_v35 = vld [vmem:[#allocation5 + $0x1e0] sm:$0xff]   ;;  %5875 = vmatpush3.bf16.msra.mxu0 %v5993_v31 }
 0xb34   :  { %v4372_v8 = vpop.f32.mrf.mxu1  ;;  %5876 = vmatprep.subr.bf16.mxu0 %v5994_v35 }
 0xb35   :  { %v9640_v37 = vadd.f32 %v4372_v8, %v9614_v29  ;;  %v5995_v8 = vld [vmem:[#allocation5 + $0x1d8] sm:$0xff]  }
 0xb37   :  { %4490 = vadd.xlane.f32.xlu1 %v9640_v37  ;;  %4492 = vadd.xlane.f32.xlu0 %v9637_v50  ;;  %v5852_v20 = vpop.f32.mrf.mxu1 }
 0xb38   :  { %v9653_v58 = vadd.f32 %v5852_v20, %v9614_v29  ;;  %5877 = vmatpush3.bf16.msra.mxu0 %v5994_v35  ;;  %v5996_v20 = vld [vmem:[#allocation5 + $0x1d0] sm:$0xff]  }
 0xb39   :  { %v4385_v32 = vpop.f32.mrf.mxu1  ;;  %5878 = vmatprep.subr.bf16.mxu0 %v5995_v8 }
 0xb3a   :  { %v9649_v40 = vadd.f32 %v4385_v32, %v9614_v29 }
 0xb3b   :  { %4494 = vadd.xlane.f32.xlu1 %v9645_v42  ;;  %v5853_v10 = vpop.f32.mrf.mxu1 }
 0xb3c   :  { %4496 = vadd.xlane.f32.xlu0 %v9649_v40  ;;  %v9661_v39 = vadd.f32 %v5853_v10, %v9614_v29  ;;  %5879 = vmatpush3.bf16.msra.mxu0 %v5995_v8 }
 0xb3d   :  { %v4388_v34 = vpop.f32.mrf.mxu1  ;;  %5880 = vmatprep.subr.bf16.mxu0 %v5996_v20 }
 0xb3e   :  { %v9656_v3 = vadd.f32 %v4388_v34, %v9614_v29 }
 0xb40   :  { %4498 = vadd.xlane.f32.xlu1 %v9656_v3  ;;  %4500 = vadd.xlane.f32.xlu0 %v9653_v58 }
 0xb41   :  { %5881 = vmatpush3.bf16.msra.mxu0 %v5996_v20 }
 0xb43   :  { %v5856_v0 = vpop.f32.mrf.mxu1 }
 0xb44   :  { %4502 = vadd.xlane.f32.xlu1 %v9661_v39  ;;  %v9669_v28 = vadd.f32 %v5856_v0, %v9614_v29 }
 0xb45   :  { %v4401_v4 = vpop.f32.mrf.mxu1 }
 0xb46   :  { %v9665_v12 = vadd.f32 %v4401_v4, %v9614_v29 }
 0xb47   :  { %v5857_v7 = vpop.f32.mrf.mxu1 }
 0xb48   :  { %4504 = vadd.xlane.f32.xlu0 %v9665_v12  ;;  %v9677_v14 = vadd.f32 %v5857_v7, %v9614_v29 }
 0xb49   :  { %v4404_v46 = vpop.f32.mrf.mxu1 }
 0xb4a   :  { %v9672_v47 = vadd.f32 %v4404_v46, %v9614_v29 }
 0xb4c   :  { %4506 = vadd.xlane.f32.xlu1 %v9672_v47  ;;  %4508 = vadd.xlane.f32.xlu0 %v9669_v28 }
 0xb50   :  { %v5860_v59 = vpop.f32.mrf.mxu1  ;;  %4510 = vadd.xlane.f32.xlu1 %v9677_v14 }
 0xb51   :  { %v9685_v25 = vadd.f32 %v5860_v59, %v9614_v29 }
 0xb52   :  { %v4417_v24 = vpop.f32.mrf.mxu1 }
 0xb53   :  { %v9681_v2 = vadd.f32 %v4417_v24, %v9614_v29 }
 0xb54   :  { %v5861_v60 = vpop.f32.mrf.mxu1 }
 0xb55   :  { %4512 = vadd.xlane.f32.xlu0 %v9681_v2  ;;  %v9693_v16 = vadd.f32 %v5861_v60, %v9614_v29 }
 0xb56   :  { %v4420_v30 = vpop.f32.mrf.mxu1 }
 0xb57   :  { %v9688_v38 = vadd.f32 %v4420_v30, %v9614_v29 }
 0xb58   :  { %v5864_v15 = vpop.f32.mrf.mxu1 }
 0xb59   :  { %4514 = vadd.xlane.f32.xlu1 %v9688_v38  ;;  %4516 = vadd.xlane.f32.xlu0 %v9685_v25  ;;  %v9701_v51 = vadd.f32 %v5864_v15, %v9614_v29 }
 0xb5a   :  { %v4433_v62 = vpop.f32.mrf.mxu1 }
 0xb5b   :  { %v9696_v56 = vadd.f32 %v4433_v62, %v9614_v29 }
 0xb5c   :  { %v5865_v9 = vpop.f32.mrf.mxu1 }
 0xb5d   :  { %4518 = vadd.xlane.f32.xlu1 %v9693_v16  ;;  %4520 = vadd.xlane.f32.xlu0 %v9696_v56  ;;  %v9709_v6 = vadd.f32 %v5865_v9, %v9614_v29 }
 0xb5e   :  { %v4436_v17 = vpop.f32.mrf.mxu1 }
 0xb5f   :  { %v9704_v18 = vadd.f32 %v4436_v17, %v9614_v29 }
 0xb60   :  { %v5868_v55 = vpop.f32.mrf.mxu1 }
 0xb61   :  { %4522 = vadd.xlane.f32.xlu1 %v9704_v18  ;;  %4524 = vadd.xlane.f32.xlu0 %v9701_v51  ;;  %v9717_v52 = vadd.f32 %v5868_v55, %v9614_v29 }
 0xb62   :  { %v4449_v22 = vpop.f32.mrf.mxu1 }
 0xb63   :  { %v9712_v11 = vadd.f32 %v4449_v22, %v9614_v29 }
 0xb64   :  { %v5869_v36 = vpop.f32.mrf.mxu1 }
 0xb65   :  { %4526 = vadd.xlane.f32.xlu1 %v9709_v6  ;;  %4528 = vadd.xlane.f32.xlu0 %v9712_v11  ;;  %v9725_v49 = vadd.f32 %v5869_v36, %v9614_v29 }
 0xb66   :  { %v4452_v1 = vpop.f32.mrf.mxu1 }
 0xb67   :  { %v9720_v63 = vadd.f32 %v4452_v1, %v9614_v29 }
 0xb68   :  { %v5872_v13 = vpop.f32.mrf.mxu1 }
 0xb69   :  { %4530 = vadd.xlane.f32.xlu1 %v9720_v63  ;;  %4532 = vadd.xlane.f32.xlu0 %v9717_v52  ;;  %v9733_v23 = vadd.f32 %v5872_v13, %v9614_v29 }
 0xb6a   :  { %v4465_v53 = vpop.f32.mrf.mxu1 }
 0xb6b   :  { %v9728_v19 = vadd.f32 %v4465_v53, %v9614_v29 }
 0xb6c   :  { %v5873_v26 = vpop.f32.mrf.mxu1 }
 0xb6d   :  { %4534 = vadd.xlane.f32.xlu1 %v9725_v49  ;;  %4536 = vadd.xlane.f32.xlu0 %v9728_v19  ;;  %v9741_v5 = vadd.f32 %v5873_v26, %v9614_v29 }
 0xb6e   :  { %v4468_v41 = vpop.f32.mrf.mxu1 }
 0xb6f   :  { %v9736_v33 = vadd.f32 %v4468_v41, %v9614_v29 }
 0xb71   :  { %4538 = vadd.xlane.f32.xlu1 %v9736_v33  ;;  %4540 = vadd.xlane.f32.xlu0 %v9733_v23 }
 0xb75   :  { %4542 = vadd.xlane.f32.xlu1 %v9741_v5 }
 0xbb0   :  { %v4481_v32 = vpop.xlane.xlu0 %4480 }
 0xbb1   :  { %v9744_v10 = vmul.f32 0.03125, %v4481_v32 }
 0xbb3   :  { %v9748_v29 = vsub.f32 %v9617_v27, %v9744_v10 }
 0xbb4   :  { %v4483_v34 = vpop.xlane.xlu1 %4482  ;;  %v4485_v0 = vpop.xlane.xlu0 %4484 }
 0xbb5   :  { %v9750_v4 = vmul.f32 0.03125, %v4483_v34  ;;  %v9752_v7 = vmul.f32 0.03125, %v4485_v0  ;;  %v4608_v46 = vmul.f32 %v9748_v29, %v9748_v29 }
 0xbb7   :  { %v9758_v59 = vsub.f32 %v9624_v54, %v9750_v4  ;;  %v9762_v24 = vsub.f32 %v9621_v44, %v9752_v7  ;;  %4640 = vadd.xlane.f32.xlu0 %v4608_v46 }
 0xbb8   :  { %v4487_v27 = vpop.xlane.xlu1 %4486 }
 0xbb9   :  { %v9764_v60 = vmul.f32 0.03125, %v4487_v27  ;;  %v4609_v30 = vmul.f32 %v9758_v59, %v9758_v59  ;;  %v4610_v15 = vmul.f32 %v9762_v24, %v9762_v24 }
 0xbbb   :  { %v9772_v62 = vsub.f32 %v9629_v57, %v9764_v60  ;;  %4642 = vadd.xlane.f32.xlu1 %v4609_v30  ;;  %4644 = vadd.xlane.f32.xlu0 %v4610_v15 }
 0xbbc   :  { %v4489_v54 = vpop.xlane.xlu0 %4488 }
 0xbbd   :  { %v9774_v9 = vmul.f32 0.03125, %v4489_v54  ;;  %v4611_v44 = vmul.f32 %v9772_v62, %v9772_v62 }
 0xbbf   :  { %v9780_v17 = vsub.f32 %v9633_v43, %v9774_v9  ;;  %4646 = vadd.xlane.f32.xlu1 %v4611_v44 }
 0xbc0   :  { %v4491_v55 = vpop.xlane.xlu1 %4490  ;;  %v4493_v22 = vpop.xlane.xlu0 %4492 }
 0xbc1   :  { %v9782_v36 = vmul.f32 0.03125, %v4491_v55  ;;  %v9784_v1 = vmul.f32 0.03125, %v4493_v22  ;;  %v4612_v57 = vmul.f32 %v9780_v17, %v9780_v17 }
 0xbc3   :  { %v9790_v13 = vsub.f32 %v9640_v37, %v9782_v36  ;;  %v9794_v53 = vsub.f32 %v9637_v50, %v9784_v1  ;;  %4648 = vadd.xlane.f32.xlu0 %v4612_v57 }
 0xbc4   :  { %v4495_v43 = vpop.xlane.xlu1 %4494 }
 0xbc5   :  { %v9796_v26 = vmul.f32 0.03125, %v4495_v43  ;;  %v4613_v41 = vmul.f32 %v9790_v13, %v9790_v13  ;;  %v4614_v31 = vmul.f32 %v9794_v53, %v9794_v53  ;;  %v4497_v37 = vpop.xlane.xlu0 %4496 }
 0xbc6   :  { %v9806_v8 = vmul.f32 0.03125, %v4497_v37 }
 0xbc7   :  { %v9804_v35 = vsub.f32 %v9645_v42, %v9796_v26  ;;  %4650 = vadd.xlane.f32.xlu1 %v4613_v41  ;;  %4652 = vadd.xlane.f32.xlu0 %v4614_v31 }
 0xbc8   :  { %v9812_v20 = vsub.f32 %v9649_v40, %v9806_v8 }
 0xbc9   :  { %v4615_v50 = vmul.f32 %v9804_v35, %v9804_v35  ;;  %v4499_v32 = vpop.xlane.xlu1 %4498  ;;  %v4501_v34 = vpop.xlane.xlu0 %4500 }
 0xbca   :  { %v9814_v0 = vmul.f32 0.03125, %v4499_v32  ;;  %v9816_v46 = vmul.f32 0.03125, %v4501_v34  ;;  %v4616_v42 = vmul.f32 %v9812_v20, %v9812_v20 }
 0xbcb   :  { %4654 = vadd.xlane.f32.xlu1 %v4615_v50 }
 0xbcc   :  { %v9822_v27 = vsub.f32 %v9656_v3, %v9814_v0  ;;  %v9826_v30 = vsub.f32 %v9653_v58, %v9816_v46  ;;  %4656 = vadd.xlane.f32.xlu0 %v4616_v42 }
 0xbcd   :  { %v4503_v40 = vpop.xlane.xlu1 %4502 }
 0xbce   :  { %v9828_v15 = vmul.f32 0.03125, %v4503_v40  ;;  %v4617_v54 = vmul.f32 %v9822_v27, %v9822_v27  ;;  %v4618_v44 = vmul.f32 %v9826_v30, %v9826_v30 }
 0xbd0   :  { %v9836_v55 = vsub.f32 %v9661_v39, %v9828_v15  ;;  %4658 = vadd.xlane.f32.xlu1 %v4617_v54  ;;  %4660 = vadd.xlane.f32.xlu0 %v4618_v44  ;;  %v5998_v44 = vld [vmem:[#allocation5 + $0x1c0] sm:$0xff]  }
 0xbd1   :  { %v4505_v3 = vpop.xlane.xlu0 %4504 }
 0xbd2   :  { %v9838_v22 = vmul.f32 0.03125, %v4505_v3  ;;  %v4619_v58 = vmul.f32 %v9836_v55, %v9836_v55 }
 0xbd4   :  { %v9844_v57 = vsub.f32 %v9665_v12, %v9838_v22  ;;  %4662 = vadd.xlane.f32.xlu1 %v4619_v58  ;;  %v5997_v12 = vld [vmem:[#allocation5 + $0x1c8] sm:$0xff]  }
 0xbd5   :  { %v4507_v43 = vpop.xlane.xlu1 %4506  ;;  %v4509_v41 = vpop.xlane.xlu0 %4508  ;;  %5882 = vmatprep.subr.bf16.mxu0 %v5997_v12 }
 0xbd6   :  { %v9846_v31 = vmul.f32 0.03125, %v4507_v43  ;;  %v9848_v37 = vmul.f32 0.03125, %v4509_v41  ;;  %v4620_v39 = vmul.f32 %v9844_v57, %v9844_v57  ;;  %5883 = vmatpush3.bf16.msra.mxu0 %v5997_v12  ;;  %v5999_v12 = vld [vmem:[#allocation5 + $0x1b8] sm:$0xff]  }
 0xbd7   :  { %5884 = vmatprep.subr.bf16.mxu0 %v5998_v44 }
 0xbd8   :  { %v9854_v50 = vsub.f32 %v9672_v47, %v9846_v31  ;;  %v9858_v32 = vsub.f32 %v9669_v28, %v9848_v37  ;;  %4664 = vadd.xlane.f32.xlu0 %v4620_v39 }
 0xbd9   :  { %v4511_v34 = vpop.xlane.xlu1 %4510 }
 0xbda   :  { %10610 = vst [vmem:[#allocation25_spill] sm:$0xff] %v9854_v50  ;;  %10611 = vst [vmem:[#allocation27_spill] sm:$0xff] %v9858_v32  ;;  %v9860_v42 = vmul.f32 0.03125, %v4511_v34  ;;  %v4621_v40 = vmul.f32 %v9854_v50, %v9854_v50  ;;  %v4622_v54 = vmul.f32 %v9858_v32, %v9858_v32  ;;  %5885 = vmatpush3.bf16.msra.mxu0 %v5998_v44 }
 0xbdb   :  { %5886 = vmatprep.subr.bf16.mxu0 %v5999_v12 }
 0xbdc   :  { %v9868_v47 = vsub.f32 %v9677_v14, %v9860_v42  ;;  %4666 = vadd.xlane.f32.xlu1 %v4621_v40  ;;  %4668 = vadd.xlane.f32.xlu0 %v4622_v54 }
 0xbde   :  { %10612 = vst [vmem:[#allocation28_spill] sm:$0xff] %v9868_v47  ;;  %v4513_v28 = vpop.xlane.xlu0 %4512  ;;  %v4623_v58 = vmul.f32 %v9868_v47, %v9868_v47  ;;  %5887 = vmatpush3.bf16.msra.mxu0 %v5999_v12 }
 0xbdf   :  { %v9870_v3 = vmul.f32 0.03125, %v4513_v28 }
 0xbe0   :  { %4670 = vadd.xlane.f32.xlu1 %v4623_v58 }
 0xbe1   :  { %v9876_v43 = vsub.f32 %v9681_v2, %v9870_v3 }
 0xbe2   :  { %v4515_v41 = vpop.xlane.xlu1 %4514  ;;  %v4517_v39 = vpop.xlane.xlu0 %4516 }
 0xbe3   :  { %10613 = vst [vmem:[#allocation30_spill] sm:$0xff] %v9876_v43  ;;  %v9878_v14 = vmul.f32 0.03125, %v4515_v41  ;;  %v9880_v34 = vmul.f32 0.03125, %v4517_v39  ;;  %v4624_v40 = vmul.f32 %v9876_v43, %v9876_v43 }
 0xbe5   :  { %v9886_v54 = vsub.f32 %v9688_v38, %v9878_v14  ;;  %v9890_v2 = vsub.f32 %v9685_v25, %v9880_v34  ;;  %4672 = vadd.xlane.f32.xlu0 %v4624_v40 }
 0xbe6   :  { %v4519_v44 = vpop.xlane.xlu1 %4518  ;;  %v4521_v28 = vpop.xlane.xlu0 %4520 }
 0xbe7   :  { %10614 = vst [vmem:[#allocation31_spill] sm:$0xff] %v9886_v54  ;;  %10615 = vst [vmem:[#allocation32_spill] sm:$0xff] %v9890_v2  ;;  %v9892_v58 = vmul.f32 0.03125, %v4519_v44  ;;  %v9894_v41 = vmul.f32 0.03125, %v4521_v28  ;;  %v4625_v39 = vmul.f32 %v9886_v54, %v9886_v54  ;;  %v4626_v48 = vmul.f32 %v9890_v2, %v9890_v2 }
 0xbe9   :  { %v9902_v38 = vsub.f32 %v9693_v16, %v9892_v58  ;;  %v9906_v25 = vsub.f32 %v9696_v56, %v9894_v41  ;;  %4674 = vadd.xlane.f32.xlu1 %v4625_v39  ;;  %4676 = vadd.xlane.f32.xlu0 %v4626_v48 }
 0xbea   :  { %v4523_v12 = vpop.xlane.xlu1 %4522  ;;  %v4525_v40 = vpop.xlane.xlu0 %4524 }
 0xbeb   :  { %10616 = vst [vmem:[#allocation23_spill] sm:$0xff] %v9902_v38  ;;  %10617 = vst [vmem:[#allocation33_spill] sm:$0xff] %v9906_v25  ;;  %v9908_v44 = vmul.f32 0.03125, %v4523_v12  ;;  %v9910_v28 = vmul.f32 0.03125, %v4525_v40  ;;  %v4627_v54 = vmul.f32 %v9902_v38, %v9902_v38  ;;  %v4628_v2 = vmul.f32 %v9906_v25, %v9906_v25  ;;  %v6000_v12 = vld [vmem:[#allocation5 + $0x1b0] sm:$0xff]  }
 0xbec   :  { %5888 = vmatprep.subr.bf16.mxu0 %v6000_v12 }
 0xbed   :  { %v9918_v16 = vsub.f32 %v9704_v18, %v9908_v44  ;;  %v9922_v56 = vsub.f32 %v9701_v51, %v9910_v28  ;;  %4678 = vadd.xlane.f32.xlu1 %v4627_v54  ;;  %4680 = vadd.xlane.f32.xlu0 %v4628_v2 }
 0xbee   :  { %v4527_v48 = vpop.xlane.xlu1 %4526  ;;  %v4529_v39 = vpop.xlane.xlu0 %4528  ;;  %5889 = vmatpush3.bf16.msra.mxu0 %v6000_v12 }
 0xbef   :  { %10618 = vst [vmem:[#allocation12_spill] sm:$0xff] %v9918_v16  ;;  %10619 = vst [vmem:[#allocation26_spill] sm:$0xff] %v9922_v56  ;;  %v9924_v40 = vmul.f32 0.03125, %v4527_v48  ;;  %v9926_v43 = vmul.f32 0.03125, %v4529_v39  ;;  %v4629_v25 = vmul.f32 %v9918_v16, %v9918_v16  ;;  %v4630_v18 = vmul.f32 %v9922_v56, %v9922_v56 }
 0xbf1   :  { %v9934_v51 = vsub.f32 %v9709_v6, %v9924_v40  ;;  %v9938_v54 = vsub.f32 %v9712_v11, %v9926_v43  ;;  %4682 = vadd.xlane.f32.xlu1 %v4629_v25  ;;  %4684 = vadd.xlane.f32.xlu0 %v4630_v18 }
 0xbf2   :  { %v4531_v2 = vpop.xlane.xlu1 %4530  ;;  %v4533_v48 = vpop.xlane.xlu0 %4532 }
 0xbf3   :  { %10620 = vst [vmem:[#allocation13_spill] sm:$0xff] %v9934_v51  ;;  %10621 = vst [vmem:[#allocation29_spill] sm:$0xff] %v9938_v54  ;;  %v9940_v39 = vmul.f32 0.03125, %v4531_v2  ;;  %v9942_v16 = vmul.f32 0.03125, %v4533_v48  ;;  %v4631_v56 = vmul.f32 %v9934_v51, %v9934_v51  ;;  %v4632_v6 = vmul.f32 %v9938_v54, %v9938_v54 }
 0xbf5   :  { %v9950_v38 = vsub.f32 %v9720_v63, %v9940_v39  ;;  %v9954_v11 = vsub.f32 %v9717_v52, %v9942_v16  ;;  %4686 = vadd.xlane.f32.xlu1 %v4631_v56  ;;  %4688 = vadd.xlane.f32.xlu0 %v4632_v6 }
 0xbf6   :  { %v4535_v25 = vpop.xlane.xlu1 %4534  ;;  %v4537_v12 = vpop.xlane.xlu0 %4536 }
 0xbf7   :  { %10622 = vst [vmem:[#allocation14_spill] sm:$0xff] %v9950_v38  ;;  %10623 = vst [vmem:[#allocation15_spill] sm:$0xff] %v9954_v11  ;;  %v9956_v18 = vmul.f32 0.03125, %v4535_v25  ;;  %v9958_v2 = vmul.f32 0.03125, %v4537_v12  ;;  %v4633_v48 = vmul.f32 %v9950_v38, %v9950_v38  ;;  %v4634_v54 = vmul.f32 %v9954_v11, %v9954_v11 }
 0xbf9   :  { %v9966_v63 = vsub.f32 %v9725_v49, %v9956_v18  ;;  %v9970_v52 = vsub.f32 %v9728_v19, %v9958_v2  ;;  %4690 = vadd.xlane.f32.xlu1 %v4633_v48  ;;  %4692 = vadd.xlane.f32.xlu0 %v4634_v54 }
 0xbfa   :  { %v4539_v56 = vpop.xlane.xlu1 %4538  ;;  %v4541_v6 = vpop.xlane.xlu0 %4540 }
 0xbfb   :  { %10624 = vst [vmem:[#allocation16_spill] sm:$0xff] %v9966_v63  ;;  %10625 = vst [vmem:[#allocation17_spill] sm:$0xff] %v9970_v52  ;;  %v9972_v25 = vmul.f32 0.03125, %v4539_v56  ;;  %v9974_v12 = vmul.f32 0.03125, %v4541_v6  ;;  %v4635_v38 = vmul.f32 %v9966_v63, %v9966_v63  ;;  %v4636_v11 = vmul.f32 %v9970_v52, %v9970_v52 }
 0xbfd   :  { %v9982_v49 = vsub.f32 %v9736_v33, %v9972_v25  ;;  %v9986_v19 = vsub.f32 %v9733_v23, %v9974_v12  ;;  %4694 = vadd.xlane.f32.xlu1 %v4635_v38  ;;  %4696 = vadd.xlane.f32.xlu0 %v4636_v11  ;;  %v4704_v33 = vmul.f32 96.0, %v9744_v10  ;;  %v4705_v11 = vmul.f32 96.0, %v9750_v4 }
 0xbfe   :  { %v4543_v54 = vpop.xlane.xlu1 %4542 }
 0xbff   :  { %10626 = vst [vmem:[#allocation18_spill] sm:$0xff] %v9982_v49  ;;  %10627 = vst [vmem:[#allocation19_spill] sm:$0xff] %v9986_v19  ;;  %v9988_v48 = vmul.f32 0.03125, %v4543_v54  ;;  %v4637_v56 = vmul.f32 %v9982_v49, %v9982_v49  ;;  %v4638_v6 = vmul.f32 %v9986_v19, %v9986_v19  ;;  %v4736_v38 = vmul.f32 %v4704_v33, %v9744_v10 }
 0xc00   :  { %v4706_v54 = vmul.f32 96.0, %v9752_v7  ;;  %v4708_v10 = vmul.f32 96.0, %v9774_v9 }
 0xc01   :  { %10628 = vst [vmem:[#allocation20_spill] sm:$0xff] %v9988_v48  ;;  %v9996_v52 = vsub.f32 %v9741_v5, %v9988_v48  ;;  %4698 = vadd.xlane.f32.xlu1 %v4637_v56  ;;  %4700 = vadd.xlane.f32.xlu0 %v4638_v6  ;;  %v4737_v5 = vmul.f32 %v4705_v11, %v9750_v4  ;;  %v4707_v6 = vmul.f32 96.0, %v9764_v60 }
 0xc02   :  { %v4738_v56 = vmul.f32 %v4706_v54, %v9752_v7  ;;  %v4740_v7 = vmul.f32 %v4708_v10, %v9774_v9  ;;  %v4709_v54 = vmul.f32 96.0, %v9782_v36 }
 0xc03   :  { %10629 = vst [vmem:[#allocation22_spill] sm:$0xff] %v9996_v52  ;;  %v4639_v23 = vmul.f32 %v9996_v52, %v9996_v52  ;;  %v4739_v50 = vmul.f32 %v4707_v6, %v9764_v60  ;;  %v4712_v60 = vmul.f32 96.0, %v9806_v8 }
 0xc05   :  { %4702 = vadd.xlane.f32.xlu1 %v4639_v23 }
 0xc40   :  { %v4641_v49 = vpop.xlane.xlu0 %4640 }
 0xc41   :  { %v4768_v19 = vsub.f32 %v4641_v49, %v4736_v38 }
 0xc43   :  { %v4800_v63 = vmul.f32 0.03125, %v4768_v19 }
 0xc44   :  { %v4643_v51 = vpop.xlane.xlu1 %4642  ;;  %v4645_v52 = vpop.xlane.xlu0 %4644 }
 0xc45   :  { %v4832_v23 = vadd.f32 1e-05, %v4800_v63  ;;  %v4769_v48 = vsub.f32 %v4643_v51, %v4737_v5  ;;  %v4770_v47 = vsub.f32 %v4645_v52, %v4738_v56  ;;  %v4710_v51 = vmul.f32 96.0, %v9784_v1 }
 0xc46   :  { %v4711_v52 = vmul.f32 96.0, %v9796_v26 }
 0xc47   :  { %6321 = vrsqrt.f32 %v4832_v23  ;;  %v4801_v33 = vmul.f32 0.03125, %v4769_v48  ;;  %v4802_v32 = vmul.f32 0.03125, %v4770_v47  ;;  %v4742_v9 = vmul.f32 %v4710_v51, %v9784_v1 }
 0xc48   :  { %v4647_v49 = vpop.xlane.xlu1 %4646  ;;  %v4743_v6 = vmul.f32 %v4711_v52, %v9796_v26  ;;  %v4713_v23 = vmul.f32 96.0, %v9814_v0  ;;  %v10025_v26 = vrot.slane %v9610_v61, %v6920_v45  ;;  %v4719_v52 = vmul.f32 96.0, %v9860_v42 }
 0xc49   :  { %v4833_v19 = vadd.f32 1e-05, %v4801_v33  ;;  %v4834_v38 = vadd.f32 1e-05, %v4802_v32  ;;  %v4771_v4 = vsub.f32 %v4647_v49, %v4739_v50  ;;  %v4741_v50 = vmul.f32 %v4709_v54, %v9782_v36 }
 0xc4a   :  { %v4717_v36 = vmul.f32 96.0, %v9846_v31 }
 0xc4b   :  { %6323 = vrsqrt.f32 %v4833_v19  ;;  %v4803_v11 = vmul.f32 0.03125, %v4771_v4  ;;  %v4744_v19 = vmul.f32 %v4712_v60, %v9806_v8  ;;  %v4715_v4 = vmul.f32 96.0, %v9828_v15 }
 0xc4c   :  { %6325 = vrsqrt.f32 %v4834_v38  ;;  %v4649_v63 = vpop.xlane.xlu0 %4648  ;;  %v4714_v38 = vmul.f32 96.0, %v9816_v46  ;;  %v4718_v8 = vmul.f32 96.0, %v9848_v37 }
 0xc4d   :  { %v4835_v48 = vadd.f32 1e-05, %v4803_v11  ;;  %v4772_v47 = vsub.f32 %v4649_v63, %v4740_v7  ;;  %v4716_v7 = vmul.f32 96.0, %v9838_v22  ;;  %v4745_v63 = vmul.f32 %v4713_v23, %v9814_v0 }
 0xc4e   :  { %v4746_v45 = vmul.f32 %v4714_v38, %v9816_v46  ;;  %v4720_v0 = vmul.f32 96.0, %v9870_v3  ;;  %v10046_v46 = vmul.f32 %v4718_v8, %v9848_v37  ;;  %v4722_v37 = vmul.f32 96.0, %v9880_v34 }
 0xc4f   :  { %6327 = vrsqrt.f32 %v4835_v48  ;;  %v4804_v5 = vmul.f32 0.03125, %v4772_v47  ;;  %v10032_v48 = vrot.slane %v9610_v61, %v6923_v21  ;;  %v10042_v21 = vmul.f32 %v4717_v36, %v9846_v31 }
 0xc50   :  { %v4651_v32 = vpop.xlane.xlu1 %4650  ;;  %v4653_v56 = vpop.xlane.xlu0 %4652 }
 0xc51   :  { %v4836_v10 = vadd.f32 1e-05, %v4804_v5  ;;  %v4773_v33 = vsub.f32 %v4651_v32, %v4741_v50  ;;  %v4774_v49 = vsub.f32 %v4653_v56, %v4742_v9  ;;  %v4747_v9 = vmul.f32 %v4715_v4, %v9828_v15 }
 0xc52   :  { %v10038_v32 = vmul.f32 %v4716_v7, %v9838_v22  ;;  %v10049_v15 = vmul.f32 %v4719_v52, %v9860_v42  ;;  %v10056_v7 = vmul.f32 %v4720_v0, %v9870_v3 }
 0xc53   :  { %6329 = vrsqrt.f32 %v4836_v10  ;;  %v4805_v1 = vmul.f32 0.03125, %v4773_v33  ;;  %v4806_v11 = vmul.f32 0.03125, %v4774_v49  ;;  %v4721_v33 = vmul.f32 96.0, %v9878_v14 }
 0xc54   :  { %v6322_v54 = vpop.eup %6321  ;;  %v4655_v51 = vpop.xlane.xlu1 %4654 }
 0xc55   :  { %v4837_v47 = vadd.f32 1e-05, %v4805_v1  ;;  %v4838_v60 = vadd.f32 1e-05, %v4806_v11  ;;  %v4775_v5 = vsub.f32 %v4655_v51, %v4743_v6  ;;  %v4896_v50 = vmul.f32 %v6322_v54, %v9748_v29  ;;  %v4657_v23 = vpop.xlane.xlu0 %4656 }
 0xc56   :  { %v4776_v29 = vsub.f32 %v4657_v23, %v4744_v19  ;;  %v4723_v11 = vmul.f32 96.0, %v9892_v58  ;;  %v10064_v3 = vmul.f32 %v4721_v33, %v9878_v14 }
 0xc57   :  { %6331 = vrsqrt.f32 %v4837_v47  ;;  %v4807_v56 = vmul.f32 0.03125, %v4775_v5  ;;  %v4932_v61 = vmul.f32 %v10025_v26, %v4896_v50 }
 0xc58   :  { %v6324_v6 = vpop.eup %6323  ;;  %6333 = vrsqrt.f32 %v4838_v60  ;;  %v4808_v4 = vmul.f32 0.03125, %v4776_v29  ;;  %v4724_v60 = vmul.f32 96.0, %v9894_v41  ;;  %v10073_v23 = vmul.f32 %v4723_v11, %v9892_v58 }
 0xc59   :  { %v6326_v22 = vpop.eup %6325  ;;  %v4839_v10 = vadd.f32 1e-05, %v4807_v56  ;;  %v4897_v49 = vmul.f32 %v6324_v6, %v9758_v59  ;;  %v4968_v31 = vadd.f32 %v10032_v48, %v4932_v61  ;;  %v4659_v19 = vpop.xlane.xlu1 %4658  ;;  %v4725_v58 = vmul.f32 96.0, %v9908_v44 }
 0xc5a   :  { %v4898_v38 = vmul.f32 %v6326_v22, %v9762_v24  ;;  %v4661_v42 = vpop.xlane.xlu0 %4660  ;;  %v4840_v59 = vadd.f32 1e-05, %v4808_v4  ;;  %v4777_v51 = vsub.f32 %v4659_v19, %v4745_v63  ;;  %v10070_v63 = vmul.f32 %v4722_v37, %v9880_v34 }
 0xc5b   :  { %6335 = vrsqrt.f32 %v4839_v10  ;;  %v4933_v36 = vmul.f32 %v10025_v26, %v4897_v49  ;;  %v5000_v1 = vmax.f32 %v4968_v31, 0.0  ;;  %v4778_v8 = vsub.f32 %v4661_v42, %v4746_v45 }
 0xc5c   :  { %v6328_v54 = vpop.eup %6327  ;;  %v4934_v24 = vmul.f32 %v10025_v26, %v4898_v38  ;;  %6337 = vrsqrt.f32 %v4840_v59  ;;  %v4809_v5 = vmul.f32 0.03125, %v4777_v51  ;;  %v10079_v38 = vmul.f32 %v4724_v60, %v9894_v41 }
 0xc5d   :  { %v4899_v52 = vmul.f32 %v6328_v54, %v9772_v62  ;;  %v4969_v47 = vadd.f32 %v10032_v48, %v4933_v36  ;;  %v4810_v50 = vmul.f32 0.03125, %v4778_v8  ;;  %v4663_v56 = vpop.xlane.xlu1 %4662  ;;  %v5032_v22 = vmin.f32 %v5000_v1, 6.0 }
 0xc5e   :  { %v4970_v0 = vadd.f32 %v10032_v48, %v4934_v24  ;;  %v4841_v61 = vadd.f32 1e-05, %v4809_v5  ;;  %v4779_v29 = vsub.f32 %v4663_v56, %v4747_v9  ;;  %v4726_v11 = vmul.f32 96.0, %v9910_v28 }
 0xc5f   :  { %v5001_v45 = vmax.f32 %v4969_v47, 0.0  ;;  %v4935_v62 = vmul.f32 %v10025_v26, %v4899_v52  ;;  %v4842_v6 = vadd.f32 1e-05, %v4810_v50  ;;  %v10089_v52 = vmul.f32 %v4725_v58, %v9908_v44 }
 0xc60   :  { %v6330_v14 = vpop.eup %6329  ;;  %v5002_v49 = vmax.f32 %v4970_v0, 0.0  ;;  %6339 = vrsqrt.f32 %v4841_v61  ;;  %v4811_v34 = vmul.f32 0.03125, %v4779_v29  ;;  %v4728_v56 = vmul.f32 96.0, %v9926_v43 }
 0xc61   :  { %v5033_v10 = vmin.f32 %v5001_v45, 6.0  ;;  %v4971_v33 = vadd.f32 %v10032_v48, %v4935_v62  ;;  %v4900_v31 = vmul.f32 %v6330_v14, %v9780_v17  ;;  %6341 = vrsqrt.f32 %v4842_v6  ;;  %v4665_v4 = vpop.xlane.xlu0 %4664 }
 0xc62   :  { %v4843_v36 = vadd.f32 1e-05, %v4811_v34  ;;  %v4780_v1 = vsub.f32 %v4665_v4, %v10038_v32  ;;  %v4727_v17 = vmul.f32 96.0, %v9924_v40  ;;  %v5034_v41 = vmin.f32 %v5002_v49, 6.0 }
 0xc63   :  { %v5083_v37 = vpack.c.bf16 %v5033_v10, %v5032_v22  ;;  %v5003_v19 = vmax.f32 %v4971_v33, 0.0  ;;  %v4936_v9 = vmul.f32 %v10025_v26, %v4900_v31  ;;  %v10098_v44 = vmul.f32 %v4726_v11, %v9910_v28 }
 0xc64   :  { %v6332_v42 = vpop.eup %6331  ;;  %6343 = vrsqrt.f32 %v4843_v36  ;;  %v4812_v24 = vmul.f32 0.03125, %v4780_v1  ;;  %v10102_v6 = vmul.f32 %v4727_v17, %v9924_v40  ;;  %v10107_v31 = vmul.f32 %v4728_v56, %v9926_v43 }
 0xc65   :  { %v6334_v54 = vpop.eup %6333  ;;  %5890 = vmatprep.mubr.bf16.mxu0 %v5083_v37  ;;  %v5035_v59 = vmin.f32 %v5003_v19, 6.0  ;;  %v4901_v51 = vmul.f32 %v6332_v42, %v9790_v13  ;;  %v4972_v8 = vadd.f32 %v10032_v48, %v4936_v9  ;;  %v4667_v32 = vpop.xlane.xlu1 %4666  ;;  %v4729_v34 = vmul.f32 96.0, %v9940_v39 }
 0xc66   :  { %v4902_v47 = vmul.f32 %v6334_v54, %v9794_v53  ;;  %v4669_v60 = vpop.xlane.xlu0 %4668  ;;  %v4844_v62 = vadd.f32 1e-05, %v4812_v24  ;;  %v4781_v13 = vsub.f32 %v4667_v32, %v10042_v21  ;;  %v4730_v43 = vmul.f32 96.0, %v9942_v16 }
 0xc67   :  { %v5084_v5 = vpack.c.bf16 %v5035_v59, %v5034_v41  ;;  %v4937_v50 = vmul.f32 %v10025_v26, %v4901_v51  ;;  %v5004_v0 = vmax.f32 %v4972_v8, 0.0  ;;  %v4782_v14 = vsub.f32 %v4669_v60, %v10046_v46 }
 0xc68   :  { %v6336_v45 = vpop.eup %6335  ;;  %v4938_v61 = vmul.f32 %v10025_v26, %v4902_v47  ;;  %6345 = vrsqrt.f32 %v4844_v62  ;;  %v4813_v22 = vmul.f32 0.03125, %v4781_v13  ;;  %v4731_v1 = vmul.f32 96.0, %v9956_v18 }
 0xc69   :  { %5891 = vmatmul.mubr.bf16.vlgmr.msra.gmra.mxu0 %v5084_v5  ;;  %v4973_v53 = vadd.f32 %v10032_v48, %v4937_v50  ;;  %v4903_v29 = vmul.f32 %v6336_v45, %v9804_v35  ;;  %v4814_v10 = vmul.f32 0.03125, %v4782_v14  ;;  %v6338_v33 = vpop.eup %6337  ;;  %v4671_v46 = vpop.xlane.xlu1 %4670  ;;  %v5036_v35 = vmin.f32 %v5004_v0, 6.0 }
 0xc6a   :  { %v4974_v21 = vadd.f32 %v10032_v48, %v4938_v61  ;;  %v4845_v58 = vadd.f32 1e-05, %v4813_v22  ;;  %v4783_v4 = vsub.f32 %v4671_v46, %v10049_v15  ;;  %v4904_v42 = vmul.f32 %v6338_v33, %v9812_v20 }
 0xc6b   :  { %v5005_v49 = vmax.f32 %v4973_v53, 0.0  ;;  %v4939_v28 = vmul.f32 %v10025_v26, %v4903_v29  ;;  %v4846_v40 = vadd.f32 1e-05, %v4814_v10  ;;  %v4732_v20 = vmul.f32 96.0, %v9958_v2 }
 0xc6c   :  { %v5006_v9 = vmax.f32 %v4974_v21, 0.0  ;;  %6347 = vrsqrt.f32 %v4845_v58  ;;  %v4815_v36 = vmul.f32 0.03125, %v4783_v4  ;;  %v4940_v15 = vmul.f32 %v10025_v26, %v4904_v42 }
 0xc6d   :  { %v5037_v37 = vmin.f32 %v5005_v49, 6.0  ;;  %v4975_v19 = vadd.f32 %v10032_v48, %v4939_v28  ;;  %v6340_v11 = vpop.eup %6339  ;;  %6349 = vrsqrt.f32 %v4846_v40  ;;  %v10123_v0 = vmul.f32 %v4729_v34, %v9940_v39 }
 0xc6e   :  { %v4673_v17 = vpop.xlane.xlu0 %4672  ;;  %v6342_v59 = vpop.eup %6341  ;;  %v4847_v51 = vadd.f32 1e-05, %v4815_v36  ;;  %v4905_v24 = vmul.f32 %v6340_v11, %v9822_v27  ;;  %v5038_v47 = vmin.f32 %v5006_v9, 6.0  ;;  %v4976_v60 = vadd.f32 %v10032_v48, %v4940_v15 }
 0xc6f   :  { %v5085_v54 = vpack.c.bf16 %v5037_v37, %v5036_v35  ;;  %v5007_v41 = vmax.f32 %v4975_v19, 0.0  ;;  %v4784_v8 = vsub.f32 %v4673_v17, %v10056_v7  ;;  %v4906_v5 = vmul.f32 %v6342_v59, %v9826_v30 }
 0xc70   :  { %6351 = vrsqrt.f32 %v4847_v51  ;;  %v4941_v56 = vmul.f32 %v10025_v26, %v4905_v24  ;;  %v10127_v13 = vmul.f32 %v4730_v43, %v9942_v16  ;;  %v10130_v14 = vmul.f32 %v4731_v1, %v9956_v18 }
 0xc71   :  { %5894 = vmatprep.mubr.bf16.mxu0 %v5085_v54  ;;  %v5039_v32 = vmin.f32 %v5007_v41, 6.0  ;;  %v4816_v50 = vmul.f32 0.03125, %v4784_v8  ;;  %v6344_v45 = vpop.eup %6343  ;;  %v4942_v61 = vmul.f32 %v10025_v26, %v4906_v5  ;;  %v5008_v22 = vmax.f32 %v4976_v60, 0.0  ;;  %v10631_v60 = vld [vmem:[#allocation27_spill] sm:$0xff] }
 0xc72   :  { %v4675_v7 = vpop.xlane.xlu1 %4674  ;;  %v4677_v62 = vpop.xlane.xlu0 %4676  ;;  %v4977_v29 = vadd.f32 %v10032_v48, %v4941_v56  ;;  %v10137_v10 = vmul.f32 %v4732_v20, %v9958_v2  ;;  %v4907_v16 = vmul.f32 %v6344_v45, %v9836_v55  ;;  %v4733_v58 = vmul.f32 96.0, %v9972_v25  ;;  %v10630_v20 = vld [vmem:[#allocation25_spill] sm:$0xff] }
 0xc73   :  { %v5086_v27 = vpack.c.bf16 %v5039_v32, %v5038_v47  ;;  %v4848_v30 = vadd.f32 1e-05, %v4816_v50  ;;  %v4785_v53 = vsub.f32 %v4675_v7, %v10064_v3  ;;  %v4786_v39 = vsub.f32 %v4677_v62, %v10070_v63 }
 0xc74   :  { %v4978_v21 = vadd.f32 %v10032_v48, %v4942_v61  ;;  %v5009_v46 = vmax.f32 %v4977_v29, 0.0  ;;  %v4943_v63 = vmul.f32 %v10025_v26, %v4907_v16  ;;  %v4734_v40 = vmul.f32 96.0, %v9974_v12  ;;  %v10632_v16 = vld [vmem:[#allocation28_spill] sm:$0xff] }
 0xc75   :  { %5895 = vmatmul.mubr.bf16.gmra.mxu0 %v5086_v27  ;;  %6353 = vrsqrt.f32 %v4848_v30  ;;  %v4817_v18 = vmul.f32 0.03125, %v4785_v53  ;;  %v4818_v33 = vmul.f32 0.03125, %v4786_v39  ;;  %v6346_v49 = vpop.eup %6345  ;;  %v5040_v37 = vmin.f32 %v5008_v22, 6.0 }
 0xc76   :  { %v4679_v28 = vpop.xlane.xlu1 %4678  ;;  %v4681_v3 = vpop.xlane.xlu0 %4680  ;;  %v5010_v34 = vmax.f32 %v4978_v21, 0.0  ;;  %v5041_v19 = vmin.f32 %v5009_v46, 6.0  ;;  %v4979_v9 = vadd.f32 %v10032_v48, %v4943_v63  ;;  %v4908_v42 = vmul.f32 %v6346_v49, %v9844_v57 }
 0xc77   :  { %v4849_v2 = vadd.f32 1e-05, %v4817_v18  ;;  %v4850_v4 = vadd.f32 1e-05, %v4818_v33  ;;  %v4787_v55 = vsub.f32 %v4679_v28, %v10073_v23  ;;  %v4788_v35 = vsub.f32 %v4681_v3, %v10079_v38 }
 0xc78   :  { %v5042_v1 = vmin.f32 %v5010_v34, 6.0  ;;  %v5087_v41 = vpack.c.bf16 %v5041_v19, %v5040_v37  ;;  %v5011_v15 = vmax.f32 %v4979_v9, 0.0  ;;  %v4944_v23 = vmul.f32 %v10025_v26, %v4908_v42  ;;  %v10633_v37 = vld [vmem:[#allocation30_spill] sm:$0xff] }
 0xc79   :  { %6355 = vrsqrt.f32 %v4849_v2  ;;  %v4819_v36 = vmul.f32 0.03125, %v4787_v55  ;;  %v4820_v43 = vmul.f32 0.03125, %v4788_v35  ;;  %v6348_v11 = vpop.eup %6347  ;;  %v10155_v45 = vmul.f32 %v4733_v58, %v9972_v25 }
 0xc7a   :  { %6357 = vrsqrt.f32 %v4850_v4  ;;  %v4683_v17 = vpop.xlane.xlu1 %4682  ;;  %v4685_v54 = vpop.xlane.xlu0 %4684  ;;  %5898 = vmatprep.mubr.bf16.mxu0 %v5087_v41  ;;  %v5043_v57 = vmin.f32 %v5011_v15, 6.0  ;;  %v4909_v47 = vmul.f32 %v6348_v11, %v10630_v20  ;;  %v4980_v32 = vadd.f32 %v10032_v48, %v4944_v23  ;;  %v10636_v20 = vld [vmem:[#allocation32_spill] sm:$0xff] }
 0xc7b   :  { %v6350_v59 = vpop.eup %6349  ;;  %v4851_v38 = vadd.f32 1e-05, %v4819_v36  ;;  %v4852_v51 = vadd.f32 1e-05, %v4820_v43  ;;  %v4789_v8 = vsub.f32 %v4683_v17, %v10089_v52  ;;  %v4790_v24 = vsub.f32 %v4685_v54, %v10098_v44  ;;  %v10634_v36 = vld [vmem:[#allocation20_spill] sm:$0xff] }
 0xc7c   :  { %v4910_v5 = vmul.f32 %v6350_v59, %v10631_v60  ;;  %v5088_v27 = vpack.c.bf16 %v5043_v57, %v5042_v1  ;;  %v4945_v44 = vmul.f32 %v10025_v26, %v4909_v47  ;;  %v5012_v61 = vmax.f32 %v4980_v32, 0.0 }
 0xc7d   :  { %6359 = vrsqrt.f32 %v4851_v38  ;;  %v4821_v50 = vmul.f32 0.03125, %v4789_v8  ;;  %v4822_v56 = vmul.f32 0.03125, %v4790_v24  ;;  %v6352_v7 = vpop.eup %6351  ;;  %v10161_v22 = vmul.f32 %v4734_v40, %v9974_v12  ;;  %v10635_v8 = vld [vmem:[#allocation31_spill] sm:$0xff] }
 0xc7e   :  { %6361 = vrsqrt.f32 %v4852_v51  ;;  %v4687_v62 = vpop.xlane.xlu1 %4686  ;;  %v4689_v52 = vpop.xlane.xlu0 %4688  ;;  %5899 = vmatmul.mubr.bf16.gmra.mxu0 %v5088_v27  ;;  %v4981_v25 = vadd.f32 %v10032_v48, %v4945_v44  ;;  %v4911_v21 = vmul.f32 %v6352_v7, %v10632_v16  ;;  %v4946_v18 = vmul.f32 %v10025_v26, %v4910_v5 }
 0xc7f   :  { %v4853_v30 = vadd.f32 1e-05, %v4821_v50  ;;  %v4854_v53 = vadd.f32 1e-05, %v4822_v56  ;;  %v4791_v39 = vsub.f32 %v4687_v62, %v10102_v6  ;;  %v4792_v29 = vsub.f32 %v4689_v52, %v10107_v31 }
 0xc80   :  { %v5044_v49 = vmin.f32 %v5012_v61, 6.0  ;;  %v5013_v63 = vmax.f32 %v4981_v25, 0.0  ;;  %v4947_v31 = vmul.f32 %v10025_v26, %v4911_v21  ;;  %v4982_v12 = vadd.f32 %v10032_v48, %v4946_v18 }
 0xc81   :  { %6363 = vrsqrt.f32 %v4853_v30  ;;  %v4823_v33 = vmul.f32 0.03125, %v4791_v39  ;;  %v4824_v46 = vmul.f32 0.03125, %v4792_v29  ;;  %v4735_v43 = vmul.f32 96.0, %v10634_v36  ;;  %v10637_v29 = vld [vmem:[#allocation23_spill] sm:$0xff] }
 0xc82   :  { %v6354_v28 = vpop.eup %6353  ;;  %6365 = vrsqrt.f32 %v4854_v53  ;;  %v4691_v3 = vpop.xlane.xlu1 %4690  ;;  %v5045_v4 = vmin.f32 %v5013_v63, 6.0  ;;  %v4983_v55 = vadd.f32 %v10032_v48, %v4947_v31  ;;  %v5014_v35 = vmax.f32 %v4982_v12, 0.0 }
 0xc83   :  { %v4693_v6 = vpop.xlane.xlu0 %4692  ;;  %v4855_v34 = vadd.f32 1e-05, %v4823_v33  ;;  %v4856_v58 = vadd.f32 1e-05, %v4824_v46  ;;  %v4793_v40 = vsub.f32 %v4691_v3, %v10123_v0  ;;  %v4912_v19 = vmul.f32 %v6354_v28, %v10633_v37  ;;  %v10638_v33 = vld [vmem:[#allocation33_spill] sm:$0xff] }
 0xc84   :  { %v4794_v2 = vsub.f32 %v4693_v6, %v10127_v13  ;;  %v5089_v54 = vpack.c.bf16 %v5045_v4, %v5044_v49  ;;  %v5015_v41 = vmax.f32 %v4983_v55, 0.0  ;;  %v5046_v0 = vmin.f32 %v5014_v35, 6.0 }
 0xc85   :  { %6367 = vrsqrt.f32 %v4855_v34  ;;  %v4825_v9 = vmul.f32 0.03125, %v4793_v40  ;;  %v4948_v57 = vmul.f32 %v10025_v26, %v4912_v19  ;;  %v4767_v5 = vmul.f32 %v4735_v43, %v10634_v36  ;;  %v10640_v19 = vld [vmem:[#allocation26_spill] sm:$0xff] }
 0xc86   :  { %v4826_v42 = vmul.f32 0.03125, %v4794_v2  ;;  %v6356_v1 = vpop.eup %6355  ;;  %6369 = vrsqrt.f32 %v4856_v58  ;;  %v4695_v11 = vpop.xlane.xlu1 %4694  ;;  %5902 = vmatprep.mubr.bf16.mxu0 %v5089_v54  ;;  %v5047_v51 = vmin.f32 %v5015_v41, 6.0  ;;  %v10639_v2 = vld [vmem:[#allocation12_spill] sm:$0xff] }
 0xc87   :  { %v4697_v17 = vpop.xlane.xlu0 %4696  ;;  %v6358_v15 = vpop.eup %6357  ;;  %v4857_v13 = vadd.f32 1e-05, %v4825_v9  ;;  %v4795_v59 = vsub.f32 %v4695_v11, %v10130_v14  ;;  %v4913_v24 = vmul.f32 %v6356_v1, %v10635_v8  ;;  %v4984_v62 = vadd.f32 %v10032_v48, %v4948_v57 }
 0xc88   :  { %v4858_v23 = vadd.f32 1e-05, %v4826_v42  ;;  %v4796_v38 = vsub.f32 %v4697_v17, %v10137_v10  ;;  %v4914_v47 = vmul.f32 %v6358_v15, %v10636_v20  ;;  %v5090_v14 = vpack.c.bf16 %v5047_v51, %v5046_v0  ;;  %v10641_v0 = vld [vmem:[#allocation13_spill] sm:$0xff] }
 0xc89   :  { %6371 = vrsqrt.f32 %v4857_v13  ;;  %v4827_v32 = vmul.f32 0.03125, %v4795_v59  ;;  %v4949_v10 = vmul.f32 %v10025_v26, %v4913_v24  ;;  %v5016_v39 = vmax.f32 %v4984_v62, 0.0 }
 0xc8a   :  { %v4828_v60 = vmul.f32 0.03125, %v4796_v38  ;;  %v6360_v50 = vpop.eup %6359  ;;  %6373 = vrsqrt.f32 %v4858_v23  ;;  %v4699_v56 = vpop.xlane.xlu1 %4698  ;;  %5903 = vmatmul.mubr.bf16.gmra.mxu0 %v5090_v14  ;;  %v4950_v16 = vmul.f32 %v10025_v26, %v4914_v47  ;;  %v10642_v38 = vld [vmem:[#allocation29_spill] sm:$0xff] }
 0xc8b   :  { %v4701_v7 = vpop.xlane.xlu0 %4700  ;;  %v6362_v52 = vpop.eup %6361  ;;  %v4859_v27 = vadd.f32 1e-05, %v4827_v32  ;;  %v4797_v61 = vsub.f32 %v4699_v56, %v10155_v45  ;;  %v4985_v53 = vadd.f32 %v10032_v48, %v4949_v10  ;;  %v4915_v25 = vmul.f32 %v6360_v50, %v10637_v29 }
 0xc8c   :  { %v4860_v44 = vadd.f32 1e-05, %v4828_v60  ;;  %v4798_v30 = vsub.f32 %v4701_v7, %v10161_v22  ;;  %v4916_v46 = vmul.f32 %v6362_v52, %v10638_v33  ;;  %v5048_v45 = vmin.f32 %v5016_v39, 6.0  ;;  %v10643_v7 = vld [vmem:[#allocation14_spill] sm:$0xff] }
 0xc8d   :  { %6375 = vrsqrt.f32 %v4859_v27  ;;  %v4829_v21 = vmul.f32 0.03125, %v4797_v61  ;;  %v5017_v3 = vmax.f32 %v4985_v53, 0.0  ;;  %v4951_v22 = vmul.f32 %v10025_v26, %v4915_v25  ;;  %v10644_v27 = vld [vmem:[#allocation15_spill] sm:$0xff] }
 0xc8e   :  { %v4830_v18 = vmul.f32 0.03125, %v4798_v30  ;;  %v6364_v49 = vpop.eup %6363  ;;  %6377 = vrsqrt.f32 %v4860_v44  ;;  %v4703_v28 = vpop.xlane.xlu1 %4702  ;;  %v4986_v34 = vadd.f32 %v10032_v48, %v4950_v16  ;;  %v4952_v55 = vmul.f32 %v10025_v26, %v4916_v46  ;;  %v10645_v46 = vld [vmem:[#allocation16_spill] sm:$0xff] }
 0xc8f   :  { %v6366_v6 = vpop.eup %6365  ;;  %v4861_v63 = vadd.f32 1e-05, %v4829_v21  ;;  %v4799_v12 = vsub.f32 %v4703_v28, %v4767_v5  ;;  %v5049_v58 = vmin.f32 %v5017_v3, 6.0  ;;  %v4987_v40 = vadd.f32 %v10032_v48, %v4951_v22  ;;  %v10646_v3 = vld [vmem:[#allocation17_spill] sm:$0xff] }
 0xc90   :  { %v4862_v31 = vadd.f32 1e-05, %v4830_v18  ;;  %v4917_v4 = vmul.f32 %v6364_v49, %v10639_v2  ;;  %v5018_v37 = vmax.f32 %v4986_v34, 0.0  ;;  %v4918_v9 = vmul.f32 %v6366_v6, %v10640_v19  ;;  %v10648_v19 = vld [vmem:[#allocation19_spill] sm:$0xff] }
 0xc91   :  { %6379 = vrsqrt.f32 %v4861_v63  ;;  %v4831_v35 = vmul.f32 0.03125, %v4799_v12  ;;  %v5091_v36 = vpack.c.bf16 %v5049_v58, %v5048_v45  ;;  %v5019_v43 = vmax.f32 %v4987_v40, 0.0 }
 0xc92   :  { %v6368_v42 = vpop.eup %6367  ;;  %6381 = vrsqrt.f32 %v4862_v31  ;;  %v4953_v1 = vmul.f32 %v10025_v26, %v4917_v4  ;;  %v5050_v54 = vmin.f32 %v5018_v37, 6.0  ;;  %v4988_v41 = vadd.f32 %v10032_v48, %v4952_v55  ;;  %v10647_v55 = vld [vmem:[#allocation18_spill] sm:$0xff] }
 0xc93   :  { %v6370_v11 = vpop.eup %6369  ;;  %v4863_v17 = vadd.f32 1e-05, %v4831_v35  ;;  %v4919_v15 = vmul.f32 %v6368_v42, %v10641_v0  ;;  %5906 = vmatprep.mubr.bf16.mxu0 %v5091_v36  ;;  %v5051_v13 = vmin.f32 %v5019_v43, 6.0  ;;  %v4954_v59 = vmul.f32 %v10025_v26, %v4918_v9 }
 0xc94   :  { %v4989_v23 = vadd.f32 %v10032_v48, %v4953_v1  ;;  %v4920_v51 = vmul.f32 %v6370_v11, %v10642_v38  ;;  %v5020_v8 = vmax.f32 %v4988_v41, 0.0 }
 0xc95   :  { %6383 = vrsqrt.f32 %v4863_v17  ;;  %v4955_v24 = vmul.f32 %v10025_v26, %v4919_v15  ;;  %v5092_v20 = vpack.c.bf16 %v5051_v13, %v5050_v54  ;;  %v4990_v32 = vadd.f32 %v10032_v48, %v4954_v59  ;;  %v10649_v15 = vld [vmem:[#allocation22_spill] sm:$0xff] }
 0xc96   :  { %v6372_v57 = vpop.eup %6371  ;;  %v5021_v47 = vmax.f32 %v4989_v23, 0.0  ;;  %v4956_v60 = vmul.f32 %v10025_v26, %v4920_v51  ;;  %v5052_v50 = vmin.f32 %v5020_v8, 6.0 }
 0xc97   :  { %v6374_v5 = vpop.eup %6373  ;;  %v4991_v56 = vadd.f32 %v10032_v48, %v4955_v24  ;;  %v4921_v14 = vmul.f32 %v6372_v57, %v10643_v7  ;;  %5907 = vmatmul.mubr.bf16.gmra.mxu0 %v5092_v20  ;;  %v5022_v62 = vmax.f32 %v4990_v32, 0.0 }
 0xc98   :  { %v5053_v10 = vmin.f32 %v5021_v47, 6.0  ;;  %v4992_v52 = vadd.f32 %v10032_v48, %v4956_v60  ;;  %v4922_v44 = vmul.f32 %v6374_v5, %v10644_v27 }
 0xc99   :  { %v5023_v61 = vmax.f32 %v4991_v56, 0.0  ;;  %v4957_v30 = vmul.f32 %v10025_v26, %v4921_v14  ;;  %v5054_v29 = vmin.f32 %v5022_v62, 6.0  ;;  %v5081_v56 = vld [vmem:[#allocation5 + $0x1f0] sm:$0x1]  ;;  %v10650_v14 = vld [vmem:[#allocation11_spill] sm:$0xff] }
 0xc9a   :  { %v6376_v53 = vpop.eup %6375  ;;  %v5093_v39 = vpack.c.bf16 %v5053_v10, %v5052_v50  ;;  %v4958_v25 = vmul.f32 %v10025_v26, %v4922_v44  ;;  %v5024_v33 = vmax.f32 %v4992_v52, 0.0  ;;  %v5082_v7 = vunpack.c.l.bf16 %v5081_v56 }
 0xc9b   :  { %v6378_v16 = vpop.eup %6377  ;;  %v5055_v21 = vmin.f32 %v5023_v61, 6.0  ;;  %v4993_v18 = vadd.f32 %v10032_v48, %v4957_v30  ;;  %v4923_v49 = vmul.f32 %v6376_v53, %v10645_v46 }
 0xc9c   :  { %5910 = vmatprep.mubr.bf16.mxu0 %v5093_v39  ;;  %v4994_v28 = vadd.f32 %v10032_v48, %v4958_v25  ;;  %v4924_v45 = vmul.f32 %v6378_v16, %v10646_v3  ;;  %v5056_v40 = vmin.f32 %v5024_v33, 6.0  ;;  %v10226_v10 = vrot.slane %v5082_v7, %v10650_v14 }
 0xc9d   :  { %v5094_v22 = vpack.c.bf16 %v5055_v21, %v5054_v29  ;;  %v5025_v6 = vmax.f32 %v4993_v18, 0.0  ;;  %v4959_v63 = vmul.f32 %v10025_v26, %v4923_v49 }
 0xc9e   :  { %v6380_v31 = vpop.eup %6379  ;;  %v5026_v12 = vmax.f32 %v4994_v28, 0.0  ;;  %v4960_v34 = vmul.f32 %v10025_v26, %v4924_v45 }
 0xc9f   :  { %v6382_v58 = vpop.eup %6381  ;;  %v5057_v2 = vmin.f32 %v5025_v6, 6.0  ;;  %v4995_v4 = vadd.f32 %v10032_v48, %v4959_v63  ;;  %v4925_v35 = vmul.f32 %v6380_v31, %v10647_v55  ;;  %5911 = vmatmul.mubr.bf16.gmra.mxu0 %v5094_v22 }
 0xca0   :  { %v4996_v37 = vadd.f32 %v10032_v48, %v4960_v34  ;;  %v4926_v9 = vmul.f32 %v6382_v58, %v10648_v19  ;;  %v5058_v11 = vmin.f32 %v5026_v12, 6.0 }
 0xca1   :  { %v5095_v42 = vpack.c.bf16 %v5057_v2, %v5056_v40  ;;  %v5027_v36 = vmax.f32 %v4995_v4, 0.0  ;;  %v4961_v43 = vmul.f32 %v10025_v26, %v4925_v35 }
 0xca2   :  { %v6384_v1 = vpop.eup %6383  ;;  %v4962_v17 = vmul.f32 %v10025_v26, %v4926_v9  ;;  %v5028_v0 = vmax.f32 %v4996_v37, 0.0 }
 0xca3   :  { %5914 = vmatprep.mubr.bf16.mxu0 %v5095_v42  ;;  %v5059_v54 = vmin.f32 %v5027_v36, 6.0  ;;  %v4997_v41 = vadd.f32 %v10032_v48, %v4961_v43  ;;  %v4927_v13 = vmul.f32 %v6384_v1, %v10649_v15 }
 0xca4   :  { %v4998_v23 = vadd.f32 %v10032_v48, %v4962_v17  ;;  %v5060_v8 = vmin.f32 %v5028_v0, 6.0 }
 0xca5   :  { %v5096_v59 = vpack.c.bf16 %v5059_v54, %v5058_v11  ;;  %v5029_v38 = vmax.f32 %v4997_v41, 0.0  ;;  %v4963_v51 = vmul.f32 %v10025_v26, %v4927_v13 }
 0xca6   :  { %v5030_v20 = vmax.f32 %v4998_v23, 0.0 }
 0xca7   :  { %v5061_v24 = vmin.f32 %v5029_v38, 6.0  ;;  %v4999_v57 = vadd.f32 %v10032_v48, %v4963_v51  ;;  %5915 = vmatmul.mubr.bf16.gmra.mxu0 %v5096_v59 }
 0xca8   :  { %v5062_v60 = vmin.f32 %v5030_v20, 6.0 }
 0xca9   :  { %v5097_v47 = vpack.c.bf16 %v5061_v24, %v5060_v8  ;;  %v5031_v32 = vmax.f32 %v4999_v57, 0.0 }
 0xcab   :  { %5918 = vmatprep.mubr.bf16.mxu0 %v5097_v47  ;;  %v5063_v5 = vmin.f32 %v5031_v32, 6.0 }
 0xcad   :  { %v5098_v50 = vpack.c.bf16 %v5063_v5, %v5062_v60 }
 0xcaf   :  { %5919 = vmatmul.mubr.bf16.gmra.mxu0 %v5098_v50 }
 0xd29   :  { %v5892_v62 = vpop.f32.mrf.mxu0 }
 0xd2a   :  { %v5194_v26 = vadd.f32 %v5892_v62, %v10226_v10 }
 0xd2b   :  { %v5185_v52 = vpop.f32.mrf.mxu0 }
 0xd2c   :  { %5314 = vst [vmem:[#allocation7 + $0x10] sm:$0xff] %v5194_v26  ;;  %v5186_v48 = vadd.f32 %v5185_v52, %v10226_v10 }
 0xd2d   :  { %v5893_v27 = vpop.f32.mrf.mxu0 }
 0xd2e   :  { %5312 = vst [vmem:[#allocation7] sm:$0xff] %v5186_v48  ;;  %v5197_v44 = vadd.f32 %v5893_v27, %v10226_v10 }
 0xd2f   :  { %v5188_v61 = vpop.f32.mrf.mxu0 }
 0xd30   :  { %5315 = vst [vmem:[#allocation7 + $0x18] sm:$0xff] %v5197_v44  ;;  %v5189_v30 = vadd.f32 %v5188_v61, %v10226_v10 }
 0xd32   :  { %5313 = vst [vmem:[#allocation7 + $0x8] sm:$0xff] %v5189_v30 }
 0xd35   :  { %v5896_v53 = vpop.f32.mrf.mxu0 }
 0xd36   :  { %v5210_v39 = vadd.f32 %v5896_v53, %v10226_v10 }
 0xd37   :  { %v5201_v29 = vpop.f32.mrf.mxu0 }
 0xd38   :  { %5318 = vst [vmem:[#allocation7 + $0x30] sm:$0xff] %v5210_v39  ;;  %v5202_v25 = vadd.f32 %v5201_v29, %v10226_v10 }
 0xd39   :  { %v5897_v16 = vpop.f32.mrf.mxu0 }
 0xd3a   :  { %5316 = vst [vmem:[#allocation7 + $0x20] sm:$0xff] %v5202_v25  ;;  %v5213_v21 = vadd.f32 %v5897_v16, %v10226_v10 }
 0xd3b   :  { %v5204_v18 = vpop.f32.mrf.mxu0 }
 0xd3c   :  { %5319 = vst [vmem:[#allocation7 + $0x38] sm:$0xff] %v5213_v21  ;;  %v5205_v33 = vadd.f32 %v5204_v18, %v10226_v10 }
 0xd3e   :  { %5317 = vst [vmem:[#allocation7 + $0x28] sm:$0xff] %v5205_v33  ;;  %v5900_v46 = vpop.f32.mrf.mxu0 }
 0xd3f   :  { %v5226_v49 = vadd.f32 %v5900_v46, %v10226_v10 }
 0xd40   :  { %v5217_v28 = vpop.f32.mrf.mxu0 }
 0xd41   :  { %5322 = vst [vmem:[#allocation7 + $0x50] sm:$0xff] %v5226_v49  ;;  %v5218_v3 = vadd.f32 %v5217_v28, %v10226_v10 }
 0xd42   :  { %v5901_v45 = vpop.f32.mrf.mxu0 }
 0xd43   :  { %5320 = vst [vmem:[#allocation7 + $0x40] sm:$0xff] %v5218_v3  ;;  %v5229_v22 = vadd.f32 %v5901_v45, %v10226_v10 }
 0xd44   :  { %v5220_v6 = vpop.f32.mrf.mxu0 }
 0xd45   :  { %5323 = vst [vmem:[#allocation7 + $0x58] sm:$0xff] %v5229_v22  ;;  %v5221_v63 = vadd.f32 %v5220_v6, %v10226_v10 }
 0xd47   :  { %5321 = vst [vmem:[#allocation7 + $0x48] sm:$0xff] %v5221_v63 }
 0xd4a   :  { %v5904_v31 = vpop.f32.mrf.mxu0 }
 0xd4b   :  { %v5242_v12 = vadd.f32 %v5904_v31, %v10226_v10 }
 0xd4c   :  { %v5233_v34 = vpop.f32.mrf.mxu0 }
 0xd4d   :  { %5326 = vst [vmem:[#allocation7 + $0x70] sm:$0xff] %v5242_v12  ;;  %v5234_v58 = vadd.f32 %v5233_v34, %v10226_v10 }
 0xd4e   :  { %v5905_v40 = vpop.f32.mrf.mxu0 }
 0xd4f   :  { %5324 = vst [vmem:[#allocation7 + $0x60] sm:$0xff] %v5234_v58  ;;  %v5245_v2 = vadd.f32 %v5905_v40, %v10226_v10 }
 0xd50   :  { %v5236_v4 = vpop.f32.mrf.mxu0 }
 0xd51   :  { %5327 = vst [vmem:[#allocation7 + $0x78] sm:$0xff] %v5245_v2  ;;  %v5237_v55 = vadd.f32 %v5236_v4, %v10226_v10 }
 0xd53   :  { %5325 = vst [vmem:[#allocation7 + $0x68] sm:$0xff] %v5237_v55 }
 0xd57   :  { %v5908_v35 = vpop.f32.mrf.mxu0 }
 0xd58   :  { %v5258_v37 = vadd.f32 %v5908_v35, %v10226_v10 }
 0xd59   :  { %v5249_v19 = vpop.f32.mrf.mxu0 }
 0xd5a   :  { %5330 = vst [vmem:[#allocation7 + $0x90] sm:$0xff] %v5258_v37  ;;  %v5250_v9 = vadd.f32 %v5249_v19, %v10226_v10 }
 0xd5b   :  { %v5909_v42 = vpop.f32.mrf.mxu0 }
 0xd5c   :  { %5328 = vst [vmem:[#allocation7 + $0x80] sm:$0xff] %v5250_v9  ;;  %v5261_v36 = vadd.f32 %v5909_v42, %v10226_v10 }
 0xd5d   :  { %v5252_v43 = vpop.f32.mrf.mxu0 }
 0xd5e   :  { %5331 = vst [vmem:[#allocation7 + $0x98] sm:$0xff] %v5261_v36  ;;  %v5253_v1 = vadd.f32 %v5252_v43, %v10226_v10 }
 0xd5f   :  { %v5912_v11 = vpop.f32.mrf.mxu0 }
 0xd60   :  { %5329 = vst [vmem:[#allocation7 + $0x88] sm:$0xff] %v5253_v1  ;;  %v5274_v17 = vadd.f32 %v5912_v11, %v10226_v10 }
 0xd61   :  { %v5265_v54 = vpop.f32.mrf.mxu0 }
 0xd62   :  { %5334 = vst [vmem:[#allocation7 + $0xb0] sm:$0xff] %v5274_v17  ;;  %v5266_v41 = vadd.f32 %v5265_v54, %v10226_v10 }
 0xd63   :  { %v5913_v0 = vpop.f32.mrf.mxu0 }
 0xd64   :  { %5332 = vst [vmem:[#allocation7 + $0xa0] sm:$0xff] %v5266_v41  ;;  %v5277_v15 = vadd.f32 %v5913_v0, %v10226_v10 }
 0xd65   :  { %v5268_v13 = vpop.f32.mrf.mxu0 }
 0xd66   :  { %5335 = vst [vmem:[#allocation7 + $0xb8] sm:$0xff] %v5277_v15  ;;  %v5269_v23 = vadd.f32 %v5268_v13, %v10226_v10 }
 0xd67   :  { %v5916_v59 = vpop.f32.mrf.mxu0 }
 0xd68   :  { %5333 = vst [vmem:[#allocation7 + $0xa8] sm:$0xff] %v5269_v23  ;;  %v5290_v38 = vadd.f32 %v5916_v59, %v10226_v10 }
 0xd69   :  { %v5281_v51 = vpop.f32.mrf.mxu0 }
 0xd6a   :  { %5338 = vst [vmem:[#allocation7 + $0xd0] sm:$0xff] %v5290_v38  ;;  %v5282_v8 = vadd.f32 %v5281_v51, %v10226_v10 }
 0xd6b   :  { %v5917_v24 = vpop.f32.mrf.mxu0 }
 0xd6c   :  { %5336 = vst [vmem:[#allocation7 + $0xc0] sm:$0xff] %v5282_v8  ;;  %v5293_v57 = vadd.f32 %v5917_v24, %v10226_v10 }
 0xd6d   :  { %v5284_v20 = vpop.f32.mrf.mxu0 }
 0xd6e   :  { %5339 = vst [vmem:[#allocation7 + $0xd8] sm:$0xff] %v5293_v57  ;;  %v5285_v47 = vadd.f32 %v5284_v20, %v10226_v10 }
 0xd6f   :  { %v5920_v32 = vpop.f32.mrf.mxu0 }
 0xd70   :  { %5337 = vst [vmem:[#allocation7 + $0xc8] sm:$0xff] %v5285_v47  ;;  %v5306_v60 = vadd.f32 %v5920_v32, %v10226_v10 }
 0xd71   :  { %v5297_v5 = vpop.f32.mrf.mxu0 }
 0xd72   :  { %5342 = vst [vmem:[#allocation7 + $0xf0] sm:$0xff] %v5306_v60  ;;  %v5298_v50 = vadd.f32 %v5297_v5, %v10226_v10 }
 0xd73   :  { %v5921_v56 = vpop.f32.mrf.mxu0 }
 0xd74   :  { %5340 = vst [vmem:[#allocation7 + $0xe0] sm:$0xff] %v5298_v50  ;;  %v5309_v7 = vadd.f32 %v5921_v56, %v10226_v10 }
 0xd75   :  { %v5300_v14 = vpop.f32.mrf.mxu0 }
 0xd76   :  { %5343 = vst [vmem:[#allocation7 + $0xf8] sm:$0xff] %v5309_v7  ;;  %v5301_v62 = vadd.f32 %v5300_v14, %v10226_v10 }
 0xd78   :  { %5341 = vst [vmem:[#allocation7 + $0xe8] sm:$0xff] %v5301_v62 }
 0xd79   :  { %6436 = shalt.err (!%p6433_p0)
}
 0xd7a   :  { %5355 = dma.vmem_to_hbm [thread:$0]  %s5350_s1, 4096, %s10268_s2, [#allocation4], %s6452_s12, %s6452_s12, %s6453_s13  }
 0xd7b   :  { %6449 = dma.done.wait [#allocation4], 4096  }
 0xd7c   :  { %6450 = vsyncadd [#allocation4], 4294963200 }
 0xd7d   :  { %5359 = vsyncpa [#allocation3], 1 }
 0xd7e   :  { %5360 = vsyncpa [#allocation6], 1 }
 0xd7f   :  { %5361 = vsyncpa [#allocation4], 1 }

</bundles_post_ra>
